<compile_context>
chip_gen: v6e
topology: v6e:2x2x1
jax: 0.10.0
libtpu: 0.0.40
codegen_flags: <defaults>
</compile_context>

<pallas_src>
from functools import partial

import numpy as np
import jax
import jax.numpy as jnp
from jax.experimental import pallas as pl
from jax.experimental.pallas import tpu as pltpu

BN_EPS = 1e-5


# ------------------------------ Pallas kernel ------------------------------ #

def _fused_dilated_kernel(x_ref, w_ref, g_ref, b_ref, v_ref, skips_ref,
                          canvas, xb16, x9, acc, *,
                          offsets_per_layer, margin, q, inv_m):
    """All layers fused: dilated conv + batch-stat BN + ReLU + residual.

    x_ref     : [C, ext]  f32  input activation canvas (zero ring + margins)
    w_ref     : [L, C, 9C] bf16 stacked conv taps; column block t = tap
                (dy, dx) with t = 3*dy + dx (conv bias omitted: batch-stat BN
                cancels any per-channel pre-BN constant exactly)
    g_ref     : [L, C, 1] f32 BN gamma      b_ref : [L, C, 1] f32 BN beta
    v_ref     : [1, q]    f32 validity mask (1 at real pixels, 0 on pad ring)
    skips_ref : [L, C, q] f32 per-layer skip slabs (interior only, no margins)
    canvas    : [C, ext]  f32  scratch - activation carried across layers
    xb16      : [C, ext]  bf16 scratch - one bf16 cast of the canvas per layer
    x9        : [9C, q]   bf16 scratch - stacked shifted tap slab
    acc       : [C, q]    f32  scratch - conv result (scratch-backed)
    """
    n_layers = len(offsets_per_layer)
    c = g_ref.shape[1]
    v = v_ref[...]

    # Canvas stays resident in VMEM for the whole call (no inter-layer HBM).
    # Its margins / pad ring are zero from the input and stay zero: interior
    # writes below are masked by v and the margins are never re-stored.
    canvas[...] = x_ref[...]

    for l, offs in enumerate(offsets_per_layer):        # static Python loop
        # ---- one bf16 cast per layer (not one per tap) ----------------------
        xb16[...] = canvas[...].astype(jnp.bfloat16)

        # ---- stack the nine dilated taps as sublane blocks of X9 [9C, q] ----
        # (each tap is a pure static lane-offset slice of the padded canvas)
        for t, d in enumerate(offs):
            x9[t * c:(t + 1) * c, :] = xb16[:, margin + d: margin + d + q]

        # ---- dilated 3x3 conv == ONE MXU matmul with K = 9C ------------------
        acc[...] = jnp.dot(w_ref[l], x9[...],
                           preferred_element_type=jnp.float32)

        # ---- BatchNorm2d, train-mode batch stats over the valid pixels -------
        # (single-pass E[y^2] - E[y]^2; fine at f32 / unit activation scale)
        a = acc[...]
        av = a * v                                     # zero out pad-ring pixels
        s1 = jnp.sum(av, axis=1, keepdims=True)        # [C, 1] sum
        s2 = jnp.sum(av * a, axis=1, keepdims=True)    # [C, 1] sum of squares
        mean = s1 * inv_m
        var = s2 * inv_m - mean * mean
        scale = g_ref[l] * jax.lax.rsqrt(var + BN_EPS)
        shift = b_ref[l] - mean * scale

        # ---- BN affine + ReLU + residual; keep pad ring exactly zero ---------
        # Dropout2d(p=0) is the identity.
        # TODO(synk): train-mode Dropout2d with p > 0 is not implemented.
        z = jnp.maximum(acc[...] * scale + shift, 0.0)
        new = (canvas[:, margin: margin + q] + z) * v
        skips_ref[l] = new
        if l + 1 < n_layers:               # last layer's canvas update unused
            canvas[:, margin: margin + q] = new


# ------------------------------ JAX wrapper -------------------------------- #

def dilated_convolutions_forward(x_nchw, params, dilations, dropout_p=0.0):
    """Pallas forward pass matching DilatedConvolutions.forward."""
    # TODO(synk): only dropout_p == 0.0 (identity Dropout2d) is supported.
    N, C, H, W = x_nchw.shape
    L = len(dilations)
    P = max(dilations)                        # canvas pad covers every dilation
    Hc, Wc = H + 2 * P, W + 2 * P
    Qc = N * Hc * Wc                          # canvas pixels (lane axis length)
    max_shift = P * (Wc + 1)
    margin = ((max_shift + 127) // 128) * 128   # lane-aligned margin
    ext = margin + Qc + margin

    # Lane-dense input canvas slab [C, N*Hc*Wc] (+ zero margins), built once.
    xc = jnp.pad(jnp.transpose(x_nchw, (1, 0, 2, 3)).astype(jnp.float32),
                 ((0, 0), (0, 0), (P, P), (P, P)))          # [C, N, Hc, Wc]
    x_ext = jnp.pad(xc.reshape(C, Qc), ((0, 0), (margin, margin)))

    # Validity mask: 1.0 at real pixel positions, 0.0 on the pad ring.
    vh = (np.arange(Hc) >= P) & (np.arange(Hc) < P + H)
    vw = (np.arange(Wc) >= P) & (np.arange(Wc) < P + W)
    v_img = np.outer(vh, vw).astype(np.float32)              # [Hc, Wc]
    v = jnp.asarray(np.tile(v_img.reshape(-1), N).reshape(1, Qc))

    inv_m = 1.0 / float(N * H * W)

    # Static per-layer tap lane-offsets: tap t = 3*dy + dx shifts by
    # (dy-1, dx-1)*s on the padded image, i.e. (dy-1)*s*Wc + (dx-1)*s flat.
    offsets_per_layer = tuple(
        tuple((dy - 1) * s * Wc + (dx - 1) * s
              for dy in range(3) for dx in range(3))
        for s in dilations)

    # Stacked parameters (single operands). torch weight [O, I, kh, kw] ->
    # [O, 9*I] so column block t matches X9 row block t.  Conv bias is
    # intentionally NOT passed: batch-stat BN subtracts it exactly.
    w_all = jnp.stack([jnp.transpose(w, (0, 2, 3, 1)).reshape(C, 9 * C)
                       for (w, b, g, be) in params]).astype(jnp.bfloat16)
    g_all = jnp.stack([g.reshape(C, 1) for (w, b, g, be) in params])
    b_all = jnp.stack([be.reshape(C, 1) for (w, b, g, be) in params])

    kern = partial(_fused_dilated_kernel,
                   offsets_per_layer=offsets_per_layer,
                   margin=margin, q=Qc, inv_m=inv_m)
    vmem = pltpu.MemorySpace.VMEM
    skips_slab = pl.pallas_call(
        kern,
        out_shape=jax.ShapeDtypeStruct((L, C, Qc), jnp.float32),
        in_specs=[pl.BlockSpec(memory_space=vmem)] * 5,
        out_specs=pl.BlockSpec(memory_space=vmem),
        scratch_shapes=[
            pltpu.VMEM((C, ext), jnp.float32),       # activation canvas
            pltpu.VMEM((C, ext), jnp.bfloat16),      # bf16 canvas
            pltpu.VMEM((9 * C, Qc), jnp.bfloat16),   # stacked tap slab X9
            pltpu.VMEM((C, Qc), jnp.float32),        # conv accumulator
        ],
    )(x_ext, w_all, g_all, b_all, v)

    def _extract(slab):  # [C, Qc] -> NCHW (wrapper-side layout plumbing only)
        body = slab.reshape(C, N, Hc, Wc)
        return jnp.transpose(body[:, :, P:P + H, P:P + W], (1, 0, 2, 3))

    skips = [_extract(skips_slab[l]) for l in range(L)]
    return skips[-1], skips


# --------------------------- parameter creation ----------------------------- #

def init_params(key, n_channels, n_convolutions, kernel_size=3):
    params = []
    fan_in = n_channels * kernel_size * kernel_size
    for k in jax.random.split(key, n_convolutions):
        kw, kb, kg, kbe = jax.random.split(k, 4)
        w = jax.random.normal(
            kw, (n_channels, n_channels, kernel_size, kernel_size),
            jnp.float32) / np.sqrt(fan_in)
        b = jax.random.uniform(kb, (n_channels,), jnp.float32,
                               -1.0, 1.0) / np.sqrt(fan_in)
        gamma = 1.0 + 0.1 * jax.random.normal(kg, (n_channels,), jnp.float32)
        beta = 0.1 * jax.random.normal(kbe, (n_channels,), jnp.float32)
        params.append((w, b, gamma, beta))
    return params


# --------------------------- pure-JAX reference ------------------------------ #

def dilated_convolutions_forward_ref(x_nchw, params, dilations):
    """Reference forward.  Mirrors the kernel's bf16 MXU operand rounding
    (f32 accumulation) so the comparison isolates structural correctness."""
    x = jnp.transpose(x_nchw, (0, 2, 3, 1)).astype(jnp.float32)   # NHWC
    skips = []
    for (w, b, gamma, beta), s in zip(params, dilations):
        x_in = x
        xq = x.astype(jnp.bfloat16).astype(jnp.float32)
        wq = w.astype(jnp.bfloat16).astype(jnp.float32)
        w_hwio = jnp.transpose(wq, (2, 3, 1, 0))
        y = jax.lax.conv_general_dilated(
            xq, w_hwio, window_strides=(1, 1),
            padding=((s, s), (s, s)), rhs_dilation=(s, s),
            dimension_numbers=("NHWC", "HWIO", "NHWC"))
        y = y + b.reshape(1, 1, 1, -1)               # conv bias (kernel drops it;
        mean = jnp.mean(y, axis=(0, 1, 2), keepdims=True)   # BN cancels it)
        var = jnp.mean((y - mean) ** 2, axis=(0, 1, 2), keepdims=True)
        y = (y - mean) * jax.lax.rsqrt(var + BN_EPS)
        y = y * gamma.reshape(1, 1, 1, -1) + beta.reshape(1, 1, 1, -1)
        y = jnp.maximum(y, 0.0)                      # ReLU; Dropout2d(p=0) = id
        x = x_in + y
        skips.append(jnp.transpose(x, (0, 3, 1, 2)))
    return skips[-1], skips


# ---------------------------------- main ------------------------------------ #

if __name__ == "__main__":
    key = jax.random.PRNGKey(0)
    kx, kp = jax.random.split(key)

    # Small shapes consistent with the module.
    N, C, H, W = 2, 16, 16, 16
    n_convolutions = 3
    dilations = [2 ** (k + 1) for k in range(n_convolutions)]   # [2, 4, 8]
    dropout_p = 0.0

    x = jax.random.normal(kx, (N, C, H, W), jnp.float32)
    params = init_params(kp, C, n_convolutions)

    out, skips = dilated_convolutions_forward(x, params, dilations, dropout_p)
    out = jax.block_until_ready(out)
    skips = [jax.block_until_ready(s) for s in skips]

    # Shape checks (matches PyTorch NCHW outputs).
    assert out.shape == (N, C, H, W)
    assert len(skips) == n_convolutions
    for s_ in skips:
        assert s_.shape == (N, C, H, W)

    # Numerical check against the pure-JAX reference.
    out_ref, skips_ref = dilated_convolutions_forward_ref(x, params, dilations)
    np.testing.assert_allclose(np.asarray(out), np.asarray(out_ref),
                               atol=3e-2, rtol=3e-2)
    for got, ref in zip(skips, skips_ref):
        np.testing.assert_allclose(np.asarray(got), np.asarray(ref),
                                   atol=3e-2, rtol=3e-2)

    print("KERNEL_OK")
</pallas_src>

<mosaic_0001>
module attributes {stable_mosaic.version = 11 : i64} {
  func.func @_fused_dilated_kernel(%arg0: memref<16x2816xf32, #tpu.memory_space<vmem>>, %arg1: memref<3x16x144xbf16, #tpu.memory_space<vmem>>, %arg2: memref<3x16x1xf32, #tpu.memory_space<vmem>>, %arg3: memref<3x16x1xf32, #tpu.memory_space<vmem>>, %arg4: memref<1x2048xf32, #tpu.memory_space<vmem>>, %arg5: memref<3x16x2048xf32, #tpu.memory_space<vmem>>, %arg6: memref<16x2816xf32, #tpu.memory_space<vmem>>, %arg7: memref<16x2816xbf16, #tpu.memory_space<vmem>>, %arg8: memref<144x2048xbf16, #tpu.memory_space<vmem>>, %arg9: memref<16x2048xf32, #tpu.memory_space<vmem>>) attributes {dimension_semantics = [], scalar_prefetch = 0 : i64, scratch_operands = 4 : i64, tpu.core_type = #tpu.core_type<tc>} {
    %c0 = arith.constant 0 : index
    %c0_0 = arith.constant 0 : index
    %0 = vector.load %arg4[%c0, %c0_0] : memref<1x2048xf32, #tpu.memory_space<vmem>>, vector<1x2048xf32>
    %c0_1 = arith.constant 0 : index
    %c0_2 = arith.constant 0 : index
    %1 = vector.load %arg0[%c0_1, %c0_2] : memref<16x2816xf32, #tpu.memory_space<vmem>>, vector<16x2816xf32>
    %c0_3 = arith.constant 0 : index
    %c0_4 = arith.constant 0 : index
    %2 = vector.load %arg6[%c0_3, %c0_4] : memref<16x2816xf32, #tpu.memory_space<vmem>>, vector<16x2816xf32>
    tpu.vector_store %arg6[%c0_3, %c0_4], %1 {strides = array<i32>} : memref<16x2816xf32, #tpu.memory_space<vmem>>, vector<16x2816xf32>,
    %c0_5 = arith.constant 0 : index
    %c0_6 = arith.constant 0 : index
    %3 = vector.load %arg6[%c0_5, %c0_6] : memref<16x2816xf32, #tpu.memory_space<vmem>>, vector<16x2816xf32>
    %4 = arith.truncf %3 : vector<16x2816xf32> to vector<16x2816xbf16>
    %c0_7 = arith.constant 0 : index
    %c0_8 = arith.constant 0 : index
    %5 = vector.load %arg7[%c0_7, %c0_8] : memref<16x2816xbf16, #tpu.memory_space<vmem>>, vector<16x2816xbf16>
    tpu.vector_store %arg7[%c0_7, %c0_8], %4 {strides = array<i32>} : memref<16x2816xbf16, #tpu.memory_space<vmem>>, vector<16x2816xbf16>,
    %c0_9 = arith.constant 0 : index
    %c318 = arith.constant 318 : index
    %6 = vector.load %arg7[%c0_9, %c318] : memref<16x2816xbf16, #tpu.memory_space<vmem>>, vector<16x2048xbf16>
    %c0_10 = arith.constant 0 : index
    %c0_11 = arith.constant 0 : index
    %7 = vector.load %arg8[%c0_10, %c0_11] : memref<144x2048xbf16, #tpu.memory_space<vmem>>, vector<16x2048xbf16>
    tpu.vector_store %arg8[%c0_10, %c0_11], %6 {strides = array<i32>} : memref<144x2048xbf16, #tpu.memory_space<vmem>>, vector<16x2048xbf16>,
    %c0_12 = arith.constant 0 : index
    %c320 = arith.constant 320 : index
    %8 = vector.load %arg7[%c0_12, %c320] : memref<16x2816xbf16, #tpu.memory_space<vmem>>, vector<16x2048xbf16>
    %c16 = arith.constant 16 : index
    %c0_13 = arith.constant 0 : index
    %9 = vector.load %arg8[%c16, %c0_13] : memref<144x2048xbf16, #tpu.memory_space<vmem>>, vector<16x2048xbf16>
    tpu.vector_store %arg8[%c16, %c0_13], %8 {strides = array<i32>} : memref<144x2048xbf16, #tpu.memory_space<vmem>>, vector<16x2048xbf16>,
    %c0_14 = arith.constant 0 : index
    %c322 = arith.constant 322 : index
    %10 = vector.load %arg7[%c0_14, %c322] : memref<16x2816xbf16, #tpu.memory_space<vmem>>, vector<16x2048xbf16>
    %c32 = arith.constant 32 : index
    %c0_15 = arith.constant 0 : index
    %11 = vector.load %arg8[%c32, %c0_15] : memref<144x2048xbf16, #tpu.memory_space<vmem>>, vector<16x2048xbf16>
    tpu.vector_store %arg8[%c32, %c0_15], %10 {strides = array<i32>} : memref<144x2048xbf16, #tpu.memory_space<vmem>>, vector<16x2048xbf16>,
    %c0_16 = arith.constant 0 : index
    %c382 = arith.constant 382 : index
    %12 = vector.load %arg7[%c0_16, %c382] : memref<16x2816xbf16, #tpu.memory_space<vmem>>, vector<16x2048xbf16>
    %c48 = arith.constant 48 : index
    %c0_17 = arith.constant 0 : index
    %13 = vector.load %arg8[%c48, %c0_17] : memref<144x2048xbf16, #tpu.memory_space<vmem>>, vector<16x2048xbf16>
    tpu.vector_store %arg8[%c48, %c0_17], %12 {strides = array<i32>} : memref<144x2048xbf16, #tpu.memory_space<vmem>>, vector<16x2048xbf16>,
    %c0_18 = arith.constant 0 : index
    %c384 = arith.constant 384 : index
    %14 = vector.load %arg7[%c0_18, %c384] : memref<16x2816xbf16, #tpu.memory_space<vmem>>, vector<16x2048xbf16>
    %c64 = arith.constant 64 : index
    %c0_19 = arith.constant 0 : index
    %15 = vector.load %arg8[%c64, %c0_19] : memref<144x2048xbf16, #tpu.memory_space<vmem>>, vector<16x2048xbf16>
    tpu.vector_store %arg8[%c64, %c0_19], %14 {strides = array<i32>} : memref<144x2048xbf16, #tpu.memory_space<vmem>>, vector<16x2048xbf16>,
    %c0_20 = arith.constant 0 : index
    %c386 = arith.constant 386 : index
    %16 = vector.load %arg7[%c0_20, %c386] : memref<16x2816xbf16, #tpu.memory_space<vmem>>, vector<16x2048xbf16>
    %c80 = arith.constant 80 : index
    %c0_21 = arith.constant 0 : index
    %17 = vector.load %arg8[%c80, %c0_21] : memref<144x2048xbf16, #tpu.memory_space<vmem>>, vector<16x2048xbf16>
    tpu.vector_store %arg8[%c80, %c0_21], %16 {strides = array<i32>} : memref<144x2048xbf16, #tpu.memory_space<vmem>>, vector<16x2048xbf16>,
    %c0_22 = arith.constant 0 : index
    %c446 = arith.constant 446 : index
    %18 = vector.load %arg7[%c0_22, %c446] : memref<16x2816xbf16, #tpu.memory_space<vmem>>, vector<16x2048xbf16>
    %c96 = arith.constant 96 : index
    %c0_23 = arith.constant 0 : index
    %19 = vector.load %arg8[%c96, %c0_23] : memref<144x2048xbf16, #tpu.memory_space<vmem>>, vector<16x2048xbf16>
    tpu.vector_store %arg8[%c96, %c0_23], %18 {strides = array<i32>} : memref<144x2048xbf16, #tpu.memory_space<vmem>>, vector<16x2048xbf16>,
    %c0_24 = arith.constant 0 : index
    %c448 = arith.constant 448 : index
    %20 = vector.load %arg7[%c0_24, %c448] : memref<16x2816xbf16, #tpu.memory_space<vmem>>, vector<16x2048xbf16>
    %c112 = arith.constant 112 : index
    %c0_25 = arith.constant 0 : index
    %21 = vector.load %arg8[%c112, %c0_25] : memref<144x2048xbf16, #tpu.memory_space<vmem>>, vector<16x2048xbf16>
    tpu.vector_store %arg8[%c112, %c0_25], %20 {strides = array<i32>} : memref<144x2048xbf16, #tpu.memory_space<vmem>>, vector<16x2048xbf16>,
    %c0_26 = arith.constant 0 : index
    %c450 = arith.constant 450 : index
    %22 = vector.load %arg7[%c0_26, %c450] : memref<16x2816xbf16, #tpu.memory_space<vmem>>, vector<16x2048xbf16>
    %c128 = arith.constant 128 : index
    %c0_27 = arith.constant 0 : index
    %23 = vector.load %arg8[%c128, %c0_27] : memref<144x2048xbf16, #tpu.memory_space<vmem>>, vector<16x2048xbf16>
    tpu.vector_store %arg8[%c128, %c0_27], %22 {strides = array<i32>} : memref<144x2048xbf16, #tpu.memory_space<vmem>>, vector<16x2048xbf16>,
    %c0_28 = arith.constant 0 : index
    %c0_29 = arith.constant 0 : index
    %c0_30 = arith.constant 0 : index
    %24 = vector.load %arg1[%c0_28, %c0_29, %c0_30] : memref<3x16x144xbf16, #tpu.memory_space<vmem>>, vector<1x16x144xbf16>
    %25 = vector.shape_cast %24 : vector<1x16x144xbf16> to vector<16x144xbf16>
    %c0_31 = arith.constant 0 : index
    %c0_32 = arith.constant 0 : index
    %26 = vector.load %arg8[%c0_31, %c0_32] : memref<144x2048xbf16, #tpu.memory_space<vmem>>, vector<144x2048xbf16>
    %cst = arith.constant dense<0.000000e+00> : vector<16x2048xf32>
    %27 = tpu.matmul %25, %26, %cst {dimension_numbers = #tpu.dot_dimension_numbers<[1], [0], [0], [1], [0, 0, 1, 1], [], []>} : vector<16x144xbf16>, vector<144x2048xbf16>, vector<16x2048xf32> -> vector<16x2048xf32>
    %c0_33 = arith.constant 0 : index
    %c0_34 = arith.constant 0 : index
    %28 = vector.load %arg9[%c0_33, %c0_34] : memref<16x2048xf32, #tpu.memory_space<vmem>>, vector<16x2048xf32>
    tpu.vector_store %arg9[%c0_33, %c0_34], %27 {strides = array<i32>} : memref<16x2048xf32, #tpu.memory_space<vmem>>, vector<16x2048xf32>,
    %c0_35 = arith.constant 0 : index
    %c0_36 = arith.constant 0 : index
    %29 = vector.load %arg9[%c0_35, %c0_36] : memref<16x2048xf32, #tpu.memory_space<vmem>>, vector<16x2048xf32>
    %30 = vector.broadcast %0 : vector<1x2048xf32> to vector<16x2048xf32>
    %31 = arith.mulf %29, %30 : vector<16x2048xf32>
    %cst_37 = arith.constant dense<0.000000e+00> : vector<16xf32>
    %32 = vector.multi_reduction <add>, %31, %cst_37 [1] : vector<16x2048xf32> to vector<16xf32>
    %33 = vector.shape_cast %32 : vector<16xf32> to vector<16x1xf32>
    %34 = arith.mulf %31, %29 : vector<16x2048xf32>
    %cst_38 = arith.constant dense<0.000000e+00> : vector<16xf32>
    %35 = vector.multi_reduction <add>, %34, %cst_38 [1] : vector<16x2048xf32> to vector<16xf32>
    %36 = vector.shape_cast %35 : vector<16xf32> to vector<16x1xf32>
    %cst_39 = arith.constant 0.001953125 : f32
    %37 = vector.broadcast %cst_39 : f32 to vector<16x1xf32>
    %38 = arith.mulf %33, %37 : vector<16x1xf32>
    %cst_40 = arith.constant 0.001953125 : f32
    %39 = vector.broadcast %cst_40 : f32 to vector<16x1xf32>
    %40 = arith.mulf %36, %39 : vector<16x1xf32>
    %41 = arith.mulf %38, %38 : vector<16x1xf32>
    %42 = arith.subf %40, %41 : vector<16x1xf32>
    %c0_41 = arith.constant 0 : index
    %c0_42 = arith.constant 0 : index
    %c0_43 = arith.constant 0 : index
    %43 = vector.load %arg2[%c0_41, %c0_42, %c0_43] : memref<3x16x1xf32, #tpu.memory_space<vmem>>, vector<1x16x1xf32>
    %44 = vector.shape_cast %43 : vector<1x16x1xf32> to vector<16x1xf32>
    %cst_44 = arith.constant 9.99999974E-6 : f32
    %45 = vector.broadcast %cst_44 : f32 to vector<16x1xf32>
    %46 = arith.addf %42, %45 : vector<16x1xf32>
    %47 = math.rsqrt %46 : vector<16x1xf32>
    %48 = arith.mulf %44, %47 : vector<16x1xf32>
    %c0_45 = arith.constant 0 : index
    %c0_46 = arith.constant 0 : index
    %c0_47 = arith.constant 0 : index
    %49 = vector.load %arg3[%c0_45, %c0_46, %c0_47] : memref<3x16x1xf32, #tpu.memory_space<vmem>>, vector<1x16x1xf32>
    %50 = vector.shape_cast %49 : vector<1x16x1xf32> to vector<16x1xf32>
    %51 = arith.mulf %38, %48 : vector<16x1xf32>
    %52 = arith.subf %50, %51 : vector<16x1xf32>
    %c0_48 = arith.constant 0 : index
    %c0_49 = arith.constant 0 : index
    %53 = vector.load %arg9[%c0_48, %c0_49] : memref<16x2048xf32, #tpu.memory_space<vmem>>, vector<16x2048xf32>
    %54 = vector.broadcast %48 : vector<16x1xf32> to vector<16x2048xf32>
    %55 = arith.mulf %53, %54 : vector<16x2048xf32>
    %56 = vector.broadcast %52 : vector<16x1xf32> to vector<16x2048xf32>
    %57 = arith.addf %55, %56 : vector<16x2048xf32>
    %cst_50 = arith.constant 0.000000e+00 : f32
    %58 = vector.broadcast %cst_50 : f32 to vector<16x2048xf32>
    %59 = arith.maximumf %57, %58 : vector<16x2048xf32>
    %c0_51 = arith.constant 0 : index
    %c384_52 = arith.constant 384 : index
    %60 = vector.load %arg6[%c0_51, %c384_52] : memref<16x2816xf32, #tpu.memory_space<vmem>>, vector<16x2048xf32>
    %61 = arith.addf %60, %59 : vector<16x2048xf32>
    %62 = vector.broadcast %0 : vector<1x2048xf32> to vector<16x2048xf32>
    %63 = arith.mulf %61, %62 : vector<16x2048xf32>
    %c0_53 = arith.constant 0 : index
    %c0_54 = arith.constant 0 : index
    %c0_55 = arith.constant 0 : index
    %64 = vector.load %arg5[%c0_53, %c0_54, %c0_55] : memref<3x16x2048xf32, #tpu.memory_space<vmem>>, vector<1x16x2048xf32>
    %65 = vector.shape_cast %64 : vector<1x16x2048xf32> to vector<16x2048xf32>
    %66 = vector.shape_cast %63 : vector<16x2048xf32> to vector<1x16x2048xf32>
    tpu.vector_store %arg5[%c0_53, %c0_54, %c0_55], %66 {strides = array<i32>} : memref<3x16x2048xf32, #tpu.memory_space<vmem>>, vector<1x16x2048xf32>,
    %c0_56 = arith.constant 0 : index
    %c384_57 = arith.constant 384 : index
    %67 = vector.load %arg6[%c0_56, %c384_57] : memref<16x2816xf32, #tpu.memory_space<vmem>>, vector<16x2048xf32>
    tpu.vector_store %arg6[%c0_56, %c384_57], %63 {strides = array<i32>} : memref<16x2816xf32, #tpu.memory_space<vmem>>, vector<16x2048xf32>,
    %c0_58 = arith.constant 0 : index
    %c0_59 = arith.constant 0 : index
    %68 = vector.load %arg6[%c0_58, %c0_59] : memref<16x2816xf32, #tpu.memory_space<vmem>>, vector<16x2816xf32>
    %69 = arith.truncf %68 : vector<16x2816xf32> to vector<16x2816xbf16>
    %c0_60 = arith.constant 0 : index
    %c0_61 = arith.constant 0 : index
    %70 = vector.load %arg7[%c0_60, %c0_61] : memref<16x2816xbf16, #tpu.memory_space<vmem>>, vector<16x2816xbf16>
    tpu.vector_store %arg7[%c0_60, %c0_61], %69 {strides = array<i32>} : memref<16x2816xbf16, #tpu.memory_space<vmem>>, vector<16x2816xbf16>,
    %c0_62 = arith.constant 0 : index
    %c252 = arith.constant 252 : index
    %71 = vector.load %arg7[%c0_62, %c252] : memref<16x2816xbf16, #tpu.memory_space<vmem>>, vector<16x2048xbf16>
    %c0_63 = arith.constant 0 : index
    %c0_64 = arith.constant 0 : index
    %72 = vector.load %arg8[%c0_63, %c0_64] : memref<144x2048xbf16, #tpu.memory_space<vmem>>, vector<16x2048xbf16>
    tpu.vector_store %arg8[%c0_63, %c0_64], %71 {strides = array<i32>} : memref<144x2048xbf16, #tpu.memory_space<vmem>>, vector<16x2048xbf16>,
    %c0_65 = arith.constant 0 : index
    %c256 = arith.constant 256 : index
    %73 = vector.load %arg7[%c0_65, %c256] : memref<16x2816xbf16, #tpu.memory_space<vmem>>, vector<16x2048xbf16>
    %c16_66 = arith.constant 16 : index
    %c0_67 = arith.constant 0 : index
    %74 = vector.load %arg8[%c16_66, %c0_67] : memref<144x2048xbf16, #tpu.memory_space<vmem>>, vector<16x2048xbf16>
    tpu.vector_store %arg8[%c16_66, %c0_67], %73 {strides = array<i32>} : memref<144x2048xbf16, #tpu.memory_space<vmem>>, vector<16x2048xbf16>,
    %c0_68 = arith.constant 0 : index
    %c260 = arith.constant 260 : index
    %75 = vector.load %arg7[%c0_68, %c260] : memref<16x2816xbf16, #tpu.memory_space<vmem>>, vector<16x2048xbf16>
    %c32_69 = arith.constant 32 : index
    %c0_70 = arith.constant 0 : index
    %76 = vector.load %arg8[%c32_69, %c0_70] : memref<144x2048xbf16, #tpu.memory_space<vmem>>, vector<16x2048xbf16>
    tpu.vector_store %arg8[%c32_69, %c0_70], %75 {strides = array<i32>} : memref<144x2048xbf16, #tpu.memory_space<vmem>>, vector<16x2048xbf16>,
    %c0_71 = arith.constant 0 : index
    %c380 = arith.constant 380 : index
    %77 = vector.load %arg7[%c0_71, %c380] : memref<16x2816xbf16, #tpu.memory_space<vmem>>, vector<16x2048xbf16>
    %c48_72 = arith.constant 48 : index
    %c0_73 = arith.constant 0 : index
    %78 = vector.load %arg8[%c48_72, %c0_73] : memref<144x2048xbf16, #tpu.memory_space<vmem>>, vector<16x2048xbf16>
    tpu.vector_store %arg8[%c48_72, %c0_73], %77 {strides = array<i32>} : memref<144x2048xbf16, #tpu.memory_space<vmem>>, vector<16x2048xbf16>,
    %c0_74 = arith.constant 0 : index
    %c384_75 = arith.constant 384 : index
    %79 = vector.load %arg7[%c0_74, %c384_75] : memref<16x2816xbf16, #tpu.memory_space<vmem>>, vector<16x2048xbf16>
    %c64_76 = arith.constant 64 : index
    %c0_77 = arith.constant 0 : index
    %80 = vector.load %arg8[%c64_76, %c0_77] : memref<144x2048xbf16, #tpu.memory_space<vmem>>, vector<16x2048xbf16>
    tpu.vector_store %arg8[%c64_76, %c0_77], %79 {strides = array<i32>} : memref<144x2048xbf16, #tpu.memory_space<vmem>>, vector<16x2048xbf16>,
    %c0_78 = arith.constant 0 : index
    %c388 = arith.constant 388 : index
    %81 = vector.load %arg7[%c0_78, %c388] : memref<16x2816xbf16, #tpu.memory_space<vmem>>, vector<16x2048xbf16>
    %c80_79 = arith.constant 80 : index
    %c0_80 = arith.constant 0 : index
    %82 = vector.load %arg8[%c80_79, %c0_80] : memref<144x2048xbf16, #tpu.memory_space<vmem>>, vector<16x2048xbf16>
    tpu.vector_store %arg8[%c80_79, %c0_80], %81 {strides = array<i32>} : memref<144x2048xbf16, #tpu.memory_space<vmem>>, vector<16x2048xbf16>,
    %c0_81 = arith.constant 0 : index
    %c508 = arith.constant 508 : index
    %83 = vector.load %arg7[%c0_81, %c508] : memref<16x2816xbf16, #tpu.memory_space<vmem>>, vector<16x2048xbf16>
    %c96_82 = arith.constant 96 : index
    %c0_83 = arith.constant 0 : index
    %84 = vector.load %arg8[%c96_82, %c0_83] : memref<144x2048xbf16, #tpu.memory_space<vmem>>, vector<16x2048xbf16>
    tpu.vector_store %arg8[%c96_82, %c0_83], %83 {strides = array<i32>} : memref<144x2048xbf16, #tpu.memory_space<vmem>>, vector<16x2048xbf16>,
    %c0_84 = arith.constant 0 : index
    %c512 = arith.constant 512 : index
    %85 = vector.load %arg7[%c0_84, %c512] : memref<16x2816xbf16, #tpu.memory_space<vmem>>, vector<16x2048xbf16>
    %c112_85 = arith.constant 112 : index
    %c0_86 = arith.constant 0 : index
    %86 = vector.load %arg8[%c112_85, %c0_86] : memref<144x2048xbf16, #tpu.memory_space<vmem>>, vector<16x2048xbf16>
    tpu.vector_store %arg8[%c112_85, %c0_86], %85 {strides = array<i32>} : memref<144x2048xbf16, #tpu.memory_space<vmem>>, vector<16x2048xbf16>,
    %c0_87 = arith.constant 0 : index
    %c516 = arith.constant 516 : index
    %87 = vector.load %arg7[%c0_87, %c516] : memref<16x2816xbf16, #tpu.memory_space<vmem>>, vector<16x2048xbf16>
    %c128_88 = arith.constant 128 : index
    %c0_89 = arith.constant 0 : index
    %88 = vector.load %arg8[%c128_88, %c0_89] : memref<144x2048xbf16, #tpu.memory_space<vmem>>, vector<16x2048xbf16>
    tpu.vector_store %arg8[%c128_88, %c0_89], %87 {strides = array<i32>} : memref<144x2048xbf16, #tpu.memory_space<vmem>>, vector<16x2048xbf16>,
    %c1 = arith.constant 1 : index
    %c0_90 = arith.constant 0 : index
    %c0_91 = arith.constant 0 : index
    %89 = vector.load %arg1[%c1, %c0_90, %c0_91] : memref<3x16x144xbf16, #tpu.memory_space<vmem>>, vector<1x16x144xbf16>
    %90 = vector.shape_cast %89 : vector<1x16x144xbf16> to vector<16x144xbf16>
    %c0_92 = arith.constant 0 : index
    %c0_93 = arith.constant 0 : index
    %91 = vector.load %arg8[%c0_92, %c0_93] : memref<144x2048xbf16, #tpu.memory_space<vmem>>, vector<144x2048xbf16>
    %cst_94 = arith.constant dense<0.000000e+00> : vector<16x2048xf32>
    %92 = tpu.matmul %90, %91, %cst_94 {dimension_numbers = #tpu.dot_dimension_numbers<[1], [0], [0], [1], [0, 0, 1, 1], [], []>} : vector<16x144xbf16>, vector<144x2048xbf16>, vector<16x2048xf32> -> vector<16x2048xf32>
    %c0_95 = arith.constant 0 : index
    %c0_96 = arith.constant 0 : index
    %93 = vector.load %arg9[%c0_95, %c0_96] : memref<16x2048xf32, #tpu.memory_space<vmem>>, vector<16x2048xf32>
    tpu.vector_store %arg9[%c0_95, %c0_96], %92 {strides = array<i32>} : memref<16x2048xf32, #tpu.memory_space<vmem>>, vector<16x2048xf32>,
    %c0_97 = arith.constant 0 : index
    %c0_98 = arith.constant 0 : index
    %94 = vector.load %arg9[%c0_97, %c0_98] : memref<16x2048xf32, #tpu.memory_space<vmem>>, vector<16x2048xf32>
    %95 = vector.broadcast %0 : vector<1x2048xf32> to vector<16x2048xf32>
    %96 = arith.mulf %94, %95 : vector<16x2048xf32>
    %cst_99 = arith.constant dense<0.000000e+00> : vector<16xf32>
    %97 = vector.multi_reduction <add>, %96, %cst_99 [1] : vector<16x2048xf32> to vector<16xf32>
    %98 = vector.shape_cast %97 : vector<16xf32> to vector<16x1xf32>
    %99 = arith.mulf %96, %94 : vector<16x2048xf32>
    %cst_100 = arith.constant dense<0.000000e+00> : vector<16xf32>
    %100 = vector.multi_reduction <add>, %99, %cst_100 [1] : vector<16x2048xf32> to vector<16xf32>
    %101 = vector.shape_cast %100 : vector<16xf32> to vector<16x1xf32>
    %cst_101 = arith.constant 0.001953125 : f32
    %102 = vector.broadcast %cst_101 : f32 to vector<16x1xf32>
    %103 = arith.mulf %98, %102 : vector<16x1xf32>
    %cst_102 = arith.constant 0.001953125 : f32
    %104 = vector.broadcast %cst_102 : f32 to vector<16x1xf32>
    %105 = arith.mulf %101, %104 : vector<16x1xf32>
    %106 = arith.mulf %103, %103 : vector<16x1xf32>
    %107 = arith.subf %105, %106 : vector<16x1xf32>
    %c1_103 = arith.constant 1 : index
    %c0_104 = arith.constant 0 : index
    %c0_105 = arith.constant 0 : index
    %108 = vector.load %arg2[%c1_103, %c0_104, %c0_105] : memref<3x16x1xf32, #tpu.memory_space<vmem>>, vector<1x16x1xf32>
    %109 = vector.shape_cast %108 : vector<1x16x1xf32> to vector<16x1xf32>
    %cst_106 = arith.constant 9.99999974E-6 : f32
    %110 = vector.broadcast %cst_106 : f32 to vector<16x1xf32>
    %111 = arith.addf %107, %110 : vector<16x1xf32>
    %112 = math.rsqrt %111 : vector<16x1xf32>
    %113 = arith.mulf %109, %112 : vector<16x1xf32>
    %c1_107 = arith.constant 1 : index
    %c0_108 = arith.constant 0 : index
    %c0_109 = arith.constant 0 : index
    %114 = vector.load %arg3[%c1_107, %c0_108, %c0_109] : memref<3x16x1xf32, #tpu.memory_space<vmem>>, vector<1x16x1xf32>
    %115 = vector.shape_cast %114 : vector<1x16x1xf32> to vector<16x1xf32>
    %116 = arith.mulf %103, %113 : vector<16x1xf32>
    %117 = arith.subf %115, %116 : vector<16x1xf32>
    %c0_110 = arith.constant 0 : index
    %c0_111 = arith.constant 0 : index
    %118 = vector.load %arg9[%c0_110, %c0_111] : memref<16x2048xf32, #tpu.memory_space<vmem>>, vector<16x2048xf32>
    %119 = vector.broadcast %113 : vector<16x1xf32> to vector<16x2048xf32>
    %120 = arith.mulf %118, %119 : vector<16x2048xf32>
    %121 = vector.broadcast %117 : vector<16x1xf32> to vector<16x2048xf32>
    %122 = arith.addf %120, %121 : vector<16x2048xf32>
    %cst_112 = arith.constant 0.000000e+00 : f32
    %123 = vector.broadcast %cst_112 : f32 to vector<16x2048xf32>
    %124 = arith.maximumf %122, %123 : vector<16x2048xf32>
    %c0_113 = arith.constant 0 : index
    %c384_114 = arith.constant 384 : index
    %125 = vector.load %arg6[%c0_113, %c384_114] : memref<16x2816xf32, #tpu.memory_space<vmem>>, vector<16x2048xf32>
    %126 = arith.addf %125, %124 : vector<16x2048xf32>
    %127 = vector.broadcast %0 : vector<1x2048xf32> to vector<16x2048xf32>
    %128 = arith.mulf %126, %127 : vector<16x2048xf32>
    %c1_115 = arith.constant 1 : index
    %c0_116 = arith.constant 0 : index
    %c0_117 = arith.constant 0 : index
    %129 = vector.load %arg5[%c1_115, %c0_116, %c0_117] : memref<3x16x2048xf32, #tpu.memory_space<vmem>>, vector<1x16x2048xf32>
    %130 = vector.shape_cast %129 : vector<1x16x2048xf32> to vector<16x2048xf32>
    %131 = vector.shape_cast %128 : vector<16x2048xf32> to vector<1x16x2048xf32>
    tpu.vector_store %arg5[%c1_115, %c0_116, %c0_117], %131 {strides = array<i32>} : memref<3x16x2048xf32, #tpu.memory_space<vmem>>, vector<1x16x2048xf32>,
    %c0_118 = arith.constant 0 : index
    %c384_119 = arith.constant 384 : index
    %132 = vector.load %arg6[%c0_118, %c384_119] : memref<16x2816xf32, #tpu.memory_space<vmem>>, vector<16x2048xf32>
    tpu.vector_store %arg6[%c0_118, %c384_119], %128 {strides = array<i32>} : memref<16x2816xf32, #tpu.memory_space<vmem>>, vector<16x2048xf32>,
    %c0_120 = arith.constant 0 : index
    %c0_121 = arith.constant 0 : index
    %133 = vector.load %arg6[%c0_120, %c0_121] : memref<16x2816xf32, #tpu.memory_space<vmem>>, vector<16x2816xf32>
    %134 = arith.truncf %133 : vector<16x2816xf32> to vector<16x2816xbf16>
    %c0_122 = arith.constant 0 : index
    %c0_123 = arith.constant 0 : index
    %135 = vector.load %arg7[%c0_122, %c0_123] : memref<16x2816xbf16, #tpu.memory_space<vmem>>, vector<16x2816xbf16>
    tpu.vector_store %arg7[%c0_122, %c0_123], %134 {strides = array<i32>} : memref<16x2816xbf16, #tpu.memory_space<vmem>>, vector<16x2816xbf16>,
    %c0_124 = arith.constant 0 : index
    %c120 = arith.constant 120 : index
    %136 = vector.load %arg7[%c0_124, %c120] : memref<16x2816xbf16, #tpu.memory_space<vmem>>, vector<16x2048xbf16>
    %c0_125 = arith.constant 0 : index
    %c0_126 = arith.constant 0 : index
    %137 = vector.load %arg8[%c0_125, %c0_126] : memref<144x2048xbf16, #tpu.memory_space<vmem>>, vector<16x2048xbf16>
    tpu.vector_store %arg8[%c0_125, %c0_126], %136 {strides = array<i32>} : memref<144x2048xbf16, #tpu.memory_space<vmem>>, vector<16x2048xbf16>,
    %c0_127 = arith.constant 0 : index
    %c128_128 = arith.constant 128 : index
    %138 = vector.load %arg7[%c0_127, %c128_128] : memref<16x2816xbf16, #tpu.memory_space<vmem>>, vector<16x2048xbf16>
    %c16_129 = arith.constant 16 : index
    %c0_130 = arith.constant 0 : index
    %139 = vector.load %arg8[%c16_129, %c0_130] : memref<144x2048xbf16, #tpu.memory_space<vmem>>, vector<16x2048xbf16>
    tpu.vector_store %arg8[%c16_129, %c0_130], %138 {strides = array<i32>} : memref<144x2048xbf16, #tpu.memory_space<vmem>>, vector<16x2048xbf16>,
    %c0_131 = arith.constant 0 : index
    %c136 = arith.constant 136 : index
    %140 = vector.load %arg7[%c0_131, %c136] : memref<16x2816xbf16, #tpu.memory_space<vmem>>, vector<16x2048xbf16>
    %c32_132 = arith.constant 32 : index
    %c0_133 = arith.constant 0 : index
    %141 = vector.load %arg8[%c32_132, %c0_133] : memref<144x2048xbf16, #tpu.memory_space<vmem>>, vector<16x2048xbf16>
    tpu.vector_store %arg8[%c32_132, %c0_133], %140 {strides = array<i32>} : memref<144x2048xbf16, #tpu.memory_space<vmem>>, vector<16x2048xbf16>,
    %c0_134 = arith.constant 0 : index
    %c376 = arith.constant 376 : index
    %142 = vector.load %arg7[%c0_134, %c376] : memref<16x2816xbf16, #tpu.memory_space<vmem>>, vector<16x2048xbf16>
    %c48_135 = arith.constant 48 : index
    %c0_136 = arith.constant 0 : index
    %143 = vector.load %arg8[%c48_135, %c0_136] : memref<144x2048xbf16, #tpu.memory_space<vmem>>, vector<16x2048xbf16>
    tpu.vector_store %arg8[%c48_135, %c0_136], %142 {strides = array<i32>} : memref<144x2048xbf16, #tpu.memory_space<vmem>>, vector<16x2048xbf16>,
    %c0_137 = arith.constant 0 : index
    %c384_138 = arith.constant 384 : index
    %144 = vector.load %arg7[%c0_137, %c384_138] : memref<16x2816xbf16, #tpu.memory_space<vmem>>, vector<16x2048xbf16>
    %c64_139 = arith.constant 64 : index
    %c0_140 = arith.constant 0 : index
    %145 = vector.load %arg8[%c64_139, %c0_140] : memref<144x2048xbf16, #tpu.memory_space<vmem>>, vector<16x2048xbf16>
    tpu.vector_store %arg8[%c64_139, %c0_140], %144 {strides = array<i32>} : memref<144x2048xbf16, #tpu.memory_space<vmem>>, vector<16x2048xbf16>,
    %c0_141 = arith.constant 0 : index
    %c392 = arith.constant 392 : index
    %146 = vector.load %arg7[%c0_141, %c392] : memref<16x2816xbf16, #tpu.memory_space<vmem>>, vector<16x2048xbf16>
    %c80_142 = arith.constant 80 : index
    %c0_143 = arith.constant 0 : index
    %147 = vector.load %arg8[%c80_142, %c0_143] : memref<144x2048xbf16, #tpu.memory_space<vmem>>, vector<16x2048xbf16>
    tpu.vector_store %arg8[%c80_142, %c0_143], %146 {strides = array<i32>} : memref<144x2048xbf16, #tpu.memory_space<vmem>>, vector<16x2048xbf16>,
    %c0_144 = arith.constant 0 : index
    %c632 = arith.constant 632 : index
    %148 = vector.load %arg7[%c0_144, %c632] : memref<16x2816xbf16, #tpu.memory_space<vmem>>, vector<16x2048xbf16>
    %c96_145 = arith.constant 96 : index
    %c0_146 = arith.constant 0 : index
    %149 = vector.load %arg8[%c96_145, %c0_146] : memref<144x2048xbf16, #tpu.memory_space<vmem>>, vector<16x2048xbf16>
    tpu.vector_store %arg8[%c96_145, %c0_146], %148 {strides = array<i32>} : memref<144x2048xbf16, #tpu.memory_space<vmem>>, vector<16x2048xbf16>,
    %c0_147 = arith.constant 0 : index
    %c640 = arith.constant 640 : index
    %150 = vector.load %arg7[%c0_147, %c640] : memref<16x2816xbf16, #tpu.memory_space<vmem>>, vector<16x2048xbf16>
    %c112_148 = arith.constant 112 : index
    %c0_149 = arith.constant 0 : index
    %151 = vector.load %arg8[%c112_148, %c0_149] : memref<144x2048xbf16, #tpu.memory_space<vmem>>, vector<16x2048xbf16>
    tpu.vector_store %arg8[%c112_148, %c0_149], %150 {strides = array<i32>} : memref<144x2048xbf16, #tpu.memory_space<vmem>>, vector<16x2048xbf16>,
    %c0_150 = arith.constant 0 : index
    %c648 = arith.constant 648 : index
    %152 = vector.load %arg7[%c0_150, %c648] : memref<16x2816xbf16, #tpu.memory_space<vmem>>, vector<16x2048xbf16>
    %c128_151 = arith.constant 128 : index
    %c0_152 = arith.constant 0 : index
    %153 = vector.load %arg8[%c128_151, %c0_152] : memref<144x2048xbf16, #tpu.memory_space<vmem>>, vector<16x2048xbf16>
    tpu.vector_store %arg8[%c128_151, %c0_152], %152 {strides = array<i32>} : memref<144x2048xbf16, #tpu.memory_space<vmem>>, vector<16x2048xbf16>,
    %c2 = arith.constant 2 : index
    %c0_153 = arith.constant 0 : index
    %c0_154 = arith.constant 0 : index
    %154 = vector.load %arg1[%c2, %c0_153, %c0_154] : memref<3x16x144xbf16, #tpu.memory_space<vmem>>, vector<1x16x144xbf16>
    %155 = vector.shape_cast %154 : vector<1x16x144xbf16> to vector<16x144xbf16>
    %c0_155 = arith.constant 0 : index
    %c0_156 = arith.constant 0 : index
    %156 = vector.load %arg8[%c0_155, %c0_156] : memref<144x2048xbf16, #tpu.memory_space<vmem>>, vector<144x2048xbf16>
    %cst_157 = arith.constant dense<0.000000e+00> : vector<16x2048xf32>
    %157 = tpu.matmul %155, %156, %cst_157 {dimension_numbers = #tpu.dot_dimension_numbers<[1], [0], [0], [1], [0, 0, 1, 1], [], []>} : vector<16x144xbf16>, vector<144x2048xbf16>, vector<16x2048xf32> -> vector<16x2048xf32>
    %c0_158 = arith.constant 0 : index
    %c0_159 = arith.constant 0 : index
    %158 = vector.load %arg9[%c0_158, %c0_159] : memref<16x2048xf32, #tpu.memory_space<vmem>>, vector<16x2048xf32>
    tpu.vector_store %arg9[%c0_158, %c0_159], %157 {strides = array<i32>} : memref<16x2048xf32, #tpu.memory_space<vmem>>, vector<16x2048xf32>,
    %c0_160 = arith.constant 0 : index
    %c0_161 = arith.constant 0 : index
    %159 = vector.load %arg9[%c0_160, %c0_161] : memref<16x2048xf32, #tpu.memory_space<vmem>>, vector<16x2048xf32>
    %160 = vector.broadcast %0 : vector<1x2048xf32> to vector<16x2048xf32>
    %161 = arith.mulf %159, %160 : vector<16x2048xf32>
    %cst_162 = arith.constant dense<0.000000e+00> : vector<16xf32>
    %162 = vector.multi_reduction <add>, %161, %cst_162 [1] : vector<16x2048xf32> to vector<16xf32>
    %163 = vector.shape_cast %162 : vector<16xf32> to vector<16x1xf32>
    %164 = arith.mulf %161, %159 : vector<16x2048xf32>
    %cst_163 = arith.constant dense<0.000000e+00> : vector<16xf32>
    %165 = vector.multi_reduction <add>, %164, %cst_163 [1] : vector<16x2048xf32> to vector<16xf32>
    %166 = vector.shape_cast %165 : vector<16xf32> to vector<16x1xf32>
    %cst_164 = arith.constant 0.001953125 : f32
    %167 = vector.broadcast %cst_164 : f32 to vector<16x1xf32>
    %168 = arith.mulf %163, %167 : vector<16x1xf32>
    %cst_165 = arith.constant 0.001953125 : f32
    %169 = vector.broadcast %cst_165 : f32 to vector<16x1xf32>
    %170 = arith.mulf %166, %169 : vector<16x1xf32>
    %171 = arith.mulf %168, %168 : vector<16x1xf32>
    %172 = arith.subf %170, %171 : vector<16x1xf32>
    %c2_166 = arith.constant 2 : index
    %c0_167 = arith.constant 0 : index
    %c0_168 = arith.constant 0 : index
    %173 = vector.load %arg2[%c2_166, %c0_167, %c0_168] : memref<3x16x1xf32, #tpu.memory_space<vmem>>, vector<1x16x1xf32>
    %174 = vector.shape_cast %173 : vector<1x16x1xf32> to vector<16x1xf32>
    %cst_169 = arith.constant 9.99999974E-6 : f32
    %175 = vector.broadcast %cst_169 : f32 to vector<16x1xf32>
    %176 = arith.addf %172, %175 : vector<16x1xf32>
    %177 = math.rsqrt %176 : vector<16x1xf32>
    %178 = arith.mulf %174, %177 : vector<16x1xf32>
    %c2_170 = arith.constant 2 : index
    %c0_171 = arith.constant 0 : index
    %c0_172 = arith.constant 0 : index
    %179 = vector.load %arg3[%c2_170, %c0_171, %c0_172] : memref<3x16x1xf32, #tpu.memory_space<vmem>>, vector<1x16x1xf32>
    %180 = vector.shape_cast %179 : vector<1x16x1xf32> to vector<16x1xf32>
    %181 = arith.mulf %168, %178 : vector<16x1xf32>
    %182 = arith.subf %180, %181 : vector<16x1xf32>
    %c0_173 = arith.constant 0 : index
    %c0_174 = arith.constant 0 : index
    %183 = vector.load %arg9[%c0_173, %c0_174] : memref<16x2048xf32, #tpu.memory_space<vmem>>, vector<16x2048xf32>
    %184 = vector.broadcast %178 : vector<16x1xf32> to vector<16x2048xf32>
    %185 = arith.mulf %183, %184 : vector<16x2048xf32>
    %186 = vector.broadcast %182 : vector<16x1xf32> to vector<16x2048xf32>
    %187 = arith.addf %185, %186 : vector<16x2048xf32>
    %cst_175 = arith.constant 0.000000e+00 : f32
    %188 = vector.broadcast %cst_175 : f32 to vector<16x2048xf32>
    %189 = arith.maximumf %187, %188 : vector<16x2048xf32>
    %c0_176 = arith.constant 0 : index
    %c384_177 = arith.constant 384 : index
    %190 = vector.load %arg6[%c0_176, %c384_177] : memref<16x2816xf32, #tpu.memory_space<vmem>>, vector<16x2048xf32>
    %191 = arith.addf %190, %189 : vector<16x2048xf32>
    %192 = vector.broadcast %0 : vector<1x2048xf32> to vector<16x2048xf32>
    %193 = arith.mulf %191, %192 : vector<16x2048xf32>
    %c2_178 = arith.constant 2 : index
    %c0_179 = arith.constant 0 : index
    %c0_180 = arith.constant 0 : index
    %194 = vector.load %arg5[%c2_178, %c0_179, %c0_180] : memref<3x16x2048xf32, #tpu.memory_space<vmem>>, vector<1x16x2048xf32>
    %195 = vector.shape_cast %194 : vector<1x16x2048xf32> to vector<16x2048xf32>
    %196 = vector.shape_cast %193 : vector<16x2048xf32> to vector<1x16x2048xf32>
    tpu.vector_store %arg5[%c2_178, %c0_179, %c0_180], %196 {strides = array<i32>} : memref<3x16x2048xf32, #tpu.memory_space<vmem>>, vector<1x16x2048xf32>,
    return
  }
}

</mosaic_0001>

<bundles_post_ra>
// kernel: tpu_custom_call.1
= control target key start
LH: loop header
LB: loop body
LE: loop exit
PB: predicated region body
PF: predicated region fallthrough
CT: control target
= control target key end

     0   :  { %10 = vsyncpa [#allocation7], 0  ;;  %s14417_s0 = inlined_call_operand.hbm [shape: f32[16,2816], index: 0, kind: input, shape index: {}]   ;;  %s14418_s1 = inlined_call_operand.vmem [shape: bf16[3,16,144], index: 1, kind: input, shape index: {}]   ;;  %s14419_s2 = inlined_call_operand.vmem [shape: f32[3,16,1], index: 2, kind: input, shape index: {}]   ;;  %s14420_s3 = inlined_call_operand.vmem [shape: f32[3,16,1], index: 3, kind: input, shape index: {}]   ;;  %s14421_s4 = inlined_call_operand.vmem [shape: f32[1,2048], index: 4, kind: input, shape index: {}]   ;;  %s14422_s5 = inlined_call_operand.hbm [shape: f32[3,16,2048], index: 5, kind: output, shape index: {}]  }
   0x1   :  { %11 = vsyncpa [#allocation8], 0  ;;  %s10157_s18 = smov [#allocation6]  }
   0x2   :  { %s17_s19 = sshll.u32 %s10157_s18, 4  ;;  %s18_s19 = int_to_ptr.vmem [resolvable:$true] %s17_s19 }
   0x3   :  { %s10121_s20 = scalar_lea.vmem %s18_s19, 5632  ;;  %p10126_p1 = scmp.lt.s32.totalorder %s18_s19, %s18_s19 }
   0x4   :  { %p10122_p0 = scmp.ne.s32.totalorder %s18_s19, %s10121_s20  ;;  %p10127_p2 = scmp.lt.s32.totalorder %s10121_s20, %s10121_s20 }
   0x6   :  { %p10128_p3 = por %p10127_p2, %p10126_p1 }
   0x8   :  { %p10129_p4 = pnand %p10128_p3, %p10122_p0 }
   0xa   :  { %10132 = shalt.err (!%p10129_p4)
}
   0xb   :  { %s10158_s21 = smov 2816   ;;  %s10159_s22 = smov 176  }
   0xc   :  { %23 = dma.hbm_to_vmem [thread:$0]  %s14417_s0, 5632, %s18_s19, [#allocation7], %s10158_s21, %s10158_s21, %s10159_s22  }
   0xd   :  { %10153 = dma.done.wait [#allocation7], 5632  }
   0xe   :  { %10154 = vsyncadd [#allocation7], 4294961664  ;;  %v62_v0 = vld [vmem:[#allocation6 + $0xc0] sm:$0xff]  ;;  %v63_v1 = vld [vmem:[#allocation6 + $0xc8] sm:$0xff]  ;;  %s10160_s0 = smov 64   ;;  %s10161_s25 = smov 66  }
   0xf   :  { %v64_v2 = vld [vmem:[#allocation6 + $0xd0] sm:$0xff]  ;;  %v65_v3 = vld [vmem:[#allocation6 + $0xd8] sm:$0xff]  ;;  %v10206_v4 = vpack.c.bf16 %v63_v1, %v62_v0  ;;  %v42_v8 = vld [vmem:[#allocation6 + $0x20] sm:$0xff]  ;;  %s10162_s26 = smov 126   ;;  %s10163_s27 = smov 2   ;;  %vm2469_vm0 = vcmask 130048  }
  0x10   :  { %v40_v5 = vld [vmem:[#allocation6 + $0x10] sm:$0xff]  ;;  %v41_v6 = vld [vmem:[#allocation6 + $0x18] sm:$0xff]  ;;  %v10208_v7 = vpack.c.bf16 %v65_v3, %v64_v2  ;;  %v43_v9 = vld [vmem:[#allocation6 + $0x28] sm:$0xff]  ;;  %s10164_s28 = smov 62   ;;  %vm414_vm1 = vcmask 1043456   ;;  %vm571_vm2 = vcmask 523264  }
  0x11   :  { %v10210_v10 = vpack.c.bf16 %v41_v6, %v40_v5  ;;  %v66_v11 = vld [vmem:[#allocation6 + $0xe0] sm:$0xff]  ;;  %314 = vst [vmem:[#allocation3 + $0x60] sm:$0xff] %v10206_v4  ;;  %v10213_v12 = vpack.c.bf16 %v43_v9, %v42_v8  ;;  %v67_v13 = vld [vmem:[#allocation6 + $0xe8] sm:$0xff]  ;;  %v44_v14 = vld [vmem:[#allocation6 + $0x30] sm:$0xff]  ;;  %vm416_vm3 = vcmask 539648   ;;  %vm1068_vm4 = vcmask 1031168  }
  0x12   :  { %v45_v15 = vld [vmem:[#allocation6 + $0x38] sm:$0xff]  ;;  %315 = vst [vmem:[#allocation3 + $0x68] sm:$0xff] %v10208_v7  ;;  %v10217_v16 = vpack.c.bf16 %v67_v13, %v66_v11  ;;  %v68_v18 = vld [vmem:[#allocation6 + $0xf0] sm:$0xff]  ;;  %v46_v20 = vld [vmem:[#allocation6 + $0x40] sm:$0xff]  ;;  %vm881_vm5 = vcmask 15360   ;;  %vm726_vm6 = vcmask 506880  }
  0x13   :  { %303 = vst [vmem:[#allocation3 + $0x8] sm:$0xff] %v10210_v10  ;;  %v10219_v17 = vpack.c.bf16 %v45_v15, %v44_v14  ;;  %v69_v19 = vld [vmem:[#allocation6 + $0xf8] sm:$0xff]  ;;  %304 = vst [vmem:[#allocation3 + $0x10] sm:$0xff] %v10213_v12  ;;  %v47_v22 = vld [vmem:[#allocation6 + $0x48] sm:$0xff]  ;;  %s10166_s23 = smov 4   ;;  %s10167_s24 = smov 124  }
  0x14   :  { %v10222_v21 = vpack.c.bf16 %v69_v19, %v68_v18  ;;  %v70_v23 = vld [vmem:[#allocation6 + $0x100] sm:$0xff]  ;;  %v71_v24 = vld [vmem:[#allocation6 + $0x108] sm:$0xff]  ;;  %316 = vst [vmem:[#allocation3 + $0x70] sm:$0xff] %v10217_v16  ;;  %v10226_v25 = vpack.c.bf16 %v47_v22, %v46_v20  ;;  %v48_v27 = vld [vmem:[#allocation6 + $0x50] sm:$0xff]  ;;  %vm3682_vm7 = vcmask 31744   ;;  %vm3869_vm8 = vcmask 1014784  }
  0x15   :  { %305 = vst [vmem:[#allocation3 + $0x18] sm:$0xff] %v10219_v17  ;;  %v10228_v26 = vpack.c.bf16 %v71_v24, %v70_v23  ;;  %v49_v28 = vld [vmem:[#allocation6 + $0x58] sm:$0xff]  ;;  %v72_v29 = vld [vmem:[#allocation6 + $0x110] sm:$0xff]  ;;  %v50_v32 = vld [vmem:[#allocation6 + $0x60] sm:$0xff]  ;;  %s10168_s15 = smov 8   ;;  %vm6622_vm9 = vcmask 64512  }
  0x16   :  { %317 = vst [vmem:[#allocation3 + $0x78] sm:$0xff] %v10222_v21  ;;  %v10231_v30 = vpack.c.bf16 %v49_v28, %v48_v27  ;;  %v73_v31 = vld [vmem:[#allocation6 + $0x118] sm:$0xff]  ;;  %v51_v33 = vld [vmem:[#allocation6 + $0x68] sm:$0xff]  ;;  %306 = vst [vmem:[#allocation3 + $0x20] sm:$0xff] %v10226_v25  ;;  %vm6809_vm10 = vcmask 982016  }
  0x17   :  { %318 = vst [vmem:[#allocation3 + $0x80] sm:$0xff] %v10228_v26  ;;  %v10235_v34 = vpack.c.bf16 %v73_v31, %v72_v29  ;;  %v10237_v35 = vpack.c.bf16 %v51_v33, %v50_v32  ;;  %v74_v42 = vld [vmem:[#allocation6 + $0x120] sm:$0xff]  ;;  %v75_v43 = vld [vmem:[#allocation6 + $0x128] sm:$0xff]  ;;  %v52_v44 = vld [vmem:[#allocation6 + $0x70] sm:$0xff] }
  0x18   :  { %307 = vst [vmem:[#allocation3 + $0x28] sm:$0xff] %v10231_v30  ;;  %v10274_v45 = vpack.c.bf16 %v75_v43, %v74_v42  ;;  %v53_v46 = vld [vmem:[#allocation6 + $0x78] sm:$0xff]  ;;  %v76_v48 = vld [vmem:[#allocation6 + $0x130] sm:$0xff]  ;;  %v54_v50 = vld [vmem:[#allocation6 + $0x80] sm:$0xff] }
  0x19   :  { %319 = vst [vmem:[#allocation3 + $0x88] sm:$0xff] %v10235_v34  ;;  %308 = vst [vmem:[#allocation3 + $0x30] sm:$0xff] %v10237_v35  ;;  %v10242_v36 = vld [vmem:[#allocation3 + $0x64] sm:$0xff]  ;;  %v10278_v47 = vpack.c.bf16 %v53_v46, %v52_v44  ;;  %v55_v52 = vld [vmem:[#allocation6 + $0x88] sm:$0xff] }
  0x1a   :  { %1340 = vrot.lane.b32.xlu1 %v10242_v36, %s10160_s0  ;;  %v10246_v37 = vld [vmem:[#allocation3 + $0xc] sm:$0xff]  ;;  %320 = vst [vmem:[#allocation3 + $0x90] sm:$0xff] %v10274_v45  ;;  %v10296_v53 = vpack.c.bf16 %v55_v52, %v54_v50  ;;  %v79_v55 = vld [vmem:[#allocation6 + $0x148] sm:$0xff]  ;;  %v56_v56 = vld [vmem:[#allocation6 + $0x90] sm:$0xff] }
  0x1b   :  { %1322 = vrot.lane.b32.xlu0 %v10246_v37, %s10160_s0  ;;  %v10250_v38 = vld [vmem:[#allocation3 + $0x6c] sm:$0xff]  ;;  %309 = vst [vmem:[#allocation3 + $0x38] sm:$0xff] %v10278_v47 }
  0x1c   :  { %v10252_v39 = vld [vmem:[#allocation3 + $0x14] sm:$0xff]  ;;  %v77_v49 = vld [vmem:[#allocation6 + $0x138] sm:$0xff]  ;;  %310 = vst [vmem:[#allocation3 + $0x40] sm:$0xff] %v10296_v53 }
  0x1d   :  { %v10266_v40 = vld [vmem:[#allocation3 + $0x74] sm:$0xff]  ;;  %v10268_v41 = vld [vmem:[#allocation3 + $0x1c] sm:$0xff]  ;;  %v10292_v51 = vpack.c.bf16 %v77_v49, %v76_v48  ;;  %v57_v58 = vld [vmem:[#allocation6 + $0x98] sm:$0xff] }
  0x1e   :  { %1342 = vrot.lane.b32.xlu1 %v10250_v38, %s10160_s0  ;;  %v78_v54 = vld [vmem:[#allocation6 + $0x140] sm:$0xff]  ;;  %v10355_v59 = vld [vmem:[%s14418_s1 + $0x4] ss:$8 sps:$4 sm:$0xff]   ;;  %v9807_v60 = vpack.c.bf16 %v57_v58, %v56_v56  ;;  %v10367_v61 = vld [vmem:[#allocation3 + $0x7c] sm:$0xff] }
  0x1f   :  { %1324 = vrot.lane.b32.xlu0 %v10252_v39, %s10160_s0  ;;  %321 = vst [vmem:[#allocation3 + $0x98] sm:$0xff] %v10292_v51  ;;  %v9818_v57 = vpack.c.bf16 %v79_v55, %v78_v54  ;;  %9426 = vmatprep.mubr.msk.bf16.mxu0 %vm2469_vm0, %v10355_v59  ;;  %v10369_v62 = vld [vmem:[#allocation3 + $0x24] sm:$0xff] }
  0x20   :  { %311 = vst [vmem:[#allocation3 + $0x48] sm:$0xff] %v9807_v60  ;;  %9427 = vmatprep.mubr.msk.bf16.mxu1 %vm2469_vm0, %v10355_v59  ;;  %v10383_v63 = vld [vmem:[#allocation3 + $0x84] sm:$0xff]  ;;  %v10385_v0 = vld [vmem:[#allocation3 + $0x2c] sm:$0xff] }
  0x21   :  { %322 = vst [vmem:[#allocation3 + $0xa0] sm:$0xff] %v9818_v57 }
  0x22   :  { %1170 = vrot.lane.b32.xlu1 %v10252_v39, %s10161_s25 }
  0x23   :  { %1168 = vrot.lane.b32.xlu0 %v10246_v37, %s10161_s25 }
  0x26   :  { %1188 = vrot.lane.b32.xlu1 %v10250_v38, %s10161_s25 }
  0x27   :  { %1186 = vrot.lane.b32.xlu0 %v10242_v36, %s10161_s25 }
  0x2a   :  { %1344 = vrot.lane.b32.xlu1 %v10266_v40, %s10160_s0 }
  0x2b   :  { %1326 = vrot.lane.b32.xlu0 %v10268_v41, %s10160_s0 }
  0x2e   :  { %1015 = vrot.lane.b32.xlu1 %v10252_v39, %s10162_s26 }
  0x2f   :  { %1013 = vrot.lane.b32.xlu0 %v10246_v37, %s10162_s26 }
  0x32   :  { %1033 = vrot.lane.b32.xlu1 %v10250_v38, %s10162_s26 }
  0x33   :  { %1031 = vrot.lane.b32.xlu0 %v10242_v36, %s10162_s26 }
  0x36   :  { %1190 = vrot.lane.b32.xlu1 %v10266_v40, %s10161_s25 }
  0x37   :  { %1172 = vrot.lane.b32.xlu0 %v10268_v41, %s10161_s25 }
  0x3a   :  { %1035 = vrot.lane.b32.xlu1 %v10266_v40, %s10162_s26 }
  0x3b   :  { %1017 = vrot.lane.b32.xlu0 %v10268_v41, %s10162_s26 }
  0x3e   :  { %828 = vrot.lane.b32.xlu1 %v10213_v12, %s10163_s27 }
  0x3f   :  { %826 = vrot.lane.b32.xlu0 %v10210_v10, %s10163_s27 }
  0x42   :  { %846 = vrot.lane.b32.xlu1 %v10208_v7, %s10163_s27 }
  0x43   :  { %844 = vrot.lane.b32.xlu0 %v10206_v4, %s10163_s27 }
  0x46   :  { %673 = vrot.lane.b32.xlu1 %v10213_v12, %s10164_s28 }
  0x47   :  { %671 = vrot.lane.b32.xlu0 %v10210_v10, %s10164_s28 }
  0x4a   :  { %691 = vrot.lane.b32.xlu1 %v10208_v7, %s10164_s28 }
  0x4b   :  { %689 = vrot.lane.b32.xlu0 %v10206_v4, %s10164_s28 }
  0x4e   :  { %848 = vrot.lane.b32.xlu1 %v10217_v16, %s10163_s27 }
  0x4f   :  { %830 = vrot.lane.b32.xlu0 %v10219_v17, %s10163_s27 }
  0x52   :  { %518 = vrot.lane.b32.xlu1 %v10213_v12, %s10160_s0 }
  0x53   :  { %516 = vrot.lane.b32.xlu0 %v10210_v10, %s10160_s0 }
  0x56   :  { %536 = vrot.lane.b32.xlu1 %v10208_v7, %s10160_s0 }
  0x57   :  { %534 = vrot.lane.b32.xlu0 %v10206_v4, %s10160_s0 }
  0x5a   :  { %693 = vrot.lane.b32.xlu1 %v10217_v16, %s10164_s28 }
  0x5b   :  { %675 = vrot.lane.b32.xlu0 %v10219_v17, %s10164_s28 }
  0x5e   :  { %362 = vrot.lane.b32.xlu1 %v10213_v12, %s10161_s25 }
  0x5f   :  { %360 = vrot.lane.b32.xlu0 %v10210_v10, %s10161_s25 }
  0x62   :  { %380 = vrot.lane.b32.xlu1 %v10208_v7, %s10161_s25 }
  0x63   :  { %378 = vrot.lane.b32.xlu0 %v10206_v4, %s10161_s25 }
  0x66   :  { %538 = vrot.lane.b32.xlu1 %v10217_v16, %s10160_s0 }
  0x67   :  { %520 = vrot.lane.b32.xlu0 %v10219_v17, %s10160_s0 }
  0x6a   :  { %382 = vrot.lane.b32.xlu1 %v10217_v16, %s10161_s25 }
  0x6b   :  { %364 = vrot.lane.b32.xlu0 %v10219_v17, %s10161_s25 }
  0x6e   :  { %1478 = vrot.lane.b32.xlu1 %v10252_v39, %s10164_s28 }
  0x6f   :  { %1476 = vrot.lane.b32.xlu0 %v10246_v37, %s10164_s28 }
  0x72   :  { %1496 = vrot.lane.b32.xlu1 %v10250_v38, %s10164_s28 }
  0x73   :  { %1494 = vrot.lane.b32.xlu0 %v10242_v36, %s10164_s28 }
  0x76   :  { %1346 = vrot.lane.b32.xlu1 %v10367_v61, %s10160_s0 }
  0x77   :  { %1328 = vrot.lane.b32.xlu0 %v10369_v62, %s10160_s0 }
  0x7a   :  { %1498 = vrot.lane.b32.xlu1 %v10266_v40, %s10164_s28 }
  0x7b   :  { %1480 = vrot.lane.b32.xlu0 %v10268_v41, %s10164_s28 }
  0x7e   :  { %1192 = vrot.lane.b32.xlu1 %v10367_v61, %s10161_s25 }
  0x7f   :  { %1174 = vrot.lane.b32.xlu0 %v10369_v62, %s10161_s25 }
  0x82   :  { %1348 = vrot.lane.b32.xlu1 %v10383_v63, %s10160_s0 }
  0x83   :  { %1330 = vrot.lane.b32.xlu0 %v10385_v0, %s10160_s0 }
  0x86   :  { %1037 = vrot.lane.b32.xlu1 %v10367_v61, %s10162_s26 }
  0x87   :  { %1019 = vrot.lane.b32.xlu0 %v10369_v62, %s10162_s26 }
  0x8a   :  { %1194 = vrot.lane.b32.xlu1 %v10383_v63, %s10161_s25 }
  0x8b   :  { %1176 = vrot.lane.b32.xlu0 %v10385_v0, %s10161_s25 }
  0x8c   :  { %v1341_v1 = vpop.permute.xlu1 %1340 }
  0x8d   :  { %v1323_v2 = vpop.permute.xlu0 %1322  ;;  %v1367_v4 = vrot.slane %v1341_v1, 4 }
  0x8e   :  { %1039 = vrot.lane.b32.xlu1 %v10383_v63, %s10162_s26  ;;  %v1358_v7 = vrot.slane %v1323_v2, 4 }
  0x8f   :  { %1021 = vrot.lane.b32.xlu0 %v10385_v0, %s10162_s26 }
  0x90   :  { %v1343_v3 = vpop.permute.xlu1 %1342 }
  0x91   :  { %v1368_v5 = vrot.slane %v1343_v3, 4  ;;  %v1325_v6 = vpop.permute.xlu0 %1324 }
  0x92   :  { %v1359_v8 = vrot.slane %v1325_v6, 4  ;;  %850 = vrot.lane.b32.xlu1 %v10222_v21, %s10163_s27 }
  0x93   :  { %832 = vrot.lane.b32.xlu0 %v10226_v25, %s10163_s27  ;;  %v1392_v9 = vsel %vm414_vm1, %v1367_v4, %v1368_v5 }
  0x94   :  { %v10408_v10 = vpop.permute.xlu1 %1170  ;;  %v1376_v11 = vsel %vm414_vm1, %v1358_v7, %v1359_v8  ;;  %v1393_v12 = vsel %vm571_vm2, %v1341_v1, %v1392_v9 }
  0x95   :  { %v1169_v13 = vpop.permute.xlu0 %1168  ;;  %v1377_v14 = vsel %vm571_vm2, %v1323_v2, %v1376_v11  ;;  %v1205_v15 = vrot.slane %v10408_v10, 4 }
  0x96   :  { %v1204_v16 = vrot.slane %v1169_v13, 4  ;;  %695 = vrot.lane.b32.xlu1 %v10222_v21, %s10164_s28  ;;  %v9395_v17 = vcombine.high %v1377_v14, %v1393_v12  ;;  %v9394_v18 = vcombine.low %v1377_v14, %v1393_v12 }
  0x97   :  { %677 = vrot.lane.b32.xlu0 %v10226_v25, %s10164_s28 }
  0x98   :  { %2473 = vmatprep.subr.bf16.mxu0 %v9395_v17  ;;  %v1189_v19 = vpop.permute.xlu1 %1188  ;;  %v1222_v23 = vsel %vm414_vm1, %v1204_v16, %v1205_v15 }
  0x99   :  { %v1214_v20 = vrot.slane %v1189_v19, 4  ;;  %2474 = vmatpush1.bf16.msra.mxu0 %v9394_v18  ;;  %v1187_v22 = vpop.permute.xlu0 %1186  ;;  %v1223_v29 = vsel %vm416_vm3, %v1169_v13, %v1222_v23 }
  0x9a   :  { %v1213_v24 = vrot.slane %v1187_v22, 4  ;;  %852 = vrot.lane.b32.xlu1 %v10228_v26, %s10163_s27 }
  0x9b   :  { %834 = vrot.lane.b32.xlu0 %v10231_v30, %s10163_s27 }
  0x9c   :  { %v1238_v27 = vsel %vm414_vm1, %v1213_v24, %v1214_v20  ;;  %v10426_v28 = vpop.permute.xlu1 %1344 }
  0x9d   :  { %v1239_v31 = vsel %vm416_vm3, %v1187_v22, %v1238_v27  ;;  %v1369_v32 = vrot.slane %v10426_v28, 4  ;;  %v10431_v33 = vpop.permute.xlu0 %1326 }
  0x9e   :  { %v1360_v40 = vrot.slane %v10431_v33, 4  ;;  %540 = vrot.lane.b32.xlu1 %v10222_v21, %s10160_s0  ;;  %v9379_v41 = vcombine.high %v1223_v29, %v1239_v31  ;;  %v9378_v42 = vcombine.low %v1223_v29, %v1239_v31 }
  0x9f   :  { %522 = vrot.lane.b32.xlu0 %v10226_v25, %s10160_s0  ;;  %v1394_v43 = vsel %vm414_vm1, %v1368_v5, %v1369_v32 }
  0xa0   :  { %2475 = vmatprep.subr.bf16.mxu0 %v9379_v41  ;;  %v1016_v44 = vpop.permute.xlu1 %1015  ;;  %v1378_v46 = vsel %vm414_vm1, %v1359_v8, %v1360_v40  ;;  %v1395_v48 = vsel %vm571_vm2, %v1343_v3, %v1394_v43  ;;  %v10510_v43 = vld [vmem:[#allocation3 + $0x8c] sm:$0xff] }
  0xa1   :  { %2476 = vmatpush1.bf16.msra.mxu0 %v9378_v42  ;;  %v1014_v49 = vpop.permute.xlu0 %1013  ;;  %v1379_v50 = vsel %vm571_vm2, %v1325_v6, %v1378_v46  ;;  %v1050_v52 = vrot.slane %v1016_v44, 4 }
  0xa2   :  { %v1049_v54 = vrot.slane %v1014_v49, 4  ;;  %697 = vrot.lane.b32.xlu1 %v10228_v26, %s10164_s28  ;;  %v9397_v55 = vcombine.high %v1379_v50, %v1395_v48  ;;  %v9396_v56 = vcombine.low %v1379_v50, %v1395_v48  ;;  %v9348_v50 = vcombine.low %v10252_v39, %v10250_v38 }
  0xa3   :  { %679 = vrot.lane.b32.xlu0 %v10231_v30, %s10164_s28 }
  0xa4   :  { %2516 = vmatprep.subr.bf16.mxu1 %v9397_v55  ;;  %v1034_v57 = vpop.permute.xlu1 %1033  ;;  %v1067_v1 = vsel %vm414_vm1, %v1049_v54, %v1050_v52 }
  0xa5   :  { %v1059_v58 = vrot.slane %v1034_v57, 4  ;;  %2517 = vmatpush1.bf16.msra.mxu1 %v9396_v56  ;;  %v1032_v60 = vpop.permute.xlu0 %1031  ;;  %v1069_v5 = vsel %vm1068_vm4, %v1014_v49, %v1067_v1 }
  0xa6   :  { %v1058_v2 = vrot.slane %v1032_v60, 4  ;;  %384 = vrot.lane.b32.xlu1 %v10222_v21, %s10161_s25 }
  0xa7   :  { %366 = vrot.lane.b32.xlu0 %v10226_v25, %s10161_s25  ;;  %v9347_v25 = vcombine.high %v10246_v37, %v10242_v36 }
  0xa8   :  { %v1084_v3 = vsel %vm414_vm1, %v1058_v2, %v1059_v58  ;;  %v10456_v4 = vpop.permute.xlu1 %1190 }
  0xa9   :  { %v1085_v6 = vsel %vm1068_vm4, %v1032_v60, %v1084_v3  ;;  %v1215_v7 = vrot.slane %v10456_v4, 4  ;;  %v10461_v8 = vpop.permute.xlu0 %1172 }
  0xaa   :  { %v1206_v9 = vrot.slane %v10461_v8, 4  ;;  %542 = vrot.lane.b32.xlu1 %v10228_v26, %s10160_s0  ;;  %v9363_v21 = vcombine.high %v1069_v5, %v1085_v6  ;;  %v9362_v11 = vcombine.low %v1069_v5, %v1085_v6 }
  0xab   :  { %524 = vrot.lane.b32.xlu0 %v10231_v30, %s10160_s0  ;;  %v1240_v12 = vsel %vm414_vm1, %v1214_v20, %v1215_v7  ;;  %v9346_v20 = vcombine.low %v10246_v37, %v10242_v36 }
  0xac   :  { %2477 = vmatprep.subr.bf16.mxu0 %v9363_v21  ;;  %v10473_v13 = vpop.permute.xlu1 %1035  ;;  %v1224_v14 = vsel %vm414_vm1, %v1205_v15, %v1206_v9  ;;  %v1241_v16 = vsel %vm416_vm3, %v1189_v19, %v1240_v12 }
  0xad   :  { %v1060_v17 = vrot.slane %v10473_v13, 4  ;;  %2478 = vmatpush1.bf16.msra.mxu0 %v9362_v11  ;;  %v10482_v18 = vpop.permute.xlu0 %1017  ;;  %v1225_v22 = vsel %vm416_vm3, %v10408_v10, %v1224_v14  ;;  %v10543_v11 = vld [vmem:[#allocation3 + $0x3c] sm:$0xff] }
  0xae   :  { %v1051_v23 = vrot.slane %v10482_v18, 4  ;;  %386 = vrot.lane.b32.xlu1 %v10228_v26, %s10161_s25  ;;  %v9381_v24 = vcombine.high %v1225_v22, %v1241_v16  ;;  %v9380_v15 = vcombine.low %v1225_v22, %v1241_v16  ;;  %2479 = vmatprep.subr.bf16.mxu0 %v9347_v25 }
  0xaf   :  { %368 = vrot.lane.b32.xlu0 %v10231_v30, %s10161_s25  ;;  %v1086_v19 = vsel %vm414_vm1, %v1059_v58, %v1060_v17  ;;  %v9349_v30 = vcombine.high %v10252_v39, %v10250_v38 }
  0xb0   :  { %2518 = vmatprep.subr.bf16.mxu1 %v9381_v24  ;;  %v10496_v10 = vpop.permute.xlu1 %828  ;;  %v1070_v36 = vsel %vm414_vm1, %v1050_v52, %v1051_v23  ;;  %v1087_v37 = vsel %vm1068_vm4, %v1034_v57, %v1086_v19 }
  0xb1   :  { %2519 = vmatpush1.bf16.msra.mxu1 %v9380_v15  ;;  %v827_v26 = vpop.permute.xlu0 %826  ;;  %v1071_v27 = vsel %vm1068_vm4, %v1016_v44, %v1070_v36  ;;  %2480 = vmatpush1.bf16.msra.mxu0 %v9346_v20  ;;  %v863_v29 = vrot.slane %v10496_v10, 4  ;;  %v10512_v44 = vld [vmem:[#allocation3 + $0x34] sm:$0xff] }
  0xb2   :  { %v862_v31 = vrot.slane %v827_v26, 4  ;;  %1500 = vrot.lane.b32.xlu1 %v10367_v61, %s10164_s28  ;;  %v9365_v41 = vcombine.high %v1071_v27, %v1087_v37  ;;  %v9364_v42 = vcombine.low %v1071_v27, %v1087_v37 }
  0xb3   :  { %1482 = vrot.lane.b32.xlu0 %v10369_v62, %s10164_s28 }
  0xb4   :  { %2520 = vmatprep.subr.bf16.mxu1 %v9365_v41  ;;  %v847_v46 = vpop.permute.xlu1 %846  ;;  %v880_v61 = vsel %vm414_vm1, %v862_v31, %v863_v29 }
  0xb5   :  { %v872_v48 = vrot.slane %v847_v46, 4  ;;  %2521 = vmatpush1.bf16.msra.mxu1 %v9364_v42  ;;  %v845_v49 = vpop.permute.xlu0 %844  ;;  %v882_v55 = vsel %vm881_vm5, %v827_v26, %v880_v61 }
  0xb6   :  { %v871_v52 = vrot.slane %v845_v49, 4  ;;  %1350 = vrot.lane.b32.xlu1 %v10510_v43, %s10160_s0  ;;  %2522 = vmatprep.subr.bf16.mxu1 %v9349_v30 }
  0xb7   :  { %1332 = vrot.lane.b32.xlu0 %v10512_v44, %s10160_s0 }
  0xb8   :  { %v897_v62 = vsel %vm414_vm1, %v871_v52, %v872_v48  ;;  %v10522_v54 = vpop.permute.xlu1 %673 }
  0xb9   :  { %v898_v56 = vsel %vm881_vm5, %v845_v49, %v897_v62  ;;  %v672_v38 = vpop.permute.xlu0 %671  ;;  %2523 = vmatpush1.bf16.msra.mxu1 %v9348_v50  ;;  %v708_v39 = vrot.slane %v10522_v54, 4 }
  0xba   :  { %v707_v57 = vrot.slane %v672_v38, 4  ;;  %1502 = vrot.lane.b32.xlu1 %v10383_v63, %s10164_s28  ;;  %v9331_v58 = vcombine.high %v882_v55, %v898_v56  ;;  %v9330_v60 = vcombine.low %v882_v55, %v898_v56  ;;  %v10538_v63 = vld [vmem:[#allocation3 + $0x94] sm:$0xff] }
  0xbb   :  { %1484 = vrot.lane.b32.xlu0 %v10385_v0, %s10164_s28 }
  0xbc   :  { %2481 = vmatprep.subr.bf16.mxu0 %v9331_v58  ;;  %v692_v1 = vpop.permute.xlu1 %691  ;;  %v725_v5 = vsel %vm414_vm1, %v707_v57, %v708_v39 }
  0xbd   :  { %v717_v2 = vrot.slane %v692_v1, 4  ;;  %2482 = vmatpush1.bf16.msra.mxu0 %v9330_v60  ;;  %v690_v3 = vpop.permute.xlu0 %689  ;;  %v727_v25 = vsel %vm726_vm6, %v672_v38, %v725_v5 }
  0xbe   :  { %v716_v6 = vrot.slane %v690_v3, 4  ;;  %1196 = vrot.lane.b32.xlu1 %v10510_v43, %s10161_s25 }
  0xbf   :  { %1178 = vrot.lane.b32.xlu0 %v10512_v44, %s10161_s25 }
  0xc0   :  { %v742_v0 = vsel %vm414_vm1, %v716_v6, %v717_v2  ;;  %v10541_v21 = vpop.permute.xlu1 %848 }
  0xc1   :  { %v743_v12 = vsel %vm726_vm6, %v690_v3, %v742_v0  ;;  %v873_v14 = vrot.slane %v10541_v21, 4  ;;  %v10548_v16 = vpop.permute.xlu0 %830 }
  0xc2   :  { %v864_v22 = vrot.slane %v10548_v16, 4  ;;  %1352 = vrot.lane.b32.xlu1 %v10538_v63, %s10160_s0  ;;  %v9315_v20 = vcombine.high %v727_v25, %v743_v12  ;;  %v9314_v24 = vcombine.low %v727_v25, %v743_v12 }
  0xc3   :  { %1334 = vrot.lane.b32.xlu0 %v10543_v11, %s10160_s0  ;;  %v899_v15 = vsel %vm414_vm1, %v872_v48, %v873_v14 }
  0xc4   :  { %2483 = vmatprep.subr.bf16.mxu0 %v9315_v20  ;;  %v10558_v19 = vpop.permute.xlu1 %518  ;;  %v883_v36 = vsel %vm414_vm1, %v863_v29, %v864_v22  ;;  %v900_v37 = vsel %vm881_vm5, %v847_v46, %v899_v15 }
  0xc5   :  { %2484 = vmatpush1.bf16.msra.mxu0 %v9314_v24  ;;  %v517_v26 = vpop.permute.xlu0 %516  ;;  %v884_v27 = vsel %vm881_vm5, %v10496_v10, %v883_v36  ;;  %v553_v30 = vrot.slane %v10558_v19, 4 }
  0xc6   :  { %v552_v31 = vrot.slane %v517_v26, 4  ;;  %1041 = vrot.lane.b32.xlu1 %v10510_v43, %s10162_s26  ;;  %v9333_v41 = vcombine.high %v884_v27, %v900_v37  ;;  %v9332_v42 = vcombine.low %v884_v27, %v900_v37 }
  0xc7   :  { %1023 = vrot.lane.b32.xlu0 %v10512_v44, %s10162_s26 }
  0xc8   :  { %2524 = vmatprep.subr.bf16.mxu1 %v9333_v41  ;;  %v537_v29 = vpop.permute.xlu1 %536  ;;  %v570_v10 = vsel %vm414_vm1, %v552_v31, %v553_v30 }
  0xc9   :  { %v562_v48 = vrot.slane %v537_v29, 4  ;;  %2525 = vmatpush1.bf16.msra.mxu1 %v9332_v42  ;;  %v535_v46 = vpop.permute.xlu0 %534  ;;  %v572_v52 = vsel %vm571_vm2, %v517_v26, %v570_v10 }
  0xca   :  { %v561_v49 = vrot.slane %v535_v46, 4  ;;  %1198 = vrot.lane.b32.xlu1 %v10538_v63, %s10161_s25 }
  0xcb   :  { %1180 = vrot.lane.b32.xlu0 %v10543_v11, %s10161_s25 }
  0xcc   :  { %v587_v50 = vsel %vm414_vm1, %v561_v49, %v562_v48  ;;  %v10579_v61 = vpop.permute.xlu1 %693 }
  0xcd   :  { %v588_v62 = vsel %vm571_vm2, %v535_v46, %v587_v50  ;;  %v718_v55 = vrot.slane %v10579_v61, 4  ;;  %v10584_v56 = vpop.permute.xlu0 %675 }
  0xce   :  { %v709_v38 = vrot.slane %v10584_v56, 4  ;;  %1043 = vrot.lane.b32.xlu1 %v10538_v63, %s10162_s26  ;;  %v9299_v57 = vcombine.high %v572_v52, %v588_v62  ;;  %v9298_v58 = vcombine.low %v572_v52, %v588_v62 }
  0xcf   :  { %1025 = vrot.lane.b32.xlu0 %v10543_v11, %s10162_s26  ;;  %v744_v60 = vsel %vm414_vm1, %v717_v2, %v718_v55 }
  0xd0   :  { %2485 = vmatprep.subr.bf16.mxu0 %v9299_v57  ;;  %v363_v3 = vpop.permute.xlu1 %362  ;;  %v728_v5 = vsel %vm414_vm1, %v708_v39, %v709_v38  ;;  %v745_v6 = vsel %vm726_vm6, %v692_v1, %v744_v60 }
  0xd1   :  { %2486 = vmatpush1.bf16.msra.mxu0 %v9298_v58  ;;  %v361_v0 = vpop.permute.xlu0 %360  ;;  %v729_v25 = vsel %vm726_vm6, %v10522_v54, %v728_v5  ;;  %v397_v12 = vrot.slane %v363_v3, 4 }
  0xd2   :  { %v396_v20 = vrot.slane %v361_v0, 4  ;;  %854 = vrot.lane.b32.xlu1 %v10235_v34, %s10163_s27  ;;  %v9317_v2 = vcombine.high %v729_v25, %v745_v6  ;;  %v9316_v24 = vcombine.low %v729_v25, %v745_v6 }
  0xd3   :  { %836 = vrot.lane.b32.xlu0 %v10237_v35, %s10163_s27 }
  0xd4   :  { %2526 = vmatprep.subr.bf16.mxu1 %v9317_v2  ;;  %v381_v15 = vpop.permute.xlu1 %380  ;;  %v415_v36 = vsel %vm414_vm1, %v396_v20, %v397_v12 }
  0xd5   :  { %v406_v39 = vrot.slane %v381_v15, 4  ;;  %2527 = vmatpush1.bf16.msra.mxu1 %v9316_v24  ;;  %v379_v1 = vpop.permute.xlu0 %378  ;;  %v417_v27 = vsel %vm416_vm3, %v361_v0, %v415_v36 }
  0xd6   :  { %v405_v37 = vrot.slane %v379_v1, 4  ;;  %699 = vrot.lane.b32.xlu1 %v10235_v34, %s10164_s28 }
  0xd7   :  { %681 = vrot.lane.b32.xlu0 %v10237_v35, %s10164_s28 }
  0xd8   :  { %v432_v54 = vsel %vm414_vm1, %v405_v37, %v406_v39  ;;  %v10612_v26 = vpop.permute.xlu1 %538 }
  0xd9   :  { %v433_v31 = vsel %vm416_vm3, %v379_v1, %v432_v54  ;;  %v563_v41 = vrot.slane %v10612_v26, 4  ;;  %v10617_v42 = vpop.permute.xlu0 %520 }
  0xda   :  { %v554_v46 = vrot.slane %v10617_v42, 4  ;;  %856 = vrot.lane.b32.xlu1 %v10274_v45, %s10163_s27  ;;  %v9283_v10 = vcombine.high %v417_v27, %v433_v31  ;;  %v9282_v49 = vcombine.low %v417_v27, %v433_v31 }
  0xdb   :  { %838 = vrot.lane.b32.xlu0 %v10278_v47, %s10163_s27  ;;  %v589_v50 = vsel %vm414_vm1, %v562_v48, %v563_v41 }
  0xdc   :  { %2487 = vmatprep.subr.bf16.mxu0 %v9283_v10  ;;  %v10627_v52 = vpop.permute.xlu1 %382  ;;  %v573_v62 = vsel %vm414_vm1, %v553_v30, %v554_v46  ;;  %v590_v57 = vsel %vm571_vm2, %v537_v29, %v589_v50 }
  0xdd   :  { %v407_v58 = vrot.slane %v10627_v52, 4  ;;  %2488 = vmatpush1.bf16.msra.mxu0 %v9282_v49  ;;  %v10636_v60 = vpop.permute.xlu0 %364  ;;  %v574_v5 = vsel %vm571_vm2, %v10558_v19, %v573_v62 }
  0xde   :  { %v398_v48 = vrot.slane %v10636_v60, 4  ;;  %544 = vrot.lane.b32.xlu1 %v10235_v34, %s10160_s0  ;;  %v9301_v6 = vcombine.high %v574_v5, %v590_v57  ;;  %v9300_v0 = vcombine.low %v574_v5, %v590_v57 }
  0xdf   :  { %526 = vrot.lane.b32.xlu0 %v10237_v35, %s10160_s0  ;;  %v434_v30 = vsel %vm414_vm1, %v406_v39, %v407_v58 }
  0xe0   :  { %2528 = vmatprep.subr.bf16.mxu1 %v9301_v6  ;;  %v1479_v29 = vpop.permute.xlu1 %1478  ;;  %v418_v19 = vsel %vm414_vm1, %v397_v12, %v398_v48  ;;  %v435_v25 = vsel %vm416_vm3, %v381_v15, %v434_v30 }
  0xe1   :  { %2529 = vmatpush1.bf16.msra.mxu1 %v9300_v0  ;;  %v1477_v20 = vpop.permute.xlu0 %1476  ;;  %v419_v2 = vsel %vm416_vm3, %v363_v3, %v418_v19  ;;  %v1513_v24 = vrot.slane %v1479_v29, 4  ;;  %v10685_v19 = vld [vmem:[%s14418_s1] ss:$8 sps:$4 sm:$0xff]  }
  0xe2   :  { %v1512_v1 = vrot.slane %v1477_v20, 4  ;;  %701 = vrot.lane.b32.xlu1 %v10274_v45, %s10164_s28  ;;  %v9285_v36 = vcombine.high %v419_v2, %v435_v25  ;;  %v9284_v37 = vcombine.low %v419_v2, %v435_v25 }
  0xe3   :  { %683 = vrot.lane.b32.xlu0 %v10278_v47, %s10164_s28 }
  0xe4   :  { %2530 = vmatprep.subr.bf16.mxu1 %v9285_v36  ;;  %v1497_v39 = vpop.permute.xlu1 %1496  ;;  %v1530_v15 = vsel %vm414_vm1, %v1512_v1, %v1513_v24 }
  0xe5   :  { %v1522_v54 = vrot.slane %v1497_v39, 4  ;;  %2531 = vmatpush1.bf16.msra.mxu1 %v9284_v37  ;;  %v1495_v12 = vpop.permute.xlu0 %1494  ;;  %v1531_v10 = vsel %vm726_vm6, %v1477_v20, %v1530_v15 }
  0xe6   :  { %v1521_v27 = vrot.slane %v1495_v12, 4  ;;  %388 = vrot.lane.b32.xlu1 %v10235_v34, %s10161_s25 }
  0xe7   :  { %370 = vrot.lane.b32.xlu0 %v10237_v35, %s10161_s25 }
  0xe8   :  { %v1546_v3 = vsel %vm414_vm1, %v1521_v27, %v1522_v54  ;;  %v1347_v31 = vpop.permute.xlu1 %1346 }
  0xe9   :  { %v1547_v49 = vsel %vm726_vm6, %v1495_v12, %v1546_v3  ;;  %v1370_v50 = vrot.slane %v1347_v31, 4  ;;  %v10665_v62 = vpop.permute.xlu0 %1328  ;;  %v10725_v3 = vld [vmem:[#allocation3 + $0x44] sm:$0xff] }
  0xea   :  { %v1361_v57 = vrot.slane %v10665_v62, 4  ;;  %546 = vrot.lane.b32.xlu1 %v10274_v45, %s10160_s0  ;;  %v9411_v5 = vcombine.high %v1531_v10, %v1547_v49  ;;  %v9410_v34 = vcombine.low %v1531_v10, %v1547_v49 }
  0xeb   :  { %528 = vrot.lane.b32.xlu0 %v10278_v47, %s10160_s0  ;;  %v1396_v35 = vsel %vm414_vm1, %v1369_v32, %v1370_v50 }
  0xec   :  { %2503 = vmatprep.subr.bf16.mxu0 %v9411_v5  ;;  %v10675_v6 = vpop.permute.xlu1 %1498  ;;  %v1380_v0 = vsel %vm414_vm1, %v1360_v40, %v1361_v57  ;;  %v1397_v30 = vsel %vm571_vm2, %v10426_v28, %v1396_v35 }
  0xed   :  { %v1523_v25 = vrot.slane %v10675_v6, 4  ;;  %2504 = vmatpush2.bf16.msra.mxu0 %v9410_v34  ;;  %v10688_v20 = vpop.permute.xlu0 %1480  ;;  %v1381_v32 = vsel %vm571_vm2, %v10431_v33, %v1380_v0 }
  0xee   :  { %v1514_v2 = vrot.slane %v10688_v20, 4  ;;  %390 = vrot.lane.b32.xlu1 %v10274_v45, %s10161_s25  ;;  %v9398_v40 = vcombine.low %v1381_v32, %v1397_v30  ;;  %v9399_v28 = vcombine.high %v1381_v32, %v1397_v30 }
  0xef   :  { %372 = vrot.lane.b32.xlu0 %v10278_v47, %s10161_s25  ;;  %v1548_v1 = vsel %vm414_vm1, %v1522_v54, %v1523_v25 }
  0xf0   :  { %2559 = vmatprep.subr.bf16.mxu0 %v9399_v28  ;;  %v10700_v36 = vpop.permute.xlu1 %1192  ;;  %2506 = vmatmul.mubr.bf16.vlgmr.msra.gmra.mxu0 %v10685_v19  ;;  %v1532_v33 = vsel %vm414_vm1, %v1513_v24, %v1514_v2  ;;  %v1549_v45 = vsel %vm726_vm6, %v1497_v39, %v1548_v1  ;;  %v10718_v24 = vld [vmem:[#allocation3 + $0x9c] sm:$0xff] }
  0xf1   :  { %v1216_v37 = vrot.slane %v10700_v36, 4  ;;  %2560 = vmatpush1.bf16.msra.mxu0 %v9398_v40  ;;  %v10708_v12 = vpop.permute.xlu0 %1174  ;;  %v1533_v47 = vsel %vm726_vm6, %v1479_v29, %v1532_v33  ;;  %9428 = vmatprep.mubr.msk.bf16.mxu0 %vm2469_vm0, %v10355_v59 }
  0xf2   :  { %v1207_v54 = vrot.slane %v10708_v12, 4  ;;  %1504 = vrot.lane.b32.xlu1 %v10510_v43, %s10164_s28  ;;  %v9413_v15 = vcombine.high %v1533_v47, %v1549_v45  ;;  %v9412_v27 = vcombine.low %v1533_v47, %v1549_v45 }
  0xf3   :  { %1486 = vrot.lane.b32.xlu0 %v10512_v44, %s10164_s28  ;;  %v1242_v39 = vsel %vm414_vm1, %v1215_v7, %v1216_v37 }
  0xf4   :  { %2546 = vmatprep.subr.bf16.mxu1 %v9413_v15  ;;  %v10723_v29 = vpop.permute.xlu1 %1348  ;;  %v1226_v43 = vsel %vm414_vm1, %v1206_v9, %v1207_v54  ;;  %v1243_v10 = vsel %vm416_vm3, %v10456_v4, %v1242_v39  ;;  %v9885_v15 = vld [vmem:[#allocation3 + $0x20] ss:$88 sps:$4 sm:$0xff]  }
  0xf5   :  { %v1371_v44 = vrot.slane %v10723_v29, 4  ;;  %2547 = vmatpush2.bf16.msra.mxu1 %v9412_v27  ;;  %v10733_v49 = vpop.permute.xlu0 %1330  ;;  %v1227_v7 = vsel %vm416_vm3, %v10461_v8, %v1226_v43 }
  0xf6   :  { %v1362_v5 = vrot.slane %v10733_v49, 4  ;;  %1354 = vrot.lane.b32.xlu1 %v10718_v24, %s10160_s0  ;;  %v9382_v34 = vcombine.low %v1227_v7, %v1243_v10  ;;  %v9383_v35 = vcombine.high %v1227_v7, %v1243_v10 }
  0xf7   :  { %1336 = vrot.lane.b32.xlu0 %v10725_v3, %s10160_s0  ;;  %v1398_v4 = vsel %vm414_vm1, %v1370_v50, %v1371_v44 }
  0xf8   :  { %2561 = vmatprep.subr.bf16.mxu0 %v9383_v35  ;;  %v1038_v9 = vpop.permute.xlu1 %1037  ;;  %v1382_v8 = vsel %vm414_vm1, %v1361_v57, %v1362_v5  ;;  %v1399_v0 = vsel %vm571_vm2, %v1347_v31, %v1398_v4  ;;  %2549 = vmatmul.mubr.bf16.vlgmr.msra.gmra.mxu1 %v10685_v19 }
  0xf9   :  { %v1061_v30 = vrot.slane %v1038_v9, 4  ;;  %2562 = vmatpush1.bf16.msra.mxu0 %v9382_v34  ;;  %v1020_v32 = vpop.permute.xlu0 %1019  ;;  %v1383_v40 = vsel %vm571_vm2, %v10665_v62, %v1382_v8  ;;  %9429 = vmatprep.mubr.msk.bf16.mxu1 %vm2469_vm0, %v10355_v59 }
  0xfa   :  { %v1052_v50 = vrot.slane %v1020_v32, 4  ;;  %1506 = vrot.lane.b32.xlu1 %v10538_v63, %s10164_s28  ;;  %v9400_v28 = vcombine.low %v1383_v40, %v1399_v0  ;;  %v9401_v1 = vcombine.high %v1383_v40, %v1399_v0 }
  0xfb   :  { %1488 = vrot.lane.b32.xlu0 %v10543_v11, %s10164_s28  ;;  %v1088_v31 = vsel %vm414_vm1, %v1060_v17, %v1061_v30 }
  0xfc   :  { %2602 = vmatprep.subr.bf16.mxu1 %v9401_v1  ;;  %v10761_v57 = vpop.permute.xlu1 %1194  ;;  %v1072_v59 = vsel %vm414_vm1, %v1051_v23, %v1052_v50  ;;  %v1089_v62 = vsel %vm1068_vm4, %v10473_v13, %v1088_v31  ;;  %v1303_v13 = vld [vmem:[#allocation3 + $0xa4] sm:$0xf] }
  0xfd   :  { %v1217_v63 = vrot.slane %v10761_v57, 4  ;;  %2603 = vmatpush1.bf16.msra.mxu1 %v9400_v28  ;;  %v10769_v33 = vpop.permute.xlu0 %1176  ;;  %v1073_v11 = vsel %vm1068_vm4, %v10482_v18, %v1072_v59  ;;  %v1294_v18 = vld [vmem:[#allocation3 + $0x4c] sm:$0xf] }
  0xfe   :  { %v1208_v17 = vrot.slane %v10769_v33, 4  ;;  %1200 = vrot.lane.b32.xlu1 %v10718_v24, %s10161_s25  ;;  %v9366_v45 = vcombine.low %v1073_v11, %v1089_v62  ;;  %v9367_v47 = vcombine.high %v1073_v11, %v1089_v62  ;;  %v9888_v62 = vld [vmem:[#allocation3 + $0x28] ss:$88 sps:$4 sm:$0xff]   ;;  %v1149_v11 = vld [vmem:[#allocation3 + $0xa4] sm:$0xf] }
  0xff   :  { %1182 = vrot.lane.b32.xlu0 %v10725_v3, %s10161_s25  ;;  %v1244_v23 = vsel %vm414_vm1, %v1216_v37, %v1217_v63  ;;  %v9887_v37 = vld [vmem:[#allocation3 + $0x1c] ss:$88 sps:$4 sm:$0xff]  }
 0x100   :  { %2563 = vmatprep.subr.bf16.mxu0 %v9367_v47  ;;  %v10781_v27 = vpop.permute.xlu1 %1039  ;;  %v1228_v39 = vsel %vm414_vm1, %v1207_v54, %v1208_v17  ;;  %v1245_v43 = vsel %vm416_vm3, %v10700_v36, %v1244_v23 }
 0x101   :  { %v1062_v10 = vrot.slane %v10781_v27, 4  ;;  %2564 = vmatpush1.bf16.msra.mxu0 %v9366_v45  ;;  %v10789_v7 = vpop.permute.xlu0 %1021  ;;  %v1229_v34 = vsel %vm416_vm3, %v10708_v12, %v1228_v39 }
 0x102   :  { %v1053_v35 = vrot.slane %v10789_v7, 4  ;;  %1356 = vrot.lane.b32.xlu1 %v1303_v13, %s10160_s0  ;;  %v9384_v4 = vcombine.low %v1229_v34, %v1245_v43  ;;  %v9385_v8 = vcombine.high %v1229_v34, %v1245_v43  ;;  %2565 = vmatprep.subr.bf16.mxu0 %v9885_v15 }
 0x103   :  { %1338 = vrot.lane.b32.xlu0 %v1294_v18, %s10160_s0  ;;  %v1090_v36 = vsel %vm414_vm1, %v1061_v30, %v1062_v10 }
 0x104   :  { %2604 = vmatprep.subr.bf16.mxu1 %v9385_v8  ;;  %v851_v54 = vpop.permute.xlu1 %850  ;;  %v1074_v12 = vsel %vm414_vm1, %v1052_v50, %v1053_v35  ;;  %v1091_v0 = vsel %vm1068_vm4, %v1038_v9, %v1090_v36 }
 0x105   :  { %v874_v40 = vrot.slane %v851_v54, 4  ;;  %2605 = vmatpush1.bf16.msra.mxu1 %v9384_v4  ;;  %v833_v28 = vpop.permute.xlu0 %832  ;;  %v1075_v1 = vsel %vm1068_vm4, %v1020_v32, %v1074_v12  ;;  %2566 = vmatpush1.bf16.msra.mxu0 %v9887_v37  ;;  %v1140_v32 = vld [vmem:[#allocation3 + $0x4c] sm:$0xf] }
 0x106   :  { %v865_v31 = vrot.slane %v833_v28, 4  ;;  %1045 = vrot.lane.b32.xlu1 %v10718_v24, %s10162_s26  ;;  %v9368_v59 = vcombine.low %v1075_v1, %v1091_v0  ;;  %v9369_v30 = vcombine.high %v1075_v1, %v1091_v0  ;;  %v985_v37 = vld [vmem:[#allocation3 + $0x4c] sm:$0xf] }
 0x107   :  { %1027 = vrot.lane.b32.xlu0 %v10725_v3, %s10162_s26  ;;  %v901_v9 = vsel %vm414_vm1, %v873_v14, %v874_v40  ;;  %v9890_v14 = vld [vmem:[#allocation3 + $0x24] ss:$88 sps:$4 sm:$0xff]  }
 0x108   :  { %2606 = vmatprep.subr.bf16.mxu1 %v9369_v30  ;;  %v10811_v50 = vpop.permute.xlu1 %695  ;;  %v885_v45 = vsel %vm414_vm1, %v864_v22, %v865_v31  ;;  %v902_v47 = vsel %vm881_vm5, %v10541_v21, %v901_v9  ;;  %v994_v22 = vld [vmem:[#allocation3 + $0xa4] sm:$0xf] }
 0x109   :  { %v719_v15 = vrot.slane %v10811_v50, 4  ;;  %2607 = vmatpush1.bf16.msra.mxu1 %v9368_v59  ;;  %v10819_v13 = vpop.permute.xlu0 %677  ;;  %v886_v23 = vsel %vm881_vm5, %v10548_v16, %v885_v45 }
 0x10a   :  { %v710_v18 = vrot.slane %v10819_v13, 4  ;;  %1202 = vrot.lane.b32.xlu1 %v1149_v11, %s10161_s25  ;;  %v9334_v39 = vcombine.low %v886_v23, %v902_v47  ;;  %v9335_v43 = vcombine.high %v886_v23, %v902_v47  ;;  %2608 = vmatprep.subr.bf16.mxu1 %v9888_v62  ;;  %v9997_v23 = vld [vmem:[#allocation3 + $0x98] sm:$0xff] }
 0x10b   :  { %1184 = vrot.lane.b32.xlu0 %v1140_v32, %s10161_s25  ;;  %v746_v21 = vsel %vm414_vm1, %v718_v55, %v719_v15 }
 0x10c   :  { %2567 = vmatprep.subr.bf16.mxu0 %v9335_v43  ;;  %v10829_v34 = vpop.permute.xlu1 %852  ;;  %v730_v16 = vsel %vm414_vm1, %v709_v38, %v710_v18  ;;  %v747_v4 = vsel %vm726_vm6, %v10579_v61, %v746_v21  ;;  %v9998_v43 = vld [vmem:[#allocation3 + $0x40] sm:$0xff]  ;;  %v798_v21 = vld [vmem:[#allocation3 + $0x48] sm:$0xf] }
 0x10d   :  { %v875_v8 = vrot.slane %v10829_v34, 4  ;;  %2568 = vmatpush1.bf16.msra.mxu0 %v9334_v39  ;;  %v10837_v36 = vpop.permute.xlu0 %834  ;;  %v731_v12 = vsel %vm726_vm6, %v10584_v56, %v730_v16  ;;  %2609 = vmatpush1.bf16.msra.mxu1 %v9890_v14 }
 0x10e   :  { %v866_v55 = vrot.slane %v10837_v36, 4  ;;  %1047 = vrot.lane.b32.xlu1 %v994_v22, %s10162_s26  ;;  %v9318_v0 = vcombine.low %v731_v12, %v747_v4  ;;  %v9319_v1 = vcombine.high %v731_v12, %v747_v4 }
 0x10f   :  { %1029 = vrot.lane.b32.xlu0 %v985_v37, %s10162_s26  ;;  %v903_v61 = vsel %vm414_vm1, %v874_v40, %v875_v8 }
 0x110   :  { %2569 = vmatprep.subr.bf16.mxu0 %v9319_v1  ;;  %v10847_v38 = vpop.permute.xlu1 %540  ;;  %v887_v56 = vsel %vm414_vm1, %v865_v31, %v866_v55  ;;  %v904_v59 = vsel %vm881_vm5, %v851_v54, %v903_v61 }
 0x111   :  { %v564_v30 = vrot.slane %v10847_v38, 4  ;;  %2570 = vmatpush1.bf16.msra.mxu0 %v9318_v0  ;;  %v10854_v62 = vpop.permute.xlu0 %522  ;;  %v888_v11 = vsel %vm881_vm5, %v833_v28, %v887_v56 }
 0x112   :  { %v555_v9 = vrot.slane %v10854_v62, 4  ;;  %858 = vrot.lane.b32.xlu1 %v10292_v51, %s10163_s27  ;;  %v9336_v40 = vcombine.low %v888_v11, %v904_v59  ;;  %v9337_v32 = vcombine.high %v888_v11, %v904_v59 }
 0x113   :  { %840 = vrot.lane.b32.xlu0 %v10296_v53, %s10163_s27  ;;  %v591_v54 = vsel %vm414_vm1, %v563_v41, %v564_v30 }
 0x114   :  { %2610 = vmatprep.subr.bf16.mxu1 %v9337_v32  ;;  %v10865_v31 = vpop.permute.xlu1 %697  ;;  %v575_v28 = vsel %vm414_vm1, %v554_v46, %v555_v9  ;;  %v592_v45 = vsel %vm571_vm2, %v10612_v26, %v591_v54  ;;  %v807_v46 = vld [vmem:[#allocation3 + $0xa0] sm:$0xf] }
 0x115   :  { %v720_v51 = vrot.slane %v10865_v31, 4  ;;  %2611 = vmatpush1.bf16.msra.mxu1 %v9336_v40  ;;  %v10873_v47 = vpop.permute.xlu0 %679  ;;  %v576_v53 = vsel %vm571_vm2, %v10617_v42, %v575_v28  ;;  %v643_v28 = vld [vmem:[#allocation3 + $0x48] sm:$0xf] }
 0x116   :  { %v711_v41 = vrot.slane %v10873_v47, 4  ;;  %703 = vrot.lane.b32.xlu1 %v9997_v23, %s10164_s28  ;;  %v9302_v14 = vcombine.low %v576_v53, %v592_v45  ;;  %v9303_v39 = vcombine.high %v576_v53, %v592_v45 }
 0x117   :  { %685 = vrot.lane.b32.xlu0 %v9998_v43, %s10164_s28  ;;  %v748_v26 = vsel %vm414_vm1, %v719_v15, %v720_v51 }
 0x118   :  { %2571 = vmatprep.subr.bf16.mxu0 %v9303_v39  ;;  %v385_v22 = vpop.permute.xlu1 %384  ;;  %v732_v42 = vsel %vm414_vm1, %v710_v18, %v711_v41  ;;  %v749_v37 = vsel %vm726_vm6, %v10811_v50, %v748_v26 }
 0x119   :  { %v408_v16 = vrot.slane %v385_v22, 4  ;;  %2572 = vmatpush1.bf16.msra.mxu0 %v9302_v14  ;;  %v367_v4 = vpop.permute.xlu0 %366  ;;  %v733_v12 = vsel %vm726_vm6, %v10819_v13, %v732_v42 }
 0x11a   :  { %v399_v0 = vrot.slane %v367_v4, 4  ;;  %860 = vrot.lane.b32.xlu1 %v807_v46, %s10163_s27  ;;  %v9320_v15 = vcombine.low %v733_v12, %v749_v37  ;;  %v9321_v1 = vcombine.high %v733_v12, %v749_v37 }
 0x11b   :  { %842 = vrot.lane.b32.xlu0 %v798_v21, %s10163_s27  ;;  %v436_v18 = vsel %vm414_vm1, %v407_v58, %v408_v16 }
 0x11c   :  { %2612 = vmatprep.subr.bf16.mxu1 %v9321_v1  ;;  %v10895_v61 = vpop.permute.xlu1 %542  ;;  %v420_v50 = vsel %vm414_vm1, %v398_v48, %v399_v0  ;;  %v437_v13 = vsel %vm416_vm3, %v10627_v52, %v436_v18  ;;  %v652_v48 = vld [vmem:[#allocation3 + $0xa0] sm:$0xf] }
 0x11d   :  { %v565_v56 = vrot.slane %v10895_v61, 4  ;;  %2613 = vmatpush1.bf16.msra.mxu1 %v9320_v15  ;;  %v10903_v59 = vpop.permute.xlu0 %524  ;;  %v421_v11 = vsel %vm416_vm3, %v10636_v60, %v420_v50 }
 0x11e   :  { %v556_v58 = vrot.slane %v10903_v59, 4  ;;  %548 = vrot.lane.b32.xlu1 %v9997_v23, %s10160_s0  ;;  %v9286_v40 = vcombine.low %v421_v11, %v437_v13  ;;  %v9287_v32 = vcombine.high %v421_v11, %v437_v13 }
 0x11f   :  { %530 = vrot.lane.b32.xlu0 %v9998_v43, %s10160_s0  ;;  %v593_v52 = vsel %vm414_vm1, %v564_v30, %v565_v56 }
 0x120   :  { %2573 = vmatprep.subr.bf16.mxu0 %v9287_v32  ;;  %v10913_v54 = vpop.permute.xlu1 %386  ;;  %v577_v60 = vsel %vm414_vm1, %v555_v9, %v556_v58  ;;  %v594_v45 = vsel %vm571_vm2, %v10847_v38, %v593_v52  ;;  %v332_v52 = vld [vmem:[#allocation3 + $0x48] sm:$0xf] }
 0x121   :  { %v409_v53 = vrot.slane %v10913_v54, 4  ;;  %2574 = vmatpush1.bf16.msra.mxu0 %v9286_v40  ;;  %v10921_v14 = vpop.permute.xlu0 %368  ;;  %v578_v39 = vsel %vm571_vm2, %v10854_v62, %v577_v60 }
 0x122   :  { %v400_v30 = vrot.slane %v10921_v14, 4  ;;  %705 = vrot.lane.b32.xlu1 %v652_v48, %s10164_s28  ;;  %v9304_v46 = vcombine.low %v578_v39, %v594_v45  ;;  %v9305_v26 = vcombine.high %v578_v39, %v594_v45 }
 0x123   :  { %687 = vrot.lane.b32.xlu0 %v643_v28, %s10164_s28  ;;  %v438_v38 = vsel %vm414_vm1, %v408_v16, %v409_v53  ;;  %v497_v16 = vld [vmem:[#allocation3 + $0xa0] sm:$0xf] }
 0x124   :  { %2614 = vmatprep.subr.bf16.mxu1 %v9305_v26  ;;  %v1501_v9 = vpop.permute.xlu1 %1500  ;;  %v422_v21 = vsel %vm414_vm1, %v399_v0, %v400_v30  ;;  %v439_v62 = vsel %vm416_vm3, %v385_v22, %v438_v38  ;;  %v488_v22 = vld [vmem:[#allocation3 + $0x48] sm:$0xf] }
 0x125   :  { %v1524_v42 = vrot.slane %v1501_v9, 4  ;;  %2615 = vmatpush1.bf16.msra.mxu1 %v9304_v46  ;;  %v1483_v37 = vpop.permute.xlu0 %1482  ;;  %v423_v12 = vsel %vm416_vm3, %v367_v4, %v422_v21 }
 0x126   :  { %v1515_v15 = vrot.slane %v1483_v37, 4  ;;  %392 = vrot.lane.b32.xlu1 %v9997_v23, %s10161_s25  ;;  %v9288_v1 = vcombine.low %v423_v12, %v439_v62  ;;  %v9289_v18 = vcombine.high %v423_v12, %v439_v62 }
 0x127   :  { %374 = vrot.lane.b32.xlu0 %v9998_v43, %s10161_s25  ;;  %v1550_v50 = vsel %vm414_vm1, %v1523_v25, %v1524_v42 }
 0x128   :  { %2616 = vmatprep.subr.bf16.mxu1 %v9289_v18  ;;  %v10941_v0 = vpop.permute.xlu1 %1350  ;;  %v1534_v4 = vsel %vm414_vm1, %v1514_v2, %v1515_v15  ;;  %v1551_v23 = vsel %vm726_vm6, %v10675_v6, %v1550_v50  ;;  %v341_v2 = vld [vmem:[#allocation3 + $0xa0] sm:$0xf]  ;;  %v1457_v18 = vld [vmem:[#allocation3 + $0xa4] sm:$0xf]  ;;  %v1448_v50 = vld [vmem:[#allocation3 + $0x4c] sm:$0xf] }
 0x129   :  { %v1372_v13 = vrot.slane %v10941_v0, 4  ;;  %2617 = vmatpush1.bf16.msra.mxu1 %v9288_v1  ;;  %v10949_v43 = vpop.permute.xlu0 %1332  ;;  %v1535_v11 = vsel %vm726_vm6, %v10688_v20, %v1534_v4 }
 0x12a   :  { %v1363_v25 = vrot.slane %v10949_v43, 4  ;;  %550 = vrot.lane.b32.xlu1 %v497_v16, %s10160_s0  ;;  %v9414_v40 = vcombine.low %v1535_v11, %v1551_v23  ;;  %v9415_v32 = vcombine.high %v1535_v11, %v1551_v23 }
 0x12b   :  { %532 = vrot.lane.b32.xlu0 %v488_v22, %s10160_s0  ;;  %v1400_v6 = vsel %vm414_vm1, %v1371_v44, %v1372_v13 }
 0x12c   :  { %2589 = vmatprep.subr.bf16.mxu0 %v9415_v32  ;;  %v10959_v48 = vpop.permute.xlu1 %1502  ;;  %v1384_v20 = vsel %vm414_vm1, %v1362_v5, %v1363_v25  ;;  %v1401_v28 = vsel %vm571_vm2, %v10723_v29, %v1400_v6 }
 0x12d   :  { %v1525_v60 = vrot.slane %v10959_v48, 4  ;;  %2590 = vmatpush2.bf16.msra.mxu0 %v9414_v40  ;;  %v10967_v45 = vpop.permute.xlu0 %1484  ;;  %v1385_v39 = vsel %vm571_vm2, %v10733_v49, %v1384_v20 }
 0x12e   :  { %v1516_v44 = vrot.slane %v10967_v45, 4  ;;  %394 = vrot.lane.b32.xlu1 %v341_v2, %s10161_s25  ;;  %v9402_v46 = vcombine.low %v1385_v39, %v1401_v28  ;;  %v9403_v26 = vcombine.high %v1385_v39, %v1401_v28 }
 0x12f   :  { %376 = vrot.lane.b32.xlu0 %v332_v52, %s10161_s25  ;;  %v1552_v29 = vsel %vm414_vm1, %v1524_v42, %v1525_v60  ;;  %v10989_v42 = vld [vmem:[%s14418_s1 + $0x4] ss:$8 sps:$4 sm:$0xff]  }
 0x130   :  { %2645 = vmatprep.subr.bf16.mxu0 %v9403_v26  ;;  %v10977_v5 = vpop.permute.xlu1 %1196  ;;  %2592 = vmatmul.mubr.bf16.vlgmr.msra.gmra.mxu0 %v10685_v19  ;;  %v1536_v49 = vsel %vm414_vm1, %v1515_v15, %v1516_v44  ;;  %v1553_v38 = vsel %vm726_vm6, %v1501_v9, %v1552_v29 }
 0x131   :  { %v1218_v21 = vrot.slane %v10977_v5, 4  ;;  %2646 = vmatpush1.bf16.msra.mxu0 %v9402_v46  ;;  %v1179_v62 = vpop.permute.xlu0 %1178  ;;  %v1537_v12 = vsel %vm726_vm6, %v1483_v37, %v1536_v49  ;;  %9430 = vmatprep.mubr.msk.bf16.mxu0 %vm2469_vm0, %v10989_v42 }
 0x132   :  { %v1209_v1 = vrot.slane %v1179_v62, 4  ;;  %1508 = vrot.lane.b32.xlu1 %v10718_v24, %s10164_s28  ;;  %v9416_v15 = vcombine.low %v1537_v12, %v1553_v38  ;;  %v9417_v9 = vcombine.high %v1537_v12, %v1553_v38  ;;  %v9891_v12 = vld [vmem:[#allocation3 + $0x30] ss:$88 sps:$4 sm:$0xff]  }
 0x133   :  { %1490 = vrot.lane.b32.xlu0 %v10725_v3, %s10164_s28  ;;  %v1246_v37 = vsel %vm414_vm1, %v1217_v63, %v1218_v21 }
 0x134   :  { %2632 = vmatprep.subr.bf16.mxu1 %v9417_v9  ;;  %v11000_v16 = vpop.permute.xlu1 %1352  ;;  %v1230_v22 = vsel %vm414_vm1, %v1208_v17, %v1209_v1  ;;  %v1247_v24 = vsel %vm416_vm3, %v10761_v57, %v1246_v37 }
 0x135   :  { %v1373_v4 = vrot.slane %v11000_v16, 4  ;;  %2633 = vmatpush2.bf16.msra.mxu1 %v9416_v15  ;;  %v11008_v3 = vpop.permute.xlu0 %1334  ;;  %v1231_v23 = vsel %vm416_vm3, %v10769_v33, %v1230_v22 }
 0x136   :  { %v1364_v63 = vrot.slane %v11008_v3, 4  ;;  %1510 = vrot.lane.b32.xlu1 %v1457_v18, %s10164_s28  ;;  %v9386_v11 = vcombine.low %v1231_v23, %v1247_v24  ;;  %v9387_v40 = vcombine.high %v1231_v23, %v1247_v24 }
 0x137   :  { %1492 = vrot.lane.b32.xlu0 %v1448_v50, %s10164_s28  ;;  %v1402_v57 = vsel %vm414_vm1, %v1372_v13, %v1373_v4  ;;  %v9893_v50 = vld [vmem:[#allocation3 + $0x2c] ss:$88 sps:$4 sm:$0xff]  }
 0x138   :  { %2647 = vmatprep.subr.bf16.mxu0 %v9387_v40  ;;  %v1042_v17 = vpop.permute.xlu1 %1041  ;;  %v1386_v32 = vsel %vm414_vm1, %v1363_v25, %v1364_v63  ;;  %v1403_v33 = vsel %vm571_vm2, %v10941_v0, %v1402_v57  ;;  %2635 = vmatmul.mubr.bf16.vlgmr.msra.gmra.mxu1 %v10685_v19 }
 0x139   :  { %v1063_v2 = vrot.slane %v1042_v17, 4  ;;  %2648 = vmatpush1.bf16.msra.mxu0 %v9386_v11  ;;  %v1024_v6 = vpop.permute.xlu0 %1023  ;;  %v1387_v52 = vsel %vm571_vm2, %v10949_v43, %v1386_v32  ;;  %9431 = vmatprep.mubr.msk.bf16.mxu1 %vm2469_vm0, %v10989_v42 }
 0x13a   :  { %v1054_v13 = vrot.slane %v1024_v6, 4  ;;  %v9404_v20 = vcombine.low %v1387_v52, %v1403_v33  ;;  %v9405_v28 = vcombine.high %v1387_v52, %v1403_v33 }
 0x13b   :  { %v1092_v25 = vsel %vm414_vm1, %v1062_v10, %v1063_v2 }
 0x13c   :  { %2688 = vmatprep.subr.bf16.mxu1 %v9405_v28  ;;  %v11031_v0 = vpop.permute.xlu1 %1198  ;;  %v1076_v39 = vsel %vm414_vm1, %v1053_v35, %v1054_v13  ;;  %v1093_v43 = vsel %vm1068_vm4, %v10781_v27, %v1092_v25 }
 0x13d   :  { %v1219_v46 = vrot.slane %v11031_v0, 4  ;;  %2689 = vmatpush1.bf16.msra.mxu1 %v9404_v20  ;;  %v11039_v26 = vpop.permute.xlu0 %1180  ;;  %v1077_v29 = vsel %vm1068_vm4, %v10789_v7, %v1076_v39  ;;  %v9894_v20 = vld [vmem:[#allocation3 + $0x38] ss:$88 sps:$4 sm:$0xff]  }
 0x13e   :  { %v1210_v10 = vrot.slane %v11039_v26, 4  ;;  %v9370_v49 = vcombine.low %v1077_v29, %v1093_v43  ;;  %v9371_v38 = vcombine.high %v1077_v29, %v1093_v43  ;;  %v9896_v43 = vld [vmem:[#allocation3 + $0x34] ss:$88 sps:$4 sm:$0xff]  }
 0x13f   :  { %v1248_v35 = vsel %vm414_vm1, %v1218_v21, %v1219_v46 }
 0x140   :  { %2649 = vmatprep.subr.bf16.mxu0 %v9371_v38  ;;  %v11047_v15 = vpop.permute.xlu1 %1043  ;;  %v1232_v27 = vsel %vm414_vm1, %v1209_v1, %v1210_v10  ;;  %v1249_v9 = vsel %vm416_vm3, %v10977_v5, %v1248_v35 }
 0x141   :  { %v1064_v7 = vrot.slane %v11047_v15, 4  ;;  %2650 = vmatpush1.bf16.msra.mxu0 %v9370_v49  ;;  %v11055_v18 = vpop.permute.xlu0 %1025  ;;  %v1233_v37 = vsel %vm416_vm3, %v1179_v62, %v1232_v27 }
 0x142   :  { %v1055_v21 = vrot.slane %v11055_v18, 4  ;;  %v9388_v22 = vcombine.low %v1233_v37, %v1249_v9  ;;  %v9389_v24 = vcombine.high %v1233_v37, %v1249_v9  ;;  %2651 = vmatprep.subr.bf16.mxu0 %v9891_v12 }
 0x143   :  { %v1094_v1 = vsel %vm414_vm1, %v1063_v2, %v1064_v7 }
 0x144   :  { %2690 = vmatprep.subr.bf16.mxu1 %v9389_v24  ;;  %v855_v23 = vpop.permute.xlu1 %854  ;;  %v1078_v5 = vsel %vm414_vm1, %v1054_v13, %v1055_v21  ;;  %v1095_v11 = vsel %vm1068_vm4, %v1042_v17, %v1094_v1 }
 0x145   :  { %v876_v40 = vrot.slane %v855_v23, 4  ;;  %2691 = vmatpush1.bf16.msra.mxu1 %v9388_v22  ;;  %v837_v62 = vpop.permute.xlu0 %836  ;;  %v1079_v57 = vsel %vm1068_vm4, %v1024_v6, %v1078_v5  ;;  %2652 = vmatpush1.bf16.msra.mxu0 %v9893_v50 }
 0x146   :  { %v867_v32 = vrot.slane %v837_v62, 4  ;;  %v9372_v33 = vcombine.low %v1079_v57, %v1095_v11  ;;  %v9373_v52 = vcombine.high %v1079_v57, %v1095_v11 }
 0x147   :  { %v905_v2 = vsel %vm414_vm1, %v875_v8, %v876_v40 }
 0x148   :  { %2692 = vmatprep.subr.bf16.mxu1 %v9373_v52  ;;  %v700_v28 = vpop.permute.xlu1 %699  ;;  %v889_v17 = vsel %vm414_vm1, %v866_v55, %v867_v32  ;;  %v906_v13 = vsel %vm881_vm5, %v10829_v34, %v905_v2 }
 0x149   :  { %v721_v25 = vrot.slane %v700_v28, 4  ;;  %2693 = vmatpush1.bf16.msra.mxu1 %v9372_v33  ;;  %v682_v6 = vpop.permute.xlu0 %681  ;;  %v890_v39 = vsel %vm881_vm5, %v10837_v36, %v889_v17 }
 0x14a   :  { %v712_v29 = vrot.slane %v682_v6, 4  ;;  %v9338_v49 = vcombine.low %v890_v39, %v906_v13  ;;  %v9339_v38 = vcombine.high %v890_v39, %v906_v13  ;;  %2694 = vmatprep.subr.bf16.mxu1 %v9894_v20 }
 0x14b   :  { %v750_v8 = vsel %vm414_vm1, %v720_v51, %v721_v25 }
 0x14c   :  { %2653 = vmatprep.subr.bf16.mxu0 %v9339_v38  ;;  %v11080_v55 = vpop.permute.xlu1 %856  ;;  %v734_v34 = vsel %vm414_vm1, %v711_v41, %v712_v29  ;;  %v751_v12 = vsel %vm726_vm6, %v10865_v31, %v750_v8 }
 0x14d   :  { %v877_v36 = vrot.slane %v11080_v55, 4  ;;  %2654 = vmatpush1.bf16.msra.mxu0 %v9338_v49  ;;  %v11088_v35 = vpop.permute.xlu0 %838  ;;  %v735_v27 = vsel %vm726_vm6, %v10873_v47, %v734_v34  ;;  %2695 = vmatpush1.bf16.msra.mxu1 %v9896_v43 }
 0x14e   :  { %v868_v51 = vrot.slane %v11088_v35, 4  ;;  %v9322_v9 = vcombine.low %v735_v27, %v751_v12  ;;  %v9323_v37 = vcombine.high %v735_v27, %v751_v12 }
 0x14f   :  { %v907_v41 = vsel %vm414_vm1, %v876_v40, %v877_v36 }
 0x150   :  { %2655 = vmatprep.subr.bf16.mxu0 %v9323_v37  ;;  %v545_v50 = vpop.permute.xlu1 %544  ;;  %v891_v31 = vsel %vm414_vm1, %v867_v32, %v868_v51  ;;  %v908_v22 = vsel %vm881_vm5, %v855_v23, %v907_v41 }
 0x151   :  { %v566_v24 = vrot.slane %v545_v50, 4  ;;  %2656 = vmatpush1.bf16.msra.mxu0 %v9322_v9  ;;  %v527_v47 = vpop.permute.xlu0 %526  ;;  %v892_v1 = vsel %vm881_vm5, %v837_v62, %v891_v31 }
 0x152   :  { %v557_v5 = vrot.slane %v527_v47, 4  ;;  %v9340_v11 = vcombine.low %v892_v1, %v908_v22  ;;  %v9341_v57 = vcombine.high %v892_v1, %v908_v22 }
 0x153   :  { %v595_v40 = vsel %vm414_vm1, %v565_v56, %v566_v24 }
 0x154   :  { %2696 = vmatprep.subr.bf16.mxu1 %v9341_v57  ;;  %v11104_v33 = vpop.permute.xlu1 %701  ;;  %v579_v32 = vsel %vm414_vm1, %v556_v58, %v557_v5  ;;  %v596_v23 = vsel %vm571_vm2, %v10895_v61, %v595_v40 }
 0x155   :  { %v722_v52 = vrot.slane %v11104_v33, 4  ;;  %2697 = vmatpush1.bf16.msra.mxu1 %v9340_v11  ;;  %v11112_v62 = vpop.permute.xlu0 %683  ;;  %v580_v20 = vsel %vm571_vm2, %v10903_v59, %v579_v32 }
 0x156   :  { %v713_v56 = vrot.slane %v11112_v62, 4  ;;  %v9306_v2 = vcombine.low %v580_v20, %v596_v23  ;;  %v9307_v17 = vcombine.high %v580_v20, %v596_v23 }
 0x157   :  { %v752_v13 = vsel %vm414_vm1, %v721_v25, %v722_v52 }
 0x158   :  { %2657 = vmatprep.subr.bf16.mxu0 %v9307_v17  ;;  %v389_v58 = vpop.permute.xlu1 %388  ;;  %v736_v61 = vsel %vm414_vm1, %v712_v29, %v713_v56  ;;  %v753_v39 = vsel %vm726_vm6, %v700_v28, %v752_v13 }
 0x159   :  { %v410_v43 = vrot.slane %v389_v58, 4  ;;  %2658 = vmatpush1.bf16.msra.mxu0 %v9306_v2  ;;  %v371_v49 = vpop.permute.xlu0 %370  ;;  %v737_v59 = vsel %vm726_vm6, %v682_v6, %v736_v61 }
 0x15a   :  { %v401_v38 = vrot.slane %v371_v49, 4  ;;  %v9324_v8 = vcombine.low %v737_v59, %v753_v39  ;;  %v9325_v34 = vcombine.high %v737_v59, %v753_v39 }
 0x15b   :  { %v440_v25 = vsel %vm414_vm1, %v409_v53, %v410_v43 }
 0x15c   :  { %2698 = vmatprep.subr.bf16.mxu1 %v9325_v34  ;;  %v11128_v12 = vpop.permute.xlu1 %546  ;;  %v424_v29 = vsel %vm414_vm1, %v400_v30, %v401_v38  ;;  %v441_v28 = vsel %vm416_vm3, %v10913_v54, %v440_v25 }
 0x15d   :  { %v567_v27 = vrot.slane %v11128_v12, 4  ;;  %2699 = vmatpush1.bf16.msra.mxu1 %v9324_v8  ;;  %v11136_v6 = vpop.permute.xlu0 %528  ;;  %v425_v9 = vsel %vm416_vm3, %v10921_v14, %v424_v29 }
 0x15e   :  { %v558_v53 = vrot.slane %v11136_v6, 4  ;;  %v9290_v37 = vcombine.low %v425_v9, %v441_v28  ;;  %v9291_v41 = vcombine.high %v425_v9, %v441_v28 }
 0x15f   :  { %v597_v31 = vsel %vm414_vm1, %v566_v24, %v567_v27 }
 0x160   :  { %2659 = vmatprep.subr.bf16.mxu0 %v9291_v41  ;;  %v11144_v30 = vpop.permute.xlu1 %390  ;;  %v581_v54 = vsel %vm414_vm1, %v557_v5, %v558_v53  ;;  %v598_v22 = vsel %vm571_vm2, %v545_v50, %v597_v31 }
 0x161   :  { %v411_v1 = vrot.slane %v11144_v30, 4  ;;  %2660 = vmatpush1.bf16.msra.mxu0 %v9290_v37  ;;  %v11151_v14 = vpop.permute.xlu0 %372  ;;  %v582_v11 = vsel %vm571_vm2, %v527_v47, %v581_v54 }
 0x162   :  { %v402_v57 = vrot.slane %v11151_v14, 4  ;;  %v9308_v40 = vcombine.low %v582_v11, %v598_v22  ;;  %v9309_v24 = vcombine.high %v582_v11, %v598_v22 }
 0x163   :  { %v442_v32 = vsel %vm414_vm1, %v410_v43, %v411_v1 }
 0x164   :  { %2700 = vmatprep.subr.bf16.mxu1 %v9309_v24  ;;  %v1505_v23 = vpop.permute.xlu1 %1504  ;;  %v426_v50 = vsel %vm414_vm1, %v401_v38, %v402_v57  ;;  %v443_v5 = vsel %vm416_vm3, %v389_v58, %v442_v32 }
 0x165   :  { %v1526_v20 = vrot.slane %v1505_v23, 4  ;;  %2701 = vmatpush1.bf16.msra.mxu1 %v9308_v40  ;;  %v1487_v2 = vpop.permute.xlu0 %1486  ;;  %v427_v47 = vsel %vm416_vm3, %v371_v49, %v426_v50 }
 0x166   :  { %v1517_v17 = vrot.slane %v1487_v2, 4  ;;  %v9292_v13 = vcombine.low %v427_v47, %v443_v5  ;;  %v9293_v61 = vcombine.high %v427_v47, %v443_v5 }
 0x167   :  { %v1554_v39 = vsel %vm414_vm1, %v1525_v60, %v1526_v20 }
 0x168   :  { %2702 = vmatprep.subr.bf16.mxu1 %v9293_v61  ;;  %v1355_v43 = vpop.permute.xlu1 %1354  ;;  %v1538_v59 = vsel %vm414_vm1, %v1516_v44, %v1517_v17  ;;  %v1555_v58 = vsel %vm726_vm6, %v10959_v48, %v1554_v39 }
 0x169   :  { %v1374_v38 = vrot.slane %v1355_v43, 4  ;;  %2703 = vmatpush1.bf16.msra.mxu1 %v9292_v13  ;;  %v1337_v8 = vpop.permute.xlu0 %1336  ;;  %v1539_v49 = vsel %vm726_vm6, %v10967_v45, %v1538_v59 }
 0x16a   :  { %v1365_v34 = vrot.slane %v1337_v8, 4  ;;  %v9418_v25 = vcombine.low %v1539_v49, %v1555_v58  ;;  %v9419_v29 = vcombine.high %v1539_v49, %v1555_v58 }
 0x16b   :  { %v1404_v60 = vsel %vm414_vm1, %v1373_v4, %v1374_v38 }
 0x16c   :  { %2675 = vmatprep.subr.bf16.mxu0 %v9419_v29  ;;  %v11176_v28 = vpop.permute.xlu1 %1506  ;;  %v1388_v48 = vsel %vm414_vm1, %v1364_v63, %v1365_v34  ;;  %v1405_v44 = vsel %vm571_vm2, %v11000_v16, %v1404_v60 }
 0x16d   :  { %v1527_v9 = vrot.slane %v11176_v28, 4  ;;  %2676 = vmatpush2.bf16.msra.mxu0 %v9418_v25  ;;  %v11184_v45 = vpop.permute.xlu0 %1488  ;;  %v1389_v37 = vsel %vm571_vm2, %v11008_v3, %v1388_v48 }
 0x16e   :  { %v1518_v4 = vrot.slane %v11184_v45, 4  ;;  %v9406_v41 = vcombine.low %v1389_v37, %v1405_v44  ;;  %v9407_v31 = vcombine.high %v1389_v37, %v1405_v44 }
 0x16f   :  { %v1556_v54 = vsel %vm414_vm1, %v1526_v20, %v1527_v9 }
 0x170   :  { %2678 = vmatmul.mubr.bf16.vlgmr.msra.gmra.mxu0 %v10685_v19  ;;  %2731 = vmatprep.subr.bf16.mxu0 %v9407_v31  ;;  %v1201_v16 = vpop.permute.xlu1 %1200  ;;  %v1540_v63 = vsel %vm414_vm1, %v1517_v17, %v1518_v4  ;;  %v1557_v22 = vsel %vm726_vm6, %v1505_v23, %v1556_v54  ;;  %v9897_v54 = vld [vmem:[#allocation3 + $0x40] ss:$88 sps:$4 sm:$0xff]  }
 0x171   :  { %v1220_v11 = vrot.slane %v1201_v16, 4  ;;  %2732 = vmatpush1.bf16.msra.mxu0 %v9406_v41  ;;  %v1183_v3 = vpop.permute.xlu0 %1182  ;;  %v1541_v40 = vsel %vm726_vm6, %v1487_v2, %v1540_v63  ;;  %9432 = vmatprep.mubr.msk.bf16.mxu0 %vm2469_vm0, %v10989_v42 }
 0x172   :  { %v1211_v24 = vrot.slane %v1183_v3, 4  ;;  %v9420_v32 = vcombine.low %v1541_v40, %v1557_v22  ;;  %v9421_v50 = vcombine.high %v1541_v40, %v1557_v22 }
 0x173   :  { %v1250_v5 = vsel %vm414_vm1, %v1219_v46, %v1220_v11 }
 0x174   :  { %2718 = vmatprep.subr.bf16.mxu1 %v9421_v50  ;;  %v1357_v20 = vpop.permute.xlu1 %1356  ;;  %v1234_v23 = vsel %vm414_vm1, %v1210_v10, %v1211_v24  ;;  %v1251_v47 = vsel %vm416_vm3, %v11031_v0, %v1250_v5  ;;  %v9899_v50 = vld [vmem:[#allocation3 + $0x3c] ss:$88 sps:$4 sm:$0xff]  }
 0x175   :  { %v1375_v2 = vrot.slane %v1357_v20, 4  ;;  %2719 = vmatpush2.bf16.msra.mxu1 %v9420_v32  ;;  %v1339_v17 = vpop.permute.xlu0 %1338  ;;  %v1235_v13 = vsel %vm416_vm3, %v11039_v26, %v1234_v23 }
 0x176   :  { %v1366_v61 = vrot.slane %v1339_v17, 4  ;;  %v9390_v39 = vcombine.low %v1235_v13, %v1251_v47  ;;  %v9391_v59 = vcombine.high %v1235_v13, %v1251_v47 }
 0x177   :  { %v1406_v46 = vsel %vm414_vm1, %v1374_v38, %v1375_v2 }
 0x178   :  { %v1390_v58 = vsel %vm414_vm1, %v1365_v34, %v1366_v61  ;;  %2721 = vmatmul.mubr.bf16.vlgmr.msra.gmra.mxu1 %v10685_v19  ;;  %2733 = vmatprep.subr.bf16.mxu0 %v9391_v59  ;;  %v1046_v10 = vpop.permute.xlu1 %1045  ;;  %v1407_v49 = vsel %vm571_vm2, %v1355_v43, %v1406_v46 }
 0x179   :  { %v1065_v0 = vrot.slane %v1046_v10, 4  ;;  %2734 = vmatpush1.bf16.msra.mxu0 %v9390_v39  ;;  %v1028_v25 = vpop.permute.xlu0 %1027  ;;  %v1391_v29 = vsel %vm571_vm2, %v1337_v8, %v1390_v58  ;;  %9433 = vmatprep.mubr.msk.bf16.mxu1 %vm2469_vm0, %v10989_v42  ;;  %v9900_v39 = vld [vmem:[#allocation3 + $0x48] ss:$88 sps:$4 sm:$0xff]  }
 0x17a   :  { %v1056_v26 = vrot.slane %v1028_v25, 4  ;;  %v9408_v60 = vcombine.low %v1391_v29, %v1407_v49  ;;  %v9409_v48 = vcombine.high %v1391_v29, %v1407_v49  ;;  %v9902_v29 = vld [vmem:[#allocation3 + $0x44] ss:$88 sps:$4 sm:$0xff]  }
 0x17b   :  { %v1096_v38 = vsel %vm414_vm1, %v1064_v7, %v1065_v0 }
 0x17c   :  { %2774 = vmatprep.subr.bf16.mxu1 %v9409_v48  ;;  %v1203_v19 = vpop.permute.xlu1 %1202  ;;  %v1080_v43 = vsel %vm414_vm1, %v1055_v21, %v1056_v26  ;;  %v1097_v34 = vsel %vm1068_vm4, %v11047_v15, %v1096_v38 }
 0x17d   :  { %v1221_v8 = vrot.slane %v1203_v19, 4  ;;  %2775 = vmatpush1.bf16.msra.mxu1 %v9408_v60  ;;  %v1185_v44 = vpop.permute.xlu0 %1184  ;;  %v1081_v42 = vsel %vm1068_vm4, %v11055_v18, %v1080_v43 }
 0x17e   :  { %v1212_v37 = vrot.slane %v1185_v44, 4  ;;  %v9374_v41 = vcombine.low %v1081_v42, %v1097_v34  ;;  %v9375_v31 = vcombine.high %v1081_v42, %v1097_v34 }
 0x17f   :  { %v1252_v7 = vsel %vm414_vm1, %v1220_v11, %v1221_v8 }
 0x180   :  { %v1236_v63 = vsel %vm414_vm1, %v1211_v24, %v1212_v37  ;;  %2735 = vmatprep.subr.bf16.mxu0 %v9375_v31  ;;  %v1048_v22 = vpop.permute.xlu1 %1047  ;;  %v1253_v21 = vsel %vm416_vm3, %v1201_v16, %v1252_v7 }
 0x181   :  { %v1066_v40 = vrot.slane %v1048_v22, 4  ;;  %2736 = vmatpush1.bf16.msra.mxu0 %v9374_v41  ;;  %v1030_v15 = vpop.permute.xlu0 %1029  ;;  %v1237_v32 = vsel %vm416_vm3, %v1183_v3, %v1236_v63 }
 0x182   :  { %v1057_v5 = vrot.slane %v1030_v15, 4  ;;  %v9392_v18 = vcombine.low %v1237_v32, %v1253_v21  ;;  %v9393_v20 = vcombine.high %v1237_v32, %v1253_v21  ;;  %2737 = vmatprep.subr.bf16.mxu0 %v9897_v54 }
 0x183   :  { %v1098_v23 = vsel %vm414_vm1, %v1065_v0, %v1066_v40 }
 0x184   :  { %v1082_v11 = vsel %vm414_vm1, %v1056_v26, %v1057_v5  ;;  %2776 = vmatprep.subr.bf16.mxu1 %v9393_v20  ;;  %v859_v24 = vpop.permute.xlu1 %858  ;;  %v1099_v47 = vsel %vm1068_vm4, %v1046_v10, %v1098_v23 }
 0x185   :  { %v878_v2 = vrot.slane %v859_v24, 4  ;;  %2777 = vmatpush1.bf16.msra.mxu1 %v9392_v18  ;;  %v841_v16 = vpop.permute.xlu0 %840  ;;  %v1083_v17 = vsel %vm1068_vm4, %v1028_v25, %v1082_v11  ;;  %2738 = vmatpush1.bf16.msra.mxu0 %v9899_v50 }
 0x186   :  { %v869_v3 = vrot.slane %v841_v16, 4  ;;  %v9376_v13 = vcombine.low %v1083_v17, %v1099_v47  ;;  %v9377_v61 = vcombine.high %v1083_v17, %v1099_v47 }
 0x187   :  { %v909_v59 = vsel %vm414_vm1, %v877_v36, %v878_v2 }
 0x188   :  { %2778 = vmatprep.subr.bf16.mxu1 %v9377_v61  ;;  %v704_v46 = vpop.permute.xlu1 %703  ;;  %v893_v58 = vsel %vm414_vm1, %v868_v51, %v869_v3  ;;  %v910_v10 = vsel %vm881_vm5, %v11080_v55, %v909_v59 }
 0x189   :  { %v723_v49 = vrot.slane %v704_v46, 4  ;;  %2779 = vmatpush1.bf16.msra.mxu1 %v9376_v13  ;;  %v686_v0 = vpop.permute.xlu0 %685  ;;  %v894_v25 = vsel %vm881_vm5, %v11088_v35, %v893_v58 }
 0x18a   :  { %v714_v26 = vrot.slane %v686_v0, 4  ;;  %v9342_v60 = vcombine.low %v894_v25, %v910_v10  ;;  %v9343_v48 = vcombine.high %v894_v25, %v910_v10  ;;  %2780 = vmatprep.subr.bf16.mxu1 %v9900_v39 }
 0x18b   :  { %v754_v36 = vsel %vm414_vm1, %v722_v52, %v723_v49 }
 0x18c   :  { %2739 = vmatprep.subr.bf16.mxu0 %v9343_v48  ;;  %v861_v51 = vpop.permute.xlu1 %860  ;;  %v738_v55 = vsel %vm414_vm1, %v713_v56, %v714_v26  ;;  %v755_v38 = vsel %vm726_vm6, %v11104_v33, %v754_v36 }
 0x18d   :  { %v879_v19 = vrot.slane %v861_v51, 4  ;;  %2740 = vmatpush1.bf16.msra.mxu0 %v9342_v60  ;;  %v843_v35 = vpop.permute.xlu0 %842  ;;  %v739_v43 = vsel %vm726_vm6, %v11112_v62, %v738_v55  ;;  %2781 = vmatpush1.bf16.msra.mxu1 %v9902_v29 }
 0x18e   :  { %v870_v34 = vrot.slane %v843_v35, 4  ;;  %v9326_v8 = vcombine.low %v739_v43, %v755_v38  ;;  %v9327_v44 = vcombine.high %v739_v43, %v755_v38 }
 0x18f   :  { %v911_v52 = vsel %vm414_vm1, %v878_v2, %v879_v19 }
 0x190   :  { %v895_v42 = vsel %vm414_vm1, %v869_v3, %v870_v34  ;;  %2741 = vmatprep.subr.bf16.mxu0 %v9327_v44  ;;  %v549_v37 = vpop.permute.xlu1 %548  ;;  %v912_v56 = vsel %vm881_vm5, %v859_v24, %v911_v52 }
 0x191   :  { %v568_v41 = vrot.slane %v549_v37, 4  ;;  %2742 = vmatpush1.bf16.msra.mxu0 %v9326_v8  ;;  %v531_v33 = vpop.permute.xlu0 %530  ;;  %v896_v31 = vsel %vm881_vm5, %v841_v16, %v895_v42 }
 0x192   :  { %v559_v54 = vrot.slane %v531_v33, 4  ;;  %v9344_v7 = vcombine.low %v896_v31, %v912_v56  ;;  %v9345_v62 = vcombine.high %v896_v31, %v912_v56 }
 0x193   :  { %v599_v63 = vsel %vm414_vm1, %v567_v27, %v568_v41 }
 0x194   :  { %2782 = vmatprep.subr.bf16.mxu1 %v9345_v62  ;;  %v706_v22 = vpop.permute.xlu1 %705  ;;  %v583_v21 = vsel %vm414_vm1, %v558_v53, %v559_v54  ;;  %v600_v40 = vsel %vm571_vm2, %v11128_v12, %v599_v63 }
 0x195   :  { %v724_v15 = vrot.slane %v706_v22, 4  ;;  %2783 = vmatpush1.bf16.msra.mxu1 %v9344_v7  ;;  %v688_v32 = vpop.permute.xlu0 %687  ;;  %v584_v50 = vsel %vm571_vm2, %v11136_v6, %v583_v21 }
 0x196   :  { %v715_v5 = vrot.slane %v688_v32, 4  ;;  %v9310_v18 = vcombine.low %v584_v50, %v600_v40  ;;  %v9311_v20 = vcombine.high %v584_v50, %v600_v40  ;;  %v10000_v40 = vld [vmem:[%s14418_s1] ss:$8 sps:$4 sm:$0xff]  }
 0x197   :  { %v756_v27 = vsel %vm414_vm1, %v723_v49, %v724_v15 }
 0x198   :  { %v740_v23 = vsel %vm414_vm1, %v714_v26, %v715_v5  ;;  %2743 = vmatprep.subr.bf16.mxu0 %v9311_v20  ;;  %v393_v11 = vpop.permute.xlu1 %392  ;;  %v757_v53 = vsel %vm726_vm6, %v704_v46, %v756_v27  ;;  %v11319_v20 = vld [vmem:[%s14421_s4] sm:$0xff] }
 0x199   :  { %v412_v24 = vrot.slane %v393_v11, 4  ;;  %2744 = vmatpush1.bf16.msra.mxu0 %v9310_v18  ;;  %v375_v12 = vpop.permute.xlu0 %374  ;;  %v741_v47 = vsel %vm726_vm6, %v686_v0, %v740_v23 }
 0x19a   :  { %v403_v2 = vrot.slane %v375_v12, 4  ;;  %v9328_v16 = vcombine.low %v741_v47, %v757_v53  ;;  %v9329_v17 = vcombine.high %v741_v47, %v757_v53 }
 0x19b   :  { %v444_v6 = vsel %vm414_vm1, %v411_v1, %v412_v24 }
 0x19c   :  { %2784 = vmatprep.subr.bf16.mxu1 %v9329_v17  ;;  %v551_v3 = vpop.permute.xlu1 %550  ;;  %v428_v13 = vsel %vm414_vm1, %v402_v57, %v403_v2  ;;  %v445_v61 = vsel %vm416_vm3, %v11144_v30, %v444_v6 }
 0x19d   :  { %v569_v39 = vrot.slane %v551_v3, 4  ;;  %2785 = vmatpush1.bf16.msra.mxu1 %v9328_v16  ;;  %v533_v59 = vpop.permute.xlu0 %532  ;;  %v429_v46 = vsel %vm416_vm3, %v11151_v14, %v428_v13 }
 0x19e   :  { %v560_v58 = vrot.slane %v533_v59, 4  ;;  %v9294_v10 = vcombine.low %v429_v46, %v445_v61  ;;  %v9295_v49 = vcombine.high %v429_v46, %v445_v61 }
 0x19f   :  { %v601_v1 = vsel %vm414_vm1, %v568_v41, %v569_v39 }
 0x1a0   :  { %v585_v0 = vsel %vm414_vm1, %v559_v54, %v560_v58  ;;  %2745 = vmatprep.subr.bf16.mxu0 %v9295_v49  ;;  %v395_v25 = vpop.permute.xlu1 %394  ;;  %v602_v57 = vsel %vm571_vm2, %v549_v37, %v601_v1 }
 0x1a1   :  { %v413_v29 = vrot.slane %v395_v25, 4  ;;  %2746 = vmatpush1.bf16.msra.mxu0 %v9294_v10  ;;  %v377_v30 = vpop.permute.xlu0 %376  ;;  %v586_v26 = vsel %vm571_vm2, %v531_v33, %v585_v0 }
 0x1a2   :  { %v404_v60 = vrot.slane %v377_v30, 4  ;;  %v9312_v48 = vcombine.low %v586_v26, %v602_v57  ;;  %v9313_v36 = vcombine.high %v586_v26, %v602_v57 }
 0x1a3   :  { %v446_v14 = vsel %vm414_vm1, %v412_v24, %v413_v29 }
 0x1a4   :  { %v430_v51 = vsel %vm414_vm1, %v403_v2, %v404_v60  ;;  %2786 = vmatprep.subr.bf16.mxu1 %v9313_v36  ;;  %v1509_v55 = vpop.permute.xlu1 %1508  ;;  %v447_v38 = vsel %vm416_vm3, %v393_v11, %v446_v14 }
 0x1a5   :  { %v1528_v19 = vrot.slane %v1509_v55, 4  ;;  %2787 = vmatpush1.bf16.msra.mxu1 %v9312_v48  ;;  %v1491_v35 = vpop.permute.xlu0 %1490  ;;  %v431_v43 = vsel %vm416_vm3, %v375_v12, %v430_v51 }
 0x1a6   :  { %v1519_v34 = vrot.slane %v1491_v35, 4  ;;  %v9296_v8 = vcombine.low %v431_v43, %v447_v38  ;;  %v9297_v44 = vcombine.high %v431_v43, %v447_v38 }
 0x1a7   :  { %v1558_v52 = vsel %vm414_vm1, %v1527_v9, %v1528_v19 }
 0x1a8   :  { %2788 = vmatprep.subr.bf16.mxu1 %v9297_v44  ;;  %v1511_v42 = vpop.permute.xlu1 %1510  ;;  %v1542_v37 = vsel %vm414_vm1, %v1518_v4, %v1519_v34  ;;  %v1559_v56 = vsel %vm726_vm6, %v11176_v28, %v1558_v52 }
 0x1a9   :  { %v1529_v41 = vrot.slane %v1511_v42, 4  ;;  %2789 = vmatpush1.bf16.msra.mxu1 %v9296_v8  ;;  %v1493_v33 = vpop.permute.xlu0 %1492  ;;  %v1543_v31 = vsel %vm726_vm6, %v11184_v45, %v1542_v37  ;;  %v2883_v45 = vlaneseq }
 0x1aa   :  { %v1520_v54 = vrot.slane %v1493_v33, 4  ;;  %v9422_v7 = vcombine.low %v1543_v31, %v1559_v56  ;;  %v9423_v62 = vcombine.high %v1543_v31, %v1559_v56 }
 0x1ab   :  { %v1560_v9 = vsel %vm414_vm1, %v1528_v19, %v1529_v41  ;;  %v11310_v32 = vshrl.u32 %v2883_v45, 7 }
 0x1ac   :  { %v1544_v63 = vsel %vm414_vm1, %v1519_v34, %v1520_v54  ;;  %2761 = vmatprep.subr.bf16.mxu0 %v9423_v62  ;;  %v1561_v22 = vsel %vm726_vm6, %v1509_v55, %v1560_v9 }
 0x1ad   :  { %2762 = vmatpush2.bf16.msra.mxu0 %v9422_v7  ;;  %v1545_v4 = vsel %vm726_vm6, %v1491_v35, %v1544_v63  ;;  %v2885_v50 = vsub.s32 0, %v11310_v32  ;;  %v2889_v18 = vsub.s32 1, %v11310_v32  ;;  %v2893_v24 = vsub.s32 2, %v11310_v32 }
 0x1ae   :  { %v9424_v28 = vcombine.low %v1545_v4, %v1561_v22  ;;  %v9425_v21 = vcombine.high %v1545_v4, %v1561_v22  ;;  %v2897_v6 = vsub.s32 3, %v11310_v32  ;;  %v2901_v39 = vsub.s32 4, %v11310_v32 }
 0x1af   :  { %v11326_v23 = vrot.slane %v11319_v20, %v2885_v50  ;;  %v11331_v11 = vrot.slane %v11319_v20, %v2889_v18  ;;  %v11345_v16 = vrot.slane %v11319_v20, %v2893_v24  ;;  %v2905_v14 = vsub.s32 5, %v11310_v32 }
 0x1b0   :  { %2764 = vmatmul.mubr.bf16.vlgmr.msra.gmra.mxu0 %v10000_v40  ;;  %2804 = vmatprep.subr.bf16.mxu1 %v9425_v21  ;;  %v11308_v15 = vpop.f32.mrf.mxu0  ;;  %v11364_v10 = vrot.slane %v11319_v20, %v2897_v6  ;;  %v11377_v30 = vrot.slane %v11319_v20, %v2901_v39  ;;  %v2909_v34 = vsub.s32 6, %v11310_v32 }
 0x1b1   :  { %2805 = vmatpush2.bf16.msra.mxu1 %v9424_v28  ;;  %14528 = vst [vmem:[#allocation12_spill] sm:$0xff] %v11326_v23  ;;  %14529 = vst [vmem:[#allocation13_spill] sm:$0xff] %v11331_v11  ;;  %v2963_v47 = vmul.f32 %v11326_v23, %v11308_v15  ;;  %v11397_v42 = vrot.slane %v11319_v20, %v2905_v14  ;;  %v2913_v28 = vsub.s32 7, %v11310_v32 }
 0x1b2   :  { %v11313_v5 = vpop.f32.mrf.mxu0  ;;  %14530 = vst [vmem:[#allocation14_spill] sm:$0xff] %v11345_v16  ;;  %14531 = vst [vmem:[#allocation15_spill] sm:$0xff] %v11364_v10  ;;  %v11409_v62 = vrot.slane %v11319_v20, %v2909_v34 }
 0x1b3   :  { %v2964_v2 = vmul.f32 %v11331_v11, %v11313_v5  ;;  %v3029_v59 = vmul.f32 %v2963_v47, %v11308_v15  ;;  %14532 = vst [vmem:[#allocation16_spill] sm:$0xff] %v11377_v30  ;;  %14533 = vst [vmem:[#allocation17_spill] sm:$0xff] %v11397_v42 }
 0x1b4   :  { %2807 = vmatmul.mubr.bf16.vlgmr.msra.gmra.mxu1 %v10000_v40  ;;  %v11333_v53 = vpop.f32.mrf.mxu0  ;;  %14534 = vst [vmem:[#allocation18_spill] sm:$0xff] %v11409_v62 }
 0x1b5   :  { %v2979_v13 = vmul.f32 %v11326_v23, %v11333_v53  ;;  %v3030_v46 = vmul.f32 %v2964_v2, %v11313_v5  ;;  %v2995_v1 = vadd.f32 %v2964_v2, %v2963_v47 }
 0x1b6   :  { %v11347_v17 = vpop.f32.mrf.mxu0 }
 0x1b7   :  { %v2980_v61 = vmul.f32 %v11331_v11, %v11347_v17  ;;  %v3045_v25 = vmul.f32 %v2979_v13, %v11333_v53  ;;  %v3061_v26 = vadd.f32 %v3030_v46, %v3029_v59  ;;  %v11427_v59 = vld [vmem:[%s14421_s4 + $0x8] sm:$0xff]  ;;  %s10169_s4 = smov 120  }
 0x1b8   :  { %v11321_v27 = vpop.f32.mrf.mxu1 }
 0x1b9   :  { %v2965_v58 = vmul.f32 %v11345_v16, %v11321_v27  ;;  %v3046_v57 = vmul.f32 %v2980_v61, %v11347_v17  ;;  %v3012_v51 = vadd.f32 %v2980_v61, %v2979_v13 }
 0x1ba   :  { %v11336_v12 = vpop.f32.mrf.mxu1 }
 0x1bb   :  { %v3031_v60 = vmul.f32 %v2965_v58, %v11321_v27  ;;  %v2966_v48 = vmul.f32 %v11364_v10, %v11336_v12  ;;  %v2996_v55 = vadd.f32 %v2995_v1, %v2965_v58  ;;  %v3078_v19 = vadd.f32 %v3046_v57, %v3045_v25 }
 0x1bc   :  { %v11350_v3 = vpop.f32.mrf.mxu1  ;;  %v11435_v25 = vrot.slane %v11319_v20, %v2913_v28 }
 0x1bd   :  { %v2981_v29 = vmul.f32 %v11345_v16, %v11350_v3  ;;  %v3062_v8 = vadd.f32 %v3061_v26, %v3031_v60  ;;  %v3032_v44 = vmul.f32 %v2966_v48, %v11336_v12  ;;  %v2997_v41 = vadd.f32 %v2996_v55, %v2966_v48 }
 0x1be   :  { %v11368_v0 = vpop.f32.mrf.mxu1  ;;  %14535 = vst [vmem:[#allocation19_spill] sm:$0xff] %v11435_v25  ;;  %v11442_v60 = vrot.slane %v11427_v59, %v2885_v50 }
 0x1bf   :  { %v3047_v35 = vmul.f32 %v2981_v29, %v11350_v3  ;;  %v2982_v43 = vmul.f32 %v11364_v10, %v11368_v0  ;;  %v3013_v56 = vadd.f32 %v3012_v51, %v2981_v29  ;;  %v3063_v9 = vadd.f32 %v3062_v8, %v3032_v44 }
 0x1c0   :  { %14536 = vst [vmem:[#allocation20_spill] sm:$0xff] %v11442_v60 }
 0x1c1   :  { %v3079_v31 = vadd.f32 %v3078_v19, %v3047_v35  ;;  %v3048_v54 = vmul.f32 %v2982_v43, %v11368_v0  ;;  %v3014_v21 = vadd.f32 %v3013_v56, %v2982_v43  ;;  %v11459_v56 = vrot.slane %v11427_v59, %v2889_v18 }
 0x1c3   :  { %v3080_v2 = vadd.f32 %v3079_v31, %v3048_v54  ;;  %14537 = vst [vmem:[#allocation21_spill] sm:$0xff] %v11459_v56 }
 0x1f0   :  { %v11366_v49 = vpop.f32.mrf.mxu0 }
 0x1f1   :  { %v2967_v52 = vmul.f32 %v11377_v30, %v11366_v49 }
 0x1f2   :  { %v11382_v36 = vpop.f32.mrf.mxu0 }
 0x1f3   :  { %v3033_v63 = vmul.f32 %v2967_v52, %v11366_v49  ;;  %v2968_v22 = vmul.f32 %v11397_v42, %v11382_v36  ;;  %v2998_v40 = vadd.f32 %v2997_v41, %v2967_v52 }
 0x1f4   :  { %v11399_v37 = vpop.f32.mrf.mxu0 }
 0x1f5   :  { %v2983_v7 = vmul.f32 %v11377_v30, %v11399_v37  ;;  %v3064_v46 = vadd.f32 %v3063_v9, %v3033_v63  ;;  %v3034_v58 = vmul.f32 %v2968_v22, %v11382_v36  ;;  %v2999_v29 = vadd.f32 %v2998_v40, %v2968_v22 }
 0x1f6   :  { %v11414_v4 = vpop.f32.mrf.mxu0  ;;  %v11470_v22 = vrot.slane %v11427_v59, %v2893_v24 }
 0x1f7   :  { %v3049_v13 = vmul.f32 %v2983_v7, %v11399_v37  ;;  %v2984_v61 = vmul.f32 %v11397_v42, %v11414_v4  ;;  %v3015_v57 = vadd.f32 %v3014_v21, %v2983_v7  ;;  %v3065_v35 = vadd.f32 %v3064_v46, %v3034_v58 }
 0x1f8   :  { %v11385_v38 = vpop.f32.mrf.mxu1  ;;  %14538 = vst [vmem:[#allocation22_spill] sm:$0xff] %v11470_v22 }
 0x1f9   :  { %v2969_v1 = vmul.f32 %v11409_v62, %v11385_v38  ;;  %v3081_v51 = vadd.f32 %v3080_v2, %v3049_v13  ;;  %v3050_v55 = vmul.f32 %v2984_v61, %v11414_v4  ;;  %v3016_v44 = vadd.f32 %v3015_v57, %v2984_v61 }
 0x1fa   :  { %v11401_v33 = vpop.f32.mrf.mxu1 }
 0x1fb   :  { %v3035_v20 = vmul.f32 %v2969_v1, %v11385_v38  ;;  %v2970_v43 = vmul.f32 %v11435_v25, %v11401_v33  ;;  %v3000_v52 = vadd.f32 %v2999_v29, %v2969_v1  ;;  %v3082_v31 = vadd.f32 %v3081_v51, %v3050_v55 }
 0x1fc   :  { %v11417_v45 = vpop.f32.mrf.mxu1  ;;  %v11487_v51 = vrot.slane %v11427_v59, %v2897_v6 }
 0x1fd   :  { %v2985_v19 = vmul.f32 %v11409_v62, %v11417_v45  ;;  %v3066_v9 = vadd.f32 %v3065_v35, %v3035_v20  ;;  %v3036_v63 = vmul.f32 %v2970_v43, %v11401_v33  ;;  %v3001_v2 = vadd.f32 %v3000_v52, %v2970_v43 }
 0x1fe   :  { %v11437_v26 = vpop.f32.mrf.mxu1  ;;  %14539 = vst [vmem:[#allocation23_spill] sm:$0xff] %v11487_v51 }
 0x1ff   :  { %v3051_v54 = vmul.f32 %v2985_v19, %v11417_v45  ;;  %v2986_v7 = vmul.f32 %v11435_v25, %v11437_v26  ;;  %v3017_v18 = vadd.f32 %v3016_v44, %v2985_v19  ;;  %v3067_v57 = vadd.f32 %v3066_v9, %v3036_v63 }
 0x201   :  { %v3083_v58 = vadd.f32 %v3082_v31, %v3051_v54  ;;  %v3052_v1 = vmul.f32 %v2986_v7, %v11437_v26  ;;  %v3018_v19 = vadd.f32 %v3017_v18, %v2986_v7 }
 0x203   :  { %v3084_v52 = vadd.f32 %v3083_v58, %v3052_v1 }
 0x230   :  { %v11419_v47 = vpop.f32.mrf.mxu0 }
 0x231   :  { %v2971_v50 = vmul.f32 %v11442_v60, %v11419_v47 }
 0x232   :  { %v11444_v48 = vpop.f32.mrf.mxu0 }
 0x233   :  { %v3037_v13 = vmul.f32 %v2971_v50, %v11419_v47  ;;  %v2972_v61 = vmul.f32 %v11459_v56, %v11444_v48  ;;  %v3002_v24 = vadd.f32 %v3001_v2, %v2971_v50 }
 0x234   :  { %v11461_v41 = vpop.f32.mrf.mxu0 }
 0x235   :  { %v2987_v40 = vmul.f32 %v11442_v60, %v11461_v41  ;;  %v3068_v43 = vadd.f32 %v3067_v57, %v3037_v13  ;;  %v3038_v44 = vmul.f32 %v2972_v61, %v11444_v48  ;;  %v3003_v54 = vadd.f32 %v3002_v24, %v2972_v61 }
 0x236   :  { %v11479_v46 = vpop.f32.mrf.mxu0 }
 0x237   :  { %v3053_v35 = vmul.f32 %v2987_v40, %v11461_v41  ;;  %v2988_v20 = vmul.f32 %v11459_v56, %v11479_v46  ;;  %v3019_v50 = vadd.f32 %v3018_v19, %v2987_v40  ;;  %v3069_v2 = vadd.f32 %v3068_v43, %v3038_v44 }
 0x238   :  { %v11452_v8 = vpop.f32.mrf.mxu1  ;;  %v11506_v40 = vrot.slane %v11427_v59, %v2901_v39  ;;  %v11515_v19 = vrot.slane %v11427_v59, %v2905_v14 }
 0x239   :  { %v2973_v29 = vmul.f32 %v11470_v22, %v11452_v8  ;;  %v3085_v63 = vadd.f32 %v3084_v52, %v3053_v35  ;;  %v3054_v18 = vmul.f32 %v2988_v20, %v11479_v46  ;;  %v3020_v58 = vadd.f32 %v3019_v50, %v2988_v20 }
 0x23a   :  { %v11472_v21 = vpop.f32.mrf.mxu1  ;;  %14542 = vst [vmem:[#allocation26_spill] sm:$0xff] %v11506_v40  ;;  %14543 = vst [vmem:[#allocation27_spill] sm:$0xff] %v11515_v19 }
 0x23b   :  { %v3039_v6 = vmul.f32 %v2973_v29, %v11452_v8  ;;  %v2974_v9 = vmul.f32 %v11487_v51, %v11472_v21  ;;  %v3004_v13 = vadd.f32 %v3003_v54, %v2973_v29  ;;  %v3086_v29 = vadd.f32 %v3085_v63, %v3054_v18 }
 0x23c   :  { %v11489_v55 = vpop.f32.mrf.mxu1  ;;  %v11527_v54 = vrot.slane %v11427_v59, %v2909_v34 }
 0x23d   :  { %14540 = vst [vmem:[#allocation24_spill] sm:$0xff] %v11489_v55  ;;  %v2989_v31 = vmul.f32 %v11470_v22, %v11489_v55  ;;  %v3070_v57 = vadd.f32 %v3069_v2, %v3039_v6  ;;  %v3040_v24 = vmul.f32 %v2974_v9, %v11472_v21  ;;  %v3005_v39 = vadd.f32 %v3004_v13, %v2974_v9 }
 0x23e   :  { %v11500_v7 = vpop.f32.mrf.mxu1  ;;  %14544 = vst [vmem:[#allocation28_spill] sm:$0xff] %v11527_v54  ;;  %v11539_v13 = vrot.slane %v11427_v59, %v2913_v28 }
 0x23f   :  { %14541 = vst [vmem:[#allocation25_spill] sm:$0xff] %v11500_v7  ;;  %v3055_v61 = vmul.f32 %v2989_v31, %v11489_v55  ;;  %v2990_v1 = vmul.f32 %v11487_v51, %v11500_v7  ;;  %v3021_v35 = vadd.f32 %v3020_v58, %v2989_v31  ;;  %v3071_v14 = vadd.f32 %v3070_v57, %v3040_v24 }
 0x240   :  { %14546 = vst [vmem:[#allocation30_spill] sm:$0xff] %v11539_v13 }
 0x241   :  { %v3087_v44 = vadd.f32 %v3086_v29, %v3055_v61  ;;  %v3056_v52 = vmul.f32 %v2990_v1, %v11500_v7  ;;  %v3022_v63 = vadd.f32 %v3021_v35, %v2990_v1 }
 0x243   :  { %v3088_v24 = vadd.f32 %v3087_v44, %v3056_v52 }
 0x270   :  { %v11517_v43 = vpop.f32.mrf.mxu0 }
 0x271   :  { %v2975_v20 = vmul.f32 %v11506_v40, %v11517_v43 }
 0x272   :  { %v11522_v50 = vpop.f32.mrf.mxu0 }
 0x273   :  { %v3006_v6 = vadd.f32 %v3005_v39, %v2975_v20  ;;  %v3041_v31 = vmul.f32 %v2975_v20, %v11517_v43  ;;  %v2976_v9 = vmul.f32 %v11515_v19, %v11522_v50 }
 0x274   :  { %v11532_v18 = vpop.f32.mrf.mxu0  ;;  %v11534_v2 = vpop.f32.mrf.mxu1 }
 0x275   :  { %14545 = vst [vmem:[#allocation29_spill] sm:$0xff] %v11532_v18  ;;  %v3072_v58 = vadd.f32 %v3071_v14, %v3041_v31  ;;  %v3007_v34 = vadd.f32 %v3006_v6, %v2976_v9  ;;  %v3042_v61 = vmul.f32 %v2976_v9, %v11522_v50  ;;  %v2991_v57 = vmul.f32 %v11506_v40, %v11532_v18 }
 0x276   :  { %v2977_v1 = vmul.f32 %v11527_v54, %v11534_v2  ;;  %v11546_v29 = vpop.f32.mrf.mxu0  ;;  %v11548_v35 = vpop.f32.mrf.mxu1 }
 0x277   :  { %v3073_v39 = vadd.f32 %v3072_v58, %v3042_v61  ;;  %v3023_v32 = vadd.f32 %v3022_v63, %v2991_v57  ;;  %v3057_v28 = vmul.f32 %v2991_v57, %v11532_v18  ;;  %v2992_v59 = vmul.f32 %v11515_v19, %v11546_v29 }
 0x278   :  { %v3008_v20 = vadd.f32 %v3007_v34, %v2977_v1  ;;  %v3043_v14 = vmul.f32 %v2977_v1, %v11534_v2  ;;  %v2978_v44 = vmul.f32 %v11539_v13, %v11548_v35  ;;  %v11556_v52 = vpop.f32.mrf.mxu1 }
 0x279   :  { %14547 = vst [vmem:[#allocation31_spill] sm:$0xff] %v11556_v52  ;;  %v3089_v6 = vadd.f32 %v3088_v24, %v3057_v28  ;;  %v3024_v31 = vadd.f32 %v3023_v32, %v2992_v59  ;;  %v3058_v9 = vmul.f32 %v2992_v59, %v11546_v29  ;;  %v2993_v63 = vmul.f32 %v11527_v54, %v11556_v52 }
 0x27a   :  { %v3074_v58 = vadd.f32 %v3073_v39, %v3043_v14  ;;  %v3044_v61 = vmul.f32 %v2978_v44, %v11548_v35  ;;  %v11562_v57 = vpop.f32.mrf.mxu1  ;;  %v3009_v34 = vadd.f32 %v3008_v20, %v2978_v44  ;;  %v10165_v14 = vmov 0  }
 0x27b   :  { %14548 = vst [vmem:[#allocation32_spill] sm:$0xff] %v11562_v57  ;;  %v3090_v18 = vadd.f32 %v3089_v6, %v3058_v9  ;;  %v3025_v1 = vadd.f32 %v3024_v31, %v2993_v63  ;;  %v3059_v7 = vmul.f32 %v2993_v63, %v11556_v52  ;;  %v2994_v55 = vmul.f32 %v11539_v13, %v11562_v57 }
 0x27c   :  { %3010 = vadd.xlane.f32.xlu0 %v3009_v34  ;;  %v3075_v59 = vadd.f32 %v3074_v58, %v3044_v61  ;;  %9880 = vset.pattern.permute.xlu1 %v10165_v14 }
 0x27d   :  { %v3026_v24 = vadd.f32 %v3025_v1, %v2994_v55  ;;  %v3091_v32 = vadd.f32 %v3090_v18, %v3059_v7  ;;  %v3060_v28 = vmul.f32 %v2994_v55, %v11562_v57  ;;  %9881 = vset.pattern.permute.xlu0 %v10165_v14 }
 0x27f   :  { %3027 = vadd.xlane.f32.xlu1 %v3026_v24  ;;  %v3092_v39 = vadd.f32 %v3091_v32, %v3060_v28  ;;  %v3103_v24 = vld [vmem:[%s14419_s2] sm:$0xff] }
 0x280   :  { %3076 = vadd.xlane.f32.xlu0 %v3075_v59  ;;  %v3111_v59 = vld [vmem:[%s14420_s3] sm:$0xff] }
 0x284   :  { %3093 = vadd.xlane.f32.xlu0 %v3092_v39 }
 0x305   :  { %v3011_v20 = vpop.xlane.xlu0 %3010 }
 0x306   :  { %v3095_v44 = vmul.f32 0.001953125, %v3011_v20 }
 0x308   :  { %v3028_v6 = vpop.xlane.xlu1 %3027  ;;  %v3099_v9 = vmul.f32 %v3095_v44, %v3095_v44 }
 0x309   :  { %v3077_v31 = vpop.xlane.xlu0 %3076  ;;  %v3096_v63 = vmul.f32 0.001953125, %v3028_v6 }
 0x30a   :  { %v3097_v52 = vmul.f32 0.001953125, %v3077_v31  ;;  %v3112_v31 = vld [vmem:[%s14420_s3 + $0x8] sm:$0xff] }
 0x30b   :  { %v3100_v7 = vmul.f32 %v3096_v63, %v3096_v63 }
 0x30c   :  { %v3101_v34 = vsub.f32 %v3097_v52, %v3099_v9  ;;  %v3104_v52 = vld [vmem:[%s14419_s2 + $0x8] sm:$0xff] }
 0x30d   :  { %v3094_v1 = vpop.xlane.xlu0 %3093 }
 0x30e   :  { %v3105_v18 = vadd.f32 1e-05, %v3101_v34  ;;  %v3098_v55 = vmul.f32 0.001953125, %v3094_v1  ;;  %v38_v1 = vld [vmem:[#allocation6] sm:$0xff] }
 0x310   :  { %9985 = vrsqrt.f32 %v3105_v18  ;;  %v3102_v58 = vsub.f32 %v3098_v55, %v3100_v7  ;;  %v39_v7 = vld [vmem:[#allocation6 + $0x8] sm:$0xff]  ;;  %v60_v55 = vld [vmem:[#allocation6 + $0xb0] sm:$0xff] }
 0x311   :  { %v11580_v18 = vpack.c.bf16 %v39_v7, %v38_v1 }
 0x312   :  { %v3106_v61 = vadd.f32 1e-05, %v3102_v58 }
 0x313   :  { %14549 = vst [vmem:[#allocation33_spill] sm:$0xff] %v11580_v18  ;;  %3569 = vst [vmem:[#allocation3] sm:$0xff] %v11580_v18 }
 0x314   :  { %9987 = vrsqrt.f32 %v3106_v61 }
 0x31d   :  { %v9986_v32 = vpop.eup %9985 }
 0x31e   :  { %v3109_v28 = vmul.f32 %v9986_v32, %v3103_v24 }
 0x320   :  { %3119 = vperm.xlu1 %9880, %v3109_v28   ;;  %v3113_v39 = vmul.f32 %v3109_v28, %v3095_v44  ;;  %v61_v44 = vld [vmem:[#allocation6 + $0xb8] sm:$0xff] }
 0x321   :  { %v9988_v14 = vpop.eup %9987  ;;  %v11583_v58 = vpack.c.bf16 %v61_v44, %v60_v55 }
 0x322   :  { %v3115_v20 = vsub.f32 %v3111_v59, %v3113_v39  ;;  %v3110_v6 = vmul.f32 %v9988_v14, %v3104_v52 }
 0x323   :  { %14550 = vst [vmem:[#allocation34_spill] sm:$0xff] %v11583_v58  ;;  %3580 = vst [vmem:[#allocation3 + $0x58] sm:$0xff] %v11583_v58 }
 0x324   :  { %3161 = vperm.xlu1 %9880, %v3115_v20   ;;  %3124 = vperm.xlu0 %9881, %v3110_v6   ;;  %v3114_v9 = vmul.f32 %v3110_v6, %v3096_v63 }
 0x326   :  { %v3116_v34 = vsub.f32 %v3112_v31, %v3114_v9 }
 0x328   :  { %3166 = vperm.xlu1 %9880, %v3116_v34  }
 0x39b   :  { %v3120_v61 = vpop.permute.xlu1 %3119 }
 0x39c   :  { %v3127_v24 = vmul.f32 %v3120_v61, %v11308_v15  ;;  %v3128_v32 = vmul.f32 %v3120_v61, %v11313_v5  ;;  %v3129_v63 = vmul.f32 %v3120_v61, %v11321_v27  ;;  %v3130_v28 = vmul.f32 %v3120_v61, %v11336_v12 }
 0x39d   :  { %v3131_v59 = vmul.f32 %v3120_v61, %v11366_v49  ;;  %v3132_v52 = vmul.f32 %v3120_v61, %v11382_v36  ;;  %v3133_v39 = vmul.f32 %v3120_v61, %v11385_v38  ;;  %v3134_v14 = vmul.f32 %v3120_v61, %v11401_v33 }
 0x39e   :  { %v3135_v20 = vmul.f32 %v3120_v61, %v11419_v47  ;;  %v3136_v6 = vmul.f32 %v3120_v61, %v11444_v48  ;;  %v3137_v15 = vmul.f32 %v3120_v61, %v11452_v8  ;;  %v3138_v5 = vmul.f32 %v3120_v61, %v11472_v21 }
 0x39f   :  { %v3139_v27 = vmul.f32 %v3120_v61, %v11517_v43  ;;  %v3140_v12 = vmul.f32 %v3120_v61, %v11522_v50  ;;  %v3141_v49 = vmul.f32 %v3120_v61, %v11534_v2  ;;  %v3142_v36 = vmul.f32 %v3120_v61, %v11548_v35  ;;  %v3162_v31 = vpop.permute.xlu1 %3161 }
 0x3a0   :  { %v3169_v38 = vadd.f32 %v3162_v31, %v3127_v24  ;;  %v3170_v9 = vadd.f32 %v3162_v31, %v3128_v32  ;;  %v3171_v33 = vadd.f32 %v3162_v31, %v3129_v63  ;;  %v3172_v34 = vadd.f32 %v3162_v31, %v3130_v28 }
 0x3a1   :  { %v3173_v47 = vadd.f32 %v3162_v31, %v3131_v59  ;;  %v3174_v1 = vadd.f32 %v3162_v31, %v3132_v52  ;;  %v3175_v48 = vadd.f32 %v3162_v31, %v3133_v39  ;;  %v3176_v7 = vadd.f32 %v3162_v31, %v3134_v14 }
 0x3a2   :  { %v3177_v8 = vadd.f32 %v3162_v31, %v3135_v20  ;;  %v3178_v55 = vadd.f32 %v3162_v31, %v3136_v6  ;;  %v3179_v21 = vadd.f32 %v3162_v31, %v3137_v15  ;;  %v3180_v44 = vadd.f32 %v3162_v31, %v3138_v5 }
 0x3a3   :  { %v3181_v43 = vadd.f32 %v3162_v31, %v3139_v27  ;;  %v3182_v58 = vadd.f32 %v3162_v31, %v3140_v12  ;;  %v3183_v50 = vadd.f32 %v3162_v31, %v3141_v49  ;;  %v3184_v18 = vadd.f32 %v3162_v31, %v3142_v36  ;;  %v10001_v27 = vld [vmem:[#allocation6 + $0x18] sm:$0xff]  ;;  %v10002_v49 = vld [vmem:[#allocation6 + $0x20] sm:$0xff]  ;;  %v10003_v31 = vld [vmem:[#allocation6 + $0x28] sm:$0xff] }
 0x3a4   :  { %v3201_v2 = vmax.f32 %v3169_v38, 0.0  ;;  %v3202_v57 = vmax.f32 %v3170_v9, 0.0  ;;  %v3203_v35 = vmax.f32 %v3171_v33, 0.0  ;;  %v3204_v61 = vmax.f32 %v3172_v34, 0.0  ;;  %v10004_v9 = vld [vmem:[#allocation6 + $0x30] sm:$0xff]  ;;  %v10005_v34 = vld [vmem:[#allocation6 + $0x38] sm:$0xff] }
 0x3a5   :  { %v3205_v24 = vmax.f32 %v3173_v47, 0.0  ;;  %v3206_v32 = vmax.f32 %v3174_v1, 0.0  ;;  %v3207_v63 = vmax.f32 %v3175_v48, 0.0  ;;  %v3208_v28 = vmax.f32 %v3176_v7, 0.0  ;;  %v10006_v1 = vld [vmem:[#allocation6 + $0x40] sm:$0xff]  ;;  %v10007_v7 = vld [vmem:[#allocation6 + $0x48] sm:$0xff] }
 0x3a6   :  { %v3209_v59 = vmax.f32 %v3177_v8, 0.0  ;;  %v3210_v52 = vmax.f32 %v3178_v55, 0.0  ;;  %v3211_v39 = vmax.f32 %v3179_v21, 0.0  ;;  %v3212_v14 = vmax.f32 %v3180_v44, 0.0  ;;  %v10008_v55 = vld [vmem:[#allocation6 + $0x50] sm:$0xff]  ;;  %v10009_v44 = vld [vmem:[#allocation6 + $0x58] sm:$0xff] }
 0x3a7   :  { %v3213_v20 = vmax.f32 %v3181_v43, 0.0  ;;  %v3214_v6 = vmax.f32 %v3182_v58, 0.0  ;;  %v3215_v15 = vmax.f32 %v3183_v50, 0.0  ;;  %v3216_v5 = vmax.f32 %v3184_v18, 0.0  ;;  %v10010_v43 = vld [vmem:[#allocation6 + $0x60] sm:$0xff]  ;;  %v10011_v50 = vld [vmem:[#allocation6 + $0x68] sm:$0xff] }
 0x3a8   :  { %v3265_v12 = vadd.f32 %v10001_v27, %v3201_v2  ;;  %v3266_v36 = vadd.f32 %v10002_v49, %v3202_v57  ;;  %v3267_v38 = vadd.f32 %v10003_v31, %v3203_v35  ;;  %v3268_v33 = vadd.f32 %v10004_v9, %v3204_v61  ;;  %v10012_v27 = vld [vmem:[#allocation6 + $0x70] sm:$0xff]  ;;  %v10013_v49 = vld [vmem:[#allocation6 + $0x78] sm:$0xff]  ;;  %v10014_v31 = vld [vmem:[#allocation6 + $0x80] sm:$0xff] }
 0x3a9   :  { %v3269_v47 = vadd.f32 %v10005_v34, %v3205_v24  ;;  %v3270_v48 = vadd.f32 %v10006_v1, %v3206_v32  ;;  %v3271_v8 = vadd.f32 %v10007_v7, %v3207_v63  ;;  %v3272_v21 = vadd.f32 %v10008_v55, %v3208_v28  ;;  %v10015_v9 = vld [vmem:[#allocation6 + $0x88] sm:$0xff]  ;;  %v10016_v34 = vld [vmem:[#allocation6 + $0x90] sm:$0xff] }
 0x3aa   :  { %v3273_v58 = vadd.f32 %v10009_v44, %v3209_v59  ;;  %v3274_v18 = vadd.f32 %v10010_v43, %v3210_v52  ;;  %v3275_v2 = vadd.f32 %v10011_v50, %v3211_v39  ;;  %v3276_v57 = vadd.f32 %v10012_v27, %v3212_v14  ;;  %v10017_v7 = vld [vmem:[#allocation6 + $0x10] sm:$0xff] }
 0x3ab   :  { %v3277_v35 = vadd.f32 %v10013_v49, %v3213_v20  ;;  %v3278_v61 = vadd.f32 %v10014_v31, %v3214_v6  ;;  %v3279_v24 = vadd.f32 %v10015_v9, %v3215_v15  ;;  %v3280_v32 = vadd.f32 %v10016_v34, %v3216_v5 }
 0x3ac   :  { %v3297_v63 = vmul.f32 %v3265_v12, %v11326_v23  ;;  %v11604_v28 = vmul.f32 %v3266_v36, %v11331_v11  ;;  %v11607_v59 = vmul.f32 %v3267_v38, %v11345_v16  ;;  %v11610_v52 = vmul.f32 %v3268_v33, %v11364_v10 }
 0x3ad   :  { %v11613_v39 = vmul.f32 %v3269_v47, %v11377_v30  ;;  %v3302_v14 = vmul.f32 %v3270_v48, %v11397_v42  ;;  %v3303_v20 = vmul.f32 %v3271_v8, %v11409_v62  ;;  %v3304_v6 = vmul.f32 %v3272_v21, %v11435_v25  ;;  %v3125_v48 = vpop.permute.xlu0 %3124 }
 0x3ae   :  { %v3305_v15 = vmul.f32 %v3273_v58, %v11442_v60  ;;  %v3306_v5 = vmul.f32 %v3274_v18, %v11459_v56  ;;  %v3307_v12 = vmul.f32 %v3275_v2, %v11470_v22  ;;  %v3308_v36 = vmul.f32 %v3276_v57, %v11487_v51  ;;  %3329 = vst [vmem:[#allocation9] sm:$0xff] %v3297_v63  ;;  %v10018_v2 = vld [vmem:[#allocation6 + $0x98] sm:$0xff] }
 0x3af   :  { %3330 = vst [vmem:[#allocation9 + $0x8] sm:$0xff] %v11604_v28  ;;  %3331 = vst [vmem:[#allocation9 + $0x10] sm:$0xff] %v11607_v59  ;;  %v3309_v38 = vmul.f32 %v3277_v35, %v11506_v40  ;;  %v3310_v33 = vmul.f32 %v3278_v61, %v11515_v19  ;;  %v3311_v47 = vmul.f32 %v3279_v24, %v11527_v54  ;;  %v3167_v24 = vpop.permute.xlu1 %3166 }
 0x3b0   :  { %3332 = vst [vmem:[#allocation9 + $0x18] sm:$0xff] %v11610_v52  ;;  %v3312_v1 = vmul.f32 %v3280_v32, %v11539_v13  ;;  %3333 = vst [vmem:[#allocation9 + $0x20] sm:$0xff] %v11613_v39  ;;  %v11630_v8 = vpack.c.bf16 %v3297_v63, %v10017_v7  ;;  %v11634_v55 = vpack.c.bf16 %v11607_v59, %v11604_v28  ;;  %v14555_v32 = vld [vmem:[#allocation24_spill] sm:$0xff] }
 0x3b1   :  { %3334 = vst [vmem:[#allocation9 + $0x28] sm:$0xff] %v3302_v14  ;;  %3335 = vst [vmem:[#allocation9 + $0x30] sm:$0xff] %v3303_v20  ;;  %v11638_v21 = vpack.c.bf16 %v11613_v39, %v11610_v52  ;;  %v11640_v44 = vpack.c.bf16 %v3303_v20, %v3302_v14  ;;  %v11642_v58 = vpack.c.bf16 %v3305_v15, %v3304_v6  ;;  %v14556_v14 = vld [vmem:[#allocation25_spill] sm:$0xff] }
 0x3b2   :  { %3336 = vst [vmem:[#allocation9 + $0x38] sm:$0xff] %v3304_v6  ;;  %3337 = vst [vmem:[#allocation9 + $0x40] sm:$0xff] %v3305_v15  ;;  %v11644_v43 = vpack.c.bf16 %v3307_v12, %v3306_v5  ;;  %v11646_v18 = vpack.c.bf16 %v3309_v38, %v3308_v36  ;;  %v11648_v50 = vpack.c.bf16 %v3311_v47, %v3310_v33  ;;  %v14557_v6 = vld [vmem:[#allocation29_spill] sm:$0xff]  ;;  %v14558_v15 = vld [vmem:[#allocation31_spill] sm:$0xff] }
 0x3b3   :  { %3338 = vst [vmem:[#allocation9 + $0x48] sm:$0xff] %v3306_v5  ;;  %3339 = vst [vmem:[#allocation9 + $0x50] sm:$0xff] %v3307_v12  ;;  %v9829_v27 = vpack.c.bf16 %v10018_v2, %v3312_v1  ;;  %v3143_v57 = vmul.f32 %v3125_v48, %v11333_v53  ;;  %v3144_v49 = vmul.f32 %v3125_v48, %v11347_v17  ;;  %v14559_v5 = vld [vmem:[#allocation32_spill] sm:$0xff] }
 0x3b4   :  { %3340 = vst [vmem:[#allocation9 + $0x58] sm:$0xff] %v3308_v36  ;;  %3341 = vst [vmem:[#allocation9 + $0x60] sm:$0xff] %v3309_v38  ;;  %v3145_v35 = vmul.f32 %v3125_v48, %v11350_v3  ;;  %v3146_v31 = vmul.f32 %v3125_v48, %v11368_v0  ;;  %v3147_v61 = vmul.f32 %v3125_v48, %v11399_v37 }
 0x3b5   :  { %3342 = vst [vmem:[#allocation9 + $0x68] sm:$0xff] %v3310_v33  ;;  %3343 = vst [vmem:[#allocation9 + $0x70] sm:$0xff] %v3311_v47  ;;  %v3148_v9 = vmul.f32 %v3125_v48, %v11414_v4  ;;  %v3149_v53 = vmul.f32 %v3125_v48, %v11417_v45  ;;  %v3150_v17 = vmul.f32 %v3125_v48, %v11437_v26 }
 0x3b6   :  { %3344 = vst [vmem:[#allocation9 + $0x78] sm:$0xff] %v3312_v1  ;;  %14551 = vst [vmem:[#allocation35_spill] sm:$0xff] %v11642_v58  ;;  %v3151_v3 = vmul.f32 %v3125_v48, %v11461_v41  ;;  %v3152_v34 = vmul.f32 %v3125_v48, %v11479_v46  ;;  %v3153_v63 = vmul.f32 %v3125_v48, %v14555_v32 }
 0x3b7   :  { %14552 = vst [vmem:[#allocation36_spill] sm:$0xff] %v11644_v43  ;;  %14553 = vst [vmem:[#allocation37_spill] sm:$0xff] %v11646_v18  ;;  %v3154_v20 = vmul.f32 %v3125_v48, %v14556_v14  ;;  %v3155_v0 = vmul.f32 %v3125_v48, %v14557_v6  ;;  %v3156_v37 = vmul.f32 %v3125_v48, %v11546_v29 }
 0x3b8   :  { %14554 = vst [vmem:[#allocation38_spill] sm:$0xff] %v11648_v50  ;;  %3570 = vst [vmem:[#allocation3 + $0x8] sm:$0xff] %v11630_v8  ;;  %v3157_v4 = vmul.f32 %v3125_v48, %v14558_v15  ;;  %v3158_v45 = vmul.f32 %v3125_v48, %v14559_v5  ;;  %v3185_v12 = vadd.f32 %v3167_v24, %v3143_v57 }
 0x3b9   :  { %3571 = vst [vmem:[#allocation3 + $0x10] sm:$0xff] %v11634_v55  ;;  %3572 = vst [vmem:[#allocation3 + $0x18] sm:$0xff] %v11638_v21  ;;  %v3186_v36 = vadd.f32 %v3167_v24, %v3144_v49  ;;  %v3187_v38 = vadd.f32 %v3167_v24, %v3145_v35  ;;  %v3188_v26 = vadd.f32 %v3167_v24, %v3146_v31 }
 0x3ba   :  { %3573 = vst [vmem:[#allocation3 + $0x20] sm:$0xff] %v11640_v44  ;;  %3574 = vst [vmem:[#allocation3 + $0x28] sm:$0xff] %v11642_v58  ;;  %v3189_v33 = vadd.f32 %v3167_v24, %v3147_v61  ;;  %v3190_v41 = vadd.f32 %v3167_v24, %v3148_v9  ;;  %v3191_v47 = vadd.f32 %v3167_v24, %v3149_v53  ;;  %v3217_v57 = vmax.f32 %v3185_v12, 0.0  ;;  %v10032_v58 = vld [vmem:[#allocation6 + $0x130] sm:$0xff] }
 0x3bb   :  { %3575 = vst [vmem:[#allocation3 + $0x30] sm:$0xff] %v11644_v43  ;;  %3576 = vst [vmem:[#allocation3 + $0x38] sm:$0xff] %v11646_v18  ;;  %v3192_v46 = vadd.f32 %v3167_v24, %v3150_v17  ;;  %v3193_v1 = vadd.f32 %v3167_v24, %v3151_v3  ;;  %v3194_v7 = vadd.f32 %v3167_v24, %v3152_v34  ;;  %v3218_v49 = vmax.f32 %v3186_v36, 0.0  ;;  %v14561_v3 = vld [vmem:[#allocation33_spill] sm:$0xff] }
 0x3bc   :  { %3577 = vst [vmem:[#allocation3 + $0x40] sm:$0xff] %v11648_v50  ;;  %3578 = vst [vmem:[#allocation3 + $0x48] sm:$0xff] %v9829_v27  ;;  %v3195_v2 = vadd.f32 %v3167_v24, %v3153_v63  ;;  %v3196_v27 = vadd.f32 %v3167_v24, %v3154_v20  ;;  %v3197_v32 = vadd.f32 %v3167_v24, %v3155_v0  ;;  %v3219_v35 = vmax.f32 %v3187_v38, 0.0  ;;  %v10019_v36 = vld [vmem:[#allocation6 + $0xc8] sm:$0xff]  ;;  %v10020_v50 = vld [vmem:[#allocation6 + $0xd0] sm:$0xff] }
 0x3bd   :  { %v3198_v14 = vadd.f32 %v3167_v24, %v3156_v37  ;;  %v3199_v6 = vadd.f32 %v3167_v24, %v3157_v4  ;;  %v3200_v48 = vadd.f32 %v3167_v24, %v3158_v45  ;;  %v3220_v61 = vmax.f32 %v3188_v26, 0.0  ;;  %v10031_v43 = vld [vmem:[#allocation6 + $0x128] sm:$0xff] }
 0x3be   :  { %v3221_v9 = vmax.f32 %v3189_v33, 0.0  ;;  %v3222_v53 = vmax.f32 %v3190_v41, 0.0  ;;  %v3223_v17 = vmax.f32 %v3191_v47, 0.0  ;;  %v3224_v34 = vmax.f32 %v3192_v46, 0.0  ;;  %v10021_v33 = vld [vmem:[#allocation6 + $0xd8] sm:$0xff]  ;;  %v10022_v47 = vld [vmem:[#allocation6 + $0xe0] sm:$0xff] }
 0x3bf   :  { %v11682_v31 = vld [vmem:[#allocation3 + $0x4] sm:$0xff]  ;;  %v3225_v24 = vmax.f32 %v3193_v1, 0.0  ;;  %v3226_v63 = vmax.f32 %v3194_v7, 0.0  ;;  %v3227_v20 = vmax.f32 %v3195_v2, 0.0  ;;  %v3228_v0 = vmax.f32 %v3196_v27, 0.0  ;;  %v10023_v1 = vld [vmem:[#allocation6 + $0xe8] sm:$0xff] }
 0x3c0   :  { %v11676_v15 = vld [vmem:[#allocation3 + $0xc] sm:$0xff]  ;;  %6509 = vst [vmem:[#allocation3] sm:$0xff] %v14561_v3  ;;  %v3229_v37 = vmax.f32 %v3197_v32, 0.0  ;;  %v3230_v4 = vmax.f32 %v3198_v14, 0.0  ;;  %v3231_v5 = vmax.f32 %v3199_v6, 0.0  ;;  %v11685_v45 = vld [vmem:[#allocation3 + $0x14] sm:$0xff]  ;;  %v3281_v38 = vadd.f32 %v10019_v36, %v3217_v57 }
 0x3c1   :  { %v11674_v29 = vld [vmem:[#allocation3 + $0x1c] sm:$0xff]  ;;  %4309 = vrot.lane.b32.xlu1 %v11676_v15, %s10166_s23  ;;  %v3232_v12 = vmax.f32 %v3200_v48, 0.0  ;;  %v3282_v26 = vadd.f32 %v10020_v50, %v3218_v49  ;;  %v3283_v41 = vadd.f32 %v10021_v33, %v3219_v35  ;;  %v3284_v46 = vadd.f32 %v10022_v47, %v3220_v61  ;;  %v10025_v32 = vld [vmem:[#allocation6 + $0xf8] sm:$0xff]  ;;  %v10026_v6 = vld [vmem:[#allocation6 + $0x100] sm:$0xff] }
 0x3c2   :  { %14560 = vst [vmem:[#allocation24_spill] sm:$0xff] %v11674_v29  ;;  %4313 = vrot.lane.b32.xlu0 %v11674_v29, %s10166_s23  ;;  %v3285_v7 = vadd.f32 %v10023_v1, %v3221_v9  ;;  %v10024_v2 = vld [vmem:[#allocation6 + $0xf0] sm:$0xff]  ;;  %v3287_v14 = vadd.f32 %v10025_v32, %v3223_v17  ;;  %v3288_v48 = vadd.f32 %v10026_v6, %v3224_v34  ;;  %v10027_v50 = vld [vmem:[#allocation6 + $0x108] sm:$0xff]  ;;  %v10029_v3 = vld [vmem:[#allocation6 + $0x118] sm:$0xff] }
 0x3c3   :  { %v3286_v27 = vadd.f32 %v10024_v2, %v3222_v53  ;;  %v3289_v57 = vadd.f32 %v10027_v50, %v3225_v24  ;;  %v10028_v49 = vld [vmem:[#allocation6 + $0x110] sm:$0xff]  ;;  %v3291_v36 = vadd.f32 %v10029_v3, %v3227_v20  ;;  %v10030_v33 = vld [vmem:[#allocation6 + $0x120] sm:$0xff]  ;;  %v3294_v61 = vadd.f32 %v10032_v58, %v3230_v4  ;;  %v10033_v47 = vld [vmem:[#allocation6 + $0x138] sm:$0xff] }
 0x3c4   :  { %v3290_v35 = vadd.f32 %v10028_v49, %v3226_v63  ;;  %v3292_v18 = vadd.f32 %v10030_v33, %v3228_v0  ;;  %v3295_v9 = vadd.f32 %v10033_v47, %v3231_v5  ;;  %v10034_v1 = vld [vmem:[#allocation6 + $0x140] sm:$0xff]  ;;  %v3313_v17 = vmul.f32 %v3281_v38, %v11326_v23  ;;  %v10036_v50 = vld [vmem:[#allocation6 + $0x148] sm:$0xff] }
 0x3c5   :  { %4311 = vrot.lane.b32.xlu1 %v11685_v45, %s10166_s23  ;;  %v3296_v53 = vadd.f32 %v10034_v1, %v3232_v12  ;;  %v3314_v34 = vmul.f32 %v3282_v26, %v11331_v11  ;;  %v3315_v24 = vmul.f32 %v3283_v41, %v11345_v16  ;;  %v3316_v63 = vmul.f32 %v3284_v46, %v11364_v10  ;;  %v59_v33 = vld [vmem:[#allocation6 + $0xa8] sm:$0xff] }
 0x3c6   :  { %4159 = vrot.lane.b32.xlu0 %v11674_v29, %s10167_s24  ;;  %v3293_v29 = vadd.f32 %v10031_v43, %v3229_v37  ;;  %v3317_v20 = vmul.f32 %v3285_v7, %v11377_v30  ;;  %v3318_v43 = vmul.f32 %v3286_v27, %v11397_v42  ;;  %v3319_v58 = vmul.f32 %v3287_v14, %v11409_v62  ;;  %v10035_v7 = vld [vmem:[#allocation6 + $0xc0] sm:$0xff]  ;;  %v4281_v62 = vld [vmem:[#allocation3 + $0x4c] sm:$0xf]  ;;  %v3941_v30 = vld [vmem:[#allocation3 + $0x48] sm:$0xf] }
 0x3c7   :  { %v3320_v0 = vmul.f32 %v3288_v48, %v11435_v25  ;;  %v3321_v37 = vmul.f32 %v3289_v57, %v11442_v60  ;;  %v3322_v4 = vmul.f32 %v3290_v35, %v11459_v56  ;;  %v3323_v5 = vmul.f32 %v3291_v36, %v11470_v22  ;;  %3345 = vst [vmem:[#allocation9 + $0x80] sm:$0xff] %v3313_v17  ;;  %v14563_v36 = vld [vmem:[#allocation35_spill] sm:$0xff]  ;;  %v11827_v47 = vld [vmem:[%s14418_s1 + $0x14] ss:$8 sps:$4 sm:$0xff]  }
 0x3c8   :  { %3346 = vst [vmem:[#allocation9 + $0x88] sm:$0xff] %v3314_v34  ;;  %3347 = vst [vmem:[#allocation9 + $0x90] sm:$0xff] %v3315_v24  ;;  %v3324_v12 = vmul.f32 %v3292_v18, %v11487_v51  ;;  %v3325_v38 = vmul.f32 %v3293_v29, %v11506_v40  ;;  %v3326_v26 = vmul.f32 %v3294_v61, %v11515_v19  ;;  %9605 = vmatprep.mubr.msk.bf16.mxu1 %vm2469_vm0, %v11827_v47  ;;  %v4280_v22 = vld [vmem:[#allocation3 + $0x44] sm:$0xff] }
 0x3c9   :  { %4155 = vrot.lane.b32.xlu1 %v11676_v15, %s10167_s24  ;;  %v3327_v41 = vmul.f32 %v3295_v9, %v11527_v54  ;;  %3348 = vst [vmem:[#allocation9 + $0x98] sm:$0xff] %v3316_v63  ;;  %3349 = vst [vmem:[#allocation9 + $0xa0] sm:$0xff] %v3317_v20  ;;  %v3328_v46 = vmul.f32 %v3296_v53, %v11539_v13  ;;  %v11711_v2 = vpack.c.bf16 %v3313_v17, %v10035_v7  ;;  %v14564_v17 = vld [vmem:[#allocation24_spill] sm:$0xff]  ;;  %v14567_v13 = vld [vmem:[#allocation38_spill] sm:$0xff] }
 0x3ca   :  { %3969 = vrot.lane.b32.xlu0 %v11630_v8, %s10166_s23  ;;  %3350 = vst [vmem:[#allocation9 + $0xa8] sm:$0xff] %v3318_v43  ;;  %3351 = vst [vmem:[#allocation9 + $0xb0] sm:$0xff] %v3319_v58  ;;  %v11713_v18 = vpack.c.bf16 %v3315_v24, %v3314_v34  ;;  %v11715_v29 = vpack.c.bf16 %v3317_v20, %v3316_v63  ;;  %v11719_v27 = vpack.c.bf16 %v3319_v58, %v3318_v43  ;;  %v4278_v58 = vld [vmem:[#allocation3 + $0x34] sm:$0xff] }
 0x3cb   :  { %3352 = vst [vmem:[#allocation9 + $0xb8] sm:$0xff] %v3320_v0  ;;  %3353 = vst [vmem:[#allocation9 + $0xc0] sm:$0xff] %v3321_v37  ;;  %v11721_v32 = vpack.c.bf16 %v3321_v37, %v3320_v0  ;;  %v11723_v14 = vpack.c.bf16 %v3323_v5, %v3322_v4  ;;  %v11725_v6 = vpack.c.bf16 %v3325_v38, %v3324_v12  ;;  %9604 = vmatprep.mubr.msk.bf16.mxu0 %vm2469_vm0, %v11827_v47 }
 0x3cc   :  { %3354 = vst [vmem:[#allocation9 + $0xc8] sm:$0xff] %v3322_v4  ;;  %3355 = vst [vmem:[#allocation9 + $0xd0] sm:$0xff] %v3323_v5  ;;  %v11729_v48 = vpack.c.bf16 %v3327_v41, %v3326_v26  ;;  %v11735_v57 = vpack.c.bf16 %v3315_v24, %v11607_v59  ;;  %v10110_v49 = vpack.c.bf16 %v3317_v20, %v11613_v39  ;;  %v81_v24 = vld [vmem:[#allocation6 + $0x158] sm:$0xff]  ;;  %v14565_v20 = vld [vmem:[#allocation36_spill] sm:$0xff] }
 0x3cd   :  { %3356 = vst [vmem:[#allocation9 + $0xd8] sm:$0xff] %v3324_v12  ;;  %3357 = vst [vmem:[#allocation9 + $0xe0] sm:$0xff] %v3325_v38  ;;  %4157 = vrot.lane.b32.xlu1 %v11685_v45, %s10167_s24  ;;  %v11743_v35 = vpack.c.bf16 %v3314_v34, %v11604_v28  ;;  %v10112_v3 = vpack.c.bf16 %v3316_v63, %v11610_v52  ;;  %v14562_v28 = vld [vmem:[#allocation34_spill] sm:$0xff] }
 0x3ce   :  { %3814 = vrot.lane.b32.xlu0 %v11630_v8, %s10167_s24  ;;  %3358 = vst [vmem:[#allocation9 + $0xe8] sm:$0xff] %v3326_v26  ;;  %3359 = vst [vmem:[#allocation9 + $0xf0] sm:$0xff] %v3327_v41  ;;  %v9840_v8 = vpack.c.bf16 %v10036_v50, %v3328_v46  ;;  %5492 = vmatprep.subr.bf16.mxu0 %v11735_v57  ;;  %v80_v34 = vld [vmem:[#allocation6 + $0x150] sm:$0xff]  ;;  %v14566_v50 = vld [vmem:[#allocation37_spill] sm:$0xff] }
 0x3cf   :  { %3360 = vst [vmem:[#allocation9 + $0xf8] sm:$0xff] %v3328_v46  ;;  %3581 = vst [vmem:[#allocation3 + $0x60] sm:$0xff] %v11711_v2  ;;  %5535 = vmatprep.subr.bf16.mxu1 %v10110_v49  ;;  %5493 = vmatpush1.bf16.msra.mxu0 %v11743_v35  ;;  %v9819_v63 = vpack.c.bf16 %v81_v24, %v80_v34  ;;  %v11876_v4 = vld [vmem:[#allocation3 + $0x3c] sm:$0xff] }
 0x3d0   :  { %3582 = vst [vmem:[#allocation3 + $0x68] sm:$0xff] %v11713_v18  ;;  %3583 = vst [vmem:[#allocation3 + $0x70] sm:$0xff] %v11715_v29  ;;  %5536 = vmatpush1.bf16.msra.mxu1 %v10112_v3 }
 0x3d1   :  { %3584 = vst [vmem:[#allocation3 + $0x78] sm:$0xff] %v11719_v27  ;;  %3585 = vst [vmem:[#allocation3 + $0x80] sm:$0xff] %v11721_v32  ;;  %3971 = vrot.lane.b32.xlu1 %v11634_v55, %s10166_s23 }
 0x3d2   :  { %3586 = vst [vmem:[#allocation3 + $0x88] sm:$0xff] %v11723_v14  ;;  %3587 = vst [vmem:[#allocation3 + $0x90] sm:$0xff] %v11725_v6  ;;  %3973 = vrot.lane.b32.xlu0 %v11638_v21, %s10166_s23 }
 0x3d3   :  { %3588 = vst [vmem:[#allocation3 + $0x98] sm:$0xff] %v11729_v48  ;;  %3589 = vst [vmem:[#allocation3 + $0xa0] sm:$0xff] %v9840_v8 }
 0x3d4   :  { %3590 = vst [vmem:[#allocation3 + $0xa8] sm:$0xff] %v9819_v63 }
 0x3d5   :  { %3816 = vrot.lane.b32.xlu1 %v11634_v55, %s10167_s24 }
 0x3d6   :  { %v3600_v59 = vld [vmem:[#allocation3 + $0x5c] sm:$0xff]  ;;  %3818 = vrot.lane.b32.xlu0 %v11638_v21, %s10167_s24 }
 0x3d7   :  { %6520 = vst [vmem:[#allocation3 + $0x58] sm:$0xff] %v14562_v28  ;;  %v11766_v52 = vld [vmem:[#allocation3 + $0x64] sm:$0xff]  ;;  %v11772_v39 = vld [vmem:[#allocation3 + $0x6c] sm:$0xff] }
 0x3d8   :  { %v11837_v9 = vld [vmem:[#allocation3 + $0x7c] sm:$0xff] }
 0x3d9   :  { %3629 = vrot.lane.b32.xlu1 %v11676_v15, %s10166_s23  ;;  %v11848_v53 = vld [vmem:[#allocation3 + $0x84] sm:$0xff] }
 0x3da   :  { %3627 = vrot.lane.b32.xlu0 %v11682_v31, %s10166_s23  ;;  %v11778_v31 = vld [vmem:[#allocation3 + $0x24] sm:$0xff]  ;;  %v11928_v28 = vld [vmem:[#allocation3 + $0x94] sm:$0xff]  ;;  %v4289_v42 = vld [vmem:[#allocation3 + $0x9c] sm:$0xff] }
 0x3db   :  { %v11866_v43 = vld [vmem:[#allocation3 + $0xa8] sm:$0xf] }
 0x3dc   :  { %6530 = vst [vmem:[#allocation3 + $0xa8] sm:$0xff] %v9819_v63 }
 0x3dd   :  { %4497 = vrot.lane.b32.xlu1 %v11638_v21, %s10167_s24  ;;  %v11790_v21 = vld [vmem:[#allocation3 + $0x2c] sm:$0xff] }
 0x3de   :  { %3631 = vrot.lane.b32.xlu0 %v11685_v45, %s10166_s23 }
 0x3e1   :  { %4327 = vrot.lane.b32.xlu1 %v11766_v52, %s10166_s23 }
 0x3e2   :  { %4495 = vrot.lane.b32.xlu0 %v11634_v55, %s10167_s24  ;;  %v11784_v55 = vld [vmem:[#allocation3 + $0x74] sm:$0xff] }
 0x3e5   :  { %4329 = vrot.lane.b32.xlu1 %v11772_v39, %s10166_s23 }
 0x3e6   :  { %4499 = vrot.lane.b32.xlu0 %v11640_v44, %s10167_s24 }
 0x3e9   :  { %4175 = vrot.lane.b32.xlu1 %v11772_v39, %s10167_s24 }
 0x3ea   :  { %4315 = vrot.lane.b32.xlu0 %v11778_v31, %s10166_s23 }
 0x3ed   :  { %4331 = vrot.lane.b32.xlu1 %v11784_v55, %s10166_s23 }
 0x3ee   :  { %4161 = vrot.lane.b32.xlu0 %v11778_v31, %s10167_s24 }
 0x3f1   :  { %4177 = vrot.lane.b32.xlu1 %v11784_v55, %s10167_s24 }
 0x3f2   :  { %4317 = vrot.lane.b32.xlu0 %v11790_v21, %s10166_s23 }
 0x3f5   :  { %3989 = vrot.lane.b32.xlu1 %v11713_v18, %s10166_s23 }
 0x3f6   :  { %4163 = vrot.lane.b32.xlu0 %v11790_v21, %s10167_s24 }
 0x3f9   :  { %3834 = vrot.lane.b32.xlu1 %v11713_v18, %s10167_s24 }
 0x3fa   :  { %3975 = vrot.lane.b32.xlu0 %v11640_v44, %s10166_s23 }
 0x3fd   :  { %3991 = vrot.lane.b32.xlu1 %v11715_v29, %s10166_s23 }
 0x3fe   :  { %3820 = vrot.lane.b32.xlu0 %v11640_v44, %s10167_s24  ;;  %v58_v44 = vld [vmem:[#allocation6 + $0xa0] sm:$0xff] }
 0x3ff   :  { %v9808_v61 = vpack.c.bf16 %v59_v33, %v58_v44 }
 0x401   :  { %3836 = vrot.lane.b32.xlu1 %v11715_v29, %s10167_s24  ;;  %3579 = vst [vmem:[#allocation3 + $0x50] sm:$0xff] %v9808_v61 }
 0x402   :  { %4173 = vrot.lane.b32.xlu0 %v11766_v52, %s10167_s24 }
 0x405   :  { %3647 = vrot.lane.b32.xlu1 %v11766_v52, %s10166_s23 }
 0x406   :  { %3977 = vrot.lane.b32.xlu0 %v14563_v36, %s10166_s23 }
 0x408   :  { %v11842_v1 = vld [vmem:[#allocation3 + $0x50] sm:$0xf] }
 0x409   :  { %3649 = vrot.lane.b32.xlu1 %v11772_v39, %s10166_s23  ;;  %6519 = vst [vmem:[#allocation3 + $0x50] sm:$0xff] %v9808_v61 }
 0x40a   :  { %3987 = vrot.lane.b32.xlu0 %v11711_v2, %s10166_s23 }
 0x40d   :  { %4515 = vrot.lane.b32.xlu1 %v11715_v29, %s10167_s24  ;;  %v11910_v29 = vld [vmem:[#allocation3 + $0x8c] sm:$0xff] }
 0x40e   :  { %3832 = vrot.lane.b32.xlu0 %v11711_v2, %s10167_s24 }
 0x411   :  { %4517 = vrot.lane.b32.xlu1 %v11719_v27, %s10167_s24 }
 0x412   :  { %3822 = vrot.lane.b32.xlu0 %v14563_v36, %s10167_s24 }
 0x415   :  { %4333 = vrot.lane.b32.xlu1 %v11837_v9, %s10166_s23 }
 0x416   :  { %3645 = vrot.lane.b32.xlu0 %v3600_v59, %s10166_s23 }
 0x419   :  { %4179 = vrot.lane.b32.xlu1 %v11837_v9, %s10167_s24 }
 0x41a   :  { %4513 = vrot.lane.b32.xlu0 %v11713_v18, %s10167_s24 }
 0x41d   :  { %4335 = vrot.lane.b32.xlu1 %v11848_v53, %s10166_s23 }
 0x41e   :  { %3633 = vrot.lane.b32.xlu0 %v14564_v17, %s10166_s23 }
 0x421   :  { %4181 = vrot.lane.b32.xlu1 %v11848_v53, %s10167_s24 }
 0x422   :  { %3635 = vrot.lane.b32.xlu0 %v11778_v31, %s10166_s23 }
 0x425   :  { %3993 = vrot.lane.b32.xlu1 %v11719_v27, %s10166_s23 }
 0x426   :  { %4501 = vrot.lane.b32.xlu0 %v14563_v36, %s10167_s24 }
 0x429   :  { %3838 = vrot.lane.b32.xlu1 %v11719_v27, %s10167_s24 }
 0x42a   :  { %4503 = vrot.lane.b32.xlu0 %v14565_v20, %s10167_s24 }
 0x42d   :  { %3995 = vrot.lane.b32.xlu1 %v11721_v32, %s10166_s23 }
 0x42e   :  { %4319 = vrot.lane.b32.xlu0 %v4278_v58, %s10166_s23 }
 0x431   :  { %3840 = vrot.lane.b32.xlu1 %v11721_v32, %s10167_s24 }
 0x432   :  { %4165 = vrot.lane.b32.xlu0 %v4278_v58, %s10167_s24 }
 0x433   :  { %v4310_v37 = vpop.permute.xlu1 %4309 }
 0x434   :  { %v11874_v0 = vpop.permute.xlu0 %4313 }
 0x435   :  { %3651 = vrot.lane.b32.xlu1 %v11784_v55, %s10166_s23 }
 0x436   :  { %4321 = vrot.lane.b32.xlu0 %v11876_v4, %s10166_s23 }
 0x437   :  { %v11884_v12 = vpop.permute.xlu1 %4311 }
 0x438   :  { %v11882_v5 = vpop.permute.xlu0 %4159  ;;  %v4346_v17 = vrot.slane %v11884_v12, 4 }
 0x439   :  { %3653 = vrot.lane.b32.xlu1 %v11837_v9, %s10166_s23 }
 0x43a   :  { %4167 = vrot.lane.b32.xlu0 %v11876_v4, %s10167_s24 }
 0x43b   :  { %v11892_v26 = vpop.permute.xlu1 %4155 }
 0x43c   :  { %v11890_v38 = vpop.permute.xlu0 %3969 }
 0x43d   :  { %4519 = vrot.lane.b32.xlu1 %v11721_v32, %s10167_s24 }
 0x43e   :  { %3979 = vrot.lane.b32.xlu0 %v14565_v20, %s10166_s23 }
 0x43f   :  { %v11900_v46 = vpop.permute.xlu1 %4157 }
 0x440   :  { %v11898_v41 = vpop.permute.xlu0 %3814 }
 0x441   :  { %4521 = vrot.lane.b32.xlu1 %v11723_v14, %s10167_s24 }
 0x442   :  { %3824 = vrot.lane.b32.xlu0 %v14565_v20, %s10167_s24 }
 0x443   :  { %v11908_v18 = vpop.permute.xlu1 %3971 }
 0x444   :  { %v11906_v7 = vpop.permute.xlu0 %3973 }
 0x445   :  { %4337 = vrot.lane.b32.xlu1 %v11910_v29, %s10166_s23 }
 0x446   :  { %3981 = vrot.lane.b32.xlu0 %v14566_v50, %s10166_s23 }
 0x447   :  { %v11918_v49 = vpop.permute.xlu1 %3816 }
 0x448   :  { %v11916_v8 = vpop.permute.xlu0 %3818 }
 0x449   :  { %4183 = vrot.lane.b32.xlu1 %v11910_v29, %s10167_s24 }
 0x44a   :  { %3826 = vrot.lane.b32.xlu0 %v14566_v50, %s10167_s24 }
 0x44b   :  { %v11926_v59 = vpop.permute.xlu1 %3629 }
 0x44c   :  { %v11924_v3 = vpop.permute.xlu0 %3627 }
 0x44d   :  { %4339 = vrot.lane.b32.xlu1 %v11928_v28, %s10166_s23 }
 0x44e   :  { %3637 = vrot.lane.b32.xlu0 %v11790_v21, %s10166_s23  ;;  %v4345_v21 = vrot.slane %v4310_v37, 4 }
 0x44f   :  { %v11936_v44 = vpop.permute.xlu1 %4497 }
 0x450   :  { %v11934_v36 = vpop.permute.xlu0 %3631 }
 0x451   :  { %4185 = vrot.lane.b32.xlu1 %v11928_v28, %s10167_s24 }
 0x452   :  { %3639 = vrot.lane.b32.xlu0 %v4278_v58, %s10166_s23  ;;  %v4363_v58 = vsel %vm414_vm1, %v4345_v21, %v4346_v17  ;;  %v4192_v21 = vrot.slane %v11900_v46, 4 }
 0x453   :  { %v4328_v61 = vpop.permute.xlu1 %4327  ;;  %v4364_v40 = vsel %vm3682_vm7, %v4310_v37, %v4363_v58 }
 0x454   :  { %v11941_v33 = vpop.permute.xlu0 %4495  ;;  %v4354_v63 = vrot.slane %v4328_v61, 4 }
 0x455   :  { %3997 = vrot.lane.b32.xlu1 %v11723_v14, %s10166_s23 }
 0x456   :  { %4505 = vrot.lane.b32.xlu0 %v14566_v50, %s10167_s24 }
 0x457   :  { %v4330_v24 = vpop.permute.xlu1 %4329 }
 0x458   :  { %v11948_v34 = vpop.permute.xlu0 %4499  ;;  %v4355_v20 = vrot.slane %v4330_v24, 4 }
 0x459   :  { %3842 = vrot.lane.b32.xlu1 %v11723_v14, %s10167_s24  ;;  %v14457_v14 = vrot.slane %v11874_v0, 4 }
 0x45a   :  { %4507 = vrot.lane.b32.xlu0 %v14567_v13, %s10167_s24  ;;  %v4379_v54 = vsel %vm414_vm1, %v4354_v63, %v4355_v20 }
 0x45b   :  { %v11958_v50 = vpop.permute.xlu1 %4175  ;;  %v4380_v51 = vsel %vm3682_vm7, %v4328_v61, %v4379_v54  ;;  %v4365_v54 = vsel %vm414_vm1, %v4346_v17, %v14457_v14 }
 0x45c   :  { %v11956_v19 = vpop.permute.xlu0 %4315  ;;  %v9556_v56 = vcombine.low %v4364_v40, %v4380_v51  ;;  %v9557_v60 = vcombine.high %v4364_v40, %v4380_v51  ;;  %v14461_v40 = vrot.slane %v11882_v5, 4 }
 0x45d   :  { %3999 = vrot.lane.b32.xlu1 %v11725_v6, %s10166_s23 }
 0x45e   :  { %4323 = vrot.lane.b32.xlu0 %v4280_v22, %s10166_s23  ;;  %5494 = vmatprep.subr.bf16.mxu0 %v9557_v60  ;;  %v4211_v37 = vsel %vm414_vm1, %v4192_v21, %v14461_v40 }
 0x45f   :  { %5495 = vmatpush1.bf16.msra.mxu0 %v9556_v56  ;;  %v11969_v25 = vpop.permute.xlu1 %4331  ;;  %v4366_v56 = vsel %vm3682_vm7, %v11884_v12, %v4365_v54 }
 0x460   :  { %v11967_v63 = vpop.permute.xlu0 %4161  ;;  %v14460_v51 = vrot.slane %v11969_v25, 4 }
 0x461   :  { %3844 = vrot.lane.b32.xlu1 %v11725_v6, %s10167_s24 }
 0x462   :  { %4169 = vrot.lane.b32.xlu0 %v4280_v22, %s10167_s24  ;;  %v4381_v60 = vsel %vm414_vm1, %v4355_v20, %v14460_v51  ;;  %v4201_v22 = vrot.slane %v11958_v50, 4 }
 0x463   :  { %v11989_v17 = vpop.permute.xlu1 %4177  ;;  %v4382_v58 = vsel %vm3682_vm7, %v4330_v24, %v4381_v60  ;;  %v4212_v24 = vsel %vm3869_vm8, %v11900_v46, %v4211_v37  ;;  %v14462_v37 = vrot.slane %v11906_v7, 4 }
 0x464   :  { %v11987_v61 = vpop.permute.xlu0 %4317  ;;  %v14463_v14 = vrot.slane %v11989_v17, 4  ;;  %v9558_v20 = vcombine.low %v4366_v56, %v4382_v58  ;;  %v9559_v51 = vcombine.high %v4366_v56, %v4382_v58  ;;  %v4127_v58 = vld [vmem:[#allocation3 + $0x4c] sm:$0xf] }
 0x465   :  { %3655 = vrot.lane.b32.xlu1 %v11848_v53, %s10166_s23 }
 0x466   :  { %4325 = vrot.lane.b32.xlu0 %v4281_v62, %s10166_s23  ;;  %5537 = vmatprep.subr.bf16.mxu1 %v9559_v51  ;;  %v4227_v12 = vsel %vm414_vm1, %v4201_v22, %v14463_v14  ;;  %v9527_v62 = vcombine.high %v11685_v45, %v11772_v39 }
 0x467   :  { %5538 = vmatpush1.bf16.msra.mxu1 %v9558_v20  ;;  %v12004_v60 = vpop.permute.xlu1 %3989  ;;  %v4228_v56 = vsel %vm3869_vm8, %v11958_v50, %v4227_v12  ;;  %v4006_v50 = vrot.slane %v11908_v18, 4 }
 0x468   :  { %v12002_v54 = vpop.permute.xlu0 %4163  ;;  %v9542_v53 = vcombine.low %v4212_v24, %v4228_v56  ;;  %v9543_v40 = vcombine.high %v4212_v24, %v4228_v56  ;;  %v14471_v24 = vrot.slane %v12004_v60, 4 }
 0x469   :  { %3657 = vrot.lane.b32.xlu1 %v11910_v29, %s10166_s23  ;;  %v9526_v29 = vcombine.low %v11685_v45, %v11772_v39  ;;  %v4025_v12 = vsel %vm414_vm1, %v4006_v50, %v14462_v37 }
 0x46a   :  { %4171 = vrot.lane.b32.xlu0 %v4127_v58, %s10167_s24  ;;  %5539 = vmatprep.subr.bf16.mxu1 %v9543_v40  ;;  %v4026_v39 = vsel %vm3682_vm7, %v11908_v18, %v4025_v12  ;;  %v14569_v18 = vrot.slane %v11918_v49, 4 }
 0x46b   :  { %5540 = vmatpush1.bf16.msra.mxu1 %v9542_v53  ;;  %v12015_v51 = vpop.permute.xlu1 %3834 }
 0x46c   :  { %v12013_v46 = vpop.permute.xlu0 %3975  ;;  %5541 = vmatprep.subr.bf16.mxu1 %v9527_v62  ;;  %v3860_v62 = vrot.slane %v12015_v51, 4 }
 0x46d   :  { %4523 = vrot.lane.b32.xlu1 %v11725_v6, %s10167_s24  ;;  %v4191_v6 = vrot.slane %v11892_v26, 4 }
 0x46e   :  { %3983 = vrot.lane.b32.xlu0 %v14567_v13, %s10166_s23 }
 0x46f   :  { %5542 = vmatpush1.bf16.msra.mxu1 %v9526_v29  ;;  %v12027_v20 = vpop.permute.xlu1 %3991  ;;  %v4209_v37 = vsel %vm414_vm1, %v4191_v6, %v4192_v21 }
 0x470   :  { %v12025_v40 = vpop.permute.xlu0 %3820  ;;  %v14470_v56 = vrot.slane %v12027_v20, 4 }
 0x471   :  { %4525 = vrot.lane.b32.xlu1 %v11729_v48, %s10167_s24 }
 0x472   :  { %3828 = vrot.lane.b32.xlu0 %v14567_v13, %s10167_s24  ;;  %v4041_v45 = vsel %vm414_vm1, %v14471_v24, %v14470_v56  ;;  %v14568_v24 = vrot.slane %v11916_v8, 4 }
 0x473   :  { %v12050_v14 = vpop.permute.xlu1 %3836  ;;  %v4042_v53 = vsel %vm3682_vm7, %v12004_v60, %v4041_v45 }
 0x474   :  { %v4174_v29 = vpop.permute.xlu0 %4173  ;;  %v14472_v58 = vrot.slane %v12050_v14, 4  ;;  %v9510_v10 = vcombine.low %v4026_v39, %v4042_v53  ;;  %v9511_v56 = vcombine.high %v4026_v39, %v4042_v53  ;;  %v3871_v12 = vsel %vm414_vm1, %v14569_v18, %v14568_v24 }
 0x475   :  { %v4200_v13 = vrot.slane %v4174_v29, 4  ;;  %4341 = vrot.lane.b32.xlu1 %v4289_v42, %s10166_s23  ;;  %v4210_v53 = vsel %vm3869_vm8, %v11892_v26, %v4209_v37  ;;  %v3665_v26 = vrot.slane %v11934_v36, 4 }
 0x476   :  { %3985 = vrot.lane.b32.xlu0 %v3941_v30, %s10166_s23  ;;  %5543 = vmatprep.subr.bf16.mxu1 %v9511_v56  ;;  %v3887_v6 = vsel %vm414_vm1, %v3860_v62, %v14472_v58  ;;  %v4005_v58 = vrot.slane %v11890_v38, 4 }
 0x477   :  { %v4225_v21 = vsel %vm414_vm1, %v4200_v13, %v4201_v22  ;;  %5544 = vmatpush1.bf16.msra.mxu1 %v9510_v10  ;;  %v12073_v24 = vpop.permute.xlu1 %3647  ;;  %v3888_v30 = vsel %vm3869_vm8, %v12015_v51, %v3887_v6  ;;  %v3872_v22 = vsel %vm3869_vm8, %v11918_v49, %v3871_v12  ;;  %v3786_v13 = vld [vmem:[#allocation3 + $0x48] sm:$0xf] }
 0x478   :  { %v4226_v45 = vsel %vm3869_vm8, %v4174_v29, %v4225_v21  ;;  %v12071_v39 = vpop.permute.xlu0 %3977  ;;  %v9494_v10 = vcombine.low %v3872_v22, %v3888_v30  ;;  %v9495_v37 = vcombine.high %v3872_v22, %v3888_v30  ;;  %v9525_v29 = vcombine.high %v11676_v15, %v11766_v52  ;;  %v4290_v30 = vld [vmem:[#allocation3 + $0xa4] sm:$0xf] }
 0x479   :  { %v9540_v56 = vcombine.low %v4210_v53, %v4226_v45  ;;  %v9541_v18 = vcombine.high %v4210_v53, %v4226_v45  ;;  %4187 = vrot.lane.b32.xlu1 %v4289_v42, %s10167_s24  ;;  %v3664_v21 = vrot.slane %v11926_v59, 4  ;;  %v4023_v6 = vsel %vm414_vm1, %v4005_v58, %v4006_v50 }
 0x47a   :  { %3830 = vrot.lane.b32.xlu0 %v3786_v13, %s10167_s24  ;;  %5545 = vmatprep.subr.bf16.mxu1 %v9495_v37  ;;  %v3673_v45 = vrot.slane %v12073_v24, 4  ;;  %v3850_v22 = vrot.slane %v11898_v41, 4  ;;  %v9524_v50 = vcombine.low %v11676_v15, %v11766_v52 }
 0x47b   :  { %5496 = vmatprep.subr.bf16.mxu0 %v9541_v18  ;;  %v12087_v53 = vpop.permute.xlu1 %3649  ;;  %5546 = vmatpush1.bf16.msra.mxu1 %v9494_v10  ;;  %v3684_v58 = vsel %vm414_vm1, %v3664_v21, %v3665_v26  ;;  %v14570_v18 = vrot.slane %v12004_v60, 4 }
 0x47c   :  { %v3988_v12 = vpop.permute.xlu0 %3987  ;;  %5497 = vmatpush1.bf16.msra.mxu0 %v9540_v56  ;;  %v3674_v13 = vrot.slane %v12087_v53, 4  ;;  %5547 = vmatprep.subr.bf16.mxu1 %v11735_v57  ;;  %v4024_v56 = vsel %vm3682_vm7, %v11890_v38, %v4023_v6  ;;  %v4533_v57 = vrot.slane %v11948_v34, 4  ;;  %v14571_v38 = vrot.slane %v11918_v49, 4  ;;  %v3599_v49 = vld [vmem:[#allocation3 + $0x44] sm:$0xf] }
 0x47d   :  { %v4014_v42 = vrot.slane %v3988_v12, 4  ;;  %5498 = vmatprep.subr.bf16.mxu0 %v9525_v29  ;;  %4343 = vrot.lane.b32.xlu1 %v4290_v30, %s10166_s23  ;;  %v4136_v30 = vld [vmem:[#allocation3 + $0xa4] sm:$0xf] }
 0x47e   :  { %3641 = vrot.lane.b32.xlu0 %v11876_v4, %s10166_s23  ;;  %v3700_v15 = vsel %vm414_vm1, %v3673_v45, %v3674_v13  ;;  %v3868_v60 = vsel %vm414_vm1, %v3850_v22, %v14571_v38 }
 0x47f   :  { %v4039_v10 = vsel %vm414_vm1, %v4014_v42, %v14570_v18  ;;  %v12118_v29 = vpop.permute.xlu1 %4515  ;;  %v3701_v4 = vsel %vm3682_vm7, %v12073_v24, %v3700_v15  ;;  %5548 = vmatpush1.bf16.msra.mxu1 %v11743_v35  ;;  %v3663_v35 = vrot.slane %v11924_v3, 4 }
 0x480   :  { %v4040_v52 = vsel %vm3682_vm7, %v3988_v12, %v4039_v10  ;;  %v3833_v37 = vpop.permute.xlu0 %3832  ;;  %5499 = vmatpush1.bf16.msra.mxu0 %v9524_v50  ;;  %v3685_v12 = vsel %vm3682_vm7, %v11926_v59, %v3684_v58  ;;  %v4532_v10 = vrot.slane %v11936_v44, 4 }
 0x481   :  { %v9508_v6 = vcombine.low %v4024_v56, %v4040_v52  ;;  %v3859_v42 = vrot.slane %v3833_v37, 4  ;;  %v9509_v18 = vcombine.high %v4024_v56, %v4040_v52  ;;  %4189 = vrot.lane.b32.xlu1 %v4136_v30, %s10167_s24  ;;  %v9462_v22 = vcombine.low %v3685_v12, %v3701_v4 }
 0x482   :  { %v9463_v50 = vcombine.high %v3685_v12, %v3701_v4  ;;  %3643 = vrot.lane.b32.xlu0 %v3599_v49, %s10166_s23  ;;  %v3870_v56 = vsel %vm3869_vm8, %v11898_v41, %v3868_v60  ;;  %v3746_v4 = vld [vmem:[#allocation3 + $0x8] sm:$0xff]  ;;  %v4551_v51 = vsel %vm414_vm1, %v4532_v10, %v4533_v57  ;;  %v3681_v49 = vsel %vm414_vm1, %v3663_v35, %v3664_v21 }
 0x483   :  { %v3885_v15 = vsel %vm414_vm1, %v3859_v42, %v3860_v62  ;;  %5500 = vmatprep.subr.bf16.mxu0 %v9509_v18  ;;  %v12137_v38 = vpop.permute.xlu1 %4517  ;;  %v4541_v42 = vrot.slane %v12118_v29, 4  ;;  %v12144_v60 = vld [vmem:[#allocation3 + $0x48] sm:$0xff]  ;;  %v4531_v18 = vrot.slane %v11941_v33, 4  ;;  %v9476_v59 = vcombine.low %v3746_v4, %v11711_v2 }
 0x484   :  { %v3886_v58 = vsel %vm3869_vm8, %v3833_v37, %v3885_v15  ;;  %5549 = vmatprep.subr.bf16.mxu1 %v9463_v50  ;;  %v12135_v52 = vpop.permute.xlu0 %3822  ;;  %5501 = vmatpush1.bf16.msra.mxu0 %v9508_v6  ;;  %v14473_v30 = vrot.slane %v12137_v38, 4  ;;  %v9477_v37 = vcombine.high %v3746_v4, %v11711_v2  ;;  %v4552_v50 = vsel %vm3869_vm8, %v11936_v44, %v4551_v51 }
 0x485   :  { %v9492_v62 = vcombine.low %v3870_v56, %v3886_v58  ;;  %5550 = vmatpush1.bf16.msra.mxu1 %v9462_v22  ;;  %v9493_v41 = vcombine.high %v3870_v56, %v3886_v58  ;;  %4001 = vrot.lane.b32.xlu1 %v11729_v48, %s10166_s23  ;;  %v12162_v56 = vld [vmem:[#allocation3 + $0x28] sm:$0xff]  ;;  %v3683_v21 = vsel %vm3682_vm7, %v11924_v3, %v3681_v49  ;;  %v4349_v3 = vrot.slane %v11987_v61, 4 }
 0x486   :  { %4509 = vrot.lane.b32.xlu0 %v12144_v60, %s10167_s24  ;;  %v4567_v6 = vsel %vm414_vm1, %v4541_v42, %v14473_v30  ;;  %v4549_v2 = vsel %vm414_vm1, %v4531_v18, %v4532_v10  ;;  %v9578_v10 = vcombine.low %v12162_v56, %v11721_v32 }
 0x487   :  { %5502 = vmatprep.subr.bf16.mxu0 %v9493_v41  ;;  %v4334_v22 = vpop.permute.xlu1 %4333  ;;  %v4568_v15 = vsel %vm3869_vm8, %v12118_v29, %v4567_v6  ;;  %v9579_v29 = vcombine.high %v12162_v56, %v11721_v32  ;;  %v4550_v6 = vsel %vm3869_vm8, %v11941_v33, %v4549_v2  ;;  %v14572_v33 = vrot.slane %v11969_v25, 4 }
 0x488   :  { %v3646_v12 = vpop.permute.xlu0 %3645  ;;  %5503 = vmatpush1.bf16.msra.mxu0 %v9492_v62  ;;  %v9590_v41 = vcombine.low %v4552_v50, %v4568_v15  ;;  %v9591_v30 = vcombine.high %v4552_v50, %v4568_v15  ;;  %v4357_v35 = vrot.slane %v4334_v22, 4  ;;  %v3950_v62 = vld [vmem:[#allocation3 + $0xa0] sm:$0xf]  ;;  %v4194_v2 = vrot.slane %v11967_v63, 4 }
 0x489   :  { %v3672_v58 = vrot.slane %v3646_v12, 4  ;;  %5504 = vmatprep.subr.bf16.mxu0 %v9477_v37  ;;  %3846 = vrot.lane.b32.xlu1 %v11729_v48, %s10167_s24  ;;  %v12179_v48 = vld [vmem:[%s14418_s1 + $0x10] ss:$8 sps:$4 sm:$0xff]   ;;  %v4348_v37 = vrot.slane %v11956_v19, 4 }
 0x48a   :  { %4511 = vrot.lane.b32.xlu0 %v11842_v1, %s10167_s24  ;;  %5565 = vmatprep.subr.bf16.mxu1 %v9591_v30 }
 0x48b   :  { %v3698_v44 = vsel %vm414_vm1, %v3672_v58, %v3673_v45  ;;  %5566 = vmatpush2.bf16.msra.mxu1 %v9590_v41  ;;  %v4180_v1 = vpop.permute.xlu1 %4179  ;;  %v12198_v58 = vld [vmem:[#allocation3 + $0x20] sm:$0xff]  ;;  %v4369_v32 = vsel %vm414_vm1, %v4348_v37, %v4349_v3 }
 0x48c   :  { %v3699_v24 = vsel %vm3682_vm7, %v3646_v12, %v3698_v44  ;;  %v4514_v45 = vpop.permute.xlu0 %4513  ;;  %5505 = vmatpush1.bf16.msra.mxu0 %v9476_v59  ;;  %5621 = vmatprep.subr.bf16.mxu1 %v9579_v29  ;;  %v4195_v12 = vrot.slane %v12002_v54, 4  ;;  %v4203_v59 = vrot.slane %v4180_v1, 4  ;;  %v3795_v44 = vld [vmem:[#allocation3 + $0xa0] sm:$0xf] }
 0x48d   :  { %v9460_v4 = vcombine.low %v3683_v21, %v3699_v24  ;;  %v4540_v51 = vrot.slane %v4514_v45, 4  ;;  %v9461_v30 = vcombine.high %v3683_v21, %v3699_v24  ;;  %4003 = vrot.lane.b32.xlu1 %v3950_v62, %s10166_s23  ;;  %v9577_v24 = vcombine.high %v12198_v58, %v11719_v27 }
 0x48e   :  { %5568 = vmatmul.mubr.bf16.vlgmr.msra.gmra.mxu1 %v12179_v48 }
 0x48f   :  { %v4565_v18 = vsel %vm414_vm1, %v4540_v51, %v4541_v42  ;;  %5506 = vmatprep.subr.bf16.mxu0 %v9461_v30  ;;  %5622 = vmatpush1.bf16.msra.mxu1 %v9578_v10  ;;  %v12196_v15 = vpop.permute.xlu1 %4335  ;;  %v4383_v42 = vsel %vm414_vm1, %v14572_v33, %v4357_v35  ;;  %v4370_v10 = vsel %vm3682_vm7, %v11956_v19, %v4369_v32 }
 0x490   :  { %v4566_v49 = vsel %vm3869_vm8, %v4514_v45, %v4565_v18  ;;  %v12194_v50 = vpop.permute.xlu0 %3633  ;;  %5507 = vmatpush1.bf16.msra.mxu0 %v9460_v4  ;;  %v4358_v21 = vrot.slane %v12196_v15, 4  ;;  %9607 = vmatprep.mubr.msk.bf16.mxu1 %vm2469_vm0, %v11827_v47  ;;  %v14573_v4 = vrot.slane %v11874_v0, 4  ;;  %v4384_v18 = vsel %vm3682_vm7, %v11969_v25, %v4383_v42 }
 0x491   :  { %v9588_v41 = vcombine.low %v4550_v6, %v4566_v49  ;;  %v9589_v29 = vcombine.high %v4550_v6, %v4566_v49  ;;  %3848 = vrot.lane.b32.xlu1 %v3795_v44, %s10167_s24  ;;  %v9576_v19 = vcombine.low %v12198_v58, %v11719_v27  ;;  %v14575_v42 = vrot.slane %v11882_v5, 4 }
 0x492   :  { %v4385_v45 = vsel %vm414_vm1, %v4357_v35, %v4358_v21  ;;  %v4367_v51 = vsel %vm414_vm1, %v14573_v4, %v4348_v37  ;;  %v4215_v35 = vsel %vm414_vm1, %v4194_v2, %v4195_v12 }
 0x493   :  { %5522 = vmatprep.subr.bf16.mxu0 %v9589_v29  ;;  %v12221_v30 = vpop.permute.xlu1 %4181  ;;  %v4386_v6 = vsel %vm3682_vm7, %v4334_v22, %v4385_v45  ;;  %v4368_v25 = vsel %vm3682_vm7, %v11874_v0, %v4367_v51  ;;  %v4213_v29 = vsel %vm414_vm1, %v14575_v42, %v4194_v2  ;;  %v4216_v0 = vsel %vm3869_vm8, %v11967_v63, %v4215_v35 }
 0x494   :  { %v12219_v62 = vpop.permute.xlu0 %3635  ;;  %5523 = vmatpush2.bf16.msra.mxu0 %v9588_v41  ;;  %v4204_v49 = vrot.slane %v12221_v30, 4  ;;  %v9562_v37 = vcombine.low %v4370_v10, %v4386_v6  ;;  %v9563_v33 = vcombine.high %v4370_v10, %v4386_v6  ;;  %v14574_v41 = vrot.slane %v11989_v17, 4 }
 0x495   :  { %5578 = vmatprep.subr.bf16.mxu0 %v9577_v24  ;;  %3659 = vrot.lane.b32.xlu1 %v11928_v28, %s10166_s23  ;;  %v9561_v22 = vcombine.high %v4368_v25, %v4384_v18  ;;  %v9560_v2 = vcombine.low %v4368_v25, %v4384_v18  ;;  %v4214_v6 = vsel %vm3869_vm8, %v11882_v5, %v4213_v29  ;;  %v4008_v63 = vrot.slane %v12013_v46, 4 }
 0x496   :  { %v4229_v44 = vsel %vm414_vm1, %v14574_v41, %v4203_v59  ;;  %5623 = vmatprep.subr.bf16.mxu1 %v9563_v33  ;;  %v4231_v32 = vsel %vm414_vm1, %v4203_v59, %v4204_v49  ;;  %v3608_v59 = vld [vmem:[#allocation3 + $0x9c] sm:$0xf]  ;;  %v4009_v33 = vrot.slane %v12071_v39, 4  ;;  %v12266_v41 = vld [vmem:[#allocation3 + $0xa0] sm:$0xff]  ;;  %v14576_v5 = vrot.slane %v12027_v20, 4 }
 0x497   :  { %5525 = vmatmul.mubr.bf16.vlgmr.msra.gmra.mxu0 %v12179_v48  ;;  %5624 = vmatpush1.bf16.msra.mxu1 %v9562_v37  ;;  %v3994_v27 = vpop.permute.xlu1 %3993  ;;  %v4232_v28 = vsel %vm3869_vm8, %v4180_v1, %v4231_v32  ;;  %v4230_v45 = vsel %vm3869_vm8, %v11989_v17, %v4229_v44  ;;  %v9531_v17 = vcombine.high %v11778_v31, %v11837_v9  ;;  %v3853_v32 = vrot.slane %v12025_v40, 4 }
 0x498   :  { %v12248_v24 = vpop.permute.xlu0 %4501  ;;  %5579 = vmatpush1.bf16.msra.mxu0 %v9576_v19  ;;  %v4017_v4 = vrot.slane %v3994_v27, 4  ;;  %v9546_v51 = vcombine.low %v4216_v0, %v4232_v28  ;;  %v9547_v10 = vcombine.high %v4216_v0, %v4232_v28  ;;  %9606 = vmatprep.mubr.msk.bf16.mxu0 %vm2469_vm0, %v11827_v47  ;;  %v9545_v1 = vcombine.high %v4214_v6, %v4230_v45 }
 0x499   :  { %5580 = vmatprep.subr.bf16.mxu0 %v9561_v22  ;;  %3661 = vrot.lane.b32.xlu1 %v3608_v59, %s10166_s23  ;;  %v9544_v19 = vcombine.low %v4214_v6, %v4230_v45  ;;  %v9530_v25 = vcombine.low %v11778_v31, %v11837_v9  ;;  %v4089_v22 = vld [vmem:[#allocation3 + $0x1c] sm:$0xff]  ;;  %v14577_v29 = vrot.slane %v11906_v7, 4  ;;  %v3854_v31 = vrot.slane %v12135_v52, 4 }
 0x49a   :  { %5625 = vmatprep.subr.bf16.mxu1 %v9547_v10  ;;  %v4043_v44 = vsel %vm414_vm1, %v14576_v5, %v4017_v4  ;;  %v9529_v42 = vcombine.high %v4089_v22, %v11784_v55  ;;  %v14578_v10 = vrot.slane %v12050_v14, 4  ;;  %v9528_v6 = vcombine.low %v4089_v22, %v11784_v55 }
 0x49b   :  { %5626 = vmatpush1.bf16.msra.mxu1 %v9546_v51  ;;  %v3839_v37 = vpop.permute.xlu1 %3838  ;;  %v4027_v0 = vsel %vm414_vm1, %v14577_v29, %v4008_v63  ;;  %v4044_v59 = vsel %vm3682_vm7, %v12027_v20, %v4043_v44  ;;  %v4029_v51 = vsel %vm414_vm1, %v4008_v63, %v4009_v33  ;;  %v14579_v5 = vrot.slane %v11916_v8, 4 }
 0x49c   :  { %v12263_v35 = vpop.permute.xlu0 %4503  ;;  %5581 = vmatpush1.bf16.msra.mxu0 %v9560_v2  ;;  %v3862_v18 = vrot.slane %v3839_v37, 4  ;;  %5627 = vmatprep.subr.bf16.mxu1 %v9531_v17  ;;  %v4028_v20 = vsel %vm3682_vm7, %v11906_v7, %v4027_v0  ;;  %v4030_v55 = vsel %vm3682_vm7, %v12013_v46, %v4029_v51  ;;  %v3666_v46 = vrot.slane %v12194_v50, 4 }
 0x49d   :  { %5582 = vmatprep.subr.bf16.mxu0 %v9545_v1  ;;  %4527 = vrot.lane.b32.xlu1 %v12266_v41, %s10167_s24  ;;  %v9513_v1 = vcombine.high %v4028_v20, %v4044_v59  ;;  %v3873_v63 = vsel %vm414_vm1, %v14579_v5, %v3853_v32  ;;  %v9512_v29 = vcombine.low %v4028_v20, %v4044_v59 }
 0x49e   :  { %v3889_v2 = vsel %vm414_vm1, %v14578_v10, %v3862_v18  ;;  %v3874_v0 = vsel %vm3869_vm8, %v11916_v8, %v3873_v63  ;;  %v3667_v8 = vrot.slane %v12219_v62, 4  ;;  %v3686_v63 = vsel %vm414_vm1, %v3665_v26, %v3666_v46 }
 0x49f   :  { %5628 = vmatpush1.bf16.msra.mxu1 %v9530_v25  ;;  %v12282_v45 = vpop.permute.xlu1 %3995  ;;  %v3890_v7 = vsel %vm3869_vm8, %v12050_v14, %v3889_v2  ;;  %v3757_v2 = vld [vmem:[#allocation3 + $0x78] sm:$0xff] }
 0x4a0   :  { %v12280_v28 = vpop.permute.xlu0 %4319  ;;  %5583 = vmatpush1.bf16.msra.mxu0 %v9544_v19  ;;  %v4018_v9 = vrot.slane %v12282_v45, 4  ;;  %v9483_v5 = vcombine.high %v12198_v58, %v3757_v2  ;;  %v3688_v26 = vsel %vm414_vm1, %v3666_v46, %v3667_v8 }
 0x4a1   :  { %5584 = vmatprep.subr.bf16.mxu0 %v9529_v42  ;;  %4529 = vrot.lane.b32.xlu1 %v11866_v43, %s10167_s24  ;;  %v3875_v42 = vsel %vm414_vm1, %v3853_v32, %v3854_v31 }
 0x4a2   :  { %v4045_v17 = vsel %vm414_vm1, %v4017_v4, %v4018_v9  ;;  %v3876_v32 = vsel %vm3869_vm8, %v12025_v40, %v3875_v42  ;;  %v3687_v42 = vsel %vm3682_vm7, %v11934_v36, %v3686_v63  ;;  %v4535_v36 = vrot.slane %v12263_v35, 4 }
 0x4a3   :  { %v12307_v19 = vpop.permute.xlu1 %3840  ;;  %v4046_v43 = vsel %vm3682_vm7, %v3994_v27, %v4045_v17  ;;  %v9497_v27 = vcombine.high %v3874_v0, %v3890_v7  ;;  %v9496_v17 = vcombine.low %v3874_v0, %v3890_v7 }
 0x4a4   :  { %v12305_v44 = vpop.permute.xlu0 %4165  ;;  %5585 = vmatpush1.bf16.msra.mxu0 %v9528_v6  ;;  %v3863_v25 = vrot.slane %v12307_v19, 4  ;;  %v9514_v4 = vcombine.low %v4030_v55, %v4046_v43  ;;  %v9515_v22 = vcombine.high %v4030_v55, %v4046_v43 }
 0x4a5   :  { %5586 = vmatprep.subr.bf16.mxu0 %v9513_v1 }
 0x4a6   :  { %5629 = vmatprep.subr.bf16.mxu1 %v9515_v22  ;;  %v3891_v14 = vsel %vm414_vm1, %v3862_v18, %v3863_v25  ;;  %v9914_v18 = vld [vmem:[#allocation3 + $0x1c] ss:$88 sps:$4 sm:$0xff]   ;;  %v9482_v22 = vcombine.low %v12198_v58, %v3757_v2 }
 0x4a7   :  { %5630 = vmatpush1.bf16.msra.mxu1 %v9514_v4  ;;  %v3652_v10 = vpop.permute.xlu1 %3651  ;;  %v3892_v59 = vsel %vm3869_vm8, %v3839_v37, %v3891_v14  ;;  %v4534_v37 = vrot.slane %v12248_v24, 4  ;;  %v3689_v14 = vsel %vm3682_vm7, %v12194_v50, %v3688_v26  ;;  %v4350_v50 = vrot.slane %v12280_v28, 4  ;;  %v12379_v26 = vld [vmem:[#allocation3 + $0x34] ss:$88 sps:$4 sm:$0xff]  }
 0x4a8   :  { %v12324_v51 = vpop.permute.xlu0 %4321  ;;  %5587 = vmatpush1.bf16.msra.mxu0 %v9512_v29  ;;  %v3675_v6 = vrot.slane %v3652_v10, 4  ;;  %v9498_v20 = vcombine.low %v3876_v32, %v3892_v59  ;;  %v9499_v1 = vcombine.high %v3876_v32, %v3892_v59 }
 0x4a9   :  { %5588 = vmatprep.subr.bf16.mxu0 %v9497_v27  ;;  %v4553_v58 = vsel %vm414_vm1, %v4533_v57, %v4534_v37 }
 0x4aa   :  { %5631 = vmatprep.subr.bf16.mxu1 %v9499_v1  ;;  %v3702_v40 = vsel %vm414_vm1, %v3674_v13, %v3675_v6  ;;  %v9917_v13 = vld [vmem:[#allocation3 + $0x18] ss:$88 sps:$4 sm:$0xff]   ;;  %v4554_v57 = vsel %vm3869_vm8, %v11948_v34, %v4553_v58 }
 0x4ab   :  { %5632 = vmatpush1.bf16.msra.mxu1 %v9498_v20  ;;  %v12340_v43 = vpop.permute.xlu1 %3653  ;;  %v3703_v7 = vsel %vm3682_vm7, %v12087_v53, %v3702_v40  ;;  %v14580_v20 = vrot.slane %v12137_v38, 4  ;;  %v12394_v58 = vld [vmem:[#allocation3 + $0x30] ss:$88 sps:$4 sm:$0xff]  }
 0x4ac   :  { %v12338_v55 = vpop.permute.xlu0 %4167  ;;  %5589 = vmatpush1.bf16.msra.mxu0 %v9496_v17  ;;  %v3676_v4 = vrot.slane %v12340_v43, 4  ;;  %5633 = vmatprep.subr.bf16.mxu1 %v9483_v5  ;;  %v9465_v29 = vcombine.high %v3687_v42, %v3703_v7 }
 0x4ad   :  { %5590 = vmatprep.subr.bf16.mxu0 %v9914_v18 }
 0x4ae   :  { %v3704_v0 = vsel %vm414_vm1, %v3675_v6, %v3676_v4  ;;  %v9464_v6 = vcombine.low %v3687_v42, %v3703_v7  ;;  %v4555_v7 = vsel %vm414_vm1, %v4534_v37, %v4535_v36  ;;  %v4371_v37 = vsel %vm414_vm1, %v4349_v3, %v4350_v50 }
 0x4af   :  { %5634 = vmatpush1.bf16.msra.mxu1 %v9482_v22  ;;  %v4520_v27 = vpop.permute.xlu1 %4519  ;;  %v3705_v46 = vsel %vm3682_vm7, %v3652_v10, %v3704_v0  ;;  %v4351_v3 = vrot.slane %v12324_v51, 4 }
 0x4b0   :  { %v12354_v53 = vpop.permute.xlu0 %3979  ;;  %5591 = vmatpush1.bf16.msra.mxu0 %v9917_v13  ;;  %v4543_v32 = vrot.slane %v4520_v27, 4  ;;  %v9466_v59 = vcombine.low %v3689_v14, %v3705_v46  ;;  %v9467_v2 = vcombine.high %v3689_v14, %v3705_v46 }
 0x4b1   :  { %5592 = vmatprep.subr.bf16.mxu0 %v9465_v29  ;;  %v4196_v29 = vrot.slane %v12305_v44, 4 }
 0x4b2   :  { %5635 = vmatprep.subr.bf16.mxu1 %v9467_v2  ;;  %v4569_v1 = vsel %vm414_vm1, %v14580_v20, %v4543_v32  ;;  %v4372_v2 = vsel %vm3682_vm7, %v11987_v61, %v4371_v37  ;;  %v9925_v37 = vld [vmem:[#allocation3 + $0x30] ss:$88 sps:$4 sm:$0xff]  }
 0x4b3   :  { %5636 = vmatpush1.bf16.msra.mxu1 %v9466_v59  ;;  %v12369_v10 = vpop.permute.xlu1 %4521  ;;  %v4570_v18 = vsel %vm3869_vm8, %v12137_v38, %v4569_v1  ;;  %v4556_v38 = vsel %vm3869_vm8, %v12248_v24, %v4555_v7  ;;  %v4373_v7 = vsel %vm414_vm1, %v4350_v50, %v4351_v3 }
 0x4b4   :  { %v12367_v17 = vpop.permute.xlu0 %3824  ;;  %5593 = vmatpush1.bf16.msra.mxu0 %v9464_v6  ;;  %v4544_v5 = vrot.slane %v12369_v10, 4  ;;  %v9592_v63 = vcombine.low %v4554_v57, %v4570_v18  ;;  %v9593_v40 = vcombine.high %v4554_v57, %v4570_v18  ;;  %v12416_v18 = vld [vmem:[#allocation3 + $0x38] ss:$88 sps:$4 sm:$0xff]  }
 0x4b6   :  { %5608 = vmatprep.subr.bf16.mxu0 %v9593_v40  ;;  %v4571_v13 = vsel %vm414_vm1, %v4543_v32, %v4544_v5  ;;  %v12397_v32 = vld [vmem:[#allocation3 + $0x3c] ss:$88 sps:$4 sm:$0xff]  }
 0x4b7   :  { %v4338_v34 = vpop.permute.xlu1 %4337  ;;  %v4572_v42 = vsel %vm3869_vm8, %v4520_v27, %v4571_v13  ;;  %v4197_v13 = vrot.slane %v12338_v55, 4 }
 0x4b8   :  { %v12384_v22 = vpop.permute.xlu0 %3981  ;;  %5609 = vmatpush2.bf16.msra.mxu0 %v9592_v63  ;;  %v4359_v0 = vrot.slane %v4338_v34, 4  ;;  %v9594_v14 = vcombine.low %v4556_v38, %v4572_v42  ;;  %v9595_v46 = vcombine.high %v4556_v38, %v4572_v42 }
 0x4b9   :  { %5664 = vmatprep.subr.bf16.mxu0 %v12379_v26 }
 0x4ba   :  { %5651 = vmatprep.subr.bf16.mxu1 %v9595_v46  ;;  %v4387_v24 = vsel %vm414_vm1, %v4358_v21, %v4359_v0  ;;  %v4217_v21 = vsel %vm414_vm1, %v4195_v12, %v4196_v29  ;;  %v4374_v46 = vsel %vm3682_vm7, %v12280_v28, %v4373_v7 }
 0x4bb   :  { %5611 = vmatmul.mubr.bf16.vlgmr.msra.gmra.mxu0 %v12179_v48  ;;  %5652 = vmatpush2.bf16.msra.mxu1 %v9594_v14  ;;  %v4184_v59 = vpop.permute.xlu1 %4183  ;;  %v4388_v6 = vsel %vm3682_vm7, %v12196_v15, %v4387_v24  ;;  %v4218_v12 = vsel %vm3869_vm8, %v12002_v54, %v4217_v21 }
 0x4bc   :  { %v12403_v27 = vpop.permute.xlu0 %3826  ;;  %5665 = vmatpush1.bf16.msra.mxu0 %v12394_v58  ;;  %v4205_v20 = vrot.slane %v4184_v59, 4  ;;  %5707 = vmatprep.subr.bf16.mxu1 %v12397_v32  ;;  %v9564_v1 = vcombine.low %v4372_v2, %v4388_v6  ;;  %v9565_v57 = vcombine.high %v4372_v2, %v4388_v6 }
 0x4bd   :  { %9608 = vmatprep.mubr.msk.bf16.mxu0 %vm2469_vm0, %v11827_v47 }
 0x4be   :  { %5654 = vmatmul.mubr.bf16.vlgmr.msra.gmra.mxu1 %v12179_v48  ;;  %5666 = vmatprep.subr.bf16.mxu0 %v9565_v57  ;;  %v4233_v61 = vsel %vm414_vm1, %v4204_v49, %v4205_v20 }
 0x4bf   :  { %5708 = vmatpush1.bf16.msra.mxu1 %v12416_v18  ;;  %v12425_v63 = vpop.permute.xlu1 %4339  ;;  %v4234_v40 = vsel %vm3869_vm8, %v12221_v30, %v4233_v61  ;;  %9609 = vmatprep.mubr.msk.bf16.mxu1 %vm2469_vm0, %v11827_v47  ;;  %v4010_v30 = vrot.slane %v12354_v53, 4 }
 0x4c0   :  { %v12422_v15 = vpop.permute.xlu0 %3637  ;;  %5667 = vmatpush1.bf16.msra.mxu0 %v9564_v1  ;;  %v4360_v49 = vrot.slane %v12425_v63, 4  ;;  %v9548_v38 = vcombine.low %v4218_v12, %v4234_v40  ;;  %v9549_v42 = vcombine.high %v4218_v12, %v4234_v40  ;;  %v9927_v1 = vld [vmem:[#allocation3 + $0x2c] ss:$88 sps:$4 sm:$0xff]   ;;  %v3855_v12 = vrot.slane %v12367_v17, 4 }
 0x4c2   :  { %5668 = vmatprep.subr.bf16.mxu0 %v9549_v42  ;;  %v4389_v54 = vsel %vm414_vm1, %v4359_v0, %v4360_v49  ;;  %v4219_v0 = vsel %vm414_vm1, %v4196_v29, %v4197_v13  ;;  %v4031_v29 = vsel %vm414_vm1, %v4009_v33, %v4010_v30 }
 0x4c3   :  { %v12444_v50 = vpop.permute.xlu1 %4185  ;;  %v4390_v24 = vsel %vm3682_vm7, %v4338_v34, %v4389_v54  ;;  %v4220_v34 = vsel %vm3869_vm8, %v12305_v44, %v4219_v0  ;;  %v4032_v33 = vsel %vm3682_vm7, %v12071_v39, %v4031_v29 }
 0x4c4   :  { %v12442_v14 = vpop.permute.xlu0 %3639  ;;  %5669 = vmatpush1.bf16.msra.mxu0 %v9548_v38  ;;  %v4206_v47 = vrot.slane %v12444_v50, 4  ;;  %v9566_v2 = vcombine.low %v4374_v46, %v4390_v24  ;;  %v9567_v6 = vcombine.high %v4374_v46, %v4390_v24 }
 0x4c5   :  { %5670 = vmatprep.subr.bf16.mxu0 %v9925_v37  ;;  %v4011_v37 = vrot.slane %v12384_v22, 4 }
 0x4c6   :  { %5709 = vmatprep.subr.bf16.mxu1 %v9567_v6  ;;  %v4235_v57 = vsel %vm414_vm1, %v4205_v20, %v4206_v47  ;;  %v9928_v20 = vld [vmem:[#allocation3 + $0x38] ss:$88 sps:$4 sm:$0xff]   ;;  %v9930_v6 = vld [vmem:[#allocation3 + $0x34] ss:$88 sps:$4 sm:$0xff]  }
 0x4c7   :  { %5710 = vmatpush1.bf16.msra.mxu1 %v9566_v2  ;;  %v3998_v28 = vpop.permute.xlu1 %3997  ;;  %v4236_v61 = vsel %vm3869_vm8, %v4184_v59, %v4235_v57 }
 0x4c8   :  { %v12456_v21 = vpop.permute.xlu0 %4505  ;;  %5671 = vmatpush1.bf16.msra.mxu0 %v9927_v1  ;;  %v4019_v40 = vrot.slane %v3998_v28, 4  ;;  %v9550_v7 = vcombine.low %v4220_v34, %v4236_v61  ;;  %v9551_v38 = vcombine.high %v4220_v34, %v4236_v61  ;;  %v3758_v34 = vld [vmem:[#allocation3 + $0x80] sm:$0xff]  ;;  %v3856_v61 = vrot.slane %v12403_v27, 4 }
 0x4ca   :  { %5711 = vmatprep.subr.bf16.mxu1 %v9551_v38  ;;  %v4047_v42 = vsel %vm414_vm1, %v4018_v9, %v4019_v40  ;;  %v3877_v9 = vsel %vm414_vm1, %v3854_v31, %v3855_v12  ;;  %v4033_v31 = vsel %vm414_vm1, %v4010_v30, %v4011_v37  ;;  %v9485_v38 = vcombine.high %v12162_v56, %v3758_v34 }
 0x4cb   :  { %5712 = vmatpush1.bf16.msra.mxu1 %v9550_v7  ;;  %v3843_v59 = vpop.permute.xlu1 %3842  ;;  %v4048_v54 = vsel %vm3682_vm7, %v12282_v45, %v4047_v42  ;;  %v3878_v45 = vsel %vm3869_vm8, %v12135_v52, %v3877_v9  ;;  %v4034_v30 = vsel %vm3682_vm7, %v12354_v53, %v4033_v31  ;;  %v9484_v9 = vcombine.low %v12162_v56, %v3758_v34 }
 0x4cc   :  { %v12469_v44 = vpop.permute.xlu0 %4507  ;;  %v3864_v46 = vrot.slane %v3843_v59, 4  ;;  %5713 = vmatprep.subr.bf16.mxu1 %v9928_v20  ;;  %v9516_v24 = vcombine.low %v4032_v33, %v4048_v54  ;;  %v9517_v2 = vcombine.high %v4032_v33, %v4048_v54  ;;  %v3669_v56 = vrot.slane %v12442_v14, 4 }
 0x4ce   :  { %5672 = vmatprep.subr.bf16.mxu0 %v9517_v2  ;;  %v3893_v0 = vsel %vm414_vm1, %v3863_v25, %v3864_v46 }
 0x4cf   :  { %5673 = vmatpush1.bf16.msra.mxu0 %v9516_v24  ;;  %5714 = vmatpush1.bf16.msra.mxu1 %v9930_v6  ;;  %v12483_v39 = vpop.permute.xlu1 %3999  ;;  %v3894_v57 = vsel %vm3869_vm8, %v12307_v19, %v3893_v0  ;;  %v3668_v19 = vrot.slane %v12422_v15, 4 }
 0x4d0   :  { %v12481_v1 = vpop.permute.xlu0 %4323  ;;  %v4020_v25 = vrot.slane %v12483_v39, 4  ;;  %v9500_v29 = vcombine.low %v3878_v45, %v3894_v57  ;;  %v9501_v7 = vcombine.high %v3878_v45, %v3894_v57 }
 0x4d2   :  { %5674 = vmatprep.subr.bf16.mxu0 %v9501_v7  ;;  %v4049_v52 = vsel %vm414_vm1, %v4019_v40, %v4020_v25  ;;  %v3879_v40 = vsel %vm414_vm1, %v3855_v12, %v3856_v61  ;;  %v3690_v12 = vsel %vm414_vm1, %v3667_v8, %v3668_v19 }
 0x4d3   :  { %5675 = vmatpush1.bf16.msra.mxu0 %v9500_v29  ;;  %v12501_v42 = vpop.permute.xlu1 %3844  ;;  %v4050_v33 = vsel %vm3682_vm7, %v3998_v28, %v4049_v52  ;;  %v3880_v28 = vsel %vm3869_vm8, %v12367_v17, %v3879_v40  ;;  %v4536_v29 = vrot.slane %v12456_v21, 4 }
 0x4d4   :  { %v12499_v20 = vpop.permute.xlu0 %4169  ;;  %v3865_v54 = vrot.slane %v12501_v42, 4  ;;  %5676 = vmatprep.subr.bf16.mxu0 %v9485_v38  ;;  %v9518_v24 = vcombine.low %v4034_v30, %v4050_v33  ;;  %v9519_v2 = vcombine.high %v4034_v30, %v4050_v33 }
 0x4d6   :  { %5715 = vmatprep.subr.bf16.mxu1 %v9519_v2  ;;  %v3895_v6 = vsel %vm414_vm1, %v3864_v46, %v3865_v54 }
 0x4d7   :  { %5677 = vmatpush1.bf16.msra.mxu0 %v9484_v9  ;;  %5716 = vmatpush1.bf16.msra.mxu1 %v9518_v24  ;;  %v3656_v53 = vpop.permute.xlu1 %3655  ;;  %v3896_v45 = vsel %vm3869_vm8, %v3843_v59, %v3895_v6  ;;  %v3691_v59 = vsel %vm3682_vm7, %v12219_v62, %v3690_v12  ;;  %v4537_v24 = vrot.slane %v12469_v44, 4  ;;  %v4352_v6 = vrot.slane %v12481_v1, 4 }
 0x4d8   :  { %v12514_v0 = vpop.permute.xlu0 %4325  ;;  %v3677_v57 = vrot.slane %v3656_v53, 4  ;;  %v9502_v34 = vcombine.low %v3880_v28, %v3896_v45  ;;  %v9503_v31 = vcombine.high %v3880_v28, %v3896_v45 }
 0x4da   :  { %5717 = vmatprep.subr.bf16.mxu1 %v9503_v31  ;;  %v3706_v46 = vsel %vm414_vm1, %v3676_v4, %v3677_v57  ;;  %v3692_v4 = vsel %vm414_vm1, %v3668_v19, %v3669_v56  ;;  %v4557_v19 = vsel %vm414_vm1, %v4535_v36, %v4536_v29 }
 0x4db   :  { %5718 = vmatpush1.bf16.msra.mxu1 %v9502_v34  ;;  %v12527_v17 = vpop.permute.xlu1 %3657  ;;  %v3707_v8 = vsel %vm3682_vm7, %v12340_v43, %v3706_v46  ;;  %v4558_v36 = vsel %vm3869_vm8, %v12263_v35, %v4557_v19  ;;  %v12567_v34 = vld [vmem:[#allocation3 + $0x44] ss:$88 sps:$4 sm:$0xff]  }
 0x4dc   :  { %v3678_v7 = vrot.slane %v12527_v17, 4  ;;  %5719 = vmatprep.subr.bf16.mxu1 %v12379_v26  ;;  %v9468_v38 = vcombine.low %v3691_v59, %v3707_v8  ;;  %v9469_v52 = vcombine.high %v3691_v59, %v3707_v8  ;;  %v12538_v30 = vpop.permute.xlu0 %4171  ;;  %v3693_v26 = vsel %vm3682_vm7, %v12422_v15, %v3692_v4 }
 0x4dd   :  { %v4375_v59 = vsel %vm414_vm1, %v4351_v3, %v4352_v6 }
 0x4de   :  { %5678 = vmatprep.subr.bf16.mxu0 %v9469_v52  ;;  %v3708_v62 = vsel %vm414_vm1, %v3677_v57, %v3678_v7 }
 0x4df   :  { %5679 = vmatpush1.bf16.msra.mxu0 %v9468_v38  ;;  %5720 = vmatpush1.bf16.msra.mxu1 %v12394_v58  ;;  %v4524_v43 = vpop.permute.xlu1 %4523  ;;  %v3709_v33 = vsel %vm3682_vm7, %v3656_v53, %v3708_v62  ;;  %v12582_v62 = vld [vmem:[#allocation3 + $0x40] ss:$88 sps:$4 sm:$0xff]  }
 0x4e0   :  { %v4545_v2 = vrot.slane %v4524_v43, 4  ;;  %v9470_v40 = vcombine.low %v3693_v26, %v3709_v33  ;;  %v9471_v9 = vcombine.high %v3693_v26, %v3709_v33  ;;  %v12555_v28 = vpop.permute.xlu0 %3983  ;;  %v4376_v33 = vsel %vm3682_vm7, %v12324_v51, %v4375_v59 }
 0x4e1   :  { %v9586_v51 = vcombine.low %v12144_v60, %v12266_v41 }
 0x4e2   :  { %5721 = vmatprep.subr.bf16.mxu1 %v9471_v9  ;;  %v4573_v58 = vsel %vm414_vm1, %v4544_v5, %v4545_v2  ;;  %v4559_v5 = vsel %vm414_vm1, %v4536_v29, %v4537_v24  ;;  %v4198_v29 = vrot.slane %v12499_v20, 4 }
 0x4e3   :  { %5722 = vmatpush1.bf16.msra.mxu1 %v9470_v40  ;;  %v12557_v15 = vpop.permute.xlu1 %4525  ;;  %v4574_v53 = vsel %vm3869_vm8, %v12369_v10, %v4573_v58  ;;  %v4560_v10 = vsel %vm3869_vm8, %v12456_v21, %v4559_v5  ;;  %v9587_v21 = vcombine.high %v12144_v60, %v12266_v41  ;;  %v4199_v60 = vrot.slane %v12538_v30, 4 }
 0x4e4   :  { %v4546_v45 = vrot.slane %v12557_v15, 4  ;;  %v9596_v12 = vcombine.low %v4558_v36, %v4574_v53  ;;  %v9597_v57 = vcombine.high %v4558_v36, %v4574_v53  ;;  %v12580_v4 = vpop.permute.xlu0 %3828  ;;  %v4012_v5 = vrot.slane %v12555_v28, 4 }
 0x4e5   :  { %v4223_v30 = vsel %vm414_vm1, %v4198_v29, %v4199_v60 }
 0x4e6   :  { %5694 = vmatprep.subr.bf16.mxu0 %v9597_v57  ;;  %v4575_v31 = vsel %vm414_vm1, %v4545_v2, %v4546_v45 }
 0x4e7   :  { %5695 = vmatpush2.bf16.msra.mxu0 %v9596_v12  ;;  %v4342_v35 = vpop.permute.xlu1 %4341  ;;  %v4576_v46 = vsel %vm3869_vm8, %v4524_v43, %v4575_v31  ;;  %v4353_v43 = vrot.slane %v12514_v0, 4  ;;  %v10037_v0 = vld [vmem:[%s14418_s1 + $0x14] ss:$8 sps:$4 sm:$0xff]  }
 0x4e8   :  { %v4361_v8 = vrot.slane %v4342_v35, 4  ;;  %5750 = vmatprep.subr.bf16.mxu0 %v12567_v34  ;;  %v9598_v38 = vcombine.low %v4560_v10, %v4576_v46  ;;  %v9599_v52 = vcombine.high %v4560_v10, %v4576_v46  ;;  %v3986_v36 = vpop.permute.xlu0 %3985 }
 0x4e9   :  { %v4377_v58 = vsel %vm414_vm1, %v4352_v6, %v4353_v43  ;;  %v9938_v6 = vld [vmem:[#allocation3 + $0x40] ss:$88 sps:$4 sm:$0xff]  }
 0x4ea   :  { %5697 = vmatmul.mubr.bf16.vlgmr.msra.gmra.mxu0 %v12179_v48  ;;  %5737 = vmatprep.subr.bf16.mxu1 %v9599_v52  ;;  %v4391_v3 = vsel %vm414_vm1, %v4360_v49, %v4361_v8  ;;  %v4221_v49 = vsel %vm414_vm1, %v4197_v13, %v4198_v29  ;;  %v9940_v52 = vld [vmem:[#allocation3 + $0x3c] ss:$88 sps:$4 sm:$0xff]   ;;  %v3857_v29 = vrot.slane %v12580_v4, 4 }
 0x4eb   :  { %5738 = vmatpush2.bf16.msra.mxu1 %v9598_v38  ;;  %5751 = vmatpush1.bf16.msra.mxu0 %v12582_v62  ;;  %v4188_v26 = vpop.permute.xlu1 %4187  ;;  %v4392_v19 = vsel %vm3682_vm7, %v12425_v63, %v4391_v3  ;;  %v4222_v53 = vsel %vm3869_vm8, %v12338_v55, %v4221_v49  ;;  %v4378_v55 = vsel %vm3682_vm7, %v12481_v1, %v4377_v58 }
 0x4ec   :  { %v4207_v2 = vrot.slane %v4188_v26, 4  ;;  %5793 = vmatprep.subr.bf16.mxu1 %v9587_v21  ;;  %v9568_v40 = vcombine.low %v4376_v33, %v4392_v19  ;;  %v9569_v9 = vcombine.high %v4376_v33, %v4392_v19  ;;  %9610 = vmatprep.mubr.msk.bf16.mxu0 %vm2469_vm0, %v10037_v0  ;;  %v3831_v38 = vpop.permute.xlu0 %3830  ;;  %v4224_v3 = vsel %vm3869_vm8, %v12499_v20, %v4223_v30 }
 0x4ed   :  { %v3881_v58 = vsel %vm414_vm1, %v3856_v61, %v3857_v29 }
 0x4ee   :  { %5740 = vmatmul.mubr.bf16.vlgmr.msra.gmra.mxu1 %v12179_v48  ;;  %5752 = vmatprep.subr.bf16.mxu0 %v9569_v9  ;;  %v4237_v63 = vsel %vm414_vm1, %v4206_v47, %v4207_v2  ;;  %v4013_v9 = vrot.slane %v3986_v36, 4 }
 0x4ef   :  { %5753 = vmatpush1.bf16.msra.mxu0 %v9568_v40  ;;  %5794 = vmatpush1.bf16.msra.mxu1 %v9586_v51  ;;  %v4344_v13 = vpop.permute.xlu1 %4343  ;;  %v4238_v12 = vsel %vm3869_vm8, %v12444_v50, %v4237_v63 }
 0x4f0   :  { %v4362_v48 = vrot.slane %v4344_v13, 4  ;;  %v9552_v41 = vcombine.low %v4222_v53, %v4238_v12  ;;  %v9553_v57 = vcombine.high %v4222_v53, %v4238_v12  ;;  %9611 = vmatprep.mubr.msk.bf16.mxu1 %vm2469_vm0, %v10037_v0  ;;  %v12633_v49 = vpop.permute.xlu0 %3641  ;;  %v4037_v13 = vsel %vm414_vm1, %v4012_v5, %v4013_v9 }
 0x4f1   :  { %v3858_v12 = vrot.slane %v3831_v38, 4 }
 0x4f2   :  { %v4393_v47 = vsel %vm414_vm1, %v4361_v8, %v4362_v48  ;;  %5754 = vmatprep.subr.bf16.mxu0 %v9553_v57 }
 0x4f3   :  { %5755 = vmatpush1.bf16.msra.mxu0 %v9552_v41  ;;  %v4190_v31 = vpop.permute.xlu1 %4189  ;;  %v4394_v50 = vsel %vm3682_vm7, %v4342_v35, %v4393_v47  ;;  %v4035_v35 = vsel %vm414_vm1, %v4011_v37, %v4012_v5  ;;  %v3883_v5 = vsel %vm414_vm1, %v3857_v29, %v3858_v12 }
 0x4f4   :  { %v4208_v10 = vrot.slane %v4190_v31, 4  ;;  %5756 = vmatprep.subr.bf16.mxu0 %v9938_v6  ;;  %v9570_v46 = vcombine.low %v4378_v55, %v4394_v50  ;;  %v9571_v59 = vcombine.high %v4378_v55, %v4394_v50  ;;  %v3644_v41 = vpop.permute.xlu0 %3643  ;;  %v4038_v6 = vsel %vm3682_vm7, %v12555_v28, %v4037_v13 }
 0x4f5   :  { %v3884_v28 = vsel %vm3869_vm8, %v12580_v4, %v3883_v5 }
 0x4f6   :  { %v4239_v8 = vsel %vm414_vm1, %v4207_v2, %v4208_v10  ;;  %5795 = vmatprep.subr.bf16.mxu1 %v9571_v59  ;;  %v9941_v2 = vld [vmem:[#allocation3 + $0x48] ss:$88 sps:$4 sm:$0xff]  }
 0x4f7   :  { %5757 = vmatpush1.bf16.msra.mxu0 %v9940_v52  ;;  %5796 = vmatpush1.bf16.msra.mxu1 %v9570_v46  ;;  %v4002_v21 = vpop.permute.xlu1 %4001  ;;  %v4240_v1 = vsel %vm3869_vm8, %v4188_v26, %v4239_v8  ;;  %v4036_v26 = vsel %vm3682_vm7, %v12384_v22, %v4035_v35 }
 0x4f8   :  { %v4021_v43 = vrot.slane %v4002_v21, 4  ;;  %v9554_v33 = vcombine.low %v4224_v3, %v4240_v1  ;;  %v9555_v19 = vcombine.high %v4224_v3, %v4240_v1  ;;  %v4510_v30 = vpop.permute.xlu0 %4509 }
 0x4fa   :  { %5797 = vmatprep.subr.bf16.mxu1 %v9555_v19  ;;  %v4051_v40 = vsel %vm414_vm1, %v4020_v25, %v4021_v43  ;;  %v9943_v25 = vld [vmem:[#allocation3 + $0x44] ss:$88 sps:$4 sm:$0xff]  }
 0x4fb   :  { %5798 = vmatpush1.bf16.msra.mxu1 %v9554_v33  ;;  %v3847_v20 = vpop.permute.xlu1 %3846  ;;  %v4052_v37 = vsel %vm3682_vm7, %v12483_v39, %v4051_v40  ;;  %v3882_v39 = vsel %vm3869_vm8, %v12403_v27, %v3881_v58 }
 0x4fc   :  { %v3866_v0 = vrot.slane %v3847_v20, 4  ;;  %5799 = vmatprep.subr.bf16.mxu1 %v9941_v2  ;;  %v9520_v51 = vcombine.low %v4036_v26, %v4052_v37  ;;  %v9521_v63 = vcombine.high %v4036_v26, %v4052_v37  ;;  %v4512_v33 = vpop.permute.xlu0 %4511 }
 0x4fe   :  { %5758 = vmatprep.subr.bf16.mxu0 %v9521_v63  ;;  %v3897_v36 = vsel %vm414_vm1, %v3865_v54, %v3866_v0  ;;  %v3670_v54 = vrot.slane %v12633_v49, 4 }
 0x4ff   :  { %5759 = vmatpush1.bf16.msra.mxu0 %v9520_v51  ;;  %5800 = vmatpush1.bf16.msra.mxu1 %v9943_v25  ;;  %v4004_v22 = vpop.permute.xlu1 %4003  ;;  %v3898_v53 = vsel %vm3869_vm8, %v12501_v42, %v3897_v36 }
 0x500   :  { %v4022_v60 = vrot.slane %v4004_v22, 4  ;;  %v9504_v61 = vcombine.low %v3882_v39, %v3898_v53  ;;  %v9505_v48 = vcombine.high %v3882_v39, %v3898_v53  ;;  %v3694_v59 = vsel %vm414_vm1, %v3669_v56, %v3670_v54 }
 0x501   :  { %v3695_v4 = vsel %vm3682_vm7, %v12442_v14, %v3694_v59 }
 0x502   :  { %v4053_v57 = vsel %vm414_vm1, %v4021_v43, %v4022_v60  ;;  %5760 = vmatprep.subr.bf16.mxu0 %v9505_v48 }
 0x503   :  { %5761 = vmatpush1.bf16.msra.mxu0 %v9504_v61  ;;  %v3849_v47 = vpop.permute.xlu1 %3848  ;;  %v4054_v27 = vsel %vm3682_vm7, %v4002_v21, %v4053_v57  ;;  %v4538_v21 = vrot.slane %v4510_v30, 4 }
 0x504   :  { %v3867_v42 = vrot.slane %v3849_v47, 4  ;;  %5762 = vmatprep.subr.bf16.mxu0 %v12397_v32  ;;  %v9522_v31 = vcombine.low %v4038_v6, %v4054_v27  ;;  %v9523_v55 = vcombine.high %v4038_v6, %v4054_v27  ;;  %v3671_v32 = vrot.slane %v3644_v41, 4 }
 0x505   :  { %v4561_v2 = vsel %vm414_vm1, %v4537_v24, %v4538_v21 }
 0x506   :  { %v3899_v50 = vsel %vm414_vm1, %v3866_v0, %v3867_v42  ;;  %5801 = vmatprep.subr.bf16.mxu1 %v9523_v55  ;;  %v3696_v56 = vsel %vm414_vm1, %v3670_v54, %v3671_v32 }
 0x507   :  { %5763 = vmatpush1.bf16.msra.mxu0 %v12416_v18  ;;  %5802 = vmatpush1.bf16.msra.mxu1 %v9522_v31  ;;  %v3660_v10 = vpop.permute.xlu1 %3659  ;;  %v3900_v46 = vsel %vm3869_vm8, %v3847_v20, %v3899_v50  ;;  %v3697_v14 = vsel %vm3682_vm7, %v12633_v49, %v3696_v56  ;;  %v4562_v49 = vsel %vm3869_vm8, %v12469_v44, %v4561_v2  ;;  %v10038_v44 = vld [vmem:[%s14418_s1 + $0x10] ss:$8 sps:$4 sm:$0xff]  }
 0x508   :  { %v3679_v38 = vrot.slane %v3660_v10, 4  ;;  %v9506_v52 = vcombine.low %v3884_v28, %v3900_v46  ;;  %v9507_v8 = vcombine.high %v3884_v28, %v3900_v46  ;;  %v14581_v46 = vld [vmem:[#allocation15_spill] sm:$0xff] }
 0x50a   :  { %5803 = vmatprep.subr.bf16.mxu1 %v9507_v8  ;;  %v3710_v18 = vsel %vm414_vm1, %v3678_v7, %v3679_v38  ;;  %v14582_v8 = vld [vmem:[#allocation16_spill] sm:$0xff] }
 0x50b   :  { %5804 = vmatpush1.bf16.msra.mxu1 %v9506_v52  ;;  %v3662_v3 = vpop.permute.xlu1 %3661  ;;  %v3711_v1 = vsel %vm3682_vm7, %v12527_v17, %v3710_v18 }
 0x50c   :  { %v3680_v35 = vrot.slane %v3662_v3, 4  ;;  %5805 = vmatprep.subr.bf16.mxu1 %v12567_v34  ;;  %v9472_v29 = vcombine.low %v3695_v4, %v3711_v1  ;;  %v9473_v43 = vcombine.high %v3695_v4, %v3711_v1  ;;  %v4539_v34 = vrot.slane %v4512_v33, 4 }
 0x50e   :  { %v3712_v19 = vsel %vm414_vm1, %v3679_v38, %v3680_v35  ;;  %5764 = vmatprep.subr.bf16.mxu0 %v9473_v43  ;;  %v4563_v0 = vsel %vm414_vm1, %v4538_v21, %v4539_v34 }
 0x50f   :  { %5765 = vmatpush1.bf16.msra.mxu0 %v9472_v29  ;;  %5806 = vmatpush1.bf16.msra.mxu1 %v12582_v62  ;;  %v4528_v7 = vpop.permute.xlu1 %4527  ;;  %v3713_v17 = vsel %vm3682_vm7, %v3660_v10, %v3712_v19  ;;  %v4564_v25 = vsel %vm3869_vm8, %v4510_v30, %v4563_v0 }
 0x510   :  { %v4547_v40 = vrot.slane %v4528_v7, 4  ;;  %v9474_v9 = vcombine.low %v3697_v14, %v3713_v17  ;;  %v9475_v20 = vcombine.high %v3697_v14, %v3713_v17  ;;  %v14583_v14 = vld [vmem:[#allocation17_spill] sm:$0xff] }
 0x512   :  { %5807 = vmatprep.subr.bf16.mxu1 %v9475_v20  ;;  %v4577_v26 = vsel %vm414_vm1, %v4546_v45, %v4547_v40 }
 0x513   :  { %5808 = vmatpush1.bf16.msra.mxu1 %v9474_v9  ;;  %v4530_v62 = vpop.permute.xlu1 %4529  ;;  %v4578_v37 = vsel %vm3869_vm8, %v12557_v15, %v4577_v26 }
 0x514   :  { %v4548_v24 = vrot.slane %v4530_v62, 4  ;;  %v9600_v51 = vcombine.low %v4562_v49, %v4578_v37  ;;  %v9601_v63 = vcombine.high %v4562_v49, %v4578_v37 }
 0x516   :  { %v4579_v58 = vsel %vm414_vm1, %v4547_v40, %v4548_v24  ;;  %5780 = vmatprep.subr.bf16.mxu0 %v9601_v63  ;;  %v14584_v63 = vld [vmem:[#allocation18_spill] sm:$0xff] }
 0x517   :  { %5781 = vmatpush2.bf16.msra.mxu0 %v9600_v51  ;;  %v4580_v45 = vsel %vm3869_vm8, %v4528_v7, %v4579_v58 }
 0x518   :  { %v9602_v36 = vcombine.low %v4564_v25, %v4580_v45  ;;  %v9603_v13 = vcombine.high %v4564_v25, %v4580_v45 }
 0x51a   :  { %5783 = vmatmul.mubr.bf16.vlgmr.msra.gmra.mxu0 %v10038_v44  ;;  %5823 = vmatprep.subr.bf16.mxu1 %v9603_v13 }
 0x51b   :  { %5824 = vmatpush2.bf16.msra.mxu1 %v9602_v36 }
 0x51e   :  { %5826 = vmatmul.mubr.bf16.vlgmr.msra.gmra.mxu1 %v10038_v44 }
 0x54e   :  { %v12702_v53 = vpop.f32.mrf.mxu1 }
 0x54f   :  { %v5902_v27 = vmul.f32 %v12702_v53, %v11345_v16 }
 0x550   :  { %v12710_v48 = vpop.f32.mrf.mxu1 }
 0x551   :  { %v5968_v28 = vmul.f32 %v5902_v27, %v12702_v53  ;;  %v5903_v59 = vmul.f32 %v12710_v48, %v14581_v46 }
 0x552   :  { %v12722_v5 = vpop.f32.mrf.mxu1 }
 0x553   :  { %v5918_v30 = vmul.f32 %v12722_v5, %v11345_v16  ;;  %v5969_v29 = vmul.f32 %v5903_v59, %v12710_v48 }
 0x554   :  { %v12733_v32 = vpop.f32.mrf.mxu1 }
 0x555   :  { %v5984_v1 = vmul.f32 %v5918_v30, %v12722_v5  ;;  %v5919_v56 = vmul.f32 %v12733_v32, %v14581_v46 }
 0x557   :  { %v12696_v15 = vpop.f32.mrf.mxu0  ;;  %v5985_v9 = vmul.f32 %v5919_v56, %v12733_v32 }
 0x558   :  { %v5900_v12 = vmul.f32 %v12696_v15, %v11326_v23 }
 0x559   :  { %v12698_v22 = vpop.f32.mrf.mxu0 }
 0x55a   :  { %v5901_v60 = vmul.f32 %v12698_v22, %v11331_v11  ;;  %v5966_v47 = vmul.f32 %v5900_v12, %v12696_v15 }
 0x55b   :  { %v12700_v39 = vpop.f32.mrf.mxu0 }
 0x55c   :  { %v5916_v57 = vmul.f32 %v12700_v39, %v11326_v23  ;;  %v5967_v6 = vmul.f32 %v5901_v60, %v12698_v22  ;;  %v5932_v42 = vadd.f32 %v5901_v60, %v5900_v12 }
 0x55d   :  { %v12708_v61 = vpop.f32.mrf.mxu0 }
 0x55e   :  { %v5917_v54 = vmul.f32 %v12708_v61, %v11331_v11  ;;  %v5982_v55 = vmul.f32 %v5916_v57, %v12700_v39  ;;  %v5998_v10 = vadd.f32 %v5967_v6, %v5966_v47  ;;  %v5933_v52 = vadd.f32 %v5932_v42, %v5902_v27  ;;  %v14585_v6 = vld [vmem:[#allocation19_spill] sm:$0xff] }
 0x560   :  { %v5983_v50 = vmul.f32 %v5917_v54, %v12708_v61  ;;  %v5949_v38 = vadd.f32 %v5917_v54, %v5916_v57  ;;  %v5999_v35 = vadd.f32 %v5998_v10, %v5968_v28  ;;  %v5934_v19 = vadd.f32 %v5933_v52, %v5903_v59 }
 0x562   :  { %v6015_v4 = vadd.f32 %v5983_v50, %v5982_v55  ;;  %v5950_v43 = vadd.f32 %v5949_v38, %v5918_v30  ;;  %v6000_v20 = vadd.f32 %v5999_v35, %v5969_v29  ;;  %v14586_v30 = vld [vmem:[#allocation20_spill] sm:$0xff] }
 0x564   :  { %v6016_v40 = vadd.f32 %v6015_v4, %v5984_v1  ;;  %v5951_v49 = vadd.f32 %v5950_v43, %v5919_v56 }
 0x566   :  { %v6017_v45 = vadd.f32 %v6016_v40, %v5985_v9 }
 0x57b   :  { %v12712_v41 = vpop.f32.mrf.mxu0 }
 0x57c   :  { %v5904_v18 = vmul.f32 %v12712_v41, %v14582_v8 }
 0x57d   :  { %v12724_v31 = vpop.f32.mrf.mxu0 }
 0x57e   :  { %v12739_v3 = vpop.f32.mrf.mxu1  ;;  %v5970_v7 = vmul.f32 %v5904_v18, %v12712_v41  ;;  %v5905_v17 = vmul.f32 %v12724_v31, %v14583_v14  ;;  %v5935_v26 = vadd.f32 %v5934_v19, %v5904_v18 }
 0x57f   :  { %v12737_v21 = vpop.f32.mrf.mxu0  ;;  %v5906_v58 = vmul.f32 %v12739_v3, %v14584_v63 }
 0x580   :  { %v5920_v33 = vmul.f32 %v12737_v21, %v14582_v8  ;;  %v12752_v34 = vpop.f32.mrf.mxu1  ;;  %v6001_v24 = vadd.f32 %v6000_v20, %v5970_v7  ;;  %v5971_v51 = vmul.f32 %v5905_v17, %v12724_v31  ;;  %v5936_v13 = vadd.f32 %v5935_v26, %v5905_v17 }
 0x581   :  { %v12750_v2 = vpop.f32.mrf.mxu0  ;;  %v5972_v47 = vmul.f32 %v5906_v58, %v12739_v3  ;;  %v5907_v27 = vmul.f32 %v12752_v34, %v14585_v6 }
 0x582   :  { %v5986_v37 = vmul.f32 %v5920_v33, %v12737_v21  ;;  %v5921_v0 = vmul.f32 %v12750_v2, %v14583_v14  ;;  %v12763_v25 = vpop.f32.mrf.mxu1  ;;  %v5952_v36 = vadd.f32 %v5951_v49, %v5920_v33  ;;  %v6002_v54 = vadd.f32 %v6001_v24, %v5971_v51  ;;  %v14587_v33 = vld [vmem:[#allocation21_spill] sm:$0xff] }
 0x583   :  { %v5922_v57 = vmul.f32 %v12763_v25, %v14584_v63  ;;  %v5937_v50 = vadd.f32 %v5936_v13, %v5906_v58  ;;  %v5973_v1 = vmul.f32 %v5907_v27, %v12752_v34  ;;  %v14588_v58 = vld [vmem:[#allocation22_spill] sm:$0xff] }
 0x584   :  { %v6018_v12 = vadd.f32 %v6017_v45, %v5986_v37  ;;  %v5987_v60 = vmul.f32 %v5921_v0, %v12750_v2  ;;  %v12773_v42 = vpop.f32.mrf.mxu1  ;;  %v5953_v55 = vadd.f32 %v5952_v36, %v5921_v0  ;;  %v6003_v4 = vadd.f32 %v6002_v54, %v5972_v47 }
 0x585   :  { %v5988_v52 = vmul.f32 %v5922_v57, %v12763_v25  ;;  %v5923_v18 = vmul.f32 %v12773_v42, %v14585_v6  ;;  %v5938_v29 = vadd.f32 %v5937_v50, %v5907_v27  ;;  %v14589_v50 = vld [vmem:[#allocation23_spill] sm:$0xff] }
 0x586   :  { %v6019_v38 = vadd.f32 %v6018_v12, %v5987_v60  ;;  %v5954_v56 = vadd.f32 %v5953_v55, %v5922_v57  ;;  %v6004_v20 = vadd.f32 %v6003_v4, %v5973_v1 }
 0x587   :  { %v5989_v9 = vmul.f32 %v5923_v18, %v12773_v42 }
 0x588   :  { %v6020_v40 = vadd.f32 %v6019_v38, %v5988_v52  ;;  %v5955_v49 = vadd.f32 %v5954_v56, %v5923_v18 }
 0x58a   :  { %v6021_v13 = vadd.f32 %v6020_v40, %v5989_v9  ;;  %v14590_v9 = vld [vmem:[#allocation26_spill] sm:$0xff] }
 0x5aa   :  { %v12755_v62 = vpop.f32.mrf.mxu0 }
 0x5ab   :  { %v5908_v10 = vmul.f32 %v12755_v62, %v14586_v30 }
 0x5ac   :  { %v12765_v44 = vpop.f32.mrf.mxu0 }
 0x5ad   :  { %v5974_v43 = vmul.f32 %v5908_v10, %v12755_v62  ;;  %v5909_v19 = vmul.f32 %v12765_v44, %v14587_v33  ;;  %v5939_v26 = vadd.f32 %v5938_v29, %v5908_v10 }
 0x5ae   :  { %v12777_v28 = vpop.f32.mrf.mxu0  ;;  %v12779_v59 = vpop.f32.mrf.mxu1 }
 0x5af   :  { %v5924_v35 = vmul.f32 %v12777_v28, %v14586_v30  ;;  %v6005_v24 = vadd.f32 %v6004_v20, %v5974_v43  ;;  %v5975_v51 = vmul.f32 %v5909_v19, %v12765_v44  ;;  %v5910_v45 = vmul.f32 %v12779_v59, %v14588_v58 }
 0x5b0   :  { %v12790_v7 = vpop.f32.mrf.mxu0  ;;  %v12792_v17 = vpop.f32.mrf.mxu1  ;;  %v5940_v60 = vadd.f32 %v5939_v26, %v5909_v19 }
 0x5b1   :  { %v5990_v37 = vmul.f32 %v5924_v35, %v12777_v28  ;;  %v5925_v0 = vmul.f32 %v12790_v7, %v14587_v33  ;;  %v5956_v12 = vadd.f32 %v5955_v49, %v5924_v35  ;;  %v6006_v27 = vadd.f32 %v6005_v24, %v5975_v51 }
 0x5b2   :  { %v12801_v36 = vpop.f32.mrf.mxu1  ;;  %v5976_v55 = vmul.f32 %v5910_v45, %v12779_v59  ;;  %v5911_v10 = vmul.f32 %v12792_v17, %v14589_v50  ;;  %v5941_v18 = vadd.f32 %v5940_v60, %v5910_v45  ;;  %v14591_v45 = vld [vmem:[#allocation27_spill] sm:$0xff] }
 0x5b3   :  { %v6022_v57 = vadd.f32 %v6021_v13, %v5990_v37  ;;  %v5991_v54 = vmul.f32 %v5925_v0, %v12790_v7  ;;  %v5926_v47 = vmul.f32 %v12801_v36, %v14588_v58  ;;  %v5957_v52 = vadd.f32 %v5956_v12, %v5925_v0 }
 0x5b4   :  { %v12809_v38 = vpop.f32.mrf.mxu1  ;;  %v6007_v35 = vadd.f32 %v6006_v27, %v5976_v55  ;;  %v5977_v29 = vmul.f32 %v5911_v10, %v12792_v17  ;;  %v5942_v40 = vadd.f32 %v5941_v18, %v5911_v10 }
 0x5b5   :  { %v6023_v4 = vadd.f32 %v6022_v57, %v5991_v54  ;;  %v5992_v1 = vmul.f32 %v5926_v47, %v12801_v36  ;;  %v5927_v56 = vmul.f32 %v12809_v38, %v14589_v50  ;;  %v5958_v43 = vadd.f32 %v5957_v52, %v5926_v47  ;;  %v14592_v52 = vld [vmem:[#allocation28_spill] sm:$0xff] }
 0x5b6   :  { %v6008_v0 = vadd.f32 %v6007_v35, %v5977_v29 }
 0x5b7   :  { %v6024_v26 = vadd.f32 %v6023_v4, %v5992_v1  ;;  %v5993_v49 = vmul.f32 %v5927_v56, %v12809_v38  ;;  %v5959_v12 = vadd.f32 %v5958_v43, %v5927_v56 }
 0x5b9   :  { %v6025_v10 = vadd.f32 %v6024_v26, %v5993_v49 }
 0x5da   :  { %v12815_v19 = vpop.f32.mrf.mxu0 }
 0x5db   :  { %v5912_v20 = vmul.f32 %v12815_v19, %v14590_v9 }
 0x5dc   :  { %v12820_v37 = vpop.f32.mrf.mxu0 }
 0x5dd   :  { %v5943_v24 = vadd.f32 %v5942_v40, %v5912_v20  ;;  %v5978_v51 = vmul.f32 %v5912_v20, %v12815_v19  ;;  %v5913_v13 = vmul.f32 %v12820_v37, %v14591_v45 }
 0x5de   :  { %v12825_v60 = vpop.f32.mrf.mxu0  ;;  %v12827_v57 = vpop.f32.mrf.mxu1 }
 0x5df   :  { %v6009_v54 = vadd.f32 %v6008_v0, %v5978_v51  ;;  %v5944_v47 = vadd.f32 %v5943_v24, %v5913_v13  ;;  %v5979_v27 = vmul.f32 %v5913_v13, %v12820_v37  ;;  %v5928_v55 = vmul.f32 %v12825_v60, %v14590_v9  ;;  %v14593_v0 = vld [vmem:[#allocation30_spill] sm:$0xff] }
 0x5e0   :  { %v5914_v18 = vmul.f32 %v12827_v57, %v14592_v52  ;;  %v12834_v4 = vpop.f32.mrf.mxu0  ;;  %v12836_v1 = vpop.f32.mrf.mxu1 }
 0x5e1   :  { %v6010_v56 = vadd.f32 %v6009_v54, %v5979_v27  ;;  %v5960_v35 = vadd.f32 %v5959_v12, %v5928_v55  ;;  %v5994_v29 = vmul.f32 %v5928_v55, %v12825_v60  ;;  %v5929_v43 = vmul.f32 %v12834_v4, %v14591_v45 }
 0x5e2   :  { %v5945_v40 = vadd.f32 %v5944_v47, %v5914_v18  ;;  %v5980_v20 = vmul.f32 %v5914_v18, %v12827_v57  ;;  %v5915_v26 = vmul.f32 %v12836_v1, %v14593_v0  ;;  %v12844_v49 = vpop.f32.mrf.mxu1 }
 0x5e3   :  { %v6026_v24 = vadd.f32 %v6025_v10, %v5994_v29  ;;  %v5961_v51 = vadd.f32 %v5960_v35, %v5929_v43  ;;  %v5995_v13 = vmul.f32 %v5929_v43, %v12834_v4  ;;  %v5930_v12 = vmul.f32 %v12844_v49, %v14592_v52 }
 0x5e4   :  { %v6011_v54 = vadd.f32 %v6010_v56, %v5980_v20  ;;  %v5981_v27 = vmul.f32 %v5915_v26, %v12836_v1  ;;  %v12850_v55 = vpop.f32.mrf.mxu1  ;;  %v5946_v47 = vadd.f32 %v5945_v40, %v5915_v26 }
 0x5e5   :  { %v6027_v45 = vadd.f32 %v6026_v24, %v5995_v13  ;;  %v5962_v18 = vadd.f32 %v5961_v51, %v5930_v12  ;;  %v5996_v9 = vmul.f32 %v5930_v12, %v12844_v49  ;;  %v5931_v50 = vmul.f32 %v12850_v55, %v14593_v0 }
 0x5e6   :  { %5947 = vadd.xlane.f32.xlu0 %v5946_v47  ;;  %v6012_v43 = vadd.f32 %v6011_v54, %v5981_v27 }
 0x5e7   :  { %v5963_v10 = vadd.f32 %v5962_v18, %v5931_v50  ;;  %v6028_v35 = vadd.f32 %v6027_v45, %v5996_v9  ;;  %v5997_v29 = vmul.f32 %v5931_v50, %v12850_v55  ;;  %v9612_v45 = vld [vmem:[%s14419_s2 + $0x10] sm:$0xff] }
 0x5e9   :  { %5964 = vadd.xlane.f32.xlu1 %v5963_v10  ;;  %v6029_v56 = vadd.f32 %v6028_v35, %v5997_v29  ;;  %v9614_v10 = vld [vmem:[%s14420_s3 + $0x10] sm:$0xff]  ;;  %v9613_v35 = vld [vmem:[%s14419_s2 + $0x18] sm:$0xff] }
 0x5ea   :  { %6013 = vadd.xlane.f32.xlu0 %v6012_v43 }
 0x5ee   :  { %6030 = vadd.xlane.f32.xlu0 %v6029_v56  ;;  %v9615_v56 = vld [vmem:[%s14420_s3 + $0x18] sm:$0xff] }
 0x66f   :  { %v5948_v20 = vpop.xlane.xlu0 %5947 }
 0x670   :  { %v6032_v52 = vmul.f32 0.001953125, %v5948_v20 }
 0x672   :  { %v5965_v40 = vpop.xlane.xlu1 %5964  ;;  %v6036_v24 = vmul.f32 %v6032_v52, %v6032_v52 }
 0x673   :  { %v6014_v26 = vpop.xlane.xlu0 %6013  ;;  %v6033_v13 = vmul.f32 0.001953125, %v5965_v40 }
 0x674   :  { %v6034_v51 = vmul.f32 0.001953125, %v6014_v26  ;;  %v6531_v26 = vld [vmem:[#allocation3] sm:$0xff] }
 0x675   :  { %v6037_v47 = vmul.f32 %v6033_v13, %v6033_v13 }
 0x676   :  { %v6038_v12 = vsub.f32 %v6034_v51, %v6036_v24  ;;  %v6540_v24 = vld [vmem:[#allocation3 + $0x58] sm:$0xff] }
 0x677   :  { %v6031_v58 = vpop.xlane.xlu0 %6030 }
 0x678   :  { %v6043_v0 = vadd.f32 1e-05, %v6038_v12  ;;  %v6035_v18 = vmul.f32 0.001953125, %v6031_v58 }
 0x67a   :  { %9989 = vrsqrt.f32 %v6043_v0  ;;  %v6039_v9 = vsub.f32 %v6035_v18, %v6037_v47 }
 0x67c   :  { %v6044_v50 = vadd.f32 1e-05, %v6039_v9 }
 0x67e   :  { %9991 = vrsqrt.f32 %v6044_v50 }
 0x687   :  { %v9990_v54 = vpop.eup %9989 }
 0x688   :  { %v6047_v27 = vmul.f32 %v9990_v54, %v9612_v45 }
 0x68a   :  { %6058 = vperm.xlu1 %9880, %v6047_v27   ;;  %v6052_v58 = vmul.f32 %v6047_v27, %v6032_v52 }
 0x68b   :  { %v9992_v0 = vpop.eup %9991 }
 0x68c   :  { %v6054_v29 = vsub.f32 %v9614_v10, %v6052_v58  ;;  %v6048_v43 = vmul.f32 %v9992_v0, %v9613_v35 }
 0x68e   :  { %6100 = vperm.xlu1 %9880, %v6054_v29   ;;  %6063 = vperm.xlu0 %9881, %v6048_v43   ;;  %v6053_v20 = vmul.f32 %v6048_v43, %v6033_v13 }
 0x690   :  { %v6055_v40 = vsub.f32 %v9615_v56, %v6053_v20 }
 0x692   :  { %6105 = vperm.xlu1 %9880, %v6055_v40   ;;  %6567 = vrot.lane.b32.xlu0 %v6531_v26, %s10168_s15 }
 0x696   :  { %6585 = vrot.lane.b32.xlu0 %v6540_v24, %s10168_s15 }
 0x705   :  { %v6059_v52 = vpop.permute.xlu1 %6058 }
 0x706   :  { %v6066_v51 = vmul.f32 %v6059_v52, %v12696_v15  ;;  %v6067_v12 = vmul.f32 %v6059_v52, %v12698_v22  ;;  %v6068_v47 = vmul.f32 %v6059_v52, %v12702_v53  ;;  %v6069_v18 = vmul.f32 %v6059_v52, %v12710_v48 }
 0x707   :  { %v6070_v13 = vmul.f32 %v6059_v52, %v12712_v41  ;;  %v6071_v9 = vmul.f32 %v6059_v52, %v12724_v31  ;;  %v6072_v50 = vmul.f32 %v6059_v52, %v12739_v3  ;;  %v6073_v45 = vmul.f32 %v6059_v52, %v12752_v34 }
 0x708   :  { %v6074_v54 = vmul.f32 %v6059_v52, %v12755_v62  ;;  %v6075_v27 = vmul.f32 %v6059_v52, %v12765_v44  ;;  %v6076_v15 = vmul.f32 %v6059_v52, %v12779_v59  ;;  %v6077_v22 = vmul.f32 %v6059_v52, %v12792_v17 }
 0x709   :  { %v6078_v53 = vmul.f32 %v6059_v52, %v12815_v19  ;;  %v6079_v48 = vmul.f32 %v6059_v52, %v12820_v37  ;;  %v6080_v41 = vmul.f32 %v6059_v52, %v12827_v57  ;;  %v6081_v31 = vmul.f32 %v6059_v52, %v12836_v1  ;;  %v6064_v10 = vpop.permute.xlu0 %6063 }
 0x70a   :  { %v12887_v3 = vmul.f32 %v6064_v10, %v12700_v39  ;;  %v12890_v34 = vmul.f32 %v6064_v10, %v12708_v61  ;;  %v12893_v62 = vmul.f32 %v6064_v10, %v12722_v5  ;;  %v12896_v44 = vmul.f32 %v6064_v10, %v12733_v32  ;;  %v6101_v61 = vpop.permute.xlu1 %6100 }
 0x70b   :  { %v12899_v59 = vmul.f32 %v6064_v10, %v12737_v21  ;;  %v12902_v17 = vmul.f32 %v6064_v10, %v12750_v2  ;;  %v12905_v19 = vmul.f32 %v6064_v10, %v12763_v25  ;;  %v12908_v39 = vmul.f32 %v6064_v10, %v12773_v42 }
 0x70c   :  { %v12911_v37 = vmul.f32 %v6064_v10, %v12777_v28  ;;  %v12914_v5 = vmul.f32 %v6064_v10, %v12790_v7  ;;  %v12917_v32 = vmul.f32 %v6064_v10, %v12801_v36  ;;  %v12920_v21 = vmul.f32 %v6064_v10, %v12809_v38 }
 0x70d   :  { %v12923_v2 = vmul.f32 %v6064_v10, %v12825_v60  ;;  %v12926_v25 = vmul.f32 %v6064_v10, %v12834_v4  ;;  %v12929_v42 = vmul.f32 %v6064_v10, %v12844_v49  ;;  %v12932_v28 = vmul.f32 %v6064_v10, %v12850_v55  ;;  %v10041_v10 = vld [vmem:[#allocation9 + $0x10] sm:$0xff] }
 0x70e   :  { %v6108_v7 = vadd.f32 %v6101_v61, %v6066_v51  ;;  %v6109_v57 = vadd.f32 %v6101_v61, %v6067_v12  ;;  %v6110_v1 = vadd.f32 %v6101_v61, %v6068_v47  ;;  %v6111_v36 = vadd.f32 %v6101_v61, %v6069_v18 }
 0x70f   :  { %v6112_v35 = vadd.f32 %v6101_v61, %v6070_v13  ;;  %v6113_v58 = vadd.f32 %v6101_v61, %v6071_v9  ;;  %v6114_v38 = vadd.f32 %v6101_v61, %v6072_v50  ;;  %v6115_v0 = vadd.f32 %v6101_v61, %v6073_v45 }
 0x710   :  { %v6116_v29 = vadd.f32 %v6101_v61, %v6074_v54  ;;  %v6117_v60 = vadd.f32 %v6101_v61, %v6075_v27  ;;  %v6118_v43 = vadd.f32 %v6101_v61, %v6076_v15  ;;  %v6119_v56 = vadd.f32 %v6101_v61, %v6077_v22 }
 0x711   :  { %v6120_v4 = vadd.f32 %v6101_v61, %v6078_v53  ;;  %v6121_v20 = vadd.f32 %v6101_v61, %v6079_v48  ;;  %v6122_v40 = vadd.f32 %v6101_v61, %v6080_v41  ;;  %v6123_v49 = vadd.f32 %v6101_v61, %v6081_v31  ;;  %v10039_v53 = vld [vmem:[#allocation9] sm:$0xff]  ;;  %v10040_v41 = vld [vmem:[#allocation9 + $0x8] sm:$0xff] }
 0x712   :  { %v6140_v26 = vmax.f32 %v6108_v7, 0.0  ;;  %v6141_v24 = vmax.f32 %v6109_v57, 0.0  ;;  %v6142_v55 = vmax.f32 %v6110_v1, 0.0  ;;  %v6143_v52 = vmax.f32 %v6111_v36, 0.0  ;;  %v10042_v7 = vld [vmem:[#allocation9 + $0x18] sm:$0xff]  ;;  %v10043_v1 = vld [vmem:[#allocation9 + $0x20] sm:$0xff] }
 0x713   :  { %v6144_v51 = vmax.f32 %v6112_v35, 0.0  ;;  %v6145_v12 = vmax.f32 %v6113_v58, 0.0  ;;  %v6146_v47 = vmax.f32 %v6114_v38, 0.0  ;;  %v6147_v18 = vmax.f32 %v6115_v0, 0.0  ;;  %v10044_v35 = vld [vmem:[#allocation9 + $0x28] sm:$0xff]  ;;  %v10045_v38 = vld [vmem:[#allocation9 + $0x30] sm:$0xff] }
 0x714   :  { %v6148_v13 = vmax.f32 %v6116_v29, 0.0  ;;  %v6149_v9 = vmax.f32 %v6117_v60, 0.0  ;;  %v6150_v50 = vmax.f32 %v6118_v43, 0.0  ;;  %v6151_v45 = vmax.f32 %v6119_v56, 0.0  ;;  %v10046_v29 = vld [vmem:[#allocation9 + $0x38] sm:$0xff]  ;;  %v10047_v43 = vld [vmem:[#allocation9 + $0x40] sm:$0xff] }
 0x715   :  { %v6152_v54 = vmax.f32 %v6120_v4, 0.0  ;;  %v6153_v27 = vmax.f32 %v6121_v20, 0.0  ;;  %v6154_v15 = vmax.f32 %v6122_v40, 0.0  ;;  %v6155_v22 = vmax.f32 %v6123_v49, 0.0  ;;  %v10048_v4 = vld [vmem:[#allocation9 + $0x48] sm:$0xff]  ;;  %v10049_v40 = vld [vmem:[#allocation9 + $0x50] sm:$0xff] }
 0x716   :  { %v6204_v48 = vadd.f32 %v10039_v53, %v6140_v26  ;;  %v6205_v31 = vadd.f32 %v10040_v41, %v6141_v24  ;;  %v6206_v61 = vadd.f32 %v10041_v10, %v6142_v55  ;;  %v6207_v57 = vadd.f32 %v10042_v7, %v6143_v52  ;;  %v10050_v26 = vld [vmem:[#allocation9 + $0x58] sm:$0xff]  ;;  %v10051_v53 = vld [vmem:[#allocation9 + $0x60] sm:$0xff]  ;;  %v10052_v41 = vld [vmem:[#allocation9 + $0x68] sm:$0xff] }
 0x717   :  { %v6208_v36 = vadd.f32 %v10043_v1, %v6144_v51  ;;  %v6209_v58 = vadd.f32 %v10044_v35, %v6145_v12  ;;  %v6210_v0 = vadd.f32 %v10045_v38, %v6146_v47  ;;  %v6211_v60 = vadd.f32 %v10046_v29, %v6147_v18  ;;  %v10053_v10 = vld [vmem:[#allocation9 + $0x70] sm:$0xff]  ;;  %v10054_v7 = vld [vmem:[#allocation9 + $0x78] sm:$0xff]  ;;  %v14598_v38 = vld [vmem:[#allocation28_spill] sm:$0xff] }
 0x718   :  { %v6212_v56 = vadd.f32 %v10047_v43, %v6148_v13  ;;  %v6213_v20 = vadd.f32 %v10048_v4, %v6149_v9  ;;  %v6214_v49 = vadd.f32 %v10049_v40, %v6150_v50  ;;  %v6215_v24 = vadd.f32 %v10050_v26, %v6151_v45  ;;  %v14594_v1 = vld [vmem:[#allocation22_spill] sm:$0xff]  ;;  %v14595_v35 = vld [vmem:[#allocation23_spill] sm:$0xff]  ;;  %v6106_v43 = vpop.permute.xlu1 %6105 }
 0x719   :  { %v6216_v55 = vadd.f32 %v10051_v53, %v6152_v54  ;;  %v6217_v52 = vadd.f32 %v10052_v41, %v6153_v27  ;;  %v6218_v51 = vadd.f32 %v10053_v10, %v6154_v15  ;;  %v6219_v12 = vadd.f32 %v10054_v7, %v6155_v22  ;;  %v14599_v29 = vld [vmem:[#allocation30_spill] sm:$0xff]  ;;  %v10056_v41 = vld [vmem:[#allocation6 + $0x98] sm:$0xff] }
 0x71a   :  { %v6236_v47 = vmul.f32 %v6204_v48, %v11326_v23  ;;  %v6237_v18 = vmul.f32 %v6205_v31, %v11331_v11  ;;  %v6238_v13 = vmul.f32 %v6206_v61, %v11345_v16  ;;  %v6239_v9 = vmul.f32 %v6207_v57, %v14581_v46  ;;  %v14596_v61 = vld [vmem:[#allocation26_spill] sm:$0xff] }
 0x71b   :  { %v6240_v50 = vmul.f32 %v6208_v36, %v14582_v8  ;;  %v6241_v45 = vmul.f32 %v6209_v58, %v14583_v14  ;;  %v6242_v54 = vmul.f32 %v6210_v0, %v14584_v63  ;;  %v6243_v27 = vmul.f32 %v6211_v60, %v14585_v6  ;;  %v14597_v36 = vld [vmem:[#allocation27_spill] sm:$0xff] }
 0x71c   :  { %v6244_v15 = vmul.f32 %v6212_v56, %v14586_v30  ;;  %v6245_v22 = vmul.f32 %v6213_v20, %v14587_v33  ;;  %v6246_v48 = vmul.f32 %v6214_v49, %v14594_v1  ;;  %v6247_v31 = vmul.f32 %v6215_v24, %v14595_v35  ;;  %6269 = vst [vmem:[#allocation9 + $0x100] sm:$0xff] %v6236_v47  ;;  %v10055_v56 = vld [vmem:[#allocation6 + $0x10] sm:$0xff] }
 0x71d   :  { %6270 = vst [vmem:[#allocation9 + $0x108] sm:$0xff] %v6237_v18  ;;  %6271 = vst [vmem:[#allocation9 + $0x110] sm:$0xff] %v6238_v13  ;;  %v6248_v57 = vmul.f32 %v6216_v55, %v14596_v61  ;;  %v6249_v58 = vmul.f32 %v6217_v52, %v14597_v36  ;;  %v6250_v0 = vmul.f32 %v6218_v51, %v14598_v38 }
 0x71e   :  { %6272 = vst [vmem:[#allocation9 + $0x118] sm:$0xff] %v6239_v9  ;;  %v6251_v60 = vmul.f32 %v6219_v12, %v14599_v29  ;;  %6273 = vst [vmem:[#allocation9 + $0x120] sm:$0xff] %v6240_v50  ;;  %v12950_v4 = vpack.c.bf16 %v6236_v47, %v10055_v56  ;;  %v12952_v20 = vpack.c.bf16 %v6238_v13, %v6237_v18 }
 0x71f   :  { %6274 = vst [vmem:[#allocation9 + $0x128] sm:$0xff] %v6241_v45  ;;  %6275 = vst [vmem:[#allocation9 + $0x130] sm:$0xff] %v6242_v54  ;;  %v12954_v40 = vpack.c.bf16 %v6240_v50, %v6239_v9  ;;  %v12956_v49 = vpack.c.bf16 %v6242_v54, %v6241_v45  ;;  %v12958_v26 = vpack.c.bf16 %v6244_v15, %v6243_v27 }
 0x720   :  { %6276 = vst [vmem:[#allocation9 + $0x138] sm:$0xff] %v6243_v27  ;;  %6277 = vst [vmem:[#allocation9 + $0x140] sm:$0xff] %v6244_v15  ;;  %v12960_v24 = vpack.c.bf16 %v6246_v48, %v6245_v22  ;;  %v12962_v53 = vpack.c.bf16 %v6248_v57, %v6247_v31  ;;  %v12964_v55 = vpack.c.bf16 %v6250_v0, %v6249_v58  ;;  %7249 = vrot.lane.b32.xlu0 %v12952_v20, %s10168_s15 }
 0x721   :  { %6278 = vst [vmem:[#allocation9 + $0x148] sm:$0xff] %v6245_v22  ;;  %6279 = vst [vmem:[#allocation9 + $0x150] sm:$0xff] %v6246_v48  ;;  %v12966_v52 = vpack.c.bf16 %v10056_v41, %v6251_v60  ;;  %v6124_v10 = vadd.f32 %v6106_v43, %v12887_v3  ;;  %v6125_v51 = vadd.f32 %v6106_v43, %v12890_v34  ;;  %7251 = vrot.lane.b32.xlu1 %v12954_v40, %s10168_s15  ;;  %v10059_v41 = vld [vmem:[#allocation9 + $0x90] sm:$0xff] }
 0x722   :  { %6280 = vst [vmem:[#allocation9 + $0x158] sm:$0xff] %v6247_v31  ;;  %6281 = vst [vmem:[#allocation9 + $0x160] sm:$0xff] %v6248_v57  ;;  %v6126_v7 = vadd.f32 %v6106_v43, %v12893_v62  ;;  %v6127_v12 = vadd.f32 %v6106_v43, %v12896_v44  ;;  %v6128_v47 = vadd.f32 %v6106_v43, %v12899_v59 }
 0x723   :  { %6282 = vst [vmem:[#allocation9 + $0x168] sm:$0xff] %v6249_v58  ;;  %6283 = vst [vmem:[#allocation9 + $0x170] sm:$0xff] %v6250_v0  ;;  %v6129_v3 = vadd.f32 %v6106_v43, %v12902_v17  ;;  %v6130_v34 = vadd.f32 %v6106_v43, %v12905_v19  ;;  %v6131_v62 = vadd.f32 %v6106_v43, %v12908_v39  ;;  %v6156_v45 = vmax.f32 %v6124_v10, 0.0  ;;  %v10057_v0 = vld [vmem:[#allocation9 + $0x80] sm:$0xff] }
 0x724   :  { %6284 = vst [vmem:[#allocation9 + $0x178] sm:$0xff] %v6251_v60  ;;  %6510 = vst [vmem:[#allocation3 + $0x8] sm:$0xff] %v12950_v4  ;;  %v6132_v18 = vadd.f32 %v6106_v43, %v12911_v37  ;;  %v6133_v13 = vadd.f32 %v6106_v43, %v12914_v5  ;;  %v6134_v9 = vadd.f32 %v6106_v43, %v12917_v32  ;;  %v6157_v54 = vmax.f32 %v6125_v51, 0.0  ;;  %v10060_v51 = vld [vmem:[#allocation9 + $0x98] sm:$0xff] }
 0x725   :  { %6511 = vst [vmem:[#allocation3 + $0x10] sm:$0xff] %v12952_v20  ;;  %6512 = vst [vmem:[#allocation3 + $0x18] sm:$0xff] %v12954_v40  ;;  %v6135_v44 = vadd.f32 %v6106_v43, %v12920_v21  ;;  %v6136_v59 = vadd.f32 %v6106_v43, %v12923_v2  ;;  %v6137_v17 = vadd.f32 %v6106_v43, %v12926_v25  ;;  %v6158_v27 = vmax.f32 %v6126_v7, 0.0 }
 0x726   :  { %6513 = vst [vmem:[#allocation3 + $0x20] sm:$0xff] %v12956_v49  ;;  %6514 = vst [vmem:[#allocation3 + $0x28] sm:$0xff] %v12958_v26  ;;  %v6138_v19 = vadd.f32 %v6106_v43, %v12929_v42  ;;  %v6139_v50 = vadd.f32 %v6106_v43, %v12932_v28  ;;  %v6159_v39 = vmax.f32 %v6127_v12, 0.0  ;;  %v6160_v15 = vmax.f32 %v6128_v47, 0.0  ;;  %v10058_v43 = vld [vmem:[#allocation9 + $0x88] sm:$0xff]  ;;  %v10061_v12 = vld [vmem:[#allocation9 + $0xa0] sm:$0xff] }
 0x727   :  { %6515 = vst [vmem:[#allocation3 + $0x30] sm:$0xff] %v12960_v24  ;;  %6516 = vst [vmem:[#allocation3 + $0x38] sm:$0xff] %v12962_v53  ;;  %v6161_v37 = vmax.f32 %v6129_v3, 0.0  ;;  %v6162_v22 = vmax.f32 %v6130_v34, 0.0  ;;  %v6163_v5 = vmax.f32 %v6131_v62, 0.0  ;;  %v6164_v48 = vmax.f32 %v6132_v18, 0.0 }
 0x728   :  { %6517 = vst [vmem:[#allocation3 + $0x40] sm:$0xff] %v12964_v55  ;;  %6518 = vst [vmem:[#allocation3 + $0x48] sm:$0xff] %v12966_v52  ;;  %v6165_v32 = vmax.f32 %v6133_v13, 0.0  ;;  %v6166_v31 = vmax.f32 %v6134_v9, 0.0  ;;  %v6167_v21 = vmax.f32 %v6135_v44, 0.0  ;;  %v6168_v57 = vmax.f32 %v6136_v59, 0.0 }
 0x729   :  { %v6169_v2 = vmax.f32 %v6137_v17, 0.0  ;;  %v6170_v58 = vmax.f32 %v6138_v19, 0.0  ;;  %v6171_v28 = vmax.f32 %v6139_v50, 0.0  ;;  %v6220_v60 = vadd.f32 %v10057_v0, %v6156_v45  ;;  %v10062_v3 = vld [vmem:[#allocation9 + $0xa8] sm:$0xff]  ;;  %v10063_v62 = vld [vmem:[#allocation9 + $0xb0] sm:$0xff]  ;;  %v10064_v13 = vld [vmem:[#allocation9 + $0xb8] sm:$0xff] }
 0x72a   :  { %v6221_v56 = vadd.f32 %v10058_v43, %v6157_v54  ;;  %v6222_v10 = vadd.f32 %v10059_v41, %v6158_v27  ;;  %v6223_v7 = vadd.f32 %v10060_v51, %v6159_v39  ;;  %v6224_v47 = vadd.f32 %v10061_v12, %v6160_v15  ;;  %v10065_v44 = vld [vmem:[#allocation9 + $0xc0] sm:$0xff]  ;;  %v10066_v17 = vld [vmem:[#allocation9 + $0xc8] sm:$0xff]  ;;  %v10067_v50 = vld [vmem:[#allocation9 + $0xd0] sm:$0xff] }
 0x72b   :  { %v6225_v34 = vadd.f32 %v10062_v3, %v6161_v37  ;;  %v6226_v18 = vadd.f32 %v10063_v62, %v6162_v22  ;;  %v6227_v9 = vadd.f32 %v10064_v13, %v6163_v5  ;;  %v6228_v59 = vadd.f32 %v10065_v44, %v6164_v48  ;;  %v10068_v54 = vld [vmem:[#allocation9 + $0xd8] sm:$0xff]  ;;  %v10069_v0 = vld [vmem:[#allocation9 + $0xe0] sm:$0xff]  ;;  %v10070_v41 = vld [vmem:[#allocation9 + $0xe8] sm:$0xff] }
 0x72c   :  { %v12997_v25 = vld [vmem:[#allocation3 + $0x14] sm:$0xff]  ;;  %v12999_v42 = vld [vmem:[#allocation3 + $0xc] sm:$0xff]  ;;  %v6229_v19 = vadd.f32 %v10066_v17, %v6165_v32  ;;  %v6230_v45 = vadd.f32 %v10067_v50, %v6166_v31  ;;  %v6231_v27 = vadd.f32 %v10068_v54, %v6167_v21  ;;  %v6232_v43 = vadd.f32 %v10069_v0, %v6168_v57  ;;  %v10071_v51 = vld [vmem:[#allocation9 + $0xf0] sm:$0xff] }
 0x72d   :  { %7097 = vrot.lane.b32.xlu1 %v12997_v25, %s10169_s4  ;;  %7095 = vrot.lane.b32.xlu0 %v12999_v42, %s10169_s4  ;;  %v6233_v39 = vadd.f32 %v10070_v41, %v6169_v2  ;;  %v6234_v15 = vadd.f32 %v10071_v51, %v6170_v58  ;;  %v10072_v12 = vld [vmem:[#allocation9 + $0xf8] sm:$0xff]  ;;  %v6252_v22 = vmul.f32 %v6220_v60, %v11326_v23 }
 0x72e   :  { %v6235_v37 = vadd.f32 %v10072_v12, %v6171_v28  ;;  %v6253_v5 = vmul.f32 %v6221_v56, %v11331_v11  ;;  %v6254_v48 = vmul.f32 %v6222_v10, %v11345_v16  ;;  %v6255_v32 = vmul.f32 %v6223_v7, %v14581_v46 }
 0x72f   :  { %v6256_v31 = vmul.f32 %v6224_v47, %v14582_v8  ;;  %v6257_v21 = vmul.f32 %v6225_v34, %v14583_v14  ;;  %v6258_v57 = vmul.f32 %v6226_v18, %v14584_v63  ;;  %v6259_v2 = vmul.f32 %v6227_v9, %v14585_v6  ;;  %6285 = vst [vmem:[#allocation9 + $0x180] sm:$0xff] %v6252_v22  ;;  %v10073_v34 = vld [vmem:[#allocation6 + $0xc0] sm:$0xff]  ;;  %v13031_v9 = vld [vmem:[#allocation3 + $0x1c] sm:$0xff] }
 0x730   :  { %v6260_v58 = vmul.f32 %v6228_v59, %v14586_v30  ;;  %v6261_v28 = vmul.f32 %v6229_v19, %v14587_v33  ;;  %v6262_v60 = vmul.f32 %v6230_v45, %v14594_v1  ;;  %6286 = vst [vmem:[#allocation9 + $0x188] sm:$0xff] %v6253_v5  ;;  %6287 = vst [vmem:[#allocation9 + $0x190] sm:$0xff] %v6254_v48  ;;  %v10074_v45 = vld [vmem:[#allocation6 + $0x148] sm:$0xff] }
 0x731   :  { %6911 = vrot.lane.b32.xlu1 %v12952_v20, %s10168_s15  ;;  %7253 = vrot.lane.b32.xlu0 %v12956_v49, %s10168_s15  ;;  %v6263_v56 = vmul.f32 %v6231_v27, %v14595_v35  ;;  %v6264_v10 = vmul.f32 %v6232_v43, %v14596_v61  ;;  %v6265_v7 = vmul.f32 %v6233_v39, %v14597_v36  ;;  %v13062_v27 = vld [vmem:[#allocation3 + $0x4] sm:$0xff] }
 0x732   :  { %v6266_v47 = vmul.f32 %v6234_v15, %v14598_v38  ;;  %6288 = vst [vmem:[#allocation9 + $0x198] sm:$0xff] %v6255_v32  ;;  %6289 = vst [vmem:[#allocation9 + $0x1a0] sm:$0xff] %v6256_v31  ;;  %v6267_v3 = vmul.f32 %v6235_v37, %v14599_v29  ;;  %v13025_v62 = vpack.c.bf16 %v6252_v22, %v10073_v34 }
 0x733   :  { %6290 = vst [vmem:[#allocation9 + $0x1a8] sm:$0xff] %v6257_v21  ;;  %6291 = vst [vmem:[#allocation9 + $0x1b0] sm:$0xff] %v6258_v57  ;;  %v13027_v18 = vpack.c.bf16 %v6254_v48, %v6253_v5  ;;  %v13029_v13 = vpack.c.bf16 %v6256_v31, %v6255_v32  ;;  %v13035_v44 = vpack.c.bf16 %v6258_v57, %v6257_v21  ;;  %v13142_v31 = vld [vmem:[%s14418_s1 + $0x24] ss:$8 sps:$4 sm:$0xff]   ;;  %v13178_v57 = vpop.permute.xlu0 %6567 }
 0x734   :  { %6292 = vst [vmem:[#allocation9 + $0x1b8] sm:$0xff] %v6259_v2  ;;  %6293 = vst [vmem:[#allocation9 + $0x1c0] sm:$0xff] %v6260_v58  ;;  %v13037_v59 = vpack.c.bf16 %v6260_v58, %v6259_v2  ;;  %v13039_v17 = vpack.c.bf16 %v6262_v60, %v6261_v28  ;;  %v13041_v19 = vpack.c.bf16 %v6264_v10, %v6263_v56  ;;  %9787 = vmatprep.mubr.msk.bf16.mxu1 %vm2469_vm0, %v13142_v31 }
 0x735   :  { %6294 = vst [vmem:[#allocation9 + $0x1c8] sm:$0xff] %v6261_v28  ;;  %6295 = vst [vmem:[#allocation9 + $0x1d0] sm:$0xff] %v6262_v60  ;;  %6756 = vrot.lane.b32.xlu1 %v12999_v42, %s10169_s4  ;;  %7099 = vrot.lane.b32.xlu0 %v13031_v9, %s10169_s4  ;;  %v13045_v50 = vpack.c.bf16 %v6266_v47, %v6265_v7  ;;  %v13047_v54 = vpack.c.bf16 %v10074_v45, %v6267_v3 }
 0x736   :  { %6296 = vst [vmem:[#allocation9 + $0x1d8] sm:$0xff] %v6263_v56  ;;  %6297 = vst [vmem:[#allocation9 + $0x1e0] sm:$0xff] %v6264_v10  ;;  %9786 = vmatprep.mubr.msk.bf16.mxu0 %vm2469_vm0, %v13142_v31 }
 0x737   :  { %6298 = vst [vmem:[#allocation9 + $0x1e8] sm:$0xff] %v6265_v7  ;;  %6299 = vst [vmem:[#allocation9 + $0x1f0] sm:$0xff] %v6266_v47  ;;  %v13186_v2 = vpop.permute.xlu0 %6585  ;;  %v13216_v47 = vld [vmem:[#allocation3 + $0x3c] sm:$0xff] }
 0x738   :  { %6300 = vst [vmem:[#allocation9 + $0x1f8] sm:$0xff] %v6267_v3  ;;  %6521 = vst [vmem:[#allocation3 + $0x60] sm:$0xff] %v13025_v62 }
 0x739   :  { %6522 = vst [vmem:[#allocation3 + $0x68] sm:$0xff] %v13027_v18  ;;  %6523 = vst [vmem:[#allocation3 + $0x70] sm:$0xff] %v13029_v13  ;;  %6569 = vrot.lane.b32.xlu1 %v12950_v4, %s10168_s15  ;;  %6909 = vrot.lane.b32.xlu0 %v12950_v4, %s10168_s15 }
 0x73a   :  { %6524 = vst [vmem:[#allocation3 + $0x78] sm:$0xff] %v13035_v44  ;;  %6525 = vst [vmem:[#allocation3 + $0x80] sm:$0xff] %v13037_v59 }
 0x73b   :  { %6526 = vst [vmem:[#allocation3 + $0x88] sm:$0xff] %v13039_v17  ;;  %6527 = vst [vmem:[#allocation3 + $0x90] sm:$0xff] %v13041_v19 }
 0x73c   :  { %6528 = vst [vmem:[#allocation3 + $0x98] sm:$0xff] %v13045_v50  ;;  %6529 = vst [vmem:[#allocation3 + $0xa0] sm:$0xff] %v13047_v54 }
 0x73d   :  { %7437 = vrot.lane.b32.xlu1 %v13031_v9, %s10169_s4  ;;  %6754 = vrot.lane.b32.xlu0 %v13062_v27, %s10169_s4 }
 0x73f   :  { %v13068_v41 = vld [vmem:[#allocation3 + $0x5c] sm:$0xff] }
 0x740   :  { %v7375_v0 = vld [vmem:[#allocation3 + $0x6c] sm:$0xff]  ;;  %v6728_v43 = vld [vmem:[#allocation3 + $0x64] sm:$0xff] }
 0x741   :  { %v13071_v39 = vcombine.low %v12997_v25, %v7375_v0  ;;  %v13074_v51 = vcombine.high %v12997_v25, %v7375_v0  ;;  %v7376_v15 = vld [vmem:[#allocation3 + $0x74] sm:$0xff]  ;;  %v13077_v4 = vcombine.low %v12999_v42, %v6728_v43  ;;  %v13080_v12 = vcombine.high %v12999_v42, %v6728_v43  ;;  %7269 = vrot.lane.b32.xlu1 %v13029_v13, %s10168_s15  ;;  %v13106_v42 = vld [vmem:[#allocation3 + $0x24] sm:$0xff]  ;;  %v13135_v32 = vld [vmem:[#allocation3 + $0x7c] sm:$0xff] }
 0x742   :  { %v9756_v37 = vcombine.low %v13031_v9, %v7376_v15  ;;  %v9757_v22 = vcombine.high %v13031_v9, %v7376_v15  ;;  %6913 = vrot.lane.b32.xlu0 %v12954_v40, %s10168_s15  ;;  %v13162_v21 = vld [vmem:[#allocation3 + $0x84] sm:$0xff]  ;;  %v13204_v56 = vld [vmem:[#allocation3 + $0x8c] sm:$0xff] }
 0x743   :  { %8432 = vmatprep.subr.bf16.mxu0 %v13074_v51  ;;  %v7414_v63 = vld [vmem:[#allocation3 + $0x9c] sm:$0xff] }
 0x744   :  { %8475 = vmatprep.subr.bf16.mxu1 %v9757_v22  ;;  %8433 = vmatpush1.bf16.msra.mxu0 %v13071_v39 }
 0x745   :  { %8476 = vmatpush1.bf16.msra.mxu1 %v9756_v37  ;;  %7115 = vrot.lane.b32.xlu1 %v7375_v0, %s10169_s4 }
 0x746   :  { %6758 = vrot.lane.b32.xlu0 %v12997_v25, %s10169_s4 }
 0x749   :  { %7271 = vrot.lane.b32.xlu1 %v13035_v44, %s10168_s15 }
 0x74a   :  { %6571 = vrot.lane.b32.xlu0 %v12952_v20, %s10168_s15  ;;  %v13122_v20 = vld [vmem:[#allocation3 + $0x2c] sm:$0xff] }
 0x74d   :  { %7117 = vrot.lane.b32.xlu1 %v7376_v15, %s10169_s4 }
 0x74e   :  { %7435 = vrot.lane.b32.xlu0 %v12997_v25, %s10169_s4  ;;  %v7230_v25 = vld [vmem:[#allocation3 + $0xa8] sm:$0xf] }
 0x751   :  { %6929 = vrot.lane.b32.xlu1 %v13027_v18, %s10168_s15 }
 0x752   :  { %7439 = vrot.lane.b32.xlu0 %v13106_v42, %s10169_s4 }
 0x755   :  { %6774 = vrot.lane.b32.xlu1 %v6728_v43, %s10169_s4 }
 0x756   :  { %7255 = vrot.lane.b32.xlu0 %v12958_v26, %s10168_s15 }
 0x759   :  { %6931 = vrot.lane.b32.xlu1 %v13029_v13, %s10168_s15 }
 0x75a   :  { %7101 = vrot.lane.b32.xlu0 %v13106_v42, %s10169_s4 }
 0x75d   :  { %6776 = vrot.lane.b32.xlu1 %v7375_v0, %s10169_s4 }
 0x75e   :  { %7257 = vrot.lane.b32.xlu0 %v12960_v24, %s10168_s15 }
 0x761   :  { %6587 = vrot.lane.b32.xlu1 %v13025_v62, %s10168_s15 }
 0x762   :  { %7103 = vrot.lane.b32.xlu0 %v13122_v20, %s10169_s4 }
 0x765   :  { %6589 = vrot.lane.b32.xlu1 %v13027_v18, %s10168_s15 }
 0x766   :  { %6915 = vrot.lane.b32.xlu0 %v12956_v49, %s10168_s15 }
 0x769   :  { %7283 = vrot.lane.b32.xlu1 %v7230_v25, %s10168_s15 }
 0x76a   :  { %7267 = vrot.lane.b32.xlu0 %v13027_v18, %s10168_s15 }
 0x76d   :  { %7455 = vrot.lane.b32.xlu1 %v7376_v15, %s10169_s4 }
 0x76e   :  { %7113 = vrot.lane.b32.xlu0 %v6728_v43, %s10169_s4 }
 0x771   :  { %7457 = vrot.lane.b32.xlu1 %v13135_v32, %s10169_s4 }
 0x772   :  { %6760 = vrot.lane.b32.xlu0 %v13031_v9, %s10169_s4 }
 0x775   :  { %7273 = vrot.lane.b32.xlu1 %v13037_v59, %s10168_s15 }
 0x776   :  { %6927 = vrot.lane.b32.xlu0 %v13025_v62, %s10168_s15 }
 0x779   :  { %7119 = vrot.lane.b32.xlu1 %v13135_v32, %s10169_s4 }
 0x77a   :  { %6772 = vrot.lane.b32.xlu0 %v13068_v41, %s10169_s4 }
 0x77d   :  { %7275 = vrot.lane.b32.xlu1 %v13039_v17, %s10168_s15 }
 0x77e   :  { %6917 = vrot.lane.b32.xlu0 %v12958_v26, %s10168_s15 }
 0x781   :  { %7121 = vrot.lane.b32.xlu1 %v13162_v21, %s10169_s4 }
 0x782   :  { %6762 = vrot.lane.b32.xlu0 %v13106_v42, %s10169_s4 }
 0x785   :  { %6933 = vrot.lane.b32.xlu1 %v13035_v44, %s10168_s15 }
 0x786   :  { %7453 = vrot.lane.b32.xlu0 %v7375_v0, %s10169_s4 }
 0x789   :  { %6778 = vrot.lane.b32.xlu1 %v7376_v15, %s10169_s4 }
 0x78a   :  { %6573 = vrot.lane.b32.xlu0 %v12954_v40, %s10168_s15  ;;  %v7403_v40 = vld [vmem:[#allocation3 + $0x34] sm:$0xff] }
 0x78d   :  { %6935 = vrot.lane.b32.xlu1 %v13037_v59, %s10168_s15 }
 0x78e   :  { %6575 = vrot.lane.b32.xlu0 %v12956_v49, %s10168_s15 }
 0x791   :  { %6780 = vrot.lane.b32.xlu1 %v13135_v32, %s10169_s4 }
 0x792   :  { %7441 = vrot.lane.b32.xlu0 %v13122_v20, %s10169_s4  ;;  %v13193_v49 = vpop.permute.xlu0 %7249 }
 0x793   :  { %v13195_v58 = vpop.permute.xlu1 %7251 }
 0x794   :  { %v14484_v22 = vrot.slane %v13195_v58, 4 }
 0x795   :  { %6591 = vrot.lane.b32.xlu1 %v13029_v13, %s10168_s15 }
 0x796   :  { %7443 = vrot.lane.b32.xlu0 %v7403_v40, %s10169_s4 }
 0x799   :  { %6593 = vrot.lane.b32.xlu1 %v13035_v44, %s10168_s15  ;;  %v13240_v44 = vld [vmem:[#allocation3 + $0x94] sm:$0xff] }
 0x79a   :  { %7259 = vrot.lane.b32.xlu0 %v12962_v53, %s10168_s15 }
 0x79d   :  { %7459 = vrot.lane.b32.xlu1 %v13162_v21, %s10169_s4 }
 0x79e   :  { %7105 = vrot.lane.b32.xlu0 %v7403_v40, %s10169_s4 }
 0x79f   :  { %v13200_v28 = vpop.permute.xlu0 %7095  ;;  %v13202_v60 = vpop.permute.xlu1 %7097 }
 0x7a0   :  { %v14601_v61 = vrot.slane %v13202_v60, 4 }
 0x7a1   :  { %7461 = vrot.lane.b32.xlu1 %v13204_v56, %s10169_s4 }
 0x7a2   :  { %7261 = vrot.lane.b32.xlu0 %v12964_v55, %s10168_s15 }
 0x7a3   :  { %v13210_v10 = vpop.permute.xlu1 %6911  ;;  %v13212_v7 = vpop.permute.xlu0 %7253 }
 0x7a4   :  { %v14483_v15 = vrot.slane %v13212_v7, 4 }
 0x7a5   :  { %7277 = vrot.lane.b32.xlu1 %v13041_v19, %s10168_s15 }
 0x7a6   :  { %7107 = vrot.lane.b32.xlu0 %v13216_v47, %s10169_s4  ;;  %v7305_v29 = vsel %vm414_vm1, %v14484_v22, %v14483_v15 }
 0x7a7   :  { %v13220_v3 = vpop.permute.xlu1 %6756  ;;  %v13222_v34 = vpop.permute.xlu0 %7099  ;;  %v7306_v15 = vsel %vm6622_vm9, %v13195_v58, %v7305_v29 }
 0x7a8   :  { %v14600_v38 = vrot.slane %v13222_v34, 4 }
 0x7a9   :  { %7123 = vrot.lane.b32.xlu1 %v13204_v56, %s10169_s4 }
 0x7aa   :  { %6919 = vrot.lane.b32.xlu0 %v12960_v24, %s10168_s15  ;;  %v7151_v35 = vsel %vm414_vm1, %v14601_v61, %v14600_v38 }
 0x7ab   :  { %v13228_v62 = vpop.permute.xlu1 %6569  ;;  %v13230_v18 = vpop.permute.xlu0 %6909  ;;  %v7152_v38 = vsel %vm6809_vm10, %v13202_v60, %v7151_v35 }
 0x7ad   :  { %7279 = vrot.lane.b32.xlu1 %v13045_v50, %s10168_s15 }
 0x7ae   :  { %6764 = vrot.lane.b32.xlu0 %v13122_v20, %s10169_s4 }
 0x7af   :  { %v13236_v13 = vpop.permute.xlu1 %7437  ;;  %v13238_v9 = vpop.permute.xlu0 %6754 }
 0x7b1   :  { %7125 = vrot.lane.b32.xlu1 %v13240_v44, %s10169_s4 }
 0x7b2   :  { %6921 = vrot.lane.b32.xlu0 %v12962_v53, %s10168_s15 }
 0x7b3   :  { %v13246_v45 = vpop.permute.xlu1 %7269 }
 0x7b4   :  { %v13248_v0 = vpop.permute.xlu0 %6913 }
 0x7b5   :  { %6937 = vrot.lane.b32.xlu1 %v13039_v17, %s10168_s15 }
 0x7b6   :  { %6766 = vrot.lane.b32.xlu0 %v7403_v40, %s10169_s4  ;;  %v14489_v40 = vrot.slane %v13246_v45, 4 }
 0x7b7   :  { %v13253_v43 = vpop.permute.xlu1 %7115 }
 0x7b8   :  { %v13256_v37 = vpop.permute.xlu0 %6758  ;;  %v14495_v1 = vrot.slane %v13253_v43, 4 }
 0x7b9   :  { %6782 = vrot.lane.b32.xlu1 %v13162_v21, %s10169_s4 }
 0x7ba   :  { %6577 = vrot.lane.b32.xlu0 %v12958_v26, %s10168_s15 }
 0x7bb   :  { %v13264_v5 = vpop.permute.xlu1 %7271 }
 0x7bc   :  { %v14488_v48 = vrot.slane %v13264_v5, 4  ;;  %v13274_v36 = vpop.permute.xlu0 %6571 }
 0x7bd   :  { %6939 = vrot.lane.b32.xlu1 %v13041_v19, %s10168_s15 }
 0x7be   :  { %v7321_v26 = vsel %vm414_vm1, %v14489_v40, %v14488_v48  ;;  %6579 = vrot.lane.b32.xlu0 %v12960_v24, %s10168_s15 }
 0x7bf   :  { %v13285_v25 = vpop.permute.xlu1 %7117  ;;  %v7322_v22 = vsel %vm6622_vm9, %v13246_v45, %v7321_v26 }
 0x7c0   :  { %v14492_v48 = vrot.slane %v13285_v25, 4  ;;  %v9740_v40 = vcombine.low %v7306_v15, %v7322_v22  ;;  %v9741_v24 = vcombine.high %v7306_v15, %v7322_v22  ;;  %v13298_v33 = vpop.permute.xlu0 %7435 }
 0x7c1   :  { %6784 = vrot.lane.b32.xlu1 %v13204_v56, %s10169_s4 }
 0x7c2   :  { %v7167_v29 = vsel %vm414_vm1, %v14495_v1, %v14492_v48  ;;  %8477 = vmatprep.subr.bf16.mxu1 %v9741_v24  ;;  %7445 = vrot.lane.b32.xlu0 %v13216_v47, %s10169_s4  ;;  %v7405_v24 = vld [vmem:[#allocation3 + $0x44] sm:$0xff]  ;;  %v14493_v48 = vrot.slane %v13248_v0, 4 }
 0x7c3   :  { %8478 = vmatpush1.bf16.msra.mxu1 %v9740_v40  ;;  %v13309_v61 = vpop.permute.xlu1 %6929  ;;  %v7168_v15 = vsel %vm6809_vm10, %v13253_v43, %v7167_v29  ;;  %v14494_v29 = vrot.slane %v13210_v10, 4 }
 0x7c4   :  { %v9724_v22 = vcombine.low %v7152_v38, %v7168_v15  ;;  %v9725_v26 = vcombine.high %v7152_v38, %v7168_v15  ;;  %v13315_v30 = vpop.permute.xlu0 %7439  ;;  %v14498_v15 = vrot.slane %v13309_v61, 4 }
 0x7c5   :  { %6595 = vrot.lane.b32.xlu1 %v13037_v59, %s10168_s15  ;;  %v14504_v59 = vrot.slane %v13256_v37, 4 }
 0x7c6   :  { %8479 = vmatprep.subr.bf16.mxu1 %v9725_v26  ;;  %7447 = vrot.lane.b32.xlu0 %v7405_v24, %s10169_s4 }
 0x7c7   :  { %8480 = vmatpush1.bf16.msra.mxu1 %v9724_v22  ;;  %v13320_v40 = vpop.permute.xlu1 %6774  ;;  %v14503_v22 = vrot.slane %v13220_v3, 4 }
 0x7c8   :  { %8481 = vmatprep.subr.bf16.mxu1 %v13074_v51  ;;  %v13324_v35 = vpop.permute.xlu0 %7255  ;;  %v14510_v6 = vrot.slane %v13320_v40, 4 }
 0x7c9   :  { %6597 = vrot.lane.b32.xlu1 %v13039_v17, %s10168_s15  ;;  %v6965_v17 = vsel %vm414_vm1, %v14494_v29, %v14493_v48 }
 0x7ca   :  { %7263 = vrot.lane.b32.xlu0 %v12966_v52, %s10168_s15  ;;  %v6966_v29 = vsel %vm6622_vm9, %v13210_v10, %v6965_v17 }
 0x7cb   :  { %8482 = vmatpush1.bf16.msra.mxu1 %v13071_v39  ;;  %v13333_v38 = vpop.permute.xlu1 %6931  ;;  %v6811_v39 = vsel %vm414_vm1, %v14503_v22, %v14504_v59 }
 0x7cc   :  { %v14497_v51 = vrot.slane %v13333_v38, 4  ;;  %v13343_v26 = vpop.permute.xlu0 %7101 }
 0x7cd   :  { %7463 = vrot.lane.b32.xlu1 %v13240_v44, %s10169_s4 }
 0x7ce   :  { %v6981_v52 = vsel %vm414_vm1, %v14498_v15, %v14497_v51  ;;  %7109 = vrot.lane.b32.xlu0 %v7405_v24, %s10169_s4  ;;  %v7221_v15 = vld [vmem:[#allocation3 + $0x50] sm:$0xf] }
 0x7cf   :  { %v13358_v48 = vpop.permute.xlu1 %6776  ;;  %v6982_v1 = vsel %vm6622_vm9, %v13309_v61, %v6981_v52  ;;  %v6812_v52 = vsel %vm6809_vm10, %v13220_v3, %v6811_v39 }
 0x7d0   :  { %v14508_v51 = vrot.slane %v13358_v48, 4  ;;  %v9692_v14 = vcombine.low %v6966_v29, %v6982_v1  ;;  %v9693_v8 = vcombine.high %v6966_v29, %v6982_v1  ;;  %v13366_v46 = vpop.permute.xlu0 %7257  ;;  %v14507_v29 = vrot.slane %v13274_v36, 4 }
 0x7d1   :  { %7465 = vrot.lane.b32.xlu1 %v7414_v63, %s10169_s4 }
 0x7d2   :  { %v6827_v24 = vsel %vm414_vm1, %v14510_v6, %v14508_v51  ;;  %8483 = vmatprep.subr.bf16.mxu1 %v9693_v8  ;;  %7265 = vrot.lane.b32.xlu0 %v7221_v15, %s10168_s15  ;;  %v14509_v8 = vrot.slane %v13228_v62, 4  ;;  %v7131_v6 = vrot.slane %v13200_v28, 4 }
 0x7d3   :  { %8484 = vmatpush1.bf16.msra.mxu1 %v9692_v14  ;;  %v13375_v17 = vpop.permute.xlu1 %6587  ;;  %v6828_v1 = vsel %vm6809_vm10, %v13320_v40, %v6827_v24  ;;  %v7067_v14 = vld [vmem:[#allocation3 + $0x4c] sm:$0xf] }
 0x7d4   :  { %v9676_v22 = vcombine.low %v6812_v52, %v6828_v1  ;;  %v9677_v59 = vcombine.high %v6812_v52, %v6828_v1  ;;  %v13382_v16 = vpop.permute.xlu0 %7103  ;;  %v6624_v39 = vsel %vm414_vm1, %v14509_v8, %v14507_v29  ;;  %v14514_v24 = vrot.slane %v13375_v17, 4  ;;  %v7076_v29 = vld [vmem:[#allocation3 + $0xa4] sm:$0xf] }
 0x7d5   :  { %7281 = vrot.lane.b32.xlu1 %v13047_v54, %s10168_s15 }
 0x7d6   :  { %8485 = vmatprep.subr.bf16.mxu1 %v9677_v59  ;;  %7111 = vrot.lane.b32.xlu0 %v7067_v14, %s10169_s4  ;;  %v7285_v59 = vrot.slane %v13193_v49, 4  ;;  %v6625_v14 = vsel %vm6622_vm9, %v13228_v62, %v6624_v39 }
 0x7d7   :  { %8486 = vmatpush1.bf16.msra.mxu1 %v9676_v22  ;;  %v13388_v15 = vpop.permute.xlu1 %6589 }
 0x7d8   :  { %v14513_v52 = vrot.slane %v13388_v15, 4  ;;  %8487 = vmatprep.subr.bf16.mxu1 %v13080_v12  ;;  %v13398_v54 = vpop.permute.xlu0 %6915 }
 0x7d9   :  { %7127 = vrot.lane.b32.xlu1 %v7414_v63, %s10169_s4 }
 0x7da   :  { %v6640_v22 = vsel %vm414_vm1, %v14514_v24, %v14513_v52  ;;  %6923 = vrot.lane.b32.xlu0 %v12964_v55, %s10168_s15  ;;  %v14603_v55 = vrot.slane %v13195_v58, 4 }
 0x7db   :  { %8488 = vmatpush1.bf16.msra.mxu1 %v13077_v4  ;;  %v13410_v1 = vpop.permute.xlu1 %7283  ;;  %v6641_v63 = vsel %vm6622_vm9, %v13375_v17, %v6640_v22 }
 0x7dc   :  { %14602 = vst [vmem:[#allocation25_spill] sm:$0xff] %v13410_v1  ;;  %v9644_v51 = vcombine.low %v6625_v14, %v6641_v63  ;;  %v9645_v8 = vcombine.high %v6625_v14, %v6641_v63  ;;  %v7268_v11 = vpop.permute.xlu0 %7267  ;;  %v7303_v24 = vsel %vm414_vm1, %v7285_v59, %v14603_v55  ;;  %v14604_v14 = vrot.slane %v13246_v45, 4  ;;  %v6881_v1 = vld [vmem:[#allocation3 + $0x48] sm:$0xf] }
 0x7dd   :  { %7129 = vrot.lane.b32.xlu1 %v7076_v29, %s10169_s4  ;;  %v7294_v52 = vrot.slane %v7268_v11, 4  ;;  %v7304_v29 = vsel %vm6622_vm9, %v13193_v49, %v7303_v24  ;;  %v7288_v49 = vrot.slane %v13324_v35, 4 }
 0x7de   :  { %8489 = vmatprep.subr.bf16.mxu1 %v9645_v8  ;;  %6768 = vrot.lane.b32.xlu0 %v13216_v47, %s10169_s4  ;;  %v14605_v8 = vrot.slane %v13202_v60, 4  ;;  %v14606_v60 = vrot.slane %v13315_v30, 4 }
 0x7df   :  { %8490 = vmatpush1.bf16.msra.mxu1 %v9644_v51  ;;  %v13423_v39 = vpop.permute.xlu1 %7455  ;;  %v7319_v63 = vsel %vm414_vm1, %v7294_v52, %v14604_v14  ;;  %v14519_v51 = vrot.slane %v13236_v13, 4  ;;  %v6945_v52 = vrot.slane %v13230_v18, 4 }
 0x7e0   :  { %v7320_v58 = vsel %vm6622_vm9, %v7268_v11, %v7319_v63  ;;  %v7114_v23 = vpop.permute.xlu0 %7113  ;;  %v7149_v59 = vsel %vm414_vm1, %v7131_v6, %v14605_v8  ;;  %v14518_v14 = vrot.slane %v13423_v39, 4 }
 0x7e1   :  { %6941 = vrot.lane.b32.xlu1 %v13045_v50, %s10168_s15  ;;  %v9738_v55 = vcombine.low %v7304_v29, %v7320_v58  ;;  %v9739_v22 = vcombine.high %v7304_v29, %v7320_v58  ;;  %v7140_v45 = vrot.slane %v7114_v23, 4  ;;  %v7491_v6 = vsel %vm414_vm1, %v14519_v51, %v14606_v60 }
 0x7e2   :  { %6925 = vrot.lane.b32.xlu0 %v6881_v1, %s10168_s15  ;;  %v14607_v50 = vrot.slane %v13253_v43, 4  ;;  %v14521_v29 = vrot.slane %v13343_v26, 4  ;;  %v7150_v1 = vsel %vm6809_vm10, %v13200_v28, %v7149_v59  ;;  %v14608_v28 = vrot.slane %v13210_v10, 4 }
 0x7e3   :  { %v13441_v11 = vpop.permute.xlu1 %7457  ;;  %8434 = vmatprep.subr.bf16.mxu0 %v9739_v22  ;;  %v14609_v59 = vrot.slane %v13212_v7, 4  ;;  %v14610_v10 = vrot.slane %v13256_v37, 4  ;;  %v6790_v51 = vrot.slane %v13238_v9, 4 }
 0x7e4   :  { %v7165_v24 = vsel %vm414_vm1, %v7140_v45, %v14607_v50  ;;  %v14517_v63 = vrot.slane %v13441_v11, 4  ;;  %v13457_v8 = vpop.permute.xlu0 %6760  ;;  %8435 = vmatpush1.bf16.msra.mxu0 %v9738_v55  ;;  %v6726_v50 = vld [vmem:[#allocation3 + $0x44] sm:$0xf] }
 0x7e5   :  { %v7166_v58 = vsel %vm6809_vm10, %v7114_v23, %v7165_v24  ;;  %6786 = vrot.lane.b32.xlu1 %v13240_v44, %s10169_s4  ;;  %v14520_v60 = vrot.slane %v13457_v8, 4  ;;  %v6963_v23 = vsel %vm414_vm1, %v6945_v52, %v14608_v28  ;;  %v7307_v55 = vsel %vm414_vm1, %v14609_v59, %v7288_v49  ;;  %v6890_v59 = vld [vmem:[#allocation3 + $0xa0] sm:$0xf] }
 0x7e6   :  { %v9722_v43 = vcombine.low %v7150_v1, %v7166_v58  ;;  %v9723_v45 = vcombine.high %v7150_v1, %v7166_v58  ;;  %v7507_v22 = vsel %vm414_vm1, %v14518_v14, %v14517_v63  ;;  %6770 = vrot.lane.b32.xlu0 %v6726_v50, %s10169_s4  ;;  %v7492_v1 = vsel %vm6809_vm10, %v13236_v13, %v7491_v6 }
 0x7e7   :  { %v13476_v24 = vpop.permute.xlu1 %7273  ;;  %v7508_v58 = vsel %vm6809_vm10, %v13423_v39, %v7507_v22  ;;  %v6813_v52 = vsel %vm414_vm1, %v14610_v10, %v14520_v60  ;;  %v6603_v14 = vrot.slane %v13178_v57, 4  ;;  %v9760_v22 = vcombine.low %v13122_v20, %v13162_v21 }
 0x7e8   :  { %8436 = vmatprep.subr.bf16.mxu0 %v9723_v45  ;;  %v7297_v28 = vrot.slane %v13476_v24, 4  ;;  %v9772_v63 = vcombine.low %v7492_v1, %v7508_v58  ;;  %v9773_v50 = vcombine.high %v7492_v1, %v7508_v58  ;;  %v6928_v6 = vpop.permute.xlu0 %6927  ;;  %v13495_v10 = vsel %vm6809_vm10, %v13256_v37, %v6813_v52  ;;  %v13513_v52 = vld [vmem:[%s14418_s1 + $0x20] ss:$8 sps:$4 sm:$0xff]  }
 0x7e9   :  { %8437 = vmatpush1.bf16.msra.mxu0 %v9722_v43  ;;  %6943 = vrot.lane.b32.xlu1 %v6890_v59, %s10168_s15  ;;  %v14611_v45 = vrot.slane %v13222_v34, 4  ;;  %v6954_v58 = vrot.slane %v6928_v6, 4  ;;  %v14612_v43 = vrot.slane %v13264_v5, 4  ;;  %v9761_v37 = vcombine.high %v13122_v20, %v13162_v21 }
 0x7ea   :  { %8438 = vmatprep.subr.bf16.mxu0 %v13080_v12  ;;  %8505 = vmatprep.subr.bf16.mxu1 %v9773_v50  ;;  %v7289_v60 = vrot.slane %v13366_v46, 4  ;;  %v13524_v12 = vsel %vm6622_vm9, %v13212_v7, %v7307_v55  ;;  %v14613_v21 = vrot.slane %v13309_v61, 4  ;;  %v6735_v50 = vld [vmem:[#allocation3 + $0x9c] sm:$0xf]  ;;  %v6612_v7 = vrot.slane %v13186_v2, 4 }
 0x7eb   :  { %v7153_v1 = vsel %vm414_vm1, %v14611_v45, %v14521_v29  ;;  %v7323_v59 = vsel %vm414_vm1, %v14612_v43, %v7297_v28  ;;  %v6964_v45 = vsel %vm6622_vm9, %v13230_v18, %v6963_v23  ;;  %6581 = vrot.lane.b32.xlu0 %v12962_v53, %s10168_s15  ;;  %8506 = vmatpush2.bf16.msra.mxu1 %v9772_v63  ;;  %v13520_v43 = vpop.permute.xlu1 %7119  ;;  %v14614_v55 = vrot.slane %v13220_v3, 4  ;;  %v6539_v29 = vld [vmem:[#allocation3 + $0x40] sm:$0xf] }
 0x7ec   :  { %v13528_v20 = vsel %vm6622_vm9, %v13264_v5, %v7323_v59  ;;  %v6979_v18 = vsel %vm414_vm1, %v6954_v58, %v14613_v21  ;;  %v7143_v23 = vrot.slane %v13520_v43, 4  ;;  %8561 = vmatprep.subr.bf16.mxu1 %v9761_v37  ;;  %v6773_v59 = vpop.permute.xlu0 %6772  ;;  %v13547_v58 = vsel %vm6809_vm10, %v13222_v34, %v7153_v1 }
 0x7ed   :  { %v6808_v5 = vsel %vm414_vm1, %v6790_v51, %v14614_v55  ;;  %v6980_v61 = vsel %vm6622_vm9, %v6928_v6, %v6979_v18  ;;  %8439 = vmatpush1.bf16.msra.mxu0 %v13077_v4  ;;  %6788 = vrot.lane.b32.xlu1 %v6735_v50, %s10169_s4  ;;  %v6799_v53 = vrot.slane %v6773_v59, 4  ;;  %v14615_v63 = vrot.slane %v13285_v25, 4  ;;  %v13591_v55 = vld [vmem:[#allocation3 + $0x4c] sm:$0xff] }
 0x7ee   :  { %v9690_v37 = vcombine.low %v6964_v45, %v6980_v61  ;;  %v9691_v21 = vcombine.high %v6964_v45, %v6980_v61  ;;  %8508 = vmatmul.mubr.bf16.vlgmr.msra.gmra.mxu1 %v13513_v52  ;;  %v7309_v4 = vsel %vm414_vm1, %v7288_v49, %v7289_v60  ;;  %v7135_v51 = vrot.slane %v13382_v16, 4 }
 0x7ef   :  { %v7169_v3 = vsel %vm414_vm1, %v14615_v63, %v7143_v23  ;;  %v14616_v34 = vrot.slane %v13375_v17, 4  ;;  %6583 = vrot.lane.b32.xlu0 %v6539_v29, %s10168_s15  ;;  %8562 = vmatpush1.bf16.msra.mxu1 %v9760_v22  ;;  %v13563_v1 = vpop.permute.xlu1 %7275  ;;  %v14617_v18 = vrot.slane %v13320_v40, 4 }
 0x7f0   :  { %v13567_v45 = vsel %vm6809_vm10, %v13285_v25, %v7169_v3  ;;  %8440 = vmatprep.subr.bf16.mxu0 %v9691_v21  ;;  %v7298_v49 = vrot.slane %v13563_v1, 4  ;;  %9789 = vmatprep.mubr.msk.bf16.mxu1 %vm2469_vm0, %v13142_v31  ;;  %v6810_v25 = vsel %vm6809_vm10, %v13238_v9, %v6808_v5  ;;  %v13582_v40 = vpop.permute.xlu0 %6917  ;;  %v14618_v9 = vrot.slane %v13228_v62, 4  ;;  %v7407_v3 = vld [vmem:[#allocation3 + $0x54] sm:$0xf] }
 0x7f1   :  { %v6638_v6 = vsel %vm414_vm1, %v6612_v7, %v14616_v34  ;;  %v6825_v50 = vsel %vm414_vm1, %v6799_v53, %v14617_v18  ;;  %v9726_v17 = vcombine.low %v13547_v58, %v13567_v45  ;;  %v9727_v29 = vcombine.high %v13547_v58, %v13567_v45  ;;  %8441 = vmatpush1.bf16.msra.mxu0 %v9690_v37  ;;  %v6548_v34 = vld [vmem:[#allocation3 + $0x98] sm:$0xf] }
 0x7f2   :  { %v6826_v22 = vsel %vm6809_vm10, %v6773_v59, %v6825_v50  ;;  %6599 = vrot.lane.b32.xlu1 %v13041_v19, %s10168_s15  ;;  %v7325_v7 = vsel %vm414_vm1, %v7297_v28, %v7298_v49  ;;  %v6621_v5 = vsel %vm414_vm1, %v6603_v14, %v14618_v9  ;;  %v14619_v19 = vrot.slane %v13343_v26, 4 }
 0x7f3   :  { %v9674_v53 = vcombine.low %v6810_v25, %v6826_v22  ;;  %v9675_v63 = vcombine.high %v6810_v25, %v6826_v22  ;;  %7449 = vrot.lane.b32.xlu0 %v13591_v55, %s10169_s4  ;;  %v13605_v59 = vpop.permute.xlu1 %7121  ;;  %v7310_v28 = vsel %vm6622_vm9, %v13324_v35, %v7309_v4  ;;  %v7326_v62 = vsel %vm6622_vm9, %v13476_v24, %v7325_v7 }
 0x7f4   :  { %v7155_v61 = vsel %vm414_vm1, %v14619_v19, %v7135_v51  ;;  %v6639_v14 = vsel %vm6622_vm9, %v13186_v2, %v6638_v6  ;;  %v6948_v37 = vrot.slane %v13398_v54, 4  ;;  %v7144_v21 = vrot.slane %v13605_v59, 4  ;;  %v13615_v25 = vpop.permute.xlu0 %6762  ;;  %v13635_v19 = vld [vmem:[#allocation3 + $0xa4] sm:$0xff] }
 0x7f5   :  { %8442 = vmatprep.subr.bf16.mxu0 %v9675_v63  ;;  %v9744_v18 = vcombine.low %v7310_v28, %v7326_v62  ;;  %v9745_v50 = vcombine.high %v7310_v28, %v7326_v62  ;;  %v7471_v35 = vrot.slane %v13298_v33, 4  ;;  %v14620_v24 = vcombine.high %v13062_v27, %v13068_v41 }
 0x7f6   :  { %8443 = vmatpush1.bf16.msra.mxu0 %v9674_v53  ;;  %6601 = vrot.lane.b32.xlu1 %v6548_v34, %s10168_s15  ;;  %v7171_v2 = vsel %vm414_vm1, %v7143_v23, %v7144_v21  ;;  %v6623_v4 = vsel %vm6622_vm9, %v13178_v57, %v6621_v5  ;;  %v7156_v53 = vsel %vm6809_vm10, %v13343_v26, %v7155_v61  ;;  %v14621_v23 = vrot.slane %v13248_v0, 4 }
 0x7f7   :  { %8444 = vmatprep.subr.bf16.mxu0 %v14620_v24  ;;  %8563 = vmatprep.subr.bf16.mxu1 %v9745_v50  ;;  %v6934_v6 = vpop.permute.xlu1 %6933  ;;  %v9643_v22 = vcombine.high %v6623_v4, %v6639_v14  ;;  %v7172_v63 = vsel %vm6809_vm10, %v13520_v43, %v7171_v2  ;;  %v14622_v62 = vcombine.low %v13062_v27, %v13068_v41  ;;  %v14623_v26 = vrot.slane %v13236_v13, 4  ;;  %v7416_v50 = vld [vmem:[#allocation3 + $0xac] sm:$0xf] }
 0x7f8   :  { %7451 = vrot.lane.b32.xlu0 %v7407_v3, %s10169_s4  ;;  %8564 = vmatpush1.bf16.msra.mxu1 %v9744_v18  ;;  %v6967_v7 = vsel %vm414_vm1, %v14621_v23, %v6948_v37  ;;  %v6957_v9 = vrot.slane %v6934_v6, 4  ;;  %v9728_v28 = vcombine.low %v7156_v53, %v7172_v63  ;;  %v9729_v57 = vcombine.high %v7156_v53, %v7172_v63  ;;  %v7454_v5 = vpop.permute.xlu0 %7453 }
 0x7f9   :  { %v7489_v43 = vsel %vm414_vm1, %v7471_v35, %v14623_v26  ;;  %v7480_v61 = vrot.slane %v7454_v5, 4  ;;  %v14624_v3 = vrot.slane %v13333_v38, 4  ;;  %v9713_v18 = vcombine.high %v13106_v42, %v13135_v32 }
 0x7fa   :  { %8445 = vmatpush1.bf16.msra.mxu0 %v14622_v62  ;;  %7467 = vrot.lane.b32.xlu1 %v13635_v19, %s10169_s4  ;;  %v6949_v27 = vrot.slane %v13582_v40, 4  ;;  %v9642_v41 = vcombine.low %v6623_v4, %v6639_v14  ;;  %v13653_v13 = vsel %vm6622_vm9, %v13248_v0, %v6967_v7  ;;  %v14625_v24 = vrot.slane %v13423_v39, 4 }
 0x7fb   :  { %v6983_v34 = vsel %vm414_vm1, %v14624_v3, %v6957_v9  ;;  %8446 = vmatprep.subr.bf16.mxu0 %v9643_v22  ;;  %8565 = vmatprep.subr.bf16.mxu1 %v9729_v57  ;;  %v6779_v2 = vpop.permute.xlu1 %6778  ;;  %v7490_v0 = vsel %vm6809_vm10, %v13298_v33, %v7489_v43 }
 0x7fc   :  { %8566 = vmatpush1.bf16.msra.mxu1 %v9728_v28  ;;  %v13657_v35 = vsel %vm6622_vm9, %v13333_v38, %v6983_v34  ;;  %v7505_v22 = vsel %vm414_vm1, %v7480_v61, %v14625_v24  ;;  %v6802_v53 = vrot.slane %v6779_v2, 4  ;;  %v13669_v23 = vpop.permute.xlu0 %6573  ;;  %v9712_v38 = vcombine.low %v13106_v42, %v13135_v32 }
 0x7fd   :  { %8567 = vmatprep.subr.bf16.mxu1 %v9713_v18  ;;  %v9694_v63 = vcombine.low %v13653_v13, %v13657_v35  ;;  %v9695_v14 = vcombine.high %v13653_v13, %v13657_v35  ;;  %v7506_v4 = vsel %vm6809_vm10, %v7454_v5, %v7505_v22  ;;  %v14626_v28 = vrot.slane %v13358_v48, 4 }
 0x7fe   :  { %8447 = vmatpush1.bf16.msra.mxu0 %v9642_v41  ;;  %7469 = vrot.lane.b32.xlu1 %v7416_v50, %s10169_s4  ;;  %v9770_v39 = vcombine.low %v7490_v0, %v7506_v4  ;;  %v9771_v7 = vcombine.high %v7490_v0, %v7506_v4  ;;  %v6969_v33 = vsel %vm414_vm1, %v6948_v37, %v6949_v27  ;;  %v6794_v42 = vrot.slane %v13615_v25, 4 }
 0x7ff   :  { %v6829_v57 = vsel %vm414_vm1, %v14626_v28, %v6802_v53  ;;  %v13680_v5 = vpop.permute.xlu1 %6935  ;;  %v6970_v34 = vsel %vm6622_vm9, %v13398_v54, %v6969_v33  ;;  %v14627_v41 = vrot.slane %v13457_v8, 4  ;;  %v14629_v4 = vrot.slane %v13274_v36, 4 }
 0x800   :  { %8568 = vmatpush1.bf16.msra.mxu1 %v9712_v38  ;;  %v13684_v62 = vsel %vm6809_vm10, %v13358_v48, %v6829_v57  ;;  %8462 = vmatprep.subr.bf16.mxu0 %v9771_v7  ;;  %v6958_v32 = vrot.slane %v13680_v5, 4  ;;  %v13692_v61 = vpop.permute.xlu0 %6575  ;;  %v6606_v48 = vrot.slane %v13669_v23, 4  ;;  %v14632_v13 = vrot.slane %v13441_v11, 4 }
 0x801   :  { %v9678_v26 = vcombine.low %v13495_v10, %v13684_v62  ;;  %v9679_v43 = vcombine.high %v13495_v10, %v13684_v62  ;;  %v6815_v24 = vsel %vm414_vm1, %v14627_v41, %v6794_v42  ;;  %v6607_v57 = vrot.slane %v13692_v61, 4 }
 0x802   :  { %8463 = vmatpush2.bf16.msra.mxu0 %v9770_v39  ;;  %v6985_v37 = vsel %vm414_vm1, %v6957_v9, %v6958_v32  ;;  %v6626_v39 = vsel %vm414_vm1, %v14629_v4, %v6606_v48  ;;  %v14631_v41 = vrot.slane %v13388_v15, 4  ;;  %v9764_v62 = vcombine.low %v13216_v47, %v13240_v44 }
 0x803   :  { %8518 = vmatprep.subr.bf16.mxu0 %v9713_v18  ;;  %v13698_v3 = vpop.permute.xlu1 %6780  ;;  %v6986_v50 = vsel %vm6622_vm9, %v6934_v6, %v6985_v37  ;;  %v14628_v6 = vcombine.high %v13524_v12, %v13528_v20 }
 0x804   :  { %v6803_v9 = vrot.slane %v13698_v3, 4  ;;  %v9696_v18 = vcombine.low %v6970_v34, %v6986_v50  ;;  %v9697_v22 = vcombine.high %v6970_v34, %v6986_v50  ;;  %v13710_v0 = vpop.permute.xlu0 %7441  ;;  %v14630_v50 = vcombine.low %v13524_v12, %v13528_v20 }
 0x805   :  { %8465 = vmatmul.mubr.bf16.vlgmr.msra.gmra.mxu0 %v13513_v52  ;;  %v6628_v20 = vsel %vm414_vm1, %v6606_v48, %v6607_v57  ;;  %v7474_v58 = vrot.slane %v13710_v0, 4 }
 0x806   :  { %8519 = vmatpush1.bf16.msra.mxu0 %v9712_v38  ;;  %9788 = vmatprep.mubr.msk.bf16.mxu0 %vm2469_vm0, %v13142_v31  ;;  %v6831_v54 = vsel %vm414_vm1, %v6802_v53, %v6803_v9  ;;  %v6816_v38 = vsel %vm6809_vm10, %v13457_v8, %v6815_v24  ;;  %v9961_v8 = vld [vmem:[#allocation3 + $0x20] ss:$88 sps:$4 sm:$0xff]   ;;  %v13742_v24 = vsel %vm6622_vm9, %v13274_v36, %v6626_v39  ;;  %v9959_v36 = vld [vmem:[#allocation3 + $0x1c] ss:$88 sps:$4 sm:$0xff]  }
 0x807   :  { %8520 = vmatprep.subr.bf16.mxu0 %v14628_v6  ;;  %8569 = vmatprep.subr.bf16.mxu1 %v9697_v22  ;;  %v6592_v7 = vpop.permute.xlu1 %6591  ;;  %v6832_v28 = vsel %vm6809_vm10, %v6779_v2, %v6831_v54  ;;  %v6629_v4 = vsel %vm6622_vm9, %v13669_v23, %v6628_v20 }
 0x808   :  { %8570 = vmatpush1.bf16.msra.mxu1 %v9696_v18  ;;  %v6615_v33 = vrot.slane %v6592_v7, 4  ;;  %v9680_v53 = vcombine.low %v6816_v38, %v6832_v28  ;;  %v9681_v37 = vcombine.high %v6816_v38, %v6832_v28  ;;  %v13727_v34 = vpop.permute.xlu0 %7443 }
 0x809   :  { %v7475_v38 = vrot.slane %v13727_v34, 4 }
 0x80a   :  { %8521 = vmatpush1.bf16.msra.mxu0 %v14630_v50  ;;  %v6642_v18 = vsel %vm414_vm1, %v14631_v41, %v6615_v33  ;;  %8571 = vmatprep.subr.bf16.mxu1 %v9681_v37 }
 0x80b   :  { %8522 = vmatprep.subr.bf16.mxu0 %v9727_v29  ;;  %v13738_v2 = vpop.permute.xlu1 %6593  ;;  %v13746_v12 = vsel %vm6622_vm9, %v13388_v15, %v6642_v18 }
 0x80c   :  { %8572 = vmatpush1.bf16.msra.mxu1 %v9680_v53  ;;  %v6616_v22 = vrot.slane %v13738_v2, 4  ;;  %v9646_v29 = vcombine.low %v13742_v24, %v13746_v12  ;;  %v9647_v54 = vcombine.high %v13742_v24, %v13746_v12  ;;  %v13756_v6 = vpop.permute.xlu0 %7259 }
 0x80d   :  { %8573 = vmatprep.subr.bf16.mxu1 %v9961_v8 }
 0x80e   :  { %8523 = vmatpush1.bf16.msra.mxu0 %v9726_v17  ;;  %v6644_v15 = vsel %vm414_vm1, %v6615_v33, %v6616_v22  ;;  %v7495_v17 = vsel %vm414_vm1, %v7474_v58, %v7475_v38 }
 0x80f   :  { %8524 = vmatprep.subr.bf16.mxu0 %v9961_v8  ;;  %v7460_v48 = vpop.permute.xlu1 %7459  ;;  %v6645_v39 = vsel %vm6622_vm9, %v6592_v7, %v6644_v15  ;;  %v7496_v41 = vsel %vm6809_vm10, %v13710_v0, %v7495_v17  ;;  %v9964_v8 = vld [vmem:[#allocation3 + $0x18] ss:$88 sps:$4 sm:$0xff]  }
 0x810   :  { %8574 = vmatpush1.bf16.msra.mxu1 %v9959_v36  ;;  %v9648_v28 = vcombine.low %v6629_v4, %v6645_v39  ;;  %v9649_v53 = vcombine.high %v6629_v4, %v6645_v39  ;;  %v13768_v37 = vpop.permute.xlu0 %7105  ;;  %v7483_v23 = vrot.slane %v7460_v48, 4 }
 0x812   :  { %8525 = vmatpush1.bf16.msra.mxu0 %v9959_v36  ;;  %8575 = vmatprep.subr.bf16.mxu1 %v9649_v53  ;;  %v7509_v35 = vsel %vm414_vm1, %v14632_v13, %v7483_v23 }
 0x813   :  { %8526 = vmatprep.subr.bf16.mxu0 %v9695_v14  ;;  %v13774_v45 = vpop.permute.xlu1 %7461 }
 0x814   :  { %8576 = vmatpush1.bf16.msra.mxu1 %v9648_v28  ;;  %v7484_v7 = vrot.slane %v13774_v45, 4  ;;  %v13780_v33 = vpop.permute.xlu0 %7261  ;;  %v7290_v28 = vrot.slane %v13756_v6, 4 }
 0x815   :  { %v7291_v39 = vrot.slane %v13780_v33, 4 }
 0x816   :  { %8527 = vmatpush1.bf16.msra.mxu0 %v9694_v63  ;;  %v7511_v14 = vsel %vm414_vm1, %v7483_v23, %v7484_v7  ;;  %v9765_v63 = vcombine.high %v13216_v47, %v13240_v44  ;;  %v7371_v23 = vld [vmem:[#allocation3 + $0x34] sm:$0xff] }
 0x817   :  { %8528 = vmatprep.subr.bf16.mxu0 %v9679_v43  ;;  %v7278_v50 = vpop.permute.xlu1 %7277  ;;  %v7512_v18 = vsel %vm6809_vm10, %v7460_v48, %v7511_v14  ;;  %v9962_v43 = vld [vmem:[#allocation3 + $0x14] ss:$88 sps:$4 sm:$0xff]   ;;  %v14633_v48 = vrot.slane %v13315_v30, 4  ;;  %v7313_v47 = vsel %vm414_vm1, %v7290_v28, %v7291_v39 }
 0x818   :  { %v9776_v20 = vcombine.low %v7496_v41, %v7512_v18  ;;  %v9777_v36 = vcombine.high %v7496_v41, %v7512_v18  ;;  %v13794_v15 = vpop.permute.xlu0 %7107  ;;  %v7299_v53 = vrot.slane %v7278_v50, 4  ;;  %v7136_v41 = vrot.slane %v13768_v37, 4 }
 0x819   :  { %v7493_v4 = vsel %vm414_vm1, %v14633_v48, %v7474_v58  ;;  %v7137_v44 = vrot.slane %v13794_v15, 4 }
 0x81a   :  { %8529 = vmatpush1.bf16.msra.mxu0 %v9678_v26  ;;  %8591 = vmatprep.subr.bf16.mxu1 %v9777_v36  ;;  %v7510_v26 = vsel %vm6809_vm10, %v13441_v11, %v7509_v35  ;;  %v7494_v17 = vsel %vm6809_vm10, %v13315_v30, %v7493_v4  ;;  %v9763_v30 = vcombine.high %v7371_v23, %v13204_v56 }
 0x81b   :  { %8530 = vmatprep.subr.bf16.mxu0 %v9964_v8  ;;  %8592 = vmatpush2.bf16.msra.mxu1 %v9776_v20  ;;  %v7124_v0 = vpop.permute.xlu1 %7123  ;;  %v7327_v18 = vsel %vm414_vm1, %v7298_v49, %v7299_v53  ;;  %v7311_v36 = vsel %vm414_vm1, %v7289_v60, %v7290_v28  ;;  %v9774_v24 = vcombine.low %v7494_v17, %v7510_v26 }
 0x81c   :  { %8647 = vmatprep.subr.bf16.mxu1 %v9765_v63  ;;  %v13808_v10 = vpop.permute.xlu0 %6919  ;;  %v7145_v8 = vrot.slane %v7124_v0, 4  ;;  %v7159_v49 = vsel %vm414_vm1, %v7136_v41, %v7137_v44  ;;  %v7328_v60 = vsel %vm6622_vm9, %v13563_v1, %v7327_v18  ;;  %v9762_v4 = vcombine.low %v7371_v23, %v13204_v56 }
 0x81d   :  { %v7160_v1 = vsel %vm6809_vm10, %v13768_v37, %v7159_v49 }
 0x81e   :  { %8531 = vmatpush1.bf16.msra.mxu0 %v9962_v43  ;;  %8594 = vmatmul.mubr.bf16.vlgmr.msra.gmra.mxu1 %v13513_v52 }
 0x81f   :  { %8532 = vmatprep.subr.bf16.mxu0 %v9647_v54  ;;  %8648 = vmatpush1.bf16.msra.mxu1 %v9764_v62  ;;  %v13816_v58 = vpop.permute.xlu1 %7279  ;;  %v9775_v54 = vcombine.high %v7494_v17, %v7510_v26  ;;  %v7312_v26 = vsel %vm6622_vm9, %v13366_v46, %v7311_v36 }
 0x820   :  { %9791 = vmatprep.mubr.msk.bf16.mxu1 %vm2469_vm0, %v13142_v31  ;;  %v7300_v11 = vrot.slane %v13816_v58, 4  ;;  %v13827_v14 = vpop.permute.xlu0 %6764  ;;  %v9747_v17 = vcombine.high %v7312_v26, %v7328_v60 }
 0x822   :  { %8533 = vmatpush1.bf16.msra.mxu0 %v9646_v29  ;;  %v7329_v20 = vsel %vm414_vm1, %v7299_v53, %v7300_v11  ;;  %v7314_v29 = vsel %vm6622_vm9, %v13756_v6, %v7313_v47  ;;  %v7173_v6 = vsel %vm414_vm1, %v7144_v21, %v7145_v8  ;;  %v7040_v53 = vld [vmem:[#allocation3 + $0x8c] sm:$0xff]  ;;  %v7157_v21 = vsel %vm414_vm1, %v7135_v51, %v7136_v41 }
 0x823   :  { %8548 = vmatprep.subr.bf16.mxu0 %v9775_v54  ;;  %v13843_v12 = vpop.permute.xlu1 %7125  ;;  %v7330_v13 = vsel %vm6622_vm9, %v7278_v50, %v7329_v20  ;;  %v7174_v46 = vsel %vm6809_vm10, %v13605_v59, %v7173_v6  ;;  %v13878_v37 = vcombine.high %v7371_v23, %v7040_v53  ;;  %v6950_v51 = vrot.slane %v13808_v10, 4 }
 0x824   :  { %v7146_v35 = vrot.slane %v13843_v12, 4  ;;  %v9748_v63 = vcombine.low %v7314_v29, %v7330_v13  ;;  %v9749_v43 = vcombine.high %v7314_v29, %v7330_v13  ;;  %v13852_v48 = vpop.permute.xlu0 %6921  ;;  %v7158_v18 = vsel %vm6809_vm10, %v13382_v16, %v7157_v21 }
 0x825   :  { %v9731_v20 = vcombine.high %v7158_v18, %v7174_v46  ;;  %v6795_v29 = vrot.slane %v13827_v14, 4  ;;  %v6971_v16 = vsel %vm414_vm1, %v6949_v27, %v6950_v51  ;;  %v9730_v49 = vcombine.low %v7158_v18, %v7174_v46 }
 0x826   :  { %8549 = vmatpush2.bf16.msra.mxu0 %v9774_v24  ;;  %v7175_v50 = vsel %vm414_vm1, %v7145_v8, %v7146_v35  ;;  %8649 = vmatprep.subr.bf16.mxu1 %v9749_v43  ;;  %v6951_v8 = vrot.slane %v13852_v48, 4  ;;  %v13890_v24 = vcombine.low %v7371_v23, %v7040_v53  ;;  %v9973_v43 = vld [vmem:[#allocation3 + $0x30] ss:$88 sps:$4 sm:$0xff]  }
 0x827   :  { %8604 = vmatprep.subr.bf16.mxu0 %v9763_v30  ;;  %8650 = vmatpush1.bf16.msra.mxu1 %v9748_v63  ;;  %v6938_v62 = vpop.permute.xlu1 %6937  ;;  %v7176_v28 = vsel %vm6809_vm10, %v7124_v0, %v7175_v50  ;;  %v9746_v0 = vcombine.low %v7312_v26, %v7328_v60  ;;  %v6817_v50 = vsel %vm414_vm1, %v6794_v42, %v6795_v29 }
 0x828   :  { %v9732_v47 = vcombine.low %v7160_v1, %v7176_v28  ;;  %v9733_v56 = vcombine.high %v7160_v1, %v7176_v28  ;;  %v13872_v54 = vpop.permute.xlu0 %6766  ;;  %v6959_v30 = vrot.slane %v6938_v62, 4  ;;  %v6972_v26 = vsel %vm6622_vm9, %v13582_v40, %v6971_v16 }
 0x829   :  { %8551 = vmatmul.mubr.bf16.vlgmr.msra.gmra.mxu0 %v13513_v52  ;;  %v6796_v13 = vrot.slane %v13872_v54, 4 }
 0x82a   :  { %8605 = vmatpush1.bf16.msra.mxu0 %v9762_v4  ;;  %9790 = vmatprep.mubr.msk.bf16.mxu0 %vm2469_vm0, %v13142_v31  ;;  %v6987_v31 = vsel %vm414_vm1, %v6958_v32, %v6959_v30  ;;  %v6973_v32 = vsel %vm414_vm1, %v6950_v51, %v6951_v8 }
 0x82b   :  { %8606 = vmatprep.subr.bf16.mxu0 %v9747_v17  ;;  %8651 = vmatprep.subr.bf16.mxu1 %v9733_v56  ;;  %v6783_v41 = vpop.permute.xlu1 %6782  ;;  %v6988_v60 = vsel %vm6622_vm9, %v13680_v5, %v6987_v31  ;;  %v6819_v5 = vsel %vm414_vm1, %v6795_v29, %v6796_v13  ;;  %v6974_v53 = vsel %vm6622_vm9, %v13808_v10, %v6973_v32 }
 0x82c   :  { %8652 = vmatpush1.bf16.msra.mxu1 %v9732_v47  ;;  %v13888_v59 = vpop.permute.xlu0 %6577  ;;  %v6804_v36 = vrot.slane %v6783_v41, 4  ;;  %v9699_v28 = vcombine.high %v6972_v26, %v6988_v60  ;;  %v9698_v46 = vcombine.low %v6972_v26, %v6988_v60  ;;  %v6818_v10 = vsel %vm6809_vm10, %v13615_v25, %v6817_v50  ;;  %v9976_v50 = vld [vmem:[#allocation3 + $0x28] ss:$88 sps:$4 sm:$0xff]  }
 0x82d   :  { %8653 = vmatprep.subr.bf16.mxu1 %v13878_v37 }
 0x82e   :  { %8607 = vmatpush1.bf16.msra.mxu0 %v9746_v0  ;;  %v6833_v27 = vsel %vm414_vm1, %v6803_v9, %v6804_v36  ;;  %v9971_v9 = vld [vmem:[#allocation3 + $0x2c] ss:$88 sps:$4 sm:$0xff]  }
 0x82f   :  { %8608 = vmatprep.subr.bf16.mxu0 %v9731_v20  ;;  %v13898_v63 = vpop.permute.xlu1 %6939  ;;  %v6834_v40 = vsel %vm6809_vm10, %v13698_v3, %v6833_v27  ;;  %v6820_v3 = vsel %vm6809_vm10, %v13827_v14, %v6819_v5 }
 0x830   :  { %8654 = vmatpush1.bf16.msra.mxu1 %v13890_v24  ;;  %v6960_v23 = vrot.slane %v13898_v63, 4  ;;  %v13909_v6 = vpop.permute.xlu0 %6579  ;;  %v9683_v0 = vcombine.high %v6818_v10, %v6834_v40 }
 0x831   :  { %v6609_v20 = vrot.slane %v13909_v6, 4 }
 0x832   :  { %8609 = vmatpush1.bf16.msra.mxu0 %v9730_v49  ;;  %v6989_v4 = vsel %vm414_vm1, %v6959_v30, %v6960_v23  ;;  %v9682_v49 = vcombine.low %v6818_v10, %v6834_v40 }
 0x833   :  { %8610 = vmatprep.subr.bf16.mxu0 %v9973_v43  ;;  %v13922_v1 = vpop.permute.xlu1 %6784  ;;  %v6990_v42 = vsel %vm6622_vm9, %v6938_v62, %v6989_v4  ;;  %v6608_v62 = vrot.slane %v13888_v59, 4 }
 0x834   :  { %v6805_v21 = vrot.slane %v13922_v1, 4  ;;  %v9700_v17 = vcombine.low %v6974_v53, %v6990_v42  ;;  %v9701_v47 = vcombine.high %v6974_v53, %v6990_v42  ;;  %v13930_v56 = vpop.permute.xlu0 %7445 }
 0x835   :  { %v6630_v14 = vsel %vm414_vm1, %v6607_v57, %v6608_v62  ;;  %v6632_v60 = vsel %vm414_vm1, %v6608_v62, %v6609_v20 }
 0x836   :  { %8611 = vmatpush1.bf16.msra.mxu0 %v9971_v9  ;;  %v6835_v30 = vsel %vm414_vm1, %v6804_v36, %v6805_v21  ;;  %8655 = vmatprep.subr.bf16.mxu1 %v9701_v47  ;;  %v6631_v26 = vsel %vm6622_vm9, %v13692_v61, %v6630_v14 }
 0x837   :  { %8612 = vmatprep.subr.bf16.mxu0 %v9699_v28  ;;  %8656 = vmatpush1.bf16.msra.mxu1 %v9700_v17  ;;  %v6596_v51 = vpop.permute.xlu1 %6595  ;;  %v6836_v18 = vsel %vm6809_vm10, %v6783_v41, %v6835_v30  ;;  %v7476_v41 = vrot.slane %v13930_v56, 4  ;;  %v9974_v28 = vld [vmem:[#allocation3 + $0x24] ss:$88 sps:$4 sm:$0xff]  }
 0x838   :  { %v6617_v31 = vrot.slane %v6596_v51, 4  ;;  %v9684_v36 = vcombine.low %v6820_v3, %v6836_v18  ;;  %v9685_v29 = vcombine.high %v6820_v3, %v6836_v18  ;;  %v13942_v16 = vpop.permute.xlu0 %7447 }
 0x839   :  { %v7497_v5 = vsel %vm414_vm1, %v7475_v38, %v7476_v41 }
 0x83a   :  { %8613 = vmatpush1.bf16.msra.mxu0 %v9698_v46  ;;  %v6646_v25 = vsel %vm414_vm1, %v6616_v22, %v6617_v31  ;;  %8657 = vmatprep.subr.bf16.mxu1 %v9685_v29 }
 0x83b   :  { %8614 = vmatprep.subr.bf16.mxu0 %v9683_v0  ;;  %8658 = vmatpush1.bf16.msra.mxu1 %v9684_v36  ;;  %v13951_v32 = vpop.permute.xlu1 %6597  ;;  %v6647_v57 = vsel %vm6622_vm9, %v13738_v2, %v6646_v25  ;;  %v6633_v2 = vsel %vm6622_vm9, %v13888_v59, %v6632_v60  ;;  %v7498_v59 = vsel %vm6809_vm10, %v13727_v34, %v7497_v5  ;;  %v14634_v36 = vld [vmem:[#allocation25_spill] sm:$0xff]  ;;  %v13997_v60 = vld [vmem:[#allocation3 + $0x48] ss:$88 sps:$4 sm:$0xff]  }
 0x83c   :  { %v6618_v27 = vrot.slane %v13951_v32, 4  ;;  %8659 = vmatprep.subr.bf16.mxu1 %v9973_v43  ;;  %v13957_v22 = vpop.permute.xlu0 %7263  ;;  %v7477_v43 = vrot.slane %v13942_v16, 4  ;;  %v9651_v47 = vcombine.high %v6631_v26, %v6647_v57  ;;  %v9650_v38 = vcombine.low %v6631_v26, %v6647_v57 }
 0x83d   :  { %v9769_v5 = vcombine.high %v13591_v55, %v13635_v19 }
 0x83e   :  { %8615 = vmatpush1.bf16.msra.mxu0 %v9682_v49  ;;  %v6648_v4 = vsel %vm414_vm1, %v6617_v31, %v6618_v27  ;;  %v7499_v62 = vsel %vm414_vm1, %v7476_v41, %v7477_v43 }
 0x83f   :  { %8616 = vmatprep.subr.bf16.mxu0 %v9976_v50  ;;  %8660 = vmatpush1.bf16.msra.mxu1 %v9971_v9  ;;  %v7464_v53 = vpop.permute.xlu1 %7463  ;;  %v6649_v42 = vsel %vm6622_vm9, %v6596_v51, %v6648_v4  ;;  %v7500_v25 = vsel %vm6809_vm10, %v13930_v56, %v7499_v62 }
 0x840   :  { %v7485_v17 = vrot.slane %v7464_v53, 4  ;;  %v9652_v40 = vcombine.low %v6633_v2, %v6649_v42  ;;  %v9653_v30 = vcombine.high %v6633_v2, %v6649_v42  ;;  %v13973_v46 = vpop.permute.xlu0 %7109  ;;  %v14011_v42 = vld [vmem:[#allocation3 + $0x44] ss:$88 sps:$4 sm:$0xff]  }
 0x841   :  { %v7138_v41 = vrot.slane %v13973_v46, 4 }
 0x842   :  { %8617 = vmatpush1.bf16.msra.mxu0 %v9974_v28  ;;  %v7513_v61 = vsel %vm414_vm1, %v7484_v7, %v7485_v17  ;;  %8661 = vmatprep.subr.bf16.mxu1 %v9653_v30  ;;  %v7292_v7 = vrot.slane %v13957_v22, 4 }
 0x843   :  { %8618 = vmatprep.subr.bf16.mxu0 %v9651_v47  ;;  %8662 = vmatpush1.bf16.msra.mxu1 %v9652_v40  ;;  %v13978_v9 = vpop.permute.xlu1 %7465  ;;  %v7514_v10 = vsel %vm6809_vm10, %v13774_v45, %v7513_v61  ;;  %v7302_v45 = vrot.slane %v14634_v36, 4 }
 0x844   :  { %v7486_v51 = vrot.slane %v13978_v9, 4  ;;  %v9779_v0 = vcombine.high %v7498_v59, %v7514_v10  ;;  %v7266_v3 = vpop.permute.xlu0 %7265  ;;  %v9778_v18 = vcombine.low %v7498_v59, %v7514_v10  ;;  %v7315_v4 = vsel %vm414_vm1, %v7291_v39, %v7292_v7 }
 0x845   :  { %v7293_v31 = vrot.slane %v7266_v3, 4  ;;  %v7316_v61 = vsel %vm6622_vm9, %v13780_v33, %v7315_v4 }
 0x846   :  { %8619 = vmatpush1.bf16.msra.mxu0 %v9650_v38  ;;  %v7515_v34 = vsel %vm414_vm1, %v7485_v17, %v7486_v51  ;;  %v9768_v17 = vcombine.low %v13591_v55, %v13635_v19 }
 0x847   :  { %8634 = vmatprep.subr.bf16.mxu0 %v9779_v0  ;;  %v7282_v29 = vpop.permute.xlu1 %7281  ;;  %v7516_v14 = vsel %vm6809_vm10, %v7464_v53, %v7515_v34  ;;  %v7317_v56 = vsel %vm414_vm1, %v7292_v7, %v7293_v31 }
 0x848   :  { %v7301_v49 = vrot.slane %v7282_v29, 4  ;;  %v9780_v50 = vcombine.low %v7500_v25, %v7516_v14  ;;  %v9781_v57 = vcombine.high %v7500_v25, %v7516_v14  ;;  %v7112_v26 = vpop.permute.xlu0 %7111  ;;  %v7318_v38 = vsel %vm6622_vm9, %v13957_v22, %v7317_v56  ;;  %v14053_v14 = vld [vmem:[#allocation3 + $0x40] ss:$88 sps:$4 sm:$0xff]  }
 0x849   :  { %v7139_v40 = vrot.slane %v7112_v26, 4 }
 0x84a   :  { %8635 = vmatpush2.bf16.msra.mxu0 %v9778_v18  ;;  %v7331_v28 = vsel %vm414_vm1, %v7300_v11, %v7301_v49  ;;  %v7333_v53 = vsel %vm414_vm1, %v7301_v49, %v7302_v45  ;;  %8677 = vmatprep.subr.bf16.mxu1 %v9781_v57  ;;  %v7161_v11 = vsel %vm414_vm1, %v7137_v44, %v7138_v41  ;;  %v14059_v57 = vld [vmem:[#allocation3 + $0x3c] ss:$88 sps:$4 sm:$0xff]  }
 0x84b   :  { %8690 = vmatprep.subr.bf16.mxu0 %v13997_v60  ;;  %v7334_v2 = vsel %vm6622_vm9, %v7282_v29, %v7333_v53  ;;  %8678 = vmatpush2.bf16.msra.mxu1 %v9780_v50  ;;  %v7128_v39 = vpop.permute.xlu1 %7127  ;;  %v7332_v47 = vsel %vm6622_vm9, %v13816_v58, %v7331_v28  ;;  %v10075_v58 = vld [vmem:[%s14418_s1 + $0x24] ss:$8 sps:$4 sm:$0xff]   ;;  %v7162_v62 = vsel %vm6809_vm10, %v13794_v15, %v7161_v11 }
 0x84c   :  { %v7147_v30 = vrot.slane %v7128_v39, 4  ;;  %8733 = vmatprep.subr.bf16.mxu1 %v9769_v5  ;;  %v14025_v59 = vpop.permute.xlu0 %6923  ;;  %v9750_v55 = vcombine.low %v7316_v61, %v7332_v47  ;;  %v9751_v19 = vcombine.high %v7316_v61, %v7332_v47  ;;  %v9753_v44 = vcombine.high %v7318_v38, %v7334_v2 }
 0x84d   :  { %8637 = vmatmul.mubr.bf16.vlgmr.msra.gmra.mxu0 %v13513_v52  ;;  %v6952_v22 = vrot.slane %v14025_v59, 4  ;;  %v7163_v7 = vsel %vm414_vm1, %v7138_v41, %v7139_v40 }
 0x84e   :  { %8691 = vmatpush1.bf16.msra.mxu0 %v14011_v42  ;;  %9792 = vmatprep.mubr.msk.bf16.mxu0 %vm2469_vm0, %v10075_v58  ;;  %v7177_v33 = vsel %vm414_vm1, %v7146_v35, %v7147_v30  ;;  %v9752_v35 = vcombine.low %v7318_v38, %v7334_v2  ;;  %v7164_v36 = vsel %vm6809_vm10, %v13973_v46, %v7163_v7 }
 0x84f   :  { %8680 = vmatmul.mubr.bf16.vlgmr.msra.gmra.mxu1 %v13513_v52  ;;  %8692 = vmatprep.subr.bf16.mxu0 %v9751_v19  ;;  %v7130_v10 = vpop.permute.xlu1 %7129  ;;  %v7178_v0 = vsel %vm6809_vm10, %v13843_v12, %v7177_v33  ;;  %v6975_v15 = vsel %vm414_vm1, %v6951_v8, %v6952_v22 }
 0x850   :  { %8734 = vmatpush1.bf16.msra.mxu1 %v9768_v17  ;;  %v7148_v3 = vrot.slane %v7130_v10, 4  ;;  %v9735_v18 = vcombine.high %v7162_v62, %v7178_v0  ;;  %9793 = vmatprep.mubr.msk.bf16.mxu1 %vm2469_vm0, %v10075_v58  ;;  %v14043_v52 = vpop.permute.xlu0 %6768  ;;  %v9734_v31 = vcombine.low %v7162_v62, %v7178_v0  ;;  %v6976_v4 = vsel %vm6622_vm9, %v13852_v48, %v6975_v15 }
 0x851   :  { %8735 = vmatprep.subr.bf16.mxu1 %v9753_v44  ;;  %v6797_v29 = vrot.slane %v14043_v52, 4 }
 0x852   :  { %8693 = vmatpush1.bf16.msra.mxu0 %v9750_v55  ;;  %v7179_v34 = vsel %vm414_vm1, %v7147_v30, %v7148_v3 }
 0x853   :  { %8694 = vmatprep.subr.bf16.mxu0 %v9735_v18  ;;  %v6942_v12 = vpop.permute.xlu1 %6941  ;;  %v7180_v45 = vsel %vm6809_vm10, %v7128_v39, %v7179_v34  ;;  %v6821_v5 = vsel %vm414_vm1, %v6796_v13, %v6797_v29 }
 0x854   :  { %8736 = vmatpush1.bf16.msra.mxu1 %v9752_v35  ;;  %v6961_v25 = vrot.slane %v6942_v12, 4  ;;  %v9736_v41 = vcombine.low %v7164_v36, %v7180_v45  ;;  %v9737_v49 = vcombine.high %v7164_v36, %v7180_v45  ;;  %v6926_v50 = vpop.permute.xlu0 %6925  ;;  %v6822_v13 = vsel %vm6809_vm10, %v13872_v54, %v6821_v5 }
 0x855   :  { %v6953_v56 = vrot.slane %v6926_v50, 4 }
 0x856   :  { %8695 = vmatpush1.bf16.msra.mxu0 %v9734_v31  ;;  %v6991_v8 = vsel %vm414_vm1, %v6960_v23, %v6961_v25  ;;  %8737 = vmatprep.subr.bf16.mxu1 %v9737_v49 }
 0x857   :  { %8696 = vmatprep.subr.bf16.mxu0 %v14053_v14  ;;  %v6787_v46 = vpop.permute.xlu1 %6786  ;;  %v6992_v26 = vsel %vm6622_vm9, %v13898_v63, %v6991_v8 }
 0x858   :  { %8738 = vmatpush1.bf16.msra.mxu1 %v9736_v41  ;;  %v6806_v28 = vrot.slane %v6787_v46, 4  ;;  %v9703_v23 = vcombine.high %v6976_v4, %v6992_v26  ;;  %v6771_v53 = vpop.permute.xlu0 %6770  ;;  %v9702_v2 = vcombine.low %v6976_v4, %v6992_v26 }
 0x859   :  { %8739 = vmatprep.subr.bf16.mxu1 %v13997_v60  ;;  %v6977_v60 = vsel %vm414_vm1, %v6952_v22, %v6953_v56  ;;  %v6798_v17 = vrot.slane %v6771_v53, 4 }
 0x85a   :  { %8697 = vmatpush1.bf16.msra.mxu0 %v14059_v57  ;;  %v6837_v48 = vsel %vm414_vm1, %v6805_v21, %v6806_v28  ;;  %v6978_v38 = vsel %vm6622_vm9, %v14025_v59, %v6977_v60 }
 0x85b   :  { %8698 = vmatprep.subr.bf16.mxu0 %v9703_v23  ;;  %v6944_v63 = vpop.permute.xlu1 %6943  ;;  %v6838_v39 = vsel %vm6809_vm10, %v13922_v1, %v6837_v48  ;;  %v6823_v1 = vsel %vm414_vm1, %v6797_v29, %v6798_v17  ;;  %v14636_v17 = vld [vmem:[#allocation13_spill] sm:$0xff] }
 0x85c   :  { %8740 = vmatpush1.bf16.msra.mxu1 %v14011_v42  ;;  %v6962_v47 = vrot.slane %v6944_v63, 4  ;;  %v9687_v11 = vcombine.high %v6822_v13, %v6838_v39  ;;  %v9686_v30 = vcombine.low %v6822_v13, %v6838_v39  ;;  %v6824_v10 = vsel %vm6809_vm10, %v14043_v52, %v6823_v1  ;;  %v14635_v39 = vld [vmem:[#allocation12_spill] sm:$0xff] }
 0x85d   :  { %v6582_v40 = vpop.permute.xlu0 %6581 }
 0x85e   :  { %8699 = vmatpush1.bf16.msra.mxu0 %v9702_v2  ;;  %v6993_v21 = vsel %vm414_vm1, %v6961_v25, %v6962_v47  ;;  %v6610_v61 = vrot.slane %v6582_v40, 4 }
 0x85f   :  { %8700 = vmatprep.subr.bf16.mxu0 %v9687_v11  ;;  %v6789_v42 = vpop.permute.xlu1 %6788  ;;  %v6994_v54 = vsel %vm6622_vm9, %v6942_v12, %v6993_v21 }
 0x860   :  { %v6807_v55 = vrot.slane %v6789_v42, 4  ;;  %v9704_v19 = vcombine.low %v6978_v38, %v6994_v54  ;;  %v9705_v58 = vcombine.high %v6978_v38, %v6994_v54  ;;  %v6634_v22 = vsel %vm414_vm1, %v6609_v20, %v6610_v61  ;;  %v14637_v54 = vld [vmem:[#allocation14_spill] sm:$0xff] }
 0x861   :  { %v6584_v44 = vpop.permute.xlu0 %6583  ;;  %v6635_v52 = vsel %vm6622_vm9, %v13909_v6, %v6634_v22 }
 0x862   :  { %8701 = vmatpush1.bf16.msra.mxu0 %v9686_v30  ;;  %v6839_v33 = vsel %vm414_vm1, %v6806_v28, %v6807_v55  ;;  %8741 = vmatprep.subr.bf16.mxu1 %v9705_v58  ;;  %v6611_v0 = vrot.slane %v6584_v44, 4 }
 0x863   :  { %8702 = vmatprep.subr.bf16.mxu0 %v13878_v37  ;;  %8742 = vmatpush1.bf16.msra.mxu1 %v9704_v19  ;;  %v6840_v62 = vsel %vm6809_vm10, %v6787_v46, %v6839_v33 }
 0x864   :  { %v6600_v59 = vpop.permute.xlu1 %6599  ;;  %v9688_v3 = vcombine.low %v6824_v10, %v6840_v62  ;;  %v9689_v18 = vcombine.high %v6824_v10, %v6840_v62  ;;  %v6636_v15 = vsel %vm414_vm1, %v6610_v61, %v6611_v0  ;;  %v14638_v62 = vld [vmem:[#allocation15_spill] sm:$0xff] }
 0x865   :  { %v6619_v7 = vrot.slane %v6600_v59, 4  ;;  %v7450_v35 = vpop.permute.xlu0 %7449 }
 0x866   :  { %8703 = vmatpush1.bf16.msra.mxu0 %v13890_v24  ;;  %8743 = vmatprep.subr.bf16.mxu1 %v9689_v18  ;;  %v7478_v20 = vrot.slane %v7450_v35, 4 }
 0x867   :  { %v6650_v37 = vsel %vm414_vm1, %v6618_v27, %v6619_v7  ;;  %8744 = vmatpush1.bf16.msra.mxu1 %v9688_v3 }
 0x868   :  { %v6602_v31 = vpop.permute.xlu1 %6601  ;;  %v6651_v34 = vsel %vm6622_vm9, %v13951_v32, %v6650_v37  ;;  %8745 = vmatprep.subr.bf16.mxu1 %v14053_v14  ;;  %v7501_v29 = vsel %vm414_vm1, %v7477_v43, %v7478_v20  ;;  %v6637_v32 = vsel %vm6622_vm9, %v6582_v40, %v6636_v15 }
 0x869   :  { %v6620_v12 = vrot.slane %v6602_v31, 4  ;;  %v9654_v24 = vcombine.low %v6635_v52, %v6651_v34  ;;  %v9655_v36 = vcombine.high %v6635_v52, %v6651_v34  ;;  %v7502_v43 = vsel %vm6809_vm10, %v13942_v16, %v7501_v29  ;;  %v10076_v16 = vld [vmem:[%s14418_s1 + $0x20] ss:$8 sps:$4 sm:$0xff]  }
 0x86a   :  { %v7452_v45 = vpop.permute.xlu0 %7451 }
 0x86b   :  { %v6652_v27 = vsel %vm414_vm1, %v6619_v7, %v6620_v12  ;;  %8704 = vmatprep.subr.bf16.mxu0 %v9655_v36  ;;  %8746 = vmatpush1.bf16.msra.mxu1 %v14059_v57  ;;  %v7479_v41 = vrot.slane %v7452_v45, 4 }
 0x86c   :  { %8705 = vmatpush1.bf16.msra.mxu0 %v9654_v24  ;;  %v7468_v6 = vpop.permute.xlu1 %7467  ;;  %v6653_v25 = vsel %vm6622_vm9, %v6600_v59, %v6652_v27 }
 0x86d   :  { %v7487_v14 = vrot.slane %v7468_v6, 4  ;;  %v9656_v49 = vcombine.low %v6637_v32, %v6653_v25  ;;  %v9657_v50 = vcombine.high %v6637_v32, %v6653_v25  ;;  %v7503_v4 = vsel %vm414_vm1, %v7478_v20, %v7479_v41 }
 0x86f   :  { %v7517_v8 = vsel %vm414_vm1, %v7486_v51, %v7487_v14  ;;  %8747 = vmatprep.subr.bf16.mxu1 %v9657_v50  ;;  %v7504_v51 = vsel %vm6809_vm10, %v7450_v35, %v7503_v4  ;;  %v14639_v35 = vld [vmem:[#allocation16_spill] sm:$0xff] }
 0x870   :  { %8748 = vmatpush1.bf16.msra.mxu1 %v9656_v49  ;;  %v7470_v46 = vpop.permute.xlu1 %7469  ;;  %v7518_v57 = vsel %vm6809_vm10, %v13978_v9, %v7517_v8 }
 0x871   :  { %v7488_v26 = vrot.slane %v7470_v46, 4  ;;  %v9782_v5 = vcombine.low %v7502_v43, %v7518_v57  ;;  %v9783_v56 = vcombine.high %v7502_v43, %v7518_v57 }
 0x873   :  { %v7519_v28 = vsel %vm414_vm1, %v7487_v14, %v7488_v26  ;;  %8720 = vmatprep.subr.bf16.mxu0 %v9783_v56  ;;  %v14641_v56 = vld [vmem:[#allocation18_spill] sm:$0xff] }
 0x874   :  { %8721 = vmatpush2.bf16.msra.mxu0 %v9782_v5  ;;  %v7520_v23 = vsel %vm6809_vm10, %v7468_v6, %v7519_v28  ;;  %v14640_v6 = vld [vmem:[#allocation17_spill] sm:$0xff] }
 0x875   :  { %v9784_v53 = vcombine.low %v7504_v51, %v7520_v23  ;;  %v9785_v2 = vcombine.high %v7504_v51, %v7520_v23 }
 0x877   :  { %8723 = vmatmul.mubr.bf16.vlgmr.msra.gmra.mxu0 %v10076_v16  ;;  %8763 = vmatprep.subr.bf16.mxu1 %v9785_v2 }
 0x878   :  { %8764 = vmatpush2.bf16.msra.mxu1 %v9784_v53 }
 0x87b   :  { %8766 = vmatmul.mubr.bf16.vlgmr.msra.gmra.mxu1 %v10076_v16 }
 0x8ae   :  { %v14129_v13 = vpop.f32.mrf.mxu1 }
 0x8af   :  { %v8842_v1 = vmul.f32 %v14129_v13, %v14637_v54 }
 0x8b0   :  { %v14137_v40 = vpop.f32.mrf.mxu1 }
 0x8b1   :  { %v8908_v10 = vmul.f32 %v8842_v1, %v14129_v13  ;;  %v8843_v0 = vmul.f32 %v14137_v40, %v14638_v62 }
 0x8b2   :  { %v14149_v55 = vpop.f32.mrf.mxu1 }
 0x8b3   :  { %v8858_v22 = vmul.f32 %v14149_v55, %v14637_v54  ;;  %v8909_v24 = vmul.f32 %v8843_v0, %v14137_v40 }
 0x8b4   :  { %v14160_v7 = vpop.f32.mrf.mxu1 }
 0x8b5   :  { %v8924_v34 = vmul.f32 %v8858_v22, %v14149_v55  ;;  %v8859_v15 = vmul.f32 %v14160_v7, %v14638_v62 }
 0x8b7   :  { %v8925_v49 = vmul.f32 %v8859_v15, %v14160_v7 }
 0x8c5   :  { %v14123_v9 = vpop.f32.mrf.mxu0 }
 0x8c6   :  { %v8840_v60 = vmul.f32 %v14123_v9, %v14635_v39 }
 0x8c7   :  { %v14125_v48 = vpop.f32.mrf.mxu0 }
 0x8c8   :  { %v8841_v47 = vmul.f32 %v14125_v48, %v14636_v17  ;;  %v8906_v42 = vmul.f32 %v8840_v60, %v14123_v9 }
 0x8c9   :  { %v14127_v63 = vpop.f32.mrf.mxu0 }
 0x8ca   :  { %v8856_v21 = vmul.f32 %v14127_v63, %v14635_v39  ;;  %v8907_v38 = vmul.f32 %v8841_v47, %v14125_v48  ;;  %v8872_v19 = vadd.f32 %v8841_v47, %v8840_v60 }
 0x8cb   :  { %v14135_v11 = vpop.f32.mrf.mxu0 }
 0x8cc   :  { %v8857_v61 = vmul.f32 %v14135_v11, %v14636_v17  ;;  %v8922_v44 = vmul.f32 %v8856_v21, %v14127_v63  ;;  %v8938_v59 = vadd.f32 %v8907_v38, %v8906_v42  ;;  %v8873_v18 = vadd.f32 %v8872_v19, %v8842_v1  ;;  %v14642_v38 = vld [vmem:[#allocation19_spill] sm:$0xff] }
 0x8ce   :  { %v8923_v33 = vmul.f32 %v8857_v61, %v14135_v11  ;;  %v8889_v3 = vadd.f32 %v8857_v61, %v8856_v21  ;;  %v8939_v12 = vadd.f32 %v8938_v59, %v8908_v10  ;;  %v8874_v27 = vadd.f32 %v8873_v18, %v8843_v0 }
 0x8d0   :  { %v8955_v52 = vadd.f32 %v8923_v33, %v8922_v44  ;;  %v8890_v36 = vadd.f32 %v8889_v3, %v8858_v22  ;;  %v8940_v50 = vadd.f32 %v8939_v12, %v8909_v24  ;;  %v14643_v22 = vld [vmem:[#allocation20_spill] sm:$0xff] }
 0x8d2   :  { %v8956_v14 = vadd.f32 %v8955_v52, %v8924_v34  ;;  %v8891_v43 = vadd.f32 %v8890_v36, %v8859_v15 }
 0x8d4   :  { %v8957_v23 = vadd.f32 %v8956_v14, %v8925_v49 }
 0x8de   :  { %v14166_v31 = vpop.f32.mrf.mxu1 }
 0x8df   :  { %v8846_v28 = vmul.f32 %v14166_v31, %v14641_v56 }
 0x8e0   :  { %v14179_v41 = vpop.f32.mrf.mxu1 }
 0x8e1   :  { %v8912_v42 = vmul.f32 %v8846_v28, %v14166_v31  ;;  %v8847_v1 = vmul.f32 %v14179_v41, %v14642_v38 }
 0x8e2   :  { %v14190_v51 = vpop.f32.mrf.mxu1 }
 0x8e3   :  { %v8862_v21 = vmul.f32 %v14190_v51, %v14641_v56  ;;  %v8913_v34 = vmul.f32 %v8847_v1, %v14179_v41 }
 0x8e4   :  { %v14200_v19 = vpop.f32.mrf.mxu1 }
 0x8e5   :  { %v8928_v18 = vmul.f32 %v8862_v21, %v14190_v51 }
 0x8e9   :  { %v14139_v30 = vpop.f32.mrf.mxu0 }
 0x8ea   :  { %v8844_v37 = vmul.f32 %v14139_v30, %v14639_v35 }
 0x8eb   :  { %v14151_v58 = vpop.f32.mrf.mxu0 }
 0x8ec   :  { %v8910_v29 = vmul.f32 %v8844_v37, %v14139_v30  ;;  %v8845_v32 = vmul.f32 %v14151_v58, %v14640_v6  ;;  %v8875_v8 = vadd.f32 %v8874_v27, %v8844_v37  ;;  %v8863_v37 = vmul.f32 %v14200_v19, %v14642_v38 }
 0x8ed   :  { %v14164_v20 = vpop.f32.mrf.mxu0 }
 0x8ee   :  { %v8860_v45 = vmul.f32 %v14164_v20, %v14639_v35  ;;  %v8941_v26 = vadd.f32 %v8940_v50, %v8910_v29  ;;  %v8911_v5 = vmul.f32 %v8845_v32, %v14151_v58  ;;  %v8876_v2 = vadd.f32 %v8875_v8, %v8845_v32 }
 0x8ef   :  { %v14177_v25 = vpop.f32.mrf.mxu0  ;;  %v8929_v49 = vmul.f32 %v8863_v37, %v14200_v19 }
 0x8f0   :  { %v8926_v57 = vmul.f32 %v8860_v45, %v14164_v20  ;;  %v8861_v4 = vmul.f32 %v14177_v25, %v14640_v6  ;;  %v8892_v53 = vadd.f32 %v8891_v43, %v8860_v45  ;;  %v8942_v61 = vadd.f32 %v8941_v26, %v8911_v5  ;;  %v14644_v45 = vld [vmem:[#allocation21_spill] sm:$0xff] }
 0x8f1   :  { %v8877_v33 = vadd.f32 %v8876_v2, %v8846_v28  ;;  %v14645_v28 = vld [vmem:[#allocation22_spill] sm:$0xff] }
 0x8f2   :  { %v8958_v60 = vadd.f32 %v8957_v23, %v8926_v57  ;;  %v8927_v47 = vmul.f32 %v8861_v4, %v14177_v25  ;;  %v8893_v44 = vadd.f32 %v8892_v53, %v8861_v4  ;;  %v8943_v52 = vadd.f32 %v8942_v61, %v8912_v42 }
 0x8f3   :  { %v8878_v24 = vadd.f32 %v8877_v33, %v8847_v1  ;;  %v14646_v33 = vld [vmem:[#allocation23_spill] sm:$0xff] }
 0x8f4   :  { %v8959_v3 = vadd.f32 %v8958_v60, %v8927_v47  ;;  %v8894_v15 = vadd.f32 %v8893_v44, %v8862_v21  ;;  %v8944_v50 = vadd.f32 %v8943_v52, %v8913_v34 }
 0x8f6   :  { %v8960_v14 = vadd.f32 %v8959_v3, %v8928_v18  ;;  %v8895_v43 = vadd.f32 %v8894_v15, %v8863_v37 }
 0x8f8   :  { %v8961_v2 = vadd.f32 %v8960_v14, %v8929_v49  ;;  %v14647_v49 = vld [vmem:[#allocation26_spill] sm:$0xff] }
 0x90d   :  { %v14182_v46 = vpop.f32.mrf.mxu0 }
 0x90e   :  { %v8848_v59 = vmul.f32 %v14182_v46, %v14643_v22 }
 0x90f   :  { %v14192_v16 = vpop.f32.mrf.mxu0  ;;  %v14206_v0 = vpop.f32.mrf.mxu1 }
 0x910   :  { %v8914_v36 = vmul.f32 %v8848_v59, %v14182_v46  ;;  %v8849_v27 = vmul.f32 %v14192_v16, %v14644_v45  ;;  %v8879_v8 = vadd.f32 %v8878_v24, %v8848_v59  ;;  %v8850_v23 = vmul.f32 %v14206_v0, %v14645_v28 }
 0x911   :  { %v14204_v10 = vpop.f32.mrf.mxu0  ;;  %v14219_v32 = vpop.f32.mrf.mxu1 }
 0x912   :  { %v8864_v12 = vmul.f32 %v14204_v10, %v14643_v22  ;;  %v8945_v26 = vadd.f32 %v8944_v50, %v8914_v36  ;;  %v8915_v5 = vmul.f32 %v8849_v27, %v14192_v16  ;;  %v8880_v47 = vadd.f32 %v8879_v8, %v8849_v27 }
 0x913   :  { %v14217_v29 = vpop.f32.mrf.mxu0  ;;  %v14228_v53 = vpop.f32.mrf.mxu1  ;;  %v8916_v44 = vmul.f32 %v8850_v23, %v14206_v0  ;;  %v8851_v59 = vmul.f32 %v14219_v32, %v14646_v33 }
 0x914   :  { %v8930_v57 = vmul.f32 %v8864_v12, %v14204_v10  ;;  %v8865_v4 = vmul.f32 %v14217_v29, %v14644_v45  ;;  %v8896_v60 = vadd.f32 %v8895_v43, %v8864_v12  ;;  %v8866_v42 = vmul.f32 %v14228_v53, %v14645_v28 }
 0x915   :  { %v8946_v1 = vadd.f32 %v8945_v26, %v8915_v5  ;;  %v14236_v3 = vpop.f32.mrf.mxu1  ;;  %v8881_v37 = vadd.f32 %v8880_v47, %v8850_v23  ;;  %v8917_v24 = vmul.f32 %v8851_v59, %v14219_v32  ;;  %v14648_v23 = vld [vmem:[#allocation27_spill] sm:$0xff] }
 0x916   :  { %v8962_v21 = vadd.f32 %v8961_v2, %v8930_v57  ;;  %v8931_v61 = vmul.f32 %v8865_v4, %v14217_v29  ;;  %v8897_v18 = vadd.f32 %v8896_v60, %v8865_v4  ;;  %v8932_v34 = vmul.f32 %v8866_v42, %v14228_v53 }
 0x917   :  { %v8867_v15 = vmul.f32 %v14236_v3, %v14646_v33  ;;  %v8947_v12 = vadd.f32 %v8946_v1, %v8916_v44  ;;  %v8882_v14 = vadd.f32 %v8881_v37, %v8851_v59 }
 0x918   :  { %v8963_v52 = vadd.f32 %v8962_v21, %v8931_v61  ;;  %v8898_v36 = vadd.f32 %v8897_v18, %v8866_v42  ;;  %v14649_v18 = vld [vmem:[#allocation28_spill] sm:$0xff] }
 0x919   :  { %v8933_v43 = vmul.f32 %v8867_v15, %v14236_v3  ;;  %v8948_v4 = vadd.f32 %v8947_v12, %v8917_v24 }
 0x91a   :  { %v8964_v8 = vadd.f32 %v8963_v52, %v8932_v34  ;;  %v8899_v60 = vadd.f32 %v8898_v36, %v8867_v15 }
 0x91c   :  { %v8965_v59 = vadd.f32 %v8964_v8, %v8933_v43 }
 0x937   :  { %v14242_v27 = vpop.f32.mrf.mxu0 }
 0x938   :  { %v8852_v50 = vmul.f32 %v14242_v27, %v14647_v49 }
 0x939   :  { %v14247_v57 = vpop.f32.mrf.mxu0 }
 0x93a   :  { %v8883_v26 = vadd.f32 %v8882_v14, %v8852_v50  ;;  %v8918_v5 = vmul.f32 %v8852_v50, %v14242_v27  ;;  %v8853_v2 = vmul.f32 %v14247_v57, %v14648_v23 }
 0x93b   :  { %v14252_v47 = vpop.f32.mrf.mxu0  ;;  %v14254_v21 = vpop.f32.mrf.mxu1 }
 0x93c   :  { %v8949_v61 = vadd.f32 %v8948_v4, %v8918_v5  ;;  %v8884_v42 = vadd.f32 %v8883_v26, %v8853_v2  ;;  %v8919_v1 = vmul.f32 %v8853_v2, %v14247_v57  ;;  %v8868_v44 = vmul.f32 %v14252_v47, %v14647_v49  ;;  %v14650_v4 = vld [vmem:[#allocation30_spill] sm:$0xff] }
 0x93d   :  { %v8854_v37 = vmul.f32 %v14254_v21, %v14649_v18  ;;  %v14261_v52 = vpop.f32.mrf.mxu0  ;;  %v14263_v34 = vpop.f32.mrf.mxu1 }
 0x93e   :  { %v8950_v15 = vadd.f32 %v8949_v61, %v8919_v1  ;;  %v8900_v12 = vadd.f32 %v8899_v60, %v8868_v44  ;;  %v8934_v24 = vmul.f32 %v8868_v44, %v14252_v47  ;;  %v8869_v36 = vmul.f32 %v14261_v52, %v14648_v23 }
 0x93f   :  { %v8885_v14 = vadd.f32 %v8884_v42, %v8854_v37  ;;  %v8920_v50 = vmul.f32 %v8854_v37, %v14254_v21  ;;  %v8855_v8 = vmul.f32 %v14263_v34, %v14650_v4  ;;  %v14271_v43 = vpop.f32.mrf.mxu1 }
 0x940   :  { %v8966_v26 = vadd.f32 %v8965_v59, %v8934_v24  ;;  %v8901_v5 = vadd.f32 %v8900_v12, %v8869_v36  ;;  %v8935_v2 = vmul.f32 %v8869_v36, %v14261_v52  ;;  %v8870_v60 = vmul.f32 %v14271_v43, %v14649_v18 }
 0x941   :  { %v8951_v61 = vadd.f32 %v8950_v15, %v8920_v50  ;;  %v8921_v1 = vmul.f32 %v8855_v8, %v14263_v34  ;;  %v14277_v44 = vpop.f32.mrf.mxu1  ;;  %v8886_v42 = vadd.f32 %v8885_v14, %v8855_v8 }
 0x942   :  { %v8967_v23 = vadd.f32 %v8966_v26, %v8935_v2  ;;  %v8902_v37 = vadd.f32 %v8901_v5, %v8870_v60  ;;  %v8936_v49 = vmul.f32 %v8870_v60, %v14271_v43  ;;  %v8871_v33 = vmul.f32 %v14277_v44, %v14650_v4 }
 0x943   :  { %8887 = vadd.xlane.f32.xlu0 %v8886_v42  ;;  %v8952_v36 = vadd.f32 %v8951_v61, %v8921_v1 }
 0x944   :  { %v8903_v59 = vadd.f32 %v8902_v37, %v8871_v33  ;;  %v8968_v12 = vadd.f32 %v8967_v23, %v8936_v49  ;;  %v8937_v24 = vmul.f32 %v8871_v33, %v14277_v44  ;;  %v9794_v23 = vld [vmem:[%s14419_s2 + $0x20] sm:$0xff] }
 0x946   :  { %8904 = vadd.xlane.f32.xlu1 %v8903_v59  ;;  %v8969_v15 = vadd.f32 %v8968_v12, %v8937_v24  ;;  %v9796_v59 = vld [vmem:[%s14420_s3 + $0x20] sm:$0xff]  ;;  %v9795_v12 = vld [vmem:[%s14419_s2 + $0x28] sm:$0xff]  ;;  %s10170_s2 = smov [#allocation9]  }
 0x947   :  { %8953 = vadd.xlane.f32.xlu0 %v8952_v36 }
 0x94b   :  { %8970 = vadd.xlane.f32.xlu0 %v8969_v15  ;;  %v9797_v15 = vld [vmem:[%s14420_s3 + $0x28] sm:$0xff]  ;;  %s9246_s3 = sshll.u32 %s10170_s2, 4  ;;  %s14403_s3 = int_to_ptr.vmem [resolvable:$true] %s9246_s3 }
 0x94c   :  { %s10133_s30 = scalar_lea.vmem %s14403_s3, 12288  ;;  %p10138_p6 = scmp.lt.s32.totalorder %s14403_s3, %s14403_s3 }
 0x94d   :  { %p10134_p5 = scmp.ne.s32.totalorder %s14403_s3, %s10133_s30  ;;  %p10139_p7 = scmp.lt.s32.totalorder %s10133_s30, %s10133_s30 }
 0x94f   :  { %p10140_p8 = por %p10139_p7, %p10138_p6 }
 0x951   :  { %p10141_p9 = pnand %p10140_p8, %p10134_p5 }
 0x9cc   :  { %v8888_v50 = vpop.xlane.xlu0 %8887 }
 0x9cd   :  { %v8972_v18 = vmul.f32 0.001953125, %v8888_v50 }
 0x9cf   :  { %v8905_v14 = vpop.xlane.xlu1 %8904  ;;  %v8976_v26 = vmul.f32 %v8972_v18, %v8972_v18 }
 0x9d0   :  { %v8954_v8 = vpop.xlane.xlu0 %8953  ;;  %v8973_v2 = vmul.f32 0.001953125, %v8905_v14 }
 0x9d1   :  { %v8974_v5 = vmul.f32 0.001953125, %v8954_v8 }
 0x9d2   :  { %v8977_v42 = vmul.f32 %v8973_v2, %v8973_v2 }
 0x9d3   :  { %v8978_v60 = vsub.f32 %v8974_v5, %v8976_v26 }
 0x9d4   :  { %v8971_v28 = vpop.xlane.xlu0 %8970 }
 0x9d5   :  { %v8983_v4 = vadd.f32 1e-05, %v8978_v60  ;;  %v8975_v37 = vmul.f32 0.001953125, %v8971_v28 }
 0x9d7   :  { %9993 = vrsqrt.f32 %v8983_v4  ;;  %v8979_v49 = vsub.f32 %v8975_v37, %v8977_v42 }
 0x9d9   :  { %v8984_v33 = vadd.f32 1e-05, %v8979_v49 }
 0x9db   :  { %9995 = vrsqrt.f32 %v8984_v33 }
 0x9e4   :  { %v9994_v61 = vpop.eup %9993 }
 0x9e5   :  { %v8987_v1 = vmul.f32 %v9994_v61, %v9794_v23 }
 0x9e7   :  { %8998 = vperm.xlu1 %9880, %v8987_v1   ;;  %v8992_v28 = vmul.f32 %v8987_v1, %v8972_v18 }
 0x9e8   :  { %v9996_v4 = vpop.eup %9995 }
 0x9e9   :  { %v8994_v24 = vsub.f32 %v9796_v59, %v8992_v28  ;;  %v8988_v36 = vmul.f32 %v9996_v4, %v9795_v12 }
 0x9eb   :  { %9040 = vperm.xlu1 %9880, %v8994_v24   ;;  %9003 = vperm.xlu0 %9881, %v8988_v36   ;;  %v8993_v50 = vmul.f32 %v8988_v36, %v8973_v2 }
 0x9ed   :  { %v8995_v14 = vsub.f32 %v9797_v15, %v8993_v50 }
 0x9ef   :  { %9045 = vperm.xlu1 %9880, %v8995_v14  }
 0xa62   :  { %v8999_v8 = vpop.permute.xlu1 %8998 }
 0xa63   :  { %v9006_v26 = vmul.f32 %v8999_v8, %v14123_v9  ;;  %v9007_v5 = vmul.f32 %v8999_v8, %v14125_v48  ;;  %v9008_v60 = vmul.f32 %v8999_v8, %v14129_v13  ;;  %v9009_v18 = vmul.f32 %v8999_v8, %v14137_v40 }
 0xa64   :  { %v9010_v42 = vmul.f32 %v8999_v8, %v14139_v30  ;;  %v9011_v37 = vmul.f32 %v8999_v8, %v14151_v58  ;;  %v9012_v49 = vmul.f32 %v8999_v8, %v14166_v31  ;;  %v9013_v33 = vmul.f32 %v8999_v8, %v14179_v41 }
 0xa65   :  { %v9014_v2 = vmul.f32 %v8999_v8, %v14182_v46  ;;  %v9015_v23 = vmul.f32 %v8999_v8, %v14192_v16  ;;  %v9016_v9 = vmul.f32 %v8999_v8, %v14206_v0  ;;  %v9017_v48 = vmul.f32 %v8999_v8, %v14219_v32 }
 0xa66   :  { %v9018_v13 = vmul.f32 %v8999_v8, %v14242_v27  ;;  %v9019_v40 = vmul.f32 %v8999_v8, %v14247_v57  ;;  %v9020_v30 = vmul.f32 %v8999_v8, %v14254_v21  ;;  %v9021_v58 = vmul.f32 %v8999_v8, %v14263_v34  ;;  %v9004_v61 = vpop.permute.xlu0 %9003 }
 0xa67   :  { %v14312_v31 = vmul.f32 %v9004_v61, %v14127_v63  ;;  %v14315_v41 = vmul.f32 %v9004_v61, %v14135_v11  ;;  %v14318_v46 = vmul.f32 %v9004_v61, %v14149_v55  ;;  %v14321_v16 = vmul.f32 %v9004_v61, %v14160_v7  ;;  %v9041_v11 = vpop.permute.xlu1 %9040 }
 0xa68   :  { %v14324_v0 = vmul.f32 %v9004_v61, %v14164_v20  ;;  %v14327_v32 = vmul.f32 %v9004_v61, %v14177_v25  ;;  %v14330_v27 = vmul.f32 %v9004_v61, %v14190_v51  ;;  %v14333_v63 = vmul.f32 %v9004_v61, %v14200_v19 }
 0xa69   :  { %v14336_v57 = vmul.f32 %v9004_v61, %v14204_v10  ;;  %v14339_v55 = vmul.f32 %v9004_v61, %v14217_v29  ;;  %v14342_v7 = vmul.f32 %v9004_v61, %v14228_v53  ;;  %v14345_v20 = vmul.f32 %v9004_v61, %v14236_v3 }
 0xa6a   :  { %v14348_v25 = vmul.f32 %v9004_v61, %v14252_v47  ;;  %v14351_v51 = vmul.f32 %v9004_v61, %v14261_v52  ;;  %v14354_v19 = vmul.f32 %v9004_v61, %v14271_v43  ;;  %v14357_v10 = vmul.f32 %v9004_v61, %v14277_v44  ;;  %v10079_v61 = vld [vmem:[#allocation9 + $0x110] sm:$0xff] }
 0xa6b   :  { %v9048_v29 = vadd.f32 %v9041_v11, %v9006_v26  ;;  %v9049_v21 = vadd.f32 %v9041_v11, %v9007_v5  ;;  %v9050_v34 = vadd.f32 %v9041_v11, %v9008_v60  ;;  %v9051_v53 = vadd.f32 %v9041_v11, %v9009_v18 }
 0xa6c   :  { %v9052_v1 = vadd.f32 %v9041_v11, %v9010_v42  ;;  %v9053_v59 = vadd.f32 %v9041_v11, %v9011_v37  ;;  %v9054_v3 = vadd.f32 %v9041_v11, %v9012_v49  ;;  %v9055_v12 = vadd.f32 %v9041_v11, %v9013_v33 }
 0xa6d   :  { %v9056_v28 = vadd.f32 %v9041_v11, %v9014_v2  ;;  %v9057_v47 = vadd.f32 %v9041_v11, %v9015_v23  ;;  %v9058_v4 = vadd.f32 %v9041_v11, %v9016_v9  ;;  %v9059_v24 = vadd.f32 %v9041_v11, %v9017_v48 }
 0xa6e   :  { %v9060_v52 = vadd.f32 %v9041_v11, %v9018_v13  ;;  %v9061_v36 = vadd.f32 %v9041_v11, %v9019_v40  ;;  %v9062_v15 = vadd.f32 %v9041_v11, %v9020_v30  ;;  %v9063_v43 = vadd.f32 %v9041_v11, %v9021_v58  ;;  %v10077_v13 = vld [vmem:[#allocation9 + $0x100] sm:$0xff]  ;;  %v10078_v30 = vld [vmem:[#allocation9 + $0x108] sm:$0xff] }
 0xa6f   :  { %v9080_v50 = vmax.f32 %v9048_v29, 0.0  ;;  %v9081_v14 = vmax.f32 %v9049_v21, 0.0  ;;  %v9082_v44 = vmax.f32 %v9050_v34, 0.0  ;;  %v9083_v8 = vmax.f32 %v9051_v53, 0.0  ;;  %v10080_v29 = vld [vmem:[#allocation9 + $0x118] sm:$0xff]  ;;  %v10081_v34 = vld [vmem:[#allocation9 + $0x120] sm:$0xff] }
 0xa70   :  { %v9084_v26 = vmax.f32 %v9052_v1, 0.0  ;;  %v9085_v5 = vmax.f32 %v9053_v59, 0.0  ;;  %v9086_v60 = vmax.f32 %v9054_v3, 0.0  ;;  %v9087_v18 = vmax.f32 %v9055_v12, 0.0  ;;  %v10082_v1 = vld [vmem:[#allocation9 + $0x128] sm:$0xff]  ;;  %v10083_v3 = vld [vmem:[#allocation9 + $0x130] sm:$0xff] }
 0xa71   :  { %v9088_v42 = vmax.f32 %v9056_v28, 0.0  ;;  %v9089_v37 = vmax.f32 %v9057_v47, 0.0  ;;  %v9090_v49 = vmax.f32 %v9058_v4, 0.0  ;;  %v9091_v33 = vmax.f32 %v9059_v24, 0.0  ;;  %v10084_v28 = vld [vmem:[#allocation9 + $0x138] sm:$0xff]  ;;  %v10085_v4 = vld [vmem:[#allocation9 + $0x140] sm:$0xff] }
 0xa72   :  { %v9092_v2 = vmax.f32 %v9060_v52, 0.0  ;;  %v9093_v23 = vmax.f32 %v9061_v36, 0.0  ;;  %v9094_v9 = vmax.f32 %v9062_v15, 0.0  ;;  %v9095_v48 = vmax.f32 %v9063_v43, 0.0  ;;  %v10086_v52 = vld [vmem:[#allocation9 + $0x148] sm:$0xff]  ;;  %v10087_v15 = vld [vmem:[#allocation9 + $0x150] sm:$0xff] }
 0xa73   :  { %v9144_v40 = vadd.f32 %v10077_v13, %v9080_v50  ;;  %v9145_v58 = vadd.f32 %v10078_v30, %v9081_v14  ;;  %v9146_v11 = vadd.f32 %v10079_v61, %v9082_v44  ;;  %v9147_v21 = vadd.f32 %v10080_v29, %v9083_v8  ;;  %v10088_v50 = vld [vmem:[#allocation9 + $0x158] sm:$0xff]  ;;  %v10089_v13 = vld [vmem:[#allocation9 + $0x160] sm:$0xff]  ;;  %v10090_v30 = vld [vmem:[#allocation9 + $0x168] sm:$0xff] }
 0xa74   :  { %v9148_v53 = vadd.f32 %v10081_v34, %v9084_v26  ;;  %v9149_v59 = vadd.f32 %v10082_v1, %v9085_v5  ;;  %v9150_v12 = vadd.f32 %v10083_v3, %v9086_v60  ;;  %v9151_v47 = vadd.f32 %v10084_v28, %v9087_v18  ;;  %v10091_v61 = vld [vmem:[#allocation9 + $0x170] sm:$0xff]  ;;  %v10092_v29 = vld [vmem:[#allocation9 + $0x178] sm:$0xff]  ;;  %v9046_v34 = vpop.permute.xlu1 %9045 }
 0xa75   :  { %v9152_v24 = vadd.f32 %v10085_v4, %v9088_v42  ;;  %v9153_v36 = vadd.f32 %v10086_v52, %v9089_v37  ;;  %v9154_v43 = vadd.f32 %v10087_v15, %v9090_v49  ;;  %v9155_v14 = vadd.f32 %v10088_v50, %v9091_v33 }
 0xa76   :  { %v9156_v44 = vadd.f32 %v10089_v13, %v9092_v2  ;;  %v9157_v8 = vadd.f32 %v10090_v30, %v9093_v23  ;;  %v9158_v26 = vadd.f32 %v10091_v61, %v9094_v9  ;;  %v9159_v5 = vadd.f32 %v10092_v29, %v9095_v48 }
 0xa77   :  { %v9176_v60 = vmul.f32 %v9144_v40, %v14635_v39  ;;  %v9177_v18 = vmul.f32 %v9145_v58, %v14636_v17  ;;  %v9178_v42 = vmul.f32 %v9146_v11, %v14637_v54  ;;  %v9179_v37 = vmul.f32 %v9147_v21, %v14638_v62  ;;  %v14651_v40 = vld [vmem:[#allocation22_spill] sm:$0xff]  ;;  %v14652_v58 = vld [vmem:[#allocation23_spill] sm:$0xff] }
 0xa78   :  { %v9180_v49 = vmul.f32 %v9148_v53, %v14639_v35  ;;  %v9181_v33 = vmul.f32 %v9149_v59, %v14640_v6  ;;  %v9182_v2 = vmul.f32 %v9150_v12, %v14641_v56  ;;  %v9183_v23 = vmul.f32 %v9151_v47, %v14642_v38  ;;  %v14653_v11 = vld [vmem:[#allocation26_spill] sm:$0xff]  ;;  %v14654_v53 = vld [vmem:[#allocation27_spill] sm:$0xff]  ;;  %v14655_v12 = vld [vmem:[#allocation28_spill] sm:$0xff] }
 0xa79   :  { %v9184_v9 = vmul.f32 %v9152_v24, %v14643_v22  ;;  %v9185_v48 = vmul.f32 %v9153_v36, %v14644_v45  ;;  %v9186_v1 = vmul.f32 %v9154_v43, %v14651_v40  ;;  %v9187_v3 = vmul.f32 %v9155_v14, %v14652_v58  ;;  %9209 = vst [vmem:[#allocation9 + $0x200] sm:$0xff] %v9176_v60  ;;  %v14656_v47 = vld [vmem:[#allocation30_spill] sm:$0xff] }
 0xa7a   :  { %9210 = vst [vmem:[#allocation9 + $0x208] sm:$0xff] %v9177_v18  ;;  %9211 = vst [vmem:[#allocation9 + $0x210] sm:$0xff] %v9178_v42  ;;  %v9188_v21 = vmul.f32 %v9156_v44, %v14653_v11  ;;  %v9189_v59 = vmul.f32 %v9157_v8, %v14654_v53  ;;  %v9190_v28 = vmul.f32 %v9158_v26, %v14655_v12 }
 0xa7b   :  { %9212 = vst [vmem:[#allocation9 + $0x218] sm:$0xff] %v9179_v37  ;;  %v9191_v4 = vmul.f32 %v9159_v5, %v14656_v47  ;;  %9213 = vst [vmem:[#allocation9 + $0x220] sm:$0xff] %v9180_v49  ;;  %v9064_v24 = vadd.f32 %v9046_v34, %v14312_v31  ;;  %v9065_v52 = vadd.f32 %v9046_v34, %v14315_v41  ;;  %v10093_v37 = vld [vmem:[#allocation9 + $0x180] sm:$0xff]  ;;  %v10094_v49 = vld [vmem:[#allocation9 + $0x188] sm:$0xff] }
 0xa7c   :  { %9214 = vst [vmem:[#allocation9 + $0x228] sm:$0xff] %v9181_v33  ;;  %9215 = vst [vmem:[#allocation9 + $0x230] sm:$0xff] %v9182_v2  ;;  %v9066_v36 = vadd.f32 %v9046_v34, %v14318_v46  ;;  %v9067_v15 = vadd.f32 %v9046_v34, %v14321_v16  ;;  %v9068_v43 = vadd.f32 %v9046_v34, %v14324_v0  ;;  %v10095_v33 = vld [vmem:[#allocation9 + $0x190] sm:$0xff] }
 0xa7d   :  { %9216 = vst [vmem:[#allocation9 + $0x238] sm:$0xff] %v9183_v23  ;;  %9217 = vst [vmem:[#allocation9 + $0x240] sm:$0xff] %v9184_v9  ;;  %v9069_v50 = vadd.f32 %v9046_v34, %v14327_v32  ;;  %v9070_v14 = vadd.f32 %v9046_v34, %v14330_v27  ;;  %v9071_v13 = vadd.f32 %v9046_v34, %v14333_v63  ;;  %v9096_v8 = vmax.f32 %v9064_v24, 0.0  ;;  %v10096_v23 = vld [vmem:[#allocation9 + $0x198] sm:$0xff]  ;;  %v10097_v9 = vld [vmem:[#allocation9 + $0x1a0] sm:$0xff] }
 0xa7e   :  { %9218 = vst [vmem:[#allocation9 + $0x248] sm:$0xff] %v9185_v48  ;;  %9219 = vst [vmem:[#allocation9 + $0x250] sm:$0xff] %v9186_v1  ;;  %v9072_v31 = vadd.f32 %v9046_v34, %v14336_v57  ;;  %v9073_v41 = vadd.f32 %v9046_v34, %v14339_v55  ;;  %v9074_v46 = vadd.f32 %v9046_v34, %v14342_v7  ;;  %v9097_v27 = vmax.f32 %v9065_v52, 0.0  ;;  %v10098_v1 = vld [vmem:[#allocation9 + $0x1a8] sm:$0xff]  ;;  %v10101_v24 = vld [vmem:[#allocation9 + $0x1c0] sm:$0xff] }
 0xa7f   :  { %9220 = vst [vmem:[#allocation9 + $0x258] sm:$0xff] %v9187_v3  ;;  %9221 = vst [vmem:[#allocation9 + $0x260] sm:$0xff] %v9188_v21  ;;  %v9075_v16 = vadd.f32 %v9046_v34, %v14345_v20  ;;  %v9076_v44 = vadd.f32 %v9046_v34, %v14348_v25  ;;  %v9077_v30 = vadd.f32 %v9046_v34, %v14351_v51  ;;  %v9098_v61 = vmax.f32 %v9066_v36, 0.0  ;;  %v10099_v21 = vld [vmem:[#allocation9 + $0x1b0] sm:$0xff]  ;;  %v10102_v36 = vld [vmem:[#allocation9 + $0x1c8] sm:$0xff] }
 0xa80   :  { %9222 = vst [vmem:[#allocation9 + $0x268] sm:$0xff] %v9189_v59  ;;  %9223 = vst [vmem:[#allocation9 + $0x270] sm:$0xff] %v9190_v28  ;;  %v9078_v0 = vadd.f32 %v9046_v34, %v14354_v19  ;;  %v9079_v32 = vadd.f32 %v9046_v34, %v14357_v10  ;;  %v9099_v63 = vmax.f32 %v9067_v15, 0.0  ;;  %v9100_v26 = vmax.f32 %v9068_v43, 0.0  ;;  %v10100_v28 = vld [vmem:[#allocation9 + $0x1b8] sm:$0xff]  ;;  %v10103_v43 = vld [vmem:[#allocation9 + $0x1d0] sm:$0xff] }
 0xa81   :  { %9224 = vst [vmem:[#allocation9 + $0x278] sm:$0xff] %v9191_v4  ;;  %v9101_v57 = vmax.f32 %v9069_v50, 0.0  ;;  %v9102_v29 = vmax.f32 %v9070_v14, 0.0  ;;  %v9103_v55 = vmax.f32 %v9071_v13, 0.0  ;;  %v9104_v5 = vmax.f32 %v9072_v31, 0.0  ;;  %v10104_v14 = vld [vmem:[#allocation9 + $0x1d8] sm:$0xff] }
 0xa82   :  { %v9105_v7 = vmax.f32 %v9073_v41, 0.0  ;;  %v9106_v60 = vmax.f32 %v9074_v46, 0.0  ;;  %v9107_v20 = vmax.f32 %v9075_v16, 0.0  ;;  %v9108_v18 = vmax.f32 %v9076_v44, 0.0  ;;  %v10105_v31 = vld [vmem:[#allocation9 + $0x1e0] sm:$0xff]  ;;  %v10106_v46 = vld [vmem:[#allocation9 + $0x1e8] sm:$0xff] }
 0xa83   :  { %v9109_v25 = vmax.f32 %v9077_v30, 0.0  ;;  %v9110_v42 = vmax.f32 %v9078_v0, 0.0  ;;  %v9111_v51 = vmax.f32 %v9079_v32, 0.0  ;;  %v9160_v19 = vadd.f32 %v10093_v37, %v9096_v8  ;;  %v10107_v44 = vld [vmem:[#allocation9 + $0x1f0] sm:$0xff]  ;;  %v10108_v0 = vld [vmem:[#allocation9 + $0x1f8] sm:$0xff] }
 0xa84   :  { %v9161_v10 = vadd.f32 %v10094_v49, %v9097_v27  ;;  %v9162_v2 = vadd.f32 %v10095_v33, %v9098_v61  ;;  %v9163_v34 = vadd.f32 %v10096_v23, %v9099_v63  ;;  %v9164_v48 = vadd.f32 %v10097_v9, %v9100_v26 }
 0xa85   :  { %v9165_v3 = vadd.f32 %v10098_v1, %v9101_v57  ;;  %v9166_v59 = vadd.f32 %v10099_v21, %v9102_v29  ;;  %v9167_v4 = vadd.f32 %v10100_v28, %v9103_v55  ;;  %v9168_v52 = vadd.f32 %v10101_v24, %v9104_v5 }
 0xa86   :  { %v9169_v15 = vadd.f32 %v10102_v36, %v9105_v7  ;;  %v9170_v50 = vadd.f32 %v10103_v43, %v9106_v60  ;;  %v9171_v13 = vadd.f32 %v10104_v14, %v9107_v20  ;;  %v9172_v41 = vadd.f32 %v10105_v31, %v9108_v18 }
 0xa87   :  { %v9173_v16 = vadd.f32 %v10106_v46, %v9109_v25  ;;  %v9174_v30 = vadd.f32 %v10107_v44, %v9110_v42  ;;  %v9175_v32 = vadd.f32 %v10108_v0, %v9111_v51  ;;  %v9192_v8 = vmul.f32 %v9160_v19, %v14635_v39 }
 0xa88   :  { %v9193_v27 = vmul.f32 %v9161_v10, %v14636_v17  ;;  %v9194_v61 = vmul.f32 %v9162_v2, %v14637_v54  ;;  %v9195_v63 = vmul.f32 %v9163_v34, %v14638_v62  ;;  %v9196_v26 = vmul.f32 %v9164_v48, %v14639_v35 }
 0xa89   :  { %v9197_v57 = vmul.f32 %v9165_v3, %v14640_v6  ;;  %v9198_v29 = vmul.f32 %v9166_v59, %v14641_v56  ;;  %v9199_v55 = vmul.f32 %v9167_v4, %v14642_v38  ;;  %v9200_v5 = vmul.f32 %v9168_v52, %v14643_v22  ;;  %9225 = vst [vmem:[#allocation9 + $0x280] sm:$0xff] %v9192_v8 }
 0xa8a   :  { %v9201_v7 = vmul.f32 %v9169_v15, %v14644_v45  ;;  %v9202_v39 = vmul.f32 %v9170_v50, %v14651_v40  ;;  %v9203_v17 = vmul.f32 %v9171_v13, %v14652_v58  ;;  %9226 = vst [vmem:[#allocation9 + $0x288] sm:$0xff] %v9193_v27  ;;  %9227 = vst [vmem:[#allocation9 + $0x290] sm:$0xff] %v9194_v61 }
 0xa8b   :  { %9228 = vst [vmem:[#allocation9 + $0x298] sm:$0xff] %v9195_v63  ;;  %v9204_v54 = vmul.f32 %v9172_v41, %v14653_v11  ;;  %v9205_v62 = vmul.f32 %v9173_v16, %v14654_v53  ;;  %v9206_v35 = vmul.f32 %v9174_v30, %v14655_v12  ;;  %v9207_v6 = vmul.f32 %v9175_v32, %v14656_v47 }
 0xa8c   :  { %9229 = vst [vmem:[#allocation9 + $0x2a0] sm:$0xff] %v9196_v26  ;;  %9230 = vst [vmem:[#allocation9 + $0x2a8] sm:$0xff] %v9197_v57 }
 0xa8d   :  { %9231 = vst [vmem:[#allocation9 + $0x2b0] sm:$0xff] %v9198_v29  ;;  %9232 = vst [vmem:[#allocation9 + $0x2b8] sm:$0xff] %v9199_v55 }
 0xa8e   :  { %9233 = vst [vmem:[#allocation9 + $0x2c0] sm:$0xff] %v9200_v5  ;;  %9234 = vst [vmem:[#allocation9 + $0x2c8] sm:$0xff] %v9201_v7 }
 0xa8f   :  { %9235 = vst [vmem:[#allocation9 + $0x2d0] sm:$0xff] %v9202_v39  ;;  %9236 = vst [vmem:[#allocation9 + $0x2d8] sm:$0xff] %v9203_v17 }
 0xa90   :  { %9237 = vst [vmem:[#allocation9 + $0x2e0] sm:$0xff] %v9204_v54  ;;  %9238 = vst [vmem:[#allocation9 + $0x2e8] sm:$0xff] %v9205_v62 }
 0xa91   :  { %9239 = vst [vmem:[#allocation9 + $0x2f0] sm:$0xff] %v9206_v35  ;;  %9240 = vst [vmem:[#allocation9 + $0x2f8] sm:$0xff] %v9207_v6 }
 0xa92   :  { %10144 = shalt.err (!%p10141_p9)
}
 0xa93   :  { %s10171_s6 = smov 2048   ;;  %s10172_s7 = smov 128  }
 0xa94   :  { %9252 = dma.vmem_to_hbm [thread:$0]  %s14403_s3, 12288, %s14422_s5, [#allocation8], %s10171_s6, %s10171_s6, %s10172_s7  }
 0xa95   :  { %10155 = dma.done.wait [#allocation8], 12288  }
 0xa96   :  { %10156 = vsyncadd [#allocation8], 4294955008 }
 0xa97   :  { %9256 = vsyncpa [#allocation7], 1 }
 0xa98   :  { %9257 = vsyncpa [#allocation8], 1 }

</bundles_post_ra>
